<compile_context>
chip_gen: v7x
topology: tpu7x:2x2x1
jax: 0.10.0
libtpu: 0.0.40
codegen_flags: <defaults>
</compile_context>

<pallas_src>
import functools

import numpy as np

import jax
import jax.numpy as jnp
from jax import lax
from jax.experimental import pallas as pl
from jax.experimental.pallas import tpu as pltpu


def _dcunit_conv_kernel(x_ref, w_ref, yc_ref, stats_ref, *,
                        S, T, Mh, Mw, Cin, Cout, row0, col0):
    """Per-image polyphase transposed conv + centered BN partial statistics.

    x_ref:     (1, Hp, Wp, Cin)            bf16  halo-padded NHWC image
    w_ref:     (S*S, T*T*Cin, Cout)        bf16  per-phase flattened weights
    yc_ref:    (1, Mh*Mw, S*S*Cout)        bf16  phase-folded conv output
    stats_ref: (1, 2, Cout)                f32   row 0 = sum, row 1 = centered sum-sq
    """
    M = Mh * Mw
    ys = []
    # Unrolled over the S*S output phases: all offsets below are Python constants.
    for rh in range(S):
        for rw in range(S):
            p = rh * S + rw
            r0 = row0[rh]
            c0 = col0[rw]
            taps = []
            for th in range(T):
                for tw in range(T):
                    # Static slice of the (halo-padded) image: (Mh, Mw, Cin).
                    taps.append(x_ref[0, pl.ds(r0 + th, Mh), pl.ds(c0 + tw, Mw), :])
            # Register-built im2col patch: lane concat + leading-dim collapse.
            patch = jnp.concatenate(taps, axis=-1).reshape(M, T * T * Cin)
            # One MXU matmul per phase: bf16 operands, f32 accumulation.
            ys.append(jnp.dot(patch, w_ref[p], preferred_element_type=jnp.float32))

    # Centered per-image BatchNorm partials (combined across images in the wrapper).
    s = ys[0].sum(axis=0, keepdims=True)                      # (1, Cout) f32
    for y in ys[1:]:
        s = s + y.sum(axis=0, keepdims=True)
    mu = s * (1.0 / float(S * S * M))
    m2 = jnp.zeros_like(s)
    for y in ys:
        d = y - mu
        m2 = m2 + (d * d).sum(axis=0, keepdims=True)
    stats_ref[0, 0:1, :] = s
    stats_ref[0, 1:2, :] = m2

    # Single lane-folded store of the whole image: (Mh*Mw, S*S*Cout), bf16.
    yc_ref[0] = jnp.concatenate(ys, axis=-1).astype(yc_ref.dtype)


def dcunit_forward(x_nchw, weight, bias, gamma, beta, *, stride, padding, eps=1e-5):
    """DCUnit forward. x_nchw: (N,Cin,H,W); weight: (Cin,Cout,K,K) PyTorch layout."""
    N, Cin, H, W = x_nchw.shape
    Cin_w, Cout, K, K2 = weight.shape
    assert Cin == Cin_w and K == K2
    S, P = int(stride), int(padding)

    Ho = (H - 1) * S - 2 * P + K
    Wo = (W - 1) * S - 2 * P + K
    # TODO(synk): (K - 2*padding) % stride != 0 needs ragged per-phase outputs; not
    # implemented (standard DCGAN configs such as 4/2/1 and 4/1/0 are covered).
    assert Ho % S == 0 and Wo % S == 0, "unsupported (kernel, stride, padding)"
    Mh, Mw = Ho // S, Wo // S           # per-phase output grid
    T = -(-K // S)                      # taps per phase per axis
    TTC = T * T * Cin                   # im2col contraction length

    # Polyphase geometry (same formula for H and W since stride/padding are shared).
    q = [(r + P) // S for r in range(S)]            # first-tap offset per phase
    pad_lo = max(0, max(T - 1 - v for v in q))
    pad_hi_h = max(0, Mh + max(q) - H)
    pad_hi_w = max(0, Mw + max(q) - W)
    Hp = H + pad_lo + pad_hi_h
    Wp = W + pad_lo + pad_hi_w
    row0 = tuple(v - (T - 1) + pad_lo for v in q)
    col0 = tuple(v - (T - 1) + pad_lo for v in q)
    # Host-side bounds check: every static tap slice stays inside the padded image.
    for r0 in row0:
        assert 0 <= r0 and r0 + (T - 1) + Mh <= Hp
    for c0 in col0:
        assert 0 <= c0 and c0 + (T - 1) + Mw <= Wp

    # --- glue: NCHW -> NHWC (channels on lanes) + tiny halo pad, bf16 ---
    # TODO(synk): accept NHWC at the API boundary; for tiny Cin a (N,Hp,Wp*Cin)
    # lane-folded input would make the halo DMA/tap loads lane-dense at the cost of
    # per-tap relayouts.
    x = jnp.transpose(x_nchw, (0, 2, 3, 1)).astype(jnp.bfloat16)
    xp = jnp.pad(x, ((0, 0), (pad_lo, pad_hi_h), (pad_lo, pad_hi_w), (0, 0)))

    # Per-phase flattened weights (S*S, T*T*Cin, Cout) via ONE vectorized gather:
    # spatially flipped taps, zero row (index K of the padded kernel) for taps that
    # fall outside the K*K kernel.  (Precompute once per layer in real use.)
    w_pad = jnp.pad(weight.astype(jnp.float32), ((0, 0), (0, 0), (0, 1), (0, 1)))
    k_idx = np.full((S, T), K, dtype=np.int32)
    for r in range(S):
        a = (r + P) % S
        for t in range(T):
            k = a + S * (T - 1 - t)
            if k < K:
                k_idx[r, t] = k
    KH = np.broadcast_to(k_idx[:, None, :, None], (S, S, T, T)).reshape(S * S, T * T)
    KW = np.broadcast_to(k_idx[None, :, None, :], (S, S, T, T)).reshape(S * S, T * T)
    w_phase = w_pad[:, :, KH, KW]                                # (Cin, Cout, S*S, T*T)
    w_phase = jnp.transpose(w_phase, (2, 3, 0, 1)).reshape(S * S, TTC, Cout)
    w_phase = w_phase.astype(jnp.bfloat16)

    kern = functools.partial(_dcunit_conv_kernel, S=S, T=T, Mh=Mh, Mw=Mw,
                             Cin=Cin, Cout=Cout, row0=row0, col0=col0)
    yc, stats = pl.pallas_call(
        kern,
        out_shape=(
            jax.ShapeDtypeStruct((N, Mh * Mw, S * S * Cout), jnp.bfloat16),
            jax.ShapeDtypeStruct((N, 2, Cout), jnp.float32),
        ),
        grid=(N,),
        in_specs=[
            pl.BlockSpec((1, Hp, Wp, Cin), lambda n: (n, 0, 0, 0)),
            pl.BlockSpec((S * S, TTC, Cout), lambda n: (0, 0, 0)),   # resident weights
        ],
        out_specs=(
            pl.BlockSpec((1, Mh * Mw, S * S * Cout), lambda n: (n, 0, 0)),
            pl.BlockSpec((1, 2, Cout), lambda n: (n, 0, 0)),
        ),
        compiler_params=pltpu.CompilerParams(
            dimension_semantics=("parallel",),
            vmem_limit_bytes=32 * 1024 * 1024),   # per-step usage <1 MiB; fits v7x 64 MiB
    )(xp, w_phase)

    # --- global BatchNorm batch stats: parallel-variance combine of centered partials ---
    cnt_i = float(S * S * Mh * Mw)                 # elements per image
    total = float(N) * cnt_i
    sums = stats[:, 0, :]                          # (N, Cout)
    m2s = stats[:, 1, :]                           # (N, Cout)
    grand_mean = jnp.sum(sums, axis=0) / total
    mean_i = sums / cnt_i
    var = (jnp.sum(m2s, axis=0)
           + cnt_i * jnp.sum((mean_i - grand_mean[None, :]) ** 2, axis=0)) / total
    var = jnp.maximum(var, 0.0)
    scale = gamma.astype(jnp.float32) * lax.rsqrt(var + eps)
    shift = beta.astype(jnp.float32) - grand_mean * scale
    # NOTE: the per-channel ConvTranspose bias is cancelled exactly by the batch-mean
    # subtraction of train-mode BatchNorm, so `bias` is intentionally unused.
    del bias

    # --- normalize + ReLU fused with the phase -> NCHW un-fold (one elementwise+transpose) ---
    y6 = yc.reshape(N, Mh, Mw, S, S, Cout).astype(jnp.float32)     # (n, mh, mw, rh, rw, c)
    y6 = jnp.maximum(y6 * scale + shift, 0.0)
    out = jnp.transpose(y6, (0, 5, 1, 3, 2, 4)).reshape(N, Cout, Ho, Wo)
    return out


def dcunit_reference(x, weight, bias, gamma, beta, *, stride, padding, eps=1e-5):
    """Pure-JAX reference (lax conv with lhs_dilation == conv transpose), all f32."""
    Cin, Cout, K, _ = weight.shape
    pad = K - 1 - padding
    rhs = jnp.flip(weight, axis=(2, 3)).transpose(1, 0, 2, 3)      # (Cout, Cin, K, K)
    y = lax.conv_general_dilated(
        x.astype(jnp.float32), rhs.astype(jnp.float32),
        window_strides=(1, 1),
        padding=((pad, pad), (pad, pad)),
        lhs_dilation=(stride, stride),
        dimension_numbers=("NCHW", "OIHW", "NCHW"))
    y = y + bias[None, :, None, None]
    mean = jnp.mean(y, axis=(0, 2, 3), keepdims=True)
    var = jnp.mean((y - mean) ** 2, axis=(0, 2, 3), keepdims=True)
    y = (y - mean) * lax.rsqrt(var + eps)
    y = y * gamma[None, :, None, None] + beta[None, :, None, None]
    return jnp.maximum(y, 0.0)


if __name__ == "__main__":
    key = jax.random.PRNGKey(0)
    k_x, k_w, k_b = jax.random.split(key, 3)

    # DCGAN-style config: DCUnit(in=4, out=8, kernel=4, stride=2, padding=1)
    N, Cin, H, W = 2, 4, 16, 16
    Cout, K, S, P = 8, 4, 2, 1

    x = jax.random.normal(k_x, (N, Cin, H, W), jnp.float32)
    fan = Cin * K * K
    weight = jax.random.normal(k_w, (Cin, Cout, K, K), jnp.float32) / jnp.sqrt(fan)
    bias = jax.random.normal(k_b, (Cout,), jnp.float32) * 0.1
    gamma = jnp.ones((Cout,), jnp.float32)    # BatchNorm2d default affine weight
    beta = jnp.zeros((Cout,), jnp.float32)    # BatchNorm2d default affine bias
    # TODO(synk): BatchNorm running_mean/running_var buffer updates (training-time
    # side effect) are not modeled; forward uses batch statistics as train() does.

    fwd = jax.jit(functools.partial(dcunit_forward, stride=S, padding=P))
    out = jax.block_until_ready(fwd(x, weight, bias, gamma, beta))

    ref = dcunit_reference(x, weight, bias, gamma, beta, stride=S, padding=P)
    Ho, Wo = (H - 1) * S - 2 * P + K, (W - 1) * S - 2 * P + K
    assert out.shape == (N, Cout, Ho, Wo)
    # bf16 MXU operands / bf16 intermediate (f32 accumulation, f32 BN stats) ->
    # tolerance loosened vs. the pure-f32 reference.
    max_err = float(jnp.max(jnp.abs(out - ref)))
    assert jnp.allclose(out, ref, atol=3e-2, rtol=3e-2), max_err

    print("KERNEL_OK")
</pallas_src>

<mosaic_0001>
module attributes {stable_mosaic.version = 11 : i64} {
  func.func @_dcunit_conv_kernel(%arg0: i32, %arg1: memref<1x18x18x4xbf16, #tpu.memory_space<vmem>>, %arg2: memref<4x16x8xbf16, #tpu.memory_space<vmem>>, %arg3: memref<1x256x32xbf16, #tpu.memory_space<vmem>>, %arg4: memref<1x2x8xf32, #tpu.memory_space<vmem>>) attributes {dimension_semantics = [#tpu.dimension_semantics<parallel>], iteration_bounds = array<i64: 2>, scalar_prefetch = 0 : i64, scratch_operands = 0 : i64, tpu.core_type = #tpu.core_type<tc>, window_params = [{transform_indices = @transform_0, window_bounds = array<i64: 1, 18, 18, 4>}, {pipeline_mode = #tpu.pipeline_mode<synchronous>, transform_indices = @transform_1, window_bounds = array<i64: 4, 16, 8>}, {transform_indices = @transform_2, window_bounds = array<i64: 1, 256, 32>}, {transform_indices = @transform_3, window_bounds = array<i64: 1, 2, 8>}]} {
    %c0 = arith.constant 0 : index
    %c0_0 = arith.constant 0 : index
    %c0_1 = arith.constant 0 : index
    %c0_2 = arith.constant 0 : index
    %0 = vector.load %arg1[%c0, %c0_0, %c0_1, %c0_2] : memref<1x18x18x4xbf16, #tpu.memory_space<vmem>>, vector<1x16x16x4xbf16>
    %1 = vector.shape_cast %0 : vector<1x16x16x4xbf16> to vector<16x16x4xbf16>
    %c0_3 = arith.constant 0 : index
    %c0_4 = arith.constant 0 : index
    %c1 = arith.constant 1 : index
    %c0_5 = arith.constant 0 : index
    %2 = vector.load %arg1[%c0_3, %c0_4, %c1, %c0_5] : memref<1x18x18x4xbf16, #tpu.memory_space<vmem>>, vector<1x16x16x4xbf16>
    %3 = vector.shape_cast %2 : vector<1x16x16x4xbf16> to vector<16x16x4xbf16>
    %c0_6 = arith.constant 0 : index
    %c1_7 = arith.constant 1 : index
    %c0_8 = arith.constant 0 : index
    %c0_9 = arith.constant 0 : index
    %4 = vector.load %arg1[%c0_6, %c1_7, %c0_8, %c0_9] : memref<1x18x18x4xbf16, #tpu.memory_space<vmem>>, vector<1x16x16x4xbf16>
    %5 = vector.shape_cast %4 : vector<1x16x16x4xbf16> to vector<16x16x4xbf16>
    %c0_10 = arith.constant 0 : index
    %c1_11 = arith.constant 1 : index
    %c1_12 = arith.constant 1 : index
    %c0_13 = arith.constant 0 : index
    %6 = vector.load %arg1[%c0_10, %c1_11, %c1_12, %c0_13] : memref<1x18x18x4xbf16, #tpu.memory_space<vmem>>, vector<1x16x16x4xbf16>
    %7 = vector.shape_cast %6 : vector<1x16x16x4xbf16> to vector<16x16x4xbf16>
    %8 = tpu.concatenate %1, %3, %5, %7 in 2 : vector<16x16x4xbf16>, vector<16x16x4xbf16>, vector<16x16x4xbf16>, vector<16x16x4xbf16> -> vector<16x16x16xbf16>
    %9 = vector.shape_cast %8 : vector<16x16x16xbf16> to vector<256x16xbf16>
    %c0_14 = arith.constant 0 : index
    %c0_15 = arith.constant 0 : index
    %c0_16 = arith.constant 0 : index
    %10 = vector.load %arg2[%c0_14, %c0_15, %c0_16] : memref<4x16x8xbf16, #tpu.memory_space<vmem>>, vector<1x16x8xbf16>
    %11 = vector.shape_cast %10 : vector<1x16x8xbf16> to vector<16x8xbf16>
    %cst = arith.constant dense<0.000000e+00> : vector<256x8xf32>
    %12 = tpu.matmul %9, %11, %cst {dimension_numbers = #tpu.dot_dimension_numbers<[1], [0], [0], [1], [0, 0, 1, 1], [], []>} : vector<256x16xbf16>, vector<16x8xbf16>, vector<256x8xf32> -> vector<256x8xf32>
    %c0_17 = arith.constant 0 : index
    %c0_18 = arith.constant 0 : index
    %c1_19 = arith.constant 1 : index
    %c0_20 = arith.constant 0 : index
    %13 = vector.load %arg1[%c0_17, %c0_18, %c1_19, %c0_20] : memref<1x18x18x4xbf16, #tpu.memory_space<vmem>>, vector<1x16x16x4xbf16>
    %14 = vector.shape_cast %13 : vector<1x16x16x4xbf16> to vector<16x16x4xbf16>
    %c0_21 = arith.constant 0 : index
    %c0_22 = arith.constant 0 : index
    %c2 = arith.constant 2 : index
    %c0_23 = arith.constant 0 : index
    %15 = vector.load %arg1[%c0_21, %c0_22, %c2, %c0_23] : memref<1x18x18x4xbf16, #tpu.memory_space<vmem>>, vector<1x16x16x4xbf16>
    %16 = vector.shape_cast %15 : vector<1x16x16x4xbf16> to vector<16x16x4xbf16>
    %c0_24 = arith.constant 0 : index
    %c1_25 = arith.constant 1 : index
    %c1_26 = arith.constant 1 : index
    %c0_27 = arith.constant 0 : index
    %17 = vector.load %arg1[%c0_24, %c1_25, %c1_26, %c0_27] : memref<1x18x18x4xbf16, #tpu.memory_space<vmem>>, vector<1x16x16x4xbf16>
    %18 = vector.shape_cast %17 : vector<1x16x16x4xbf16> to vector<16x16x4xbf16>
    %c0_28 = arith.constant 0 : index
    %c1_29 = arith.constant 1 : index
    %c2_30 = arith.constant 2 : index
    %c0_31 = arith.constant 0 : index
    %19 = vector.load %arg1[%c0_28, %c1_29, %c2_30, %c0_31] : memref<1x18x18x4xbf16, #tpu.memory_space<vmem>>, vector<1x16x16x4xbf16>
    %20 = vector.shape_cast %19 : vector<1x16x16x4xbf16> to vector<16x16x4xbf16>
    %21 = tpu.concatenate %14, %16, %18, %20 in 2 : vector<16x16x4xbf16>, vector<16x16x4xbf16>, vector<16x16x4xbf16>, vector<16x16x4xbf16> -> vector<16x16x16xbf16>
    %22 = vector.shape_cast %21 : vector<16x16x16xbf16> to vector<256x16xbf16>
    %c1_32 = arith.constant 1 : index
    %c0_33 = arith.constant 0 : index
    %c0_34 = arith.constant 0 : index
    %23 = vector.load %arg2[%c1_32, %c0_33, %c0_34] : memref<4x16x8xbf16, #tpu.memory_space<vmem>>, vector<1x16x8xbf16>
    %24 = vector.shape_cast %23 : vector<1x16x8xbf16> to vector<16x8xbf16>
    %cst_35 = arith.constant dense<0.000000e+00> : vector<256x8xf32>
    %25 = tpu.matmul %22, %24, %cst_35 {dimension_numbers = #tpu.dot_dimension_numbers<[1], [0], [0], [1], [0, 0, 1, 1], [], []>} : vector<256x16xbf16>, vector<16x8xbf16>, vector<256x8xf32> -> vector<256x8xf32>
    %c0_36 = arith.constant 0 : index
    %c1_37 = arith.constant 1 : index
    %c0_38 = arith.constant 0 : index
    %c0_39 = arith.constant 0 : index
    %26 = vector.load %arg1[%c0_36, %c1_37, %c0_38, %c0_39] : memref<1x18x18x4xbf16, #tpu.memory_space<vmem>>, vector<1x16x16x4xbf16>
    %27 = vector.shape_cast %26 : vector<1x16x16x4xbf16> to vector<16x16x4xbf16>
    %c0_40 = arith.constant 0 : index
    %c1_41 = arith.constant 1 : index
    %c1_42 = arith.constant 1 : index
    %c0_43 = arith.constant 0 : index
    %28 = vector.load %arg1[%c0_40, %c1_41, %c1_42, %c0_43] : memref<1x18x18x4xbf16, #tpu.memory_space<vmem>>, vector<1x16x16x4xbf16>
    %29 = vector.shape_cast %28 : vector<1x16x16x4xbf16> to vector<16x16x4xbf16>
    %c0_44 = arith.constant 0 : index
    %c2_45 = arith.constant 2 : index
    %c0_46 = arith.constant 0 : index
    %c0_47 = arith.constant 0 : index
    %30 = vector.load %arg1[%c0_44, %c2_45, %c0_46, %c0_47] : memref<1x18x18x4xbf16, #tpu.memory_space<vmem>>, vector<1x16x16x4xbf16>
    %31 = vector.shape_cast %30 : vector<1x16x16x4xbf16> to vector<16x16x4xbf16>
    %c0_48 = arith.constant 0 : index
    %c2_49 = arith.constant 2 : index
    %c1_50 = arith.constant 1 : index
    %c0_51 = arith.constant 0 : index
    %32 = vector.load %arg1[%c0_48, %c2_49, %c1_50, %c0_51] : memref<1x18x18x4xbf16, #tpu.memory_space<vmem>>, vector<1x16x16x4xbf16>
    %33 = vector.shape_cast %32 : vector<1x16x16x4xbf16> to vector<16x16x4xbf16>
    %34 = tpu.concatenate %27, %29, %31, %33 in 2 : vector<16x16x4xbf16>, vector<16x16x4xbf16>, vector<16x16x4xbf16>, vector<16x16x4xbf16> -> vector<16x16x16xbf16>
    %35 = vector.shape_cast %34 : vector<16x16x16xbf16> to vector<256x16xbf16>
    %c2_52 = arith.constant 2 : index
    %c0_53 = arith.constant 0 : index
    %c0_54 = arith.constant 0 : index
    %36 = vector.load %arg2[%c2_52, %c0_53, %c0_54] : memref<4x16x8xbf16, #tpu.memory_space<vmem>>, vector<1x16x8xbf16>
    %37 = vector.shape_cast %36 : vector<1x16x8xbf16> to vector<16x8xbf16>
    %cst_55 = arith.constant dense<0.000000e+00> : vector<256x8xf32>
    %38 = tpu.matmul %35, %37, %cst_55 {dimension_numbers = #tpu.dot_dimension_numbers<[1], [0], [0], [1], [0, 0, 1, 1], [], []>} : vector<256x16xbf16>, vector<16x8xbf16>, vector<256x8xf32> -> vector<256x8xf32>
    %c0_56 = arith.constant 0 : index
    %c1_57 = arith.constant 1 : index
    %c1_58 = arith.constant 1 : index
    %c0_59 = arith.constant 0 : index
    %39 = vector.load %arg1[%c0_56, %c1_57, %c1_58, %c0_59] : memref<1x18x18x4xbf16, #tpu.memory_space<vmem>>, vector<1x16x16x4xbf16>
    %40 = vector.shape_cast %39 : vector<1x16x16x4xbf16> to vector<16x16x4xbf16>
    %c0_60 = arith.constant 0 : index
    %c1_61 = arith.constant 1 : index
    %c2_62 = arith.constant 2 : index
    %c0_63 = arith.constant 0 : index
    %41 = vector.load %arg1[%c0_60, %c1_61, %c2_62, %c0_63] : memref<1x18x18x4xbf16, #tpu.memory_space<vmem>>, vector<1x16x16x4xbf16>
    %42 = vector.shape_cast %41 : vector<1x16x16x4xbf16> to vector<16x16x4xbf16>
    %c0_64 = arith.constant 0 : index
    %c2_65 = arith.constant 2 : index
    %c1_66 = arith.constant 1 : index
    %c0_67 = arith.constant 0 : index
    %43 = vector.load %arg1[%c0_64, %c2_65, %c1_66, %c0_67] : memref<1x18x18x4xbf16, #tpu.memory_space<vmem>>, vector<1x16x16x4xbf16>
    %44 = vector.shape_cast %43 : vector<1x16x16x4xbf16> to vector<16x16x4xbf16>
    %c0_68 = arith.constant 0 : index
    %c2_69 = arith.constant 2 : index
    %c2_70 = arith.constant 2 : index
    %c0_71 = arith.constant 0 : index
    %45 = vector.load %arg1[%c0_68, %c2_69, %c2_70, %c0_71] : memref<1x18x18x4xbf16, #tpu.memory_space<vmem>>, vector<1x16x16x4xbf16>
    %46 = vector.shape_cast %45 : vector<1x16x16x4xbf16> to vector<16x16x4xbf16>
    %47 = tpu.concatenate %40, %42, %44, %46 in 2 : vector<16x16x4xbf16>, vector<16x16x4xbf16>, vector<16x16x4xbf16>, vector<16x16x4xbf16> -> vector<16x16x16xbf16>
    %48 = vector.shape_cast %47 : vector<16x16x16xbf16> to vector<256x16xbf16>
    %c3 = arith.constant 3 : index
    %c0_72 = arith.constant 0 : index
    %c0_73 = arith.constant 0 : index
    %49 = vector.load %arg2[%c3, %c0_72, %c0_73] : memref<4x16x8xbf16, #tpu.memory_space<vmem>>, vector<1x16x8xbf16>
    %50 = vector.shape_cast %49 : vector<1x16x8xbf16> to vector<16x8xbf16>
    %cst_74 = arith.constant dense<0.000000e+00> : vector<256x8xf32>
    %51 = tpu.matmul %48, %50, %cst_74 {dimension_numbers = #tpu.dot_dimension_numbers<[1], [0], [0], [1], [0, 0, 1, 1], [], []>} : vector<256x16xbf16>, vector<16x8xbf16>, vector<256x8xf32> -> vector<256x8xf32>
    %cst_75 = arith.constant dense<0.000000e+00> : vector<8xf32>
    %52 = vector.multi_reduction <add>, %12, %cst_75 [0] : vector<256x8xf32> to vector<8xf32>
    %53 = vector.shape_cast %52 : vector<8xf32> to vector<1x8xf32>
    %cst_76 = arith.constant dense<0.000000e+00> : vector<8xf32>
    %54 = vector.multi_reduction <add>, %25, %cst_76 [0] : vector<256x8xf32> to vector<8xf32>
    %55 = vector.shape_cast %54 : vector<8xf32> to vector<1x8xf32>
    %56 = arith.addf %53, %55 : vector<1x8xf32>
    %cst_77 = arith.constant dense<0.000000e+00> : vector<8xf32>
    %57 = vector.multi_reduction <add>, %38, %cst_77 [0] : vector<256x8xf32> to vector<8xf32>
    %58 = vector.shape_cast %57 : vector<8xf32> to vector<1x8xf32>
    %59 = arith.addf %56, %58 : vector<1x8xf32>
    %cst_78 = arith.constant dense<0.000000e+00> : vector<8xf32>
    %60 = vector.multi_reduction <add>, %51, %cst_78 [0] : vector<256x8xf32> to vector<8xf32>
    %61 = vector.shape_cast %60 : vector<8xf32> to vector<1x8xf32>
    %62 = arith.addf %59, %61 : vector<1x8xf32>
    %cst_79 = arith.constant 9.765625E-4 : f32
    %63 = vector.broadcast %cst_79 : f32 to vector<1x8xf32>
    %64 = arith.mulf %62, %63 : vector<1x8xf32>
    %cst_80 = arith.constant 0.000000e+00 : f32
    %65 = vector.broadcast %cst_80 : f32 to vector<1x8xf32>
    %66 = vector.broadcast %64 : vector<1x8xf32> to vector<256x8xf32>
    %67 = arith.subf %12, %66 : vector<256x8xf32>
    %68 = arith.mulf %67, %67 : vector<256x8xf32>
    %cst_81 = arith.constant dense<0.000000e+00> : vector<8xf32>
    %69 = vector.multi_reduction <add>, %68, %cst_81 [0] : vector<256x8xf32> to vector<8xf32>
    %70 = vector.shape_cast %69 : vector<8xf32> to vector<1x8xf32>
    %71 = arith.addf %65, %70 : vector<1x8xf32>
    %72 = vector.broadcast %64 : vector<1x8xf32> to vector<256x8xf32>
    %73 = arith.subf %25, %72 : vector<256x8xf32>
    %74 = arith.mulf %73, %73 : vector<256x8xf32>
    %cst_82 = arith.constant dense<0.000000e+00> : vector<8xf32>
    %75 = vector.multi_reduction <add>, %74, %cst_82 [0] : vector<256x8xf32> to vector<8xf32>
    %76 = vector.shape_cast %75 : vector<8xf32> to vector<1x8xf32>
    %77 = arith.addf %71, %76 : vector<1x8xf32>
    %78 = vector.broadcast %64 : vector<1x8xf32> to vector<256x8xf32>
    %79 = arith.subf %38, %78 : vector<256x8xf32>
    %80 = arith.mulf %79, %79 : vector<256x8xf32>
    %cst_83 = arith.constant dense<0.000000e+00> : vector<8xf32>
    %81 = vector.multi_reduction <add>, %80, %cst_83 [0] : vector<256x8xf32> to vector<8xf32>
    %82 = vector.shape_cast %81 : vector<8xf32> to vector<1x8xf32>
    %83 = arith.addf %77, %82 : vector<1x8xf32>
    %84 = vector.broadcast %64 : vector<1x8xf32> to vector<256x8xf32>
    %85 = arith.subf %51, %84 : vector<256x8xf32>
    %86 = arith.mulf %85, %85 : vector<256x8xf32>
    %cst_84 = arith.constant dense<0.000000e+00> : vector<8xf32>
    %87 = vector.multi_reduction <add>, %86, %cst_84 [0] : vector<256x8xf32> to vector<8xf32>
    %88 = vector.shape_cast %87 : vector<8xf32> to vector<1x8xf32>
    %89 = arith.addf %83, %88 : vector<1x8xf32>
    %c0_85 = arith.constant 0 : index
    %c0_86 = arith.constant 0 : index
    %c0_87 = arith.constant 0 : index
    %90 = vector.load %arg4[%c0_85, %c0_86, %c0_87] : memref<1x2x8xf32, #tpu.memory_space<vmem>>, vector<1x1x8xf32>
    %91 = vector.shape_cast %90 : vector<1x1x8xf32> to vector<1x8xf32>
    %92 = vector.shape_cast %62 : vector<1x8xf32> to vector<1x1x8xf32>
    tpu.vector_store %arg4[%c0_85, %c0_86, %c0_87], %92 {strides = array<i32>} : memref<1x2x8xf32, #tpu.memory_space<vmem>>, vector<1x1x8xf32>,
    %c0_88 = arith.constant 0 : index
    %c1_89 = arith.constant 1 : index
    %c0_90 = arith.constant 0 : index
    %93 = vector.load %arg4[%c0_88, %c1_89, %c0_90] : memref<1x2x8xf32, #tpu.memory_space<vmem>>, vector<1x1x8xf32>
    %94 = vector.shape_cast %93 : vector<1x1x8xf32> to vector<1x8xf32>
    %95 = vector.shape_cast %89 : vector<1x8xf32> to vector<1x1x8xf32>
    tpu.vector_store %arg4[%c0_88, %c1_89, %c0_90], %95 {strides = array<i32>} : memref<1x2x8xf32, #tpu.memory_space<vmem>>, vector<1x1x8xf32>,
    %96 = tpu.concatenate %12, %25, %38, %51 in 1 : vector<256x8xf32>, vector<256x8xf32>, vector<256x8xf32>, vector<256x8xf32> -> vector<256x32xf32>
    %97 = arith.truncf %96 : vector<256x32xf32> to vector<256x32xbf16>
    %c0_91 = arith.constant 0 : index
    %c0_92 = arith.constant 0 : index
    %c0_93 = arith.constant 0 : index
    %98 = vector.load %arg3[%c0_91, %c0_92, %c0_93] : memref<1x256x32xbf16, #tpu.memory_space<vmem>>, vector<1x256x32xbf16>
    %99 = vector.shape_cast %98 : vector<1x256x32xbf16> to vector<256x32xbf16>
    %100 = vector.shape_cast %97 : vector<256x32xbf16> to vector<1x256x32xbf16>
    tpu.vector_store %arg3[%c0_91, %c0_92, %c0_93], %100 {strides = array<i32>} : memref<1x256x32xbf16, #tpu.memory_space<vmem>>, vector<1x256x32xbf16>,
    return
  }
  func.func @transform_0(%arg0: i32) -> (i32, i32, i32, i32) {
    %c0_i32 = arith.constant 0 : i32
    %c0_i32_0 = arith.constant 0 : i32
    %c0_i32_1 = arith.constant 0 : i32
    %c0_i32_2 = arith.constant 0 : i32
    return %arg0, %c0_i32, %c0_i32_0, %c0_i32_1 : i32, i32, i32, i32
  }
  func.func @transform_1(%arg0: i32) -> (i32, i32, i32) {
    %c0_i32 = arith.constant 0 : i32
    %c0_i32_0 = arith.constant 0 : i32
    %c0_i32_1 = arith.constant 0 : i32
    %c0_i32_2 = arith.constant 0 : i32
    return %c0_i32, %c0_i32_0, %c0_i32_1 : i32, i32, i32
  }
  func.func @transform_2(%arg0: i32) -> (i32, i32, i32) {
    %c0_i32 = arith.constant 0 : i32
    %c0_i32_0 = arith.constant 0 : i32
    %c0_i32_1 = arith.constant 0 : i32
    return %arg0, %c0_i32, %c0_i32_0 : i32, i32, i32
  }
  func.func @transform_3(%arg0: i32) -> (i32, i32, i32) {
    %c0_i32 = arith.constant 0 : i32
    %c0_i32_0 = arith.constant 0 : i32
    %c0_i32_1 = arith.constant 0 : i32
    return %arg0, %c0_i32, %c0_i32_0 : i32, i32, i32
  }
}

</mosaic_0001>

<bundles_post_ra>
// kernel: dcunit_forward.1
= control target key start
LH: loop header
LB: loop body
LE: loop exit
PB: predicated region body
PF: predicated region fallthrough
CT: control target
= control target key end

     0   :  { %s6835_s12 = smov 0   ;;  %s11257_s0 = inlined_call_operand.vmem [shape: bf16[2,18,18,4], index: 0, kind: input, shape index: {}]   ;;  %s11258_s1 = inlined_call_operand.vmem [shape: bf16[4,16,8], index: 1, kind: input, shape index: {}]   ;;  %s11259_s2 = inlined_call_operand.vmem [shape: bf16[2,256,32], index: 2, kind: output, shape index: {0}]   ;;  %s11260_s3 = inlined_call_operand.vmem [shape: f32[2,2,8], index: 3, kind: output, shape index: {1}]  }
   0x1 LB: > { %s5728_s13 = sadd.s32 4294967295, %s6808_s12   ;;  %p5732_p0 = scmp.ge.s32.totalorder %s6808_s12, 1  ;;  %s6808_s12 = sphi %s6835_s12, %s14_s12  }
   0x2   : > { %p140_p1 = scmp.lt.s32.totalorder %s6808_s12, 3 }
   0x4   : > { %p141_p2 = pnand %p5732_p0, %p140_p1 }
   0x6   : > { %144 = sbr.rel (%p141_p2) target bundleno = 1096 (0x448), region = 28 }
   0xd   : > { %p168_p3 = scmp.lt.s32.totalorder %s5728_s13, 1  ;;  %vm408_vm0 = vsmask.f32 7424  ;;  %s6810_s18 = smov 4   ;;  %vm1017_vm1 = vcmask 31744   ;;  %vm1050_vm2 = vcmask 64512  }
   0xe   : > { %s6811_s19 = smov 8   ;;  %s6812_s22 = smov 12   ;;  %vm1083_vm3 = vcmask 97280   ;;  %vm1124_vm4 = vcmask 130048   ;;  %vm4997_vm5 = vcmask 57344   ;;  %vm5448_vm6 = vcmask 195584  }
   0xf   : > { %s12288_s13 = smov (!%p168_p3, %s5728_s13), 1  ;;  %s6813_s29 = smov 16   ;;  %vm5609_vm7 = vcmask 257024  }
  0x10   : > { %s6354_s14 = smul.u32 216, %s12288_s13  ;;  %s6814_s30 = smov 24  }
  0x11   : > { %s5736_s4 = sshll.u32 %s12288_s13, 1  ;;  %s6117_s8 = sshll.u32 %s12288_s13, 7 }
  0x12   : > { %s6849_s17 = scalar_lea.vmem %s11257_s0, %s6354_s14  ;;  %s10058_s7 = scalar_lea.vmem %s11260_s3, %s5736_s4 }
  0x13   : > { %v187_v0 = vld [vmem:[%s6849_s17 + $0x18] sm:$0xf]  ;;  %v6853_v1 = vld [vmem:[%s6849_s17 + $0x1c] sm:$0xf]  ;;  %v183_v4 = vld [vmem:[%s6849_s17] sm:$0xf]  ;;  %s11055_s11 = scalar_lea.vmem %s11259_s2, %s6117_s8 }
  0x14   : > { %v6856_v2 = vcombine.low %v187_v0, %v6853_v1  ;;  %v6859_v3 = vld [vmem:[%s6849_s17 + $0x20] ss:$0 sps:$4 sm:$0x11]   ;;  %v6863_v5 = vld [vmem:[%s6849_s17 + $0x4] sm:$0xf] }
  0x15   : > { %v189_v6 = vld [vmem:[%s6849_s17 + $0x24] sm:$0xf]  ;;  %v441_v9 = vshll.u32 %v6859_v3, 16  ;;  %v6870_v10 = vcombine.low %v183_v4, %v6863_v5  ;;  %v6873_v11 = vld [vmem:[%s6849_s17 + $0x8] ss:$0 sps:$4 sm:$0x11]  }
  0x16   : > { %11568 = vst [vmem:[#allocation2_spill] sm:$0xff] %v6856_v2  ;;  %v434_v7 = vshrl.u32 %v6856_v2, 16  ;;  %v436_v8 = vshll.u32 %v6856_v2, 16  ;;  %v6876_v12 = vld [vmem:[%s6849_s17 + $0x28] sm:$0xf]  ;;  %v417_v19 = vshll.u32 %v6873_v11, 16 }
  0x17   : > { %11569 = vst [vmem:[#allocation3_spill] sm:$0xff] %v6870_v10  ;;  %v185_v13 = vld [vmem:[%s6849_s17 + $0xc] sm:$0xf]  ;;  %v6879_v15 = vrot.slane %v441_v9, 1  ;;  %v410_v16 = vshrl.u32 %v6870_v10, 16  ;;  %v412_v17 = vshll.u32 %v6870_v10, 16  ;;  %v6888_v20 = vcombine.low %v189_v6, %v6876_v12 }
  0x18   : > { %v438_v14 = vrot.slane %v436_v8, 1  ;;  %v6884_v18 = vld [vmem:[%s6849_s17 + $0x10] sm:$0xf]  ;;  %v6891_v21 = vld [vmem:[%s6849_s17 + $0x2c] ss:$0 sps:$4 sm:$0x11]  }
  0x19   : > { %11570 = vst [vmem:[#allocation4_spill] sm:$0xff] %v6888_v20  ;;  %v6894_v22 = vcombine.low %v185_v13, %v6884_v18  ;;  %v414_v24 = vrot.slane %v412_v17, 1  ;;  %v6897_v25 = vld [vmem:[%s6849_s17 + $0x14] ss:$0 sps:$4 sm:$0x11]   ;;  %v6900_v27 = vrot.slane %v417_v19, 1 }
  0x1a   : > { %v439_v23 = vor.u32 %v438_v14, %v434_v7  ;;  %v193_v26 = vld [vmem:[%s6849_s17 + $0x3c] sm:$0xf]  ;;  %v446_v28 = vshrl.u32 %v6888_v20, 16  ;;  %v448_v29 = vshll.u32 %v6888_v20, 16  ;;  %v453_v30 = vshll.u32 %v6891_v21, 16 }
  0x1b   : > { %11571 = vst [vmem:[#allocation5_spill] sm:$0xff] %v6894_v22  ;;  %v6906_v31 = vld [vmem:[%s6849_s17 + $0x40] sm:$0xf]  ;;  %v415_v33 = vor.u32 %v414_v24, %v410_v16  ;;  %v422_v34 = vshrl.u32 %v6894_v22, 16  ;;  %v424_v35 = vshll.u32 %v6894_v22, 16  ;;  %v429_v39 = vshll.u32 %v6897_v25, 16 }
  0x1c   : > { %v444_v32 = vsel %vm408_vm0, %v439_v23, %v6879_v15  ;;  %v191_v36 = vld [vmem:[%s6849_s17 + $0x30] sm:$0xf]  ;;  %v450_v37 = vrot.slane %v448_v29, 1  ;;  %v6914_v38 = vrot.slane %v453_v30, 1  ;;  %v6918_v40 = vcombine.low %v193_v26, %v6906_v31  ;;  %v6926_v44 = vld [vmem:[%s6849_s17 + $0x34] sm:$0xf] }
  0x1d   : > { %605 = vrot.lane.b32.xlu1 %v444_v32, %s6810_s18  ;;  %v6921_v41 = vld [vmem:[%s6849_s17 + $0x44] ss:$0 sps:$4 sm:$0x11]   ;;  %v420_v42 = vsel %vm408_vm0, %v415_v33, %v6900_v27  ;;  %v426_v43 = vrot.slane %v424_v35, 1  ;;  %v6929_v46 = vrot.slane %v429_v39, 1  ;;  %v6938_v52 = vcombine.low %v191_v36, %v6926_v44 }
  0x1e   : > { %11572 = vst [vmem:[#allocation6_spill] sm:$0xff] %v6918_v40  ;;  %601 = vrot.lane.b32.xlu0 %v420_v42, %s6810_s18  ;;  %v451_v45 = vor.u32 %v450_v37, %v446_v28  ;;  %v470_v47 = vshrl.u32 %v6918_v40, 16  ;;  %v472_v48 = vshll.u32 %v6918_v40, 16  ;;  %v6934_v49 = vld [vmem:[%s6849_s17 + $0x38] ss:$0 sps:$4 sm:$0x11]  }
  0x1f   : > { %v427_v50 = vor.u32 %v426_v43, %v422_v34  ;;  %v477_v51 = vshll.u32 %v6921_v41, 16  ;;  %11573 = vst [vmem:[#allocation7_spill] sm:$0xff] %v6938_v52  ;;  %v197_v53 = vld [vmem:[%s6849_s17 + $0x54] sm:$0xf]  ;;  %v6942_v54 = vld [vmem:[%s6849_s17 + $0x58] sm:$0xf] }
  0x20   : > { %v456_v55 = vsel %vm408_vm0, %v451_v45, %v6914_v38  ;;  %v474_v56 = vrot.slane %v472_v48, 1  ;;  %v465_v57 = vshll.u32 %v6934_v49, 16  ;;  %v6948_v58 = vcombine.low %v197_v53, %v6942_v54  ;;  %v195_v59 = vld [vmem:[%s6849_s17 + $0x48] sm:$0xf]  ;;  %v6967_v9 = vld [vmem:[%s6849_s17 + $0x4c] sm:$0xf] }
  0x21   : > { %607 = vrot.lane.b32.xlu1 %v456_v55, %s6810_s18  ;;  %v432_v60 = vsel %vm408_vm0, %v427_v50, %v6929_v46  ;;  %v6954_v61 = vrot.slane %v477_v51, 1  ;;  %v458_v62 = vshrl.u32 %v6938_v52, 16  ;;  %v460_v63 = vshll.u32 %v6938_v52, 16  ;;  %v6959_v0 = vld [vmem:[%s6849_s17 + $0x5c] ss:$0 sps:$4 sm:$0x11]  }
  0x22   : > { %11574 = vst [vmem:[#allocation8_spill] sm:$0xff] %v6948_v58  ;;  %11575 = vst [vmem:[#allocation9_spill] sm:$0xff] %v6959_v0  ;;  %603 = vrot.lane.b32.xlu0 %v432_v60, %s6810_s18  ;;  %v475_v4 = vor.u32 %v474_v56, %v470_v47  ;;  %v6962_v6 = vrot.slane %v465_v57, 1  ;;  %v494_v7 = vshrl.u32 %v6948_v58, 16  ;;  %v496_v8 = vshll.u32 %v6948_v58, 16 }
  0x23   : > { %v462_v13 = vrot.slane %v460_v63, 1  ;;  %v501_v14 = vshll.u32 %v6959_v0, 16  ;;  %v6971_v16 = vcombine.low %v195_v59, %v6967_v9  ;;  %v201_v17 = vld [vmem:[%s6849_s17 + $0x6c] sm:$0xf]  ;;  %v6980_v26 = vld [vmem:[%s6849_s17 + $0x70] sm:$0xf] }
  0x24   : > { %v480_v19 = vsel %vm408_vm0, %v475_v4, %v6954_v61  ;;  %v498_v23 = vrot.slane %v496_v8, 1  ;;  %v6977_v24 = vld [vmem:[%s6849_s17 + $0x50] ss:$0 sps:$4 sm:$0x11]   ;;  %v6989_v35 = vcombine.low %v201_v17, %v6980_v26  ;;  %v199_v37 = vld [vmem:[%s6849_s17 + $0x60] sm:$0xf] }
  0x25   : > { %11576 = vst [vmem:[#allocation10_spill] sm:$0xff] %v6971_v16  ;;  %611 = vrot.lane.b32.xlu1 %v480_v19, %s6810_s18  ;;  %v463_v28 = vor.u32 %v462_v13, %v458_v62  ;;  %v6983_v29 = vrot.slane %v501_v14, 1  ;;  %v482_v30 = vshrl.u32 %v6971_v16, 16  ;;  %v484_v32 = vshll.u32 %v6971_v16, 16  ;;  %v6998_v43 = vld [vmem:[%s6849_s17 + $0x64] sm:$0xf] }
  0x26   : > { %v499_v33 = vor.u32 %v498_v23, %v494_v7  ;;  %v489_v34 = vshll.u32 %v6977_v24, 16  ;;  %11578 = vst [vmem:[#allocation12_spill] sm:$0xff] %v6989_v35  ;;  %v6992_v36 = vld [vmem:[%s6849_s17 + $0x74] ss:$0 sps:$4 sm:$0x11]   ;;  %v518_v48 = vshrl.u32 %v6989_v35, 16  ;;  %v7013_v56 = vcombine.low %v199_v37, %v6998_v43 }
  0x27   : > { %11577 = vst [vmem:[#allocation11_spill] sm:$0xff] %v6983_v29  ;;  %11579 = vst [vmem:[#allocation13_spill] sm:$0xff] %v6992_v36  ;;  %v468_v39 = vsel %vm408_vm0, %v463_v28, %v6962_v6  ;;  %v486_v42 = vrot.slane %v484_v32, 1  ;;  %v520_v50 = vshll.u32 %v6989_v35, 16  ;;  %v525_v55 = vshll.u32 %v6992_v36, 16 }
  0x28   : > { %609 = vrot.lane.b32.xlu0 %v468_v39, %s6810_s18  ;;  %v504_v45 = vsel %vm408_vm0, %v499_v33, %v6983_v29  ;;  %v7003_v47 = vrot.slane %v489_v34, 1  ;;  %v7008_v51 = vld [vmem:[%s6849_s17 + $0x68] ss:$0 sps:$4 sm:$0x11]   ;;  %11582 = vst [vmem:[#allocation16_spill] sm:$0xff] %v7013_v56  ;;  %v506_v13 = vshrl.u32 %v7013_v56, 16 }
  0x29   : > { %11581 = vst [vmem:[#allocation15_spill] sm:$0xff] %v7008_v51  ;;  %615 = vrot.lane.b32.xlu1 %v504_v45, %s6810_s18  ;;  %v487_v53 = vor.u32 %v486_v42, %v482_v30  ;;  %v205_v57 = vld [vmem:[%s6849_s17 + $0x84] sm:$0xf]  ;;  %v7017_v59 = vld [vmem:[%s6849_s17 + $0x88] sm:$0xf]  ;;  %v522_v60 = vrot.slane %v520_v50, 1 }
  0x2a   : > { %11580 = vst [vmem:[#allocation14_spill] sm:$0xff] %v7003_v47  ;;  %11583 = vst [vmem:[#allocation17_spill] sm:$0xff] %v7017_v59  ;;  %v513_v62 = vshll.u32 %v7008_v51, 16  ;;  %v7021_v63 = vcombine.low %v205_v57, %v7017_v59  ;;  %v203_v4 = vld [vmem:[%s6849_s17 + $0x78] sm:$0xf]  ;;  %v7026_v8 = vrot.slane %v525_v55, 1 }
  0x2b   : > { %v492_v7 = vsel %vm408_vm0, %v487_v53, %v7003_v47  ;;  %v508_v14 = vshll.u32 %v7013_v56, 16  ;;  %v7031_v17 = vld [vmem:[%s6849_s17 + $0x8c] ss:$0 sps:$4 sm:$0x11]   ;;  %v523_v19 = vor.u32 %v522_v60, %v518_v48  ;;  %v7039_v32 = vld [vmem:[%s6849_s17 + $0x7c] sm:$0xf] }
  0x2c   : > { %11584 = vst [vmem:[#allocation18_spill] sm:$0xff] %v7021_v63  ;;  %11585 = vst [vmem:[#allocation19_spill] sm:$0xff] %v7026_v8  ;;  %613 = vrot.lane.b32.xlu0 %v492_v7, %s6810_s18  ;;  %v7034_v23 = vrot.slane %v513_v62, 1  ;;  %v542_v28 = vshrl.u32 %v7021_v63, 16  ;;  %v544_v30 = vshll.u32 %v7021_v63, 16  ;;  %v549_v34 = vshll.u32 %v7031_v17, 16 }
  0x2d   : > { %11586 = vst [vmem:[#allocation20_spill] sm:$0xff] %v7031_v17  ;;  %11588 = vst [vmem:[#allocation22_spill] sm:$0xff] %v7039_v32  ;;  %v510_v33 = vrot.slane %v508_v14, 1  ;;  %v7043_v37 = vcombine.low %v203_v4, %v7039_v32  ;;  %v209_v39 = vld [vmem:[%s6849_s17 + $0x9c] sm:$0xf]  ;;  %v528_v42 = vsel %vm408_vm0, %v523_v19, %v7026_v8 }
  0x2e   : > { %11587 = vst [vmem:[#allocation21_spill] sm:$0xff] %v7034_v23  ;;  %v546_v45 = vrot.slane %v544_v30, 1  ;;  %v7049_v48 = vld [vmem:[%s6849_s17 + $0x80] ss:$0 sps:$4 sm:$0x11]   ;;  %619 = vrot.lane.b32.xlu1 %v528_v42, %s6810_s18  ;;  %v7055_v55 = vrot.slane %v549_v34, 1 }
  0x2f   : > { %11589 = vst [vmem:[#allocation23_spill] sm:$0xff] %v7043_v37  ;;  %11590 = vst [vmem:[#allocation24_spill] sm:$0xff] %v7049_v48  ;;  %v7052_v50 = vld [vmem:[%s6849_s17 + $0xa0] sm:$0xf]  ;;  %v511_v53 = vor.u32 %v510_v33, %v506_v13  ;;  %v530_v57 = vshrl.u32 %v7043_v37, 16  ;;  %v532_v60 = vshll.u32 %v7043_v37, 16 }
  0x30   : > { %11591 = vst [vmem:[#allocation25_spill] sm:$0xff] %v7052_v50  ;;  %11592 = vst [vmem:[#allocation26_spill] sm:$0xff] %v7055_v55  ;;  %v547_v62 = vor.u32 %v546_v45, %v542_v28  ;;  %v537_v4 = vshll.u32 %v7049_v48, 16  ;;  %v7061_v7 = vcombine.low %v209_v39, %v7052_v50  ;;  %v7064_v14 = vld [vmem:[%s6849_s17 + $0xa4] ss:$0 sps:$4 sm:$0x11]  }
  0x31   : > { %11594 = vst [vmem:[#allocation28_spill] sm:$0xff] %v7064_v14  ;;  %v207_v19 = vld [vmem:[%s6849_s17 + $0x90] sm:$0xf]  ;;  %v516_v13 = vsel %vm408_vm0, %v511_v53, %v7034_v23  ;;  %v534_v30 = vrot.slane %v532_v60, 1  ;;  %v7070_v33 = vld [vmem:[%s6849_s17 + $0x94] sm:$0xf] }
  0x32   : > { %11593 = vst [vmem:[#allocation27_spill] sm:$0xff] %v7061_v7  ;;  %617 = vrot.lane.b32.xlu0 %v516_v13, %s6810_s18  ;;  %v552_v28 = vsel %vm408_vm0, %v547_v62, %v7055_v55  ;;  %v7075_v34 = vrot.slane %v537_v4, 1  ;;  %v566_v39 = vshrl.u32 %v7061_v7, 16  ;;  %v568_v42 = vshll.u32 %v7061_v7, 16  ;;  %v213_v13 = vld [vmem:[%s6849_s17 + $0xb4] sm:$0xf] }
  0x33   : > { %v7080_v45 = vld [vmem:[%s6849_s17 + $0x98] ss:$0 sps:$4 sm:$0x11]   ;;  %623 = vrot.lane.b32.xlu1 %v552_v28, %s6810_s18  ;;  %v535_v53 = vor.u32 %v534_v30, %v530_v57  ;;  %v573_v60 = vshll.u32 %v7064_v14, 16  ;;  %v7085_v63 = vcombine.low %v207_v19, %v7070_v33  ;;  %v211_v35 = vld [vmem:[%s6849_s17 + $0xa8] sm:$0xf] }
  0x34   : > { %11595 = vst [vmem:[#allocation29_spill] sm:$0xff] %v7075_v34  ;;  %11596 = vst [vmem:[#allocation30_spill] sm:$0xff] %v7080_v45  ;;  %v7089_v62 = vld [vmem:[%s6849_s17 + $0xb8] sm:$0xf]  ;;  %v570_v4 = vrot.slane %v568_v42, 1  ;;  %v561_v37 = vshll.u32 %v7080_v45, 16 }
  0x35   : > { %11597 = vst [vmem:[#allocation31_spill] sm:$0xff] %v7085_v63  ;;  %11598 = vst [vmem:[#allocation32_spill] sm:$0xff] %v7089_v62  ;;  %v7093_v7 = vcombine.low %v213_v13, %v7089_v62  ;;  %v540_v28 = vsel %vm408_vm0, %v535_v53, %v7075_v34  ;;  %v7098_v57 = vrot.slane %v573_v60, 1  ;;  %v554_v19 = vshrl.u32 %v7085_v63, 16  ;;  %v7109_v16 = vld [vmem:[%s6849_s17 + $0xac] sm:$0xf] }
  0x36   : > { %v556_v30 = vshll.u32 %v7085_v63, 16  ;;  %v7103_v56 = vld [vmem:[%s6849_s17 + $0xbc] ss:$0 sps:$4 sm:$0x11]   ;;  %621 = vrot.lane.b32.xlu0 %v540_v28, %s6810_s18  ;;  %v571_v42 = vor.u32 %v570_v4, %v566_v39  ;;  %v7111_v60 = vrot.slane %v561_v37, 1  ;;  %v7115_v63 = vcombine.low %v211_v35, %v7109_v16 }
  0x37   : > { %11599 = vst [vmem:[#allocation33_spill] sm:$0xff] %v7093_v7  ;;  %11600 = vst [vmem:[#allocation34_spill] sm:$0xff] %v7098_v57  ;;  %v590_v58 = vshrl.u32 %v7093_v7, 16  ;;  %v592_v13 = vshll.u32 %v7093_v7, 16  ;;  %v597_v40 = vshll.u32 %v7103_v56, 16 }
  0x38   : > { %11601 = vst [vmem:[#allocation35_spill] sm:$0xff] %v7103_v56  ;;  %v558_v53 = vrot.slane %v556_v30, 1  ;;  %11602 = vst [vmem:[#allocation36_spill] sm:$0xff] %v7115_v63  ;;  %v576_v28 = vsel %vm408_vm0, %v571_v42, %v7098_v57  ;;  %v7120_v4 = vld [vmem:[%s6849_s17 + $0xb0] ss:$0 sps:$4 sm:$0x11]  }
  0x39   : > { %v594_v39 = vrot.slane %v592_v13, 1  ;;  %11603 = vst [vmem:[#allocation37_spill] sm:$0xff] %v7120_v4  ;;  %627 = vrot.lane.b32.xlu1 %v576_v28, %s6810_s18  ;;  %v7123_v52 = vrot.slane %v597_v40, 1  ;;  %v578_v37 = vshrl.u32 %v7115_v63, 16  ;;  %v580_v30 = vshll.u32 %v7115_v63, 16 }
  0x3a   : > { %v559_v7 = vor.u32 %v558_v53, %v554_v19  ;;  %v585_v20 = vshll.u32 %v7120_v4, 16  ;;  %v5739_v42 = vld [vmem:[%s6849_s17 + $0x18] sm:$0xf]  ;;  %v7130_v13 = vld [vmem:[%s6849_s17 + $0x1c] sm:$0xf] }
  0x3b   : > { %11604 = vst [vmem:[#allocation38_spill] sm:$0xff] %v7123_v52  ;;  %v595_v35 = vor.u32 %v594_v39, %v590_v58  ;;  %11605 = vst [vmem:[#allocation39_spill] sm:$0xff] %v7130_v13  ;;  %v582_v19 = vrot.slane %v580_v30, 1  ;;  %v7141_v39 = vcombine.low %v5739_v42, %v7130_v13  ;;  %v5737_v63 = vld [vmem:[%s6849_s17 + $0xc] sm:$0xf] }
  0x3c   : > { %v564_v28 = vsel %vm408_vm0, %v559_v7, %v7111_v60  ;;  %v7137_v53 = vrot.slane %v585_v20, 1  ;;  %v7145_v7 = vld [vmem:[%s6849_s17 + $0x10] sm:$0xf]  ;;  %v5741_v42 = vld [vmem:[%s6849_s17 + $0x24] sm:$0xf] }
  0x3d   : > { %625 = vrot.lane.b32.xlu0 %v564_v28, %s6810_s18  ;;  %v600_v40 = vsel %vm408_vm0, %v595_v35, %v7123_v52  ;;  %v583_v58 = vor.u32 %v582_v19, %v578_v37  ;;  %11606 = vst [vmem:[#allocation40_spill] sm:$0xff] %v7141_v39  ;;  %11607 = vst [vmem:[#allocation41_spill] sm:$0xff] %v7145_v7  ;;  %v5743_v30 = vld [vmem:[%s6849_s17 + $0x30] sm:$0xf]  ;;  %v7149_v28 = vld [vmem:[%s6849_s17 + $0x34] sm:$0xf]  ;;  %v7155_v37 = vcombine.low %v5737_v63, %v7145_v7 }
  0x3e   : > { %631 = vrot.lane.b32.xlu1 %v600_v40, %s6810_s18  ;;  %11608 = vst [vmem:[#allocation42_spill] sm:$0xff] %v7149_v28  ;;  %v7160_v35 = vcombine.low %v5743_v30, %v7149_v28  ;;  %v7164_v19 = vld [vmem:[%s6849_s17 + $0x28] sm:$0xf]  ;;  %v7182_v28 = vld [vmem:[%s6849_s17 + $0x40] sm:$0xf]  ;;  %v806_v50 = vshrl.u32 %v7141_v39, 16 }
  0x3f   : > { %v588_v20 = vsel %vm408_vm0, %v583_v58, %v7137_v53  ;;  %11609 = vst [vmem:[#allocation43_spill] sm:$0xff] %v7155_v37  ;;  %11611 = vst [vmem:[#allocation45_spill] sm:$0xff] %v7164_v19  ;;  %v5747_v40 = vld [vmem:[%s6849_s17 + $0x48] sm:$0xf]  ;;  %v7168_v58 = vld [vmem:[%s6849_s17 + $0x4c] sm:$0xf]  ;;  %v7173_v63 = vcombine.low %v5741_v42, %v7164_v19 }
  0x40   : > { %11610 = vst [vmem:[#allocation44_spill] sm:$0xff] %v7160_v35  ;;  %11612 = vst [vmem:[#allocation46_spill] sm:$0xff] %v7168_v58  ;;  %v7178_v30 = vcombine.low %v5747_v40, %v7168_v58  ;;  %v5751_v2 = vld [vmem:[%s6849_s17 + $0x60] sm:$0xf]  ;;  %v5752_v10 = vld [vmem:[%s6849_s17 + $0x64] sm:$0xf] }
  0x41   : > { %629 = vrot.lane.b32.xlu0 %v588_v20, %s6810_s18  ;;  %11613 = vst [vmem:[#allocation47_spill] sm:$0xff] %v7173_v63  ;;  %v5745_v20 = vld [vmem:[%s6849_s17 + $0x3c] sm:$0xf]  ;;  %11615 = vst [vmem:[#allocation49_spill] sm:$0xff] %v7182_v28  ;;  %v5749_v19 = vld [vmem:[%s6849_s17 + $0x54] sm:$0xf]  ;;  %v7194_v40 = vcombine.low %v5751_v2, %v5752_v10 }
  0x42   : > { %715 = vrot.lane.b32.xlu1 %v7141_v39, %s6811_s19  ;;  %11614 = vst [vmem:[#allocation48_spill] sm:$0xff] %v7178_v30  ;;  %v7189_v42 = vcombine.low %v5745_v20, %v7182_v28  ;;  %v5750_v58 = vld [vmem:[%s6849_s17 + $0x58] sm:$0xf]  ;;  %v5756_v22 = vld [vmem:[%s6849_s17 + $0x7c] sm:$0xf]  ;;  %v796_v55 = vshll.u32 %v7155_v37, 16 }
  0x43   : > { %11617 = vst [vmem:[#allocation51_spill] sm:$0xff] %v7194_v40  ;;  %v5755_v13 = vld [vmem:[%s6849_s17 + $0x78] sm:$0xf]  ;;  %v7201_v7 = vcombine.low %v5749_v19, %v5750_v58  ;;  %v5753_v28 = vld [vmem:[%s6849_s17 + $0x6c] sm:$0xf]  ;;  %v794_v23 = vshrl.u32 %v7155_v37, 16 }
  0x44   : > { %11616 = vst [vmem:[#allocation50_spill] sm:$0xff] %v7189_v42  ;;  %v7205_v20 = vcombine.low %v5755_v13, %v5756_v22  ;;  %v5754_v2 = vld [vmem:[%s6849_s17 + $0x70] sm:$0xf]  ;;  %v5760_v52 = vld [vmem:[%s6849_s17 + $0x94] sm:$0xf]  ;;  %v808_v13 = vshll.u32 %v7141_v39, 16 }
  0x45   : > { %713 = vrot.lane.b32.xlu0 %v7155_v37, %s6811_s19  ;;  %11618 = vst [vmem:[#allocation52_spill] sm:$0xff] %v7201_v7  ;;  %v5759_v10 = vld [vmem:[%s6849_s17 + $0x90] sm:$0xf]  ;;  %v5757_v56 = vld [vmem:[%s6849_s17 + $0x84] sm:$0xf]  ;;  %v7216_v19 = vcombine.low %v5753_v28, %v5754_v2  ;;  %v820_v59 = vshll.u32 %v7173_v63, 16 }
  0x46   : > { %719 = vrot.lane.b32.xlu1 %v7160_v35, %s6811_s19  ;;  %11619 = vst [vmem:[#allocation53_spill] sm:$0xff] %v7205_v20  ;;  %v5758_v4 = vld [vmem:[%s6849_s17 + $0x88] sm:$0xf]  ;;  %v5764_v58 = vld [vmem:[%s6849_s17 + $0xac] sm:$0xf]  ;;  %v7224_v22 = vcombine.low %v5759_v10, %v5760_v52  ;;  %v6688_v28 = vld [vmem:[%s11258_s1] sm:$0xff]  }
  0x47   : > { %v5763_v57 = vld [vmem:[%s6849_s17 + $0xa8] sm:$0xf]  ;;  %11620 = vst [vmem:[#allocation54_spill] sm:$0xff] %v7216_v19  ;;  %v7220_v14 = vld [vmem:[%s6849_s17 + $0x20] ss:$0 sps:$4 sm:$0x11]   ;;  %v7238_v2 = vcombine.low %v5757_v56, %v5758_v4  ;;  %6218 = vmatprep.subr.bf16.mxu0 %v6688_v28 }
  0x48   : > { %11621 = vst [vmem:[#allocation55_spill] sm:$0xff] %v7220_v14  ;;  %11622 = vst [vmem:[#allocation56_spill] sm:$0xff] %v7224_v22  ;;  %v7228_v62 = vld [vmem:[%s6849_s17 + $0x14] ss:$0 sps:$4 sm:$0x11]   ;;  %v7240_v52 = vcombine.low %v5763_v57, %v5764_v58  ;;  %v813_v8 = vshll.u32 %v7220_v14, 16  ;;  %6219 = vmatpush3.bf16.msra.mxu0 %v6688_v28 }
  0x49   : > { %717 = vrot.lane.b32.xlu0 %v7173_v63, %s6811_s19  ;;  %11623 = vst [vmem:[#allocation57_spill] sm:$0xff] %v7228_v62  ;;  %v5761_v45 = vld [vmem:[%s6849_s17 + $0x9c] sm:$0xf]  ;;  %v5762_v17 = vld [vmem:[%s6849_s17 + $0xa0] sm:$0xf]  ;;  %11624 = vst [vmem:[#allocation58_spill] sm:$0xff] %v7238_v2 }
  0x4a   : > { %723 = vrot.lane.b32.xlu1 %v7178_v30, %s6811_s19  ;;  %11625 = vst [vmem:[#allocation59_spill] sm:$0xff] %v7240_v52  ;;  %v5767_v10 = vld [vmem:[%s6849_s17 + $0xc0] sm:$0xf]  ;;  %v5768_v34 = vld [vmem:[%s6849_s17 + $0xc4] sm:$0xf]  ;;  %v810_v48 = vrot.slane %v808_v13, 1  ;;  %v7260_v13 = vcombine.low %v5761_v45, %v5762_v17 }
  0x4b   : > { %v801_v36 = vshll.u32 %v7228_v62, 16  ;;  %v832_v56 = vshll.u32 %v7160_v35, 16  ;;  %v798_v57 = vrot.slane %v796_v55, 1  ;;  %v7252_v4 = vld [vmem:[%s6849_s17 + $0x38] ss:$0 sps:$4 sm:$0x11]   ;;  %v7269_v55 = vcombine.low %v5767_v10, %v5768_v34 }
  0x4c   : > { %11626 = vst [vmem:[#allocation60_spill] sm:$0xff] %v7252_v4  ;;  %v5765_v58 = vld [vmem:[%s6849_s17 + $0xb4] sm:$0xf]  ;;  %v5766_v39 = vld [vmem:[%s6849_s17 + $0xb8] sm:$0xf]  ;;  %v830_v14 = vshrl.u32 %v7160_v35, 16  ;;  %v811_v32 = vor.u32 %v810_v48, %v806_v50 }
  0x4d   : > { %721 = vrot.lane.b32.xlu0 %v7189_v42, %s6811_s19  ;;  %11627 = vst [vmem:[#allocation61_spill] sm:$0xff] %v7260_v13  ;;  %v7262_v37 = vrot.slane %v813_v8, 1  ;;  %v7265_v62 = vld [vmem:[%s6849_s17 + $0x2c] ss:$0 sps:$4 sm:$0x11]   ;;  %11630 = vst [vmem:[#allocation64_spill] sm:$0xff] %v7269_v55  ;;  %v799_v47 = vor.u32 %v798_v57, %v794_v23 }
  0x4e   : > { %727 = vrot.lane.b32.xlu1 %v7194_v40, %s6811_s19  ;;  %11629 = vst [vmem:[#allocation63_spill] sm:$0xff] %v7265_v62  ;;  %v7271_v28 = vrot.slane %v801_v36, 1  ;;  %v834_v35 = vrot.slane %v832_v56, 1  ;;  %v7274_v29 = vld [vmem:[%s6849_s17 + $0x50] ss:$0 sps:$4 sm:$0x11]   ;;  %v7287_v36 = vcombine.low %v5765_v58, %v5766_v39 }
  0x4f   : > { %11628 = vst [vmem:[#allocation62_spill] sm:$0xff] %v7262_v37  ;;  %v856_v51 = vshll.u32 %v7178_v30, 16  ;;  %v837_v17 = vshll.u32 %v7252_v4, 16  ;;  %v7279_v8 = vld [vmem:[%s6849_s17 + $0x44] ss:$0 sps:$4 sm:$0x11]   ;;  %v7298_v39 = vsel %vm408_vm0, %v811_v32, %v7262_v37 }
  0x50   : > { %11631 = vst [vmem:[#allocation65_spill] sm:$0xff] %v7271_v28  ;;  %11632 = vst [vmem:[#allocation66_spill] sm:$0xff] %v7279_v8  ;;  %v844_v45 = vshll.u32 %v7189_v42, 16  ;;  %v7283_v0 = vld [vmem:[%s6849_s17 + $0x68] ss:$0 sps:$4 sm:$0x11]   ;;  %v835_v58 = vor.u32 %v834_v35, %v830_v14 }
  0x51   : > { %725 = vrot.lane.b32.xlu0 %v7201_v7, %s6811_s19  ;;  %11633 = vst [vmem:[#allocation67_spill] sm:$0xff] %v7283_v0  ;;  %11634 = vst [vmem:[#allocation68_spill] sm:$0xff] %v7287_v36  ;;  %v818_v34 = vshrl.u32 %v7173_v63, 16  ;;  %v822_v10 = vrot.slane %v820_v59, 1  ;;  %v880_v56 = vshll.u32 %v7194_v40, 16  ;;  %v825_v23 = vshll.u32 %v7265_v62, 16 }
  0x52   : > { %731 = vrot.lane.b32.xlu1 %v7205_v20, %s6811_s19  ;;  %v854_v48 = vshrl.u32 %v7178_v30, 16  ;;  %v858_v50 = vrot.slane %v856_v51, 1  ;;  %v861_v57 = vshll.u32 %v7274_v29, 16  ;;  %11635 = vst [vmem:[#allocation69_spill] sm:$0xff] %v7298_v39  ;;  %v7302_v59 = vsel %vm408_vm0, %v799_v47, %v7271_v28 }
  0x53   : > { %11636 = vst [vmem:[#allocation70_spill] sm:$0xff] %v7302_v59  ;;  %v7304_v63 = vrot.slane %v837_v17, 1  ;;  %v842_v62 = vshrl.u32 %v7189_v42, 16  ;;  %v846_v4 = vrot.slane %v844_v45, 1  ;;  %v849_v30 = vshll.u32 %v7279_v8, 16 }
  0x54   : > { %v885_v51 = vshll.u32 %v7283_v0, 16  ;;  %v823_v32 = vor.u32 %v822_v10, %v818_v34  ;;  %v878_v47 = vshrl.u32 %v7194_v40, 16  ;;  %v882_v37 = vrot.slane %v880_v56, 1  ;;  %v7313_v14 = vld [vmem:[%s6849_s17 + $0x5c] ss:$0 sps:$4 sm:$0x11]  }
  0x55   : > { %729 = vrot.lane.b32.xlu0 %v7216_v19, %s6811_s19  ;;  %11637 = vst [vmem:[#allocation71_spill] sm:$0xff] %v7304_v63  ;;  %11638 = vst [vmem:[#allocation72_spill] sm:$0xff] %v7313_v14  ;;  %v868_v35 = vshll.u32 %v7201_v7, 16  ;;  %v7318_v17 = vrot.slane %v825_v23, 1  ;;  %v859_v45 = vor.u32 %v858_v50, %v854_v48  ;;  %v7320_v42 = vrot.slane %v861_v57, 1 }
  0x56   : > { %735 = vrot.lane.b32.xlu1 %v7224_v22, %s6811_s19  ;;  %v7323_v28 = vld [vmem:[%s6849_s17 + $0x80] ss:$0 sps:$4 sm:$0x11]   ;;  %v904_v34 = vshll.u32 %v7205_v20, 16  ;;  %v7328_v10 = vsel %vm408_vm0, %v835_v58, %v7304_v63  ;;  %v847_v0 = vor.u32 %v846_v4, %v842_v62  ;;  %v7336_v8 = vrot.slane %v849_v30, 1 }
  0x57   : > { %11639 = vst [vmem:[#allocation73_spill] sm:$0xff] %v7318_v17  ;;  %11640 = vst [vmem:[#allocation74_spill] sm:$0xff] %v7320_v42  ;;  %v7331_v56 = vld [vmem:[%s6849_s17 + $0x74] ss:$0 sps:$4 sm:$0x11]   ;;  %v7338_v23 = vrot.slane %v885_v51, 1  ;;  %v883_v57 = vor.u32 %v882_v37, %v878_v47  ;;  %v7352_v62 = vsel %vm408_vm0, %v823_v32, %v7318_v17  ;;  %v7356_v30 = vsel %vm408_vm0, %v859_v45, %v7320_v42 }
  0x58   : > { %11641 = vst [vmem:[#allocation75_spill] sm:$0xff] %v7323_v28  ;;  %11642 = vst [vmem:[#allocation76_spill] sm:$0xff] %v7328_v10  ;;  %v7334_v40 = vld [vmem:[%s6849_s17 + $0x98] ss:$0 sps:$4 sm:$0x11]   ;;  %v866_v48 = vshrl.u32 %v7201_v7, 16  ;;  %v7365_v32 = vsel %vm408_vm0, %v847_v0, %v7336_v8 }
  0x59   : > { %733 = vrot.lane.b32.xlu0 %v7238_v2, %s6811_s19  ;;  %11643 = vst [vmem:[#allocation77_spill] sm:$0xff] %v7331_v56  ;;  %11644 = vst [vmem:[#allocation78_spill] sm:$0xff] %v7336_v8  ;;  %v7342_v50 = vld [vmem:[%s6849_s17 + $0x8c] ss:$0 sps:$4 sm:$0x11]   ;;  %v873_v58 = vshll.u32 %v7313_v14, 16 }
  0x5a   : > { %739 = vrot.lane.b32.xlu1 %v7240_v52, %s6811_s19  ;;  %11645 = vst [vmem:[#allocation79_spill] sm:$0xff] %v7338_v23  ;;  %11646 = vst [vmem:[#allocation80_spill] sm:$0xff] %v7342_v50  ;;  %v892_v63 = vshll.u32 %v7216_v19, 16  ;;  %v909_v4 = vshll.u32 %v7323_v28, 16  ;;  %v928_v37 = vshll.u32 %v7224_v22, 16  ;;  %v902_v51 = vshrl.u32 %v7205_v20, 16 }
  0x5b   : > { %11647 = vst [vmem:[#allocation81_spill] sm:$0xff] %v7352_v62  ;;  %11648 = vst [vmem:[#allocation82_spill] sm:$0xff] %v7356_v30  ;;  %v906_v47 = vrot.slane %v904_v34, 1  ;;  %v933_v7 = vshll.u32 %v7334_v40, 16  ;;  %v916_v45 = vshll.u32 %v7238_v2, 16  ;;  %v7374_v34 = vsel %vm408_vm0, %v883_v57, %v7338_v23 }
  0x5c   : > { %11649 = vst [vmem:[#allocation83_spill] sm:$0xff] %v7365_v32  ;;  %11650 = vst [vmem:[#allocation84_spill] sm:$0xff] %v7374_v34  ;;  %v7376_v42 = vrot.slane %v873_v58, 1  ;;  %v894_v17 = vrot.slane %v892_v63, 1  ;;  %v926_v8 = vshrl.u32 %v7224_v22, 16  ;;  %v914_v63 = vshrl.u32 %v7238_v2, 16 }
  0x5d   : > { %737 = vrot.lane.b32.xlu0 %v7260_v13, %s6811_s19  ;;  %v7379_v0 = vld [vmem:[%s6849_s17 + $0xb0] ss:$0 sps:$4 sm:$0x11]   ;;  %v907_v57 = vor.u32 %v906_v47, %v902_v51  ;;  %v918_v58 = vrot.slane %v916_v45, 1  ;;  %v976_v2 = vshll.u32 %v7269_v55, 16 }
  0x5e   : > { %743 = vrot.lane.b32.xlu1 %v7269_v55, %s6811_s19  ;;  %11651 = vst [vmem:[#allocation85_spill] sm:$0xff] %v7376_v42  ;;  %11652 = vst [vmem:[#allocation86_spill] sm:$0xff] %v7379_v0  ;;  %v957_v47 = vshll.u32 %v7379_v0, 16  ;;  %v7407_v22 = vld [vmem:[%s6849_s17 + $0xbc] ss:$0 sps:$4 sm:$0x11]  }
  0x61   : > { %741 = vrot.lane.b32.xlu0 %v7287_v36, %s6811_s19 }
  0x62   : > { %987 = vrot.lane.b32.xlu1 %v7298_v39, %s6812_s22  ;;  %v870_v39 = vrot.slane %v868_v35, 1  ;;  %v897_v35 = vshll.u32 %v7331_v56, 16 }
  0x64   : > { %v871_v20 = vor.u32 %v870_v39, %v866_v48  ;;  %v7387_v23 = vrot.slane %v897_v35, 1  ;;  %v7389_v39 = vrot.slane %v933_v7, 1  ;;  %v7393_v48 = vld [vmem:[%s6849_s17 + $0xa4] ss:$0 sps:$4 sm:$0x11]   ;;  %v938_v7 = vshrl.u32 %v7260_v13, 16 }
  0x65   : > { %985 = vrot.lane.b32.xlu0 %v7302_v59, %s6812_s22  ;;  %v921_v59 = vshll.u32 %v7342_v50, 16  ;;  %v930_v50 = vrot.slane %v928_v37, 1  ;;  %11655 = vst [vmem:[#allocation89_spill] sm:$0xff] %v7393_v48  ;;  %v940_v37 = vshll.u32 %v7260_v13, 16  ;;  %v945_v13 = vshll.u32 %v7393_v48, 16 }
  0x66   : > { %991 = vrot.lane.b32.xlu1 %v7328_v10, %s6812_s22  ;;  %v890_v10 = vshrl.u32 %v7216_v19, 16  ;;  %v7383_v19 = vrot.slane %v909_v4, 1  ;;  %11654 = vst [vmem:[#allocation88_spill] sm:$0xff] %v7387_v23  ;;  %v950_v4 = vshrl.u32 %v7240_v52, 16 }
  0x67   : > { %v7404_v35 = vld [vmem:[%s6849_s17 + $0xc8] ss:$0 sps:$4 sm:$0x11]   ;;  %v931_v45 = vor.u32 %v930_v50, %v926_v8  ;;  %v942_v0 = vrot.slane %v940_v37, 1  ;;  %v919_v8 = vor.u32 %v918_v58, %v914_v63  ;;  %v1330_v50 = vld [vmem:[%s6849_s17 + $0x90] sm:$0xe] }
  0x68   : > { %11653 = vst [vmem:[#allocation87_spill] sm:$0xff] %v7383_v19  ;;  %v895_v51 = vor.u32 %v894_v17, %v890_v10  ;;  %v974_v17 = vshrl.u32 %v7269_v55, 16  ;;  %v7418_v10 = vsel %vm408_vm0, %v907_v57, %v7383_v19  ;;  %v7437_v37 = vrot.slane %v957_v47, 1 }
  0x69   : > { %989 = vrot.lane.b32.xlu0 %v7352_v62, %s6812_s22  ;;  %v952_v62 = vshll.u32 %v7240_v52, 16  ;;  %11657 = vst [vmem:[#allocation91_spill] sm:$0xff] %v7418_v10  ;;  %v7441_v19 = vrot.slane %v945_v13, 1  ;;  %v981_v63 = vshll.u32 %v7404_v35, 16  ;;  %v969_v58 = vshll.u32 %v7407_v22, 16 }
  0x6a   : > { %995 = vrot.lane.b32.xlu1 %v7356_v30, %s6812_s22  ;;  %v7395_v30 = vrot.slane %v921_v59, 1  ;;  %v7413_v59 = vsel %vm408_vm0, %v871_v20, %v7376_v42  ;;  %v7428_v20 = vsel %vm408_vm0, %v895_v51, %v7387_v23  ;;  %11660 = vst [vmem:[#allocation94_spill] sm:$0xff] %v7437_v37  ;;  %v978_v51 = vrot.slane %v976_v2, 1 }
  0x6b   : > { %11656 = vst [vmem:[#allocation90_spill] sm:$0xff] %v7413_v59  ;;  %v954_v52 = vrot.slane %v952_v62, 1  ;;  %11658 = vst [vmem:[#allocation92_spill] sm:$0xff] %v7428_v20  ;;  %v7435_v62 = vsel %vm408_vm0, %v931_v45, %v7389_v39  ;;  %v943_v23 = vor.u32 %v942_v0, %v938_v7  ;;  %v5894_v42 = vcombine.low %v1330_v50, %v7070_v33 }
  0x6c   : > { %11659 = vst [vmem:[#allocation93_spill] sm:$0xff] %v7435_v62  ;;  %v7456_v2 = vsel %vm408_vm0, %v919_v8, %v7395_v30  ;;  %v979_v7 = vor.u32 %v978_v51, %v974_v17  ;;  %v1321_v51 = vld [vmem:[%s6849_s17 + $0x24] sm:$0xe] }
  0x6d   : > { %993 = vrot.lane.b32.xlu0 %v7365_v32, %s6812_s22  ;;  %v1318_v32 = vld [vmem:[%s6849_s17] sm:$0xe]  ;;  %v955_v57 = vor.u32 %v954_v52, %v950_v4  ;;  %v962_v52 = vshrl.u32 %v7287_v36, 16  ;;  %11661 = vst [vmem:[#allocation95_spill] sm:$0xff] %v7456_v2  ;;  %v1519_v0 = vshrl.u32 %v5894_v42, 16  ;;  %v1521_v33 = vshll.u32 %v5894_v42, 16 }
  0x6e   : > { %999 = vrot.lane.b32.xlu1 %v7374_v34, %s6812_s22  ;;  %v964_v34 = vshll.u32 %v7287_v36, 16  ;;  %v5882_v55 = vcombine.low %v1318_v32, %v6863_v5  ;;  %v1332_v32 = vld [vmem:[%s6849_s17 + $0xa8] sm:$0xe] }
  0x6f   : > { %v7460_v47 = vsel %vm408_vm0, %v955_v57, %v7437_v37  ;;  %v1523_v45 = vrot.slane %v1521_v33, 1  ;;  %v5896_v8 = vcombine.low %v1332_v32, %v7109_v16  ;;  %v5885_v32 = vcombine.low %v1321_v51, %v6876_v12  ;;  %v1322_v33 = vld [vmem:[%s6849_s17 + $0x30] sm:$0xe] }
  0x70   : > { %v966_v4 = vrot.slane %v964_v34, 1  ;;  %v1401_v13 = vshll.u32 %v5882_v55, 16  ;;  %11662 = vst [vmem:[#allocation96_spill] sm:$0xff] %v7460_v47  ;;  %v7462_v34 = vrot.slane %v981_v63, 1  ;;  %v1399_v50 = vshrl.u32 %v5882_v55, 16 }
  0x71   : > { %997 = vrot.lane.b32.xlu0 %v7413_v59, %s6812_s22  ;;  %v1319_v59 = vld [vmem:[%s6849_s17 + $0xc] sm:$0xe]  ;;  %v1539_v63 = vshrl.u32 %v5896_v8, 16  ;;  %v1429_v51 = vshrl.u32 %v5885_v32, 16 }
  0x72   : > { %1003 = vrot.lane.b32.xlu1 %v7418_v10, %s6812_s22  ;;  %v1320_v10 = vld [vmem:[%s6849_s17 + $0x18] sm:$0xe]  ;;  %v5883_v5 = vcombine.low %v1319_v59, %v6884_v18  ;;  %11663 = vst [vmem:[#allocation97_spill] sm:$0xff] %v7462_v34  ;;  %v7466_v18 = vsel %vm408_vm0, %v943_v23, %v7441_v19  ;;  %v7468_v59 = vrot.slane %v969_v58, 1  ;;  %v967_v42 = vor.u32 %v966_v4, %v962_v52 }
  0x73   : > { %11664 = vst [vmem:[#allocation98_spill] sm:$0xff] %v7466_v18  ;;  %v5884_v57 = vcombine.low %v1320_v10, %v6853_v1  ;;  %v1403_v17 = vrot.slane %v1401_v13, 1  ;;  %v1524_v23 = vor.u32 %v1523_v45, %v1519_v0  ;;  %v1541_v58 = vshll.u32 %v5896_v8, 16 }
  0x74   : > { %11665 = vst [vmem:[#allocation99_spill] sm:$0xff] %v7468_v59  ;;  %v1411_v36 = vshll.u32 %v5883_v5, 16  ;;  %v7479_v16 = vsel %vm408_vm0, %v979_v7, %v7462_v34  ;;  %v1406_v1 = vshrl.u32 %v6873_v11, 16  ;;  %v1409_v10 = vshrl.u32 %v5883_v5, 16 }
  0x75   : > { %1001 = vrot.lane.b32.xlu0 %v7428_v20, %s6812_s22  ;;  %11666 = vst [vmem:[#allocation100_spill] sm:$0xff] %v7479_v16  ;;  %v7483_v52 = vsel %vm408_vm0, %v1524_v23, %v7111_v60  ;;  %v1543_v55 = vrot.slane %v1541_v58, 1  ;;  %v1421_v4 = vshll.u32 %v5884_v57, 16  ;;  %v7493_v13 = vsel %vm408_vm0, %v967_v42, %v7468_v59 }
  0x76   : > { %1007 = vrot.lane.b32.xlu1 %v7435_v62, %s6812_s22  ;;  %11667 = vst [vmem:[#allocation101_spill] sm:$0xff] %v7493_v13  ;;  %v1404_v60 = vor.u32 %v1403_v17, %v1399_v50  ;;  %v1413_v0 = vrot.slane %v1411_v36, 1  ;;  %v1416_v11 = vshrl.u32 %v6897_v25, 16  ;;  %v1419_v12 = vshrl.u32 %v5884_v57, 16  ;;  %v1323_v17 = vld [vmem:[%s6849_s17 + $0x3c] sm:$0xe] }
  0x77   : > { %v1544_v7 = vor.u32 %v1543_v55, %v1539_v63  ;;  %v5886_v5 = vcombine.low %v1322_v33, %v6926_v44  ;;  %v1423_v42 = vrot.slane %v1421_v4, 1  ;;  %v1431_v50 = vshll.u32 %v5885_v32, 16  ;;  %v1324_v63 = vld [vmem:[%s6849_s17 + $0x48] sm:$0xe]  ;;  %v1325_v4 = vld [vmem:[%s6849_s17 + $0x54] sm:$0xe] }
  0x78   : > { %v1405_v36 = vsel %vm408_vm0, %v1404_v60, %v6900_v27  ;;  %v1414_v8 = vor.u32 %v1413_v0, %v1409_v10  ;;  %v5887_v25 = vcombine.low %v1323_v17, %v6906_v31  ;;  %v1436_v58 = vshrl.u32 %v6891_v21, 16  ;;  %v11712_v62 = vld [vmem:[#allocation3_spill] sm:$0xff] }
  0x79   : > { %1005 = vrot.lane.b32.xlu0 %v7456_v2, %s6812_s22  ;;  %v7498_v45 = vsel %vm408_vm0, %v1544_v7, %v7137_v53  ;;  %v1426_v53 = vshrl.u32 %v6859_v3, 16  ;;  %v1424_v57 = vor.u32 %v1423_v42, %v1419_v12  ;;  %v1433_v23 = vrot.slane %v1431_v50, 1  ;;  %v1326_v7 = vld [vmem:[%s6849_s17 + $0x60] sm:$0xe]  ;;  %v1327_v50 = vld [vmem:[%s6849_s17 + $0x6c] sm:$0xe] }
  0x7a   : > { %1011 = vrot.lane.b32.xlu1 %v7460_v47, %s6812_s22  ;;  %v1415_v44 = vsel %vm408_vm0, %v1414_v8, %v6929_v46  ;;  %v1441_v27 = vshll.u32 %v5886_v5, 16  ;;  %v1439_v55 = vshrl.u32 %v5886_v5, 16  ;;  %v5888_v3 = vcombine.low %v1324_v63, %v6967_v9  ;;  %v11668_v63 = vld [vmem:[#allocation9_spill] sm:$0xff]  ;;  %v11711_v47 = vld [vmem:[#allocation39_spill] sm:$0xff] }
  0x7b   : > { %v1425_v31 = vsel %vm408_vm0, %v1424_v57, %v6879_v15  ;;  %v1451_v46 = vshll.u32 %v5887_v25, 16  ;;  %v1446_v32 = vshrl.u32 %v6934_v49, 16  ;;  %v1449_v60 = vshrl.u32 %v5887_v25, 16 }
  0x7c   : > { %v1443_v10 = vrot.slane %v1441_v27, 1  ;;  %v1461_v0 = vshll.u32 %v5888_v3, 16  ;;  %v5889_v15 = vcombine.low %v1325_v4, %v6942_v54  ;;  %v1456_v49 = vshrl.u32 %v6921_v41, 16 }
  0x7d   : > { %1009 = vrot.lane.b32.xlu0 %v7466_v18, %s6812_s22  ;;  %v1453_v33 = vrot.slane %v1451_v46, 1  ;;  %v1459_v5 = vshrl.u32 %v5888_v3, 16  ;;  %v1466_v41 = vshrl.u32 %v6977_v24, 16  ;;  %v5891_v57 = vcombine.low %v1327_v50, %v6980_v26  ;;  %v11669_v3 = vld [vmem:[#allocation14_spill] sm:$0xff]  ;;  %v11675_v50 = vld [vmem:[#allocation21_spill] sm:$0xff] }
  0x7e   : > { %1015 = vrot.lane.b32.xlu1 %v7479_v16, %s6812_s22  ;;  %v1444_v9 = vor.u32 %v1443_v10, %v1439_v55  ;;  %v1463_v54 = vrot.slane %v1461_v0, 1  ;;  %v1471_v42 = vshll.u32 %v5889_v15, 16  ;;  %v11670_v10 = vld [vmem:[#allocation22_spill] sm:$0xff]  ;;  %v11710_v16 = vld [vmem:[#allocation5_spill] sm:$0xff] }
  0x7f   : > { %v1454_v8 = vor.u32 %v1453_v33, %v1449_v60  ;;  %v1329_v26 = vld [vmem:[%s6849_s17 + $0x84] sm:$0xe]  ;;  %v11671_v60 = vld [vmem:[#allocation15_spill] sm:$0xff] }
  0x80   : > { %v1464_v25 = vor.u32 %v1463_v54, %v1459_v5  ;;  %v1486_v0 = vshrl.u32 %v11671_v60, 16  ;;  %v11672_v33 = vld [vmem:[#allocation11_spill] sm:$0xff]  ;;  %v11673_v5 = vld [vmem:[#allocation17_spill] sm:$0xff] }
  0x81   : > { %1013 = vrot.lane.b32.xlu0 %v7493_v13, %s6812_s22 }
  0x82   : > { %1560 = vrot.lane.b32.xlu1 %v1406_v1, %s6810_s18  ;;  %v1434_v1 = vor.u32 %v1433_v23, %v1429_v51  ;;  %v1469_v51 = vshrl.u32 %v5889_v15, 16  ;;  %v1328_v23 = vld [vmem:[%s6849_s17 + $0x78] sm:$0xe] }
  0x83   : > { %v5892_v46 = vcombine.low %v1328_v23, %v11670_v10  ;;  %v11676_v23 = vld [vmem:[#allocation24_spill] sm:$0xff] }
  0x84   : > { %v1435_v21 = vsel %vm408_vm0, %v1434_v1, %v6914_v38  ;;  %v1445_v38 = vsel %vm408_vm0, %v1444_v9, %v6962_v6  ;;  %v1455_v6 = vsel %vm408_vm0, %v1454_v8, %v6954_v61  ;;  %v1491_v1 = vshll.u32 %v5891_v57, 16  ;;  %v11674_v8 = vld [vmem:[#allocation13_spill] sm:$0xff] }
  0x85   : > { %1558 = vrot.lane.b32.xlu0 %v1405_v36, %s6810_s18  ;;  %v5890_v36 = vcombine.low %v1326_v7, %v6998_v43  ;;  %v1489_v9 = vshrl.u32 %v5891_v57, 16  ;;  %v1496_v54 = vshrl.u32 %v11674_v8, 16 }
  0x86   : > { %1564 = vrot.lane.b32.xlu1 %v1416_v11, %s6810_s18  ;;  %v1493_v7 = vrot.slane %v1491_v1, 1  ;;  %v11678_v1 = vld [vmem:[#allocation25_spill] sm:$0xff] }
  0x87   : > { %v1481_v43 = vshll.u32 %v5890_v36, 16  ;;  %v1479_v24 = vshrl.u32 %v5890_v36, 16  ;;  %v5893_v36 = vcombine.low %v1329_v26, %v11673_v5  ;;  %v11679_v26 = vld [vmem:[#allocation29_spill] sm:$0xff] }
  0x89   : > { %1562 = vrot.lane.b32.xlu0 %v1415_v44, %s6810_s18  ;;  %v1473_v44 = vrot.slane %v1471_v42, 1  ;;  %v1483_v55 = vrot.slane %v1481_v43, 1  ;;  %v1499_v42 = vshrl.u32 %v5892_v46, 16  ;;  %v1494_v43 = vor.u32 %v1493_v7, %v1489_v9 }
  0x8a   : > { %1568 = vrot.lane.b32.xlu1 %v1426_v53, %s6810_s18 }
  0x8b   : > { %v1474_v61 = vor.u32 %v1473_v44, %v1469_v51  ;;  %v1331_v44 = vld [vmem:[%s6849_s17 + $0x9c] sm:$0xe] }
  0x8c   : > { %v5895_v10 = vcombine.low %v1331_v44, %v11678_v1 }
  0x8d   : > { %1566 = vrot.lane.b32.xlu0 %v1425_v31, %s6810_s18  ;;  %v1465_v31 = vsel %vm408_vm0, %v1464_v25, %v11669_v3  ;;  %v1475_v15 = vsel %vm408_vm0, %v1474_v61, %v11672_v33  ;;  %v1511_v25 = vshll.u32 %v5893_v36, 16 }
  0x8e   : > { %1572 = vrot.lane.b32.xlu1 %v1436_v58, %s6810_s18  ;;  %v1476_v58 = vshrl.u32 %v11668_v63, 16  ;;  %v1506_v63 = vshrl.u32 %v11676_v23, 16  ;;  %v1531_v33 = vshll.u32 %v5895_v10, 16 }
  0x8f   : > { %v7529_v11 = vpop.permute.xlu1 %605  ;;  %v1513_v61 = vrot.slane %v1511_v25, 1  ;;  %v11684_v25 = vld [vmem:[#allocation28_spill] sm:$0xff] }
  0x90   : > { %v7532_v12 = vpop.permute.xlu0 %601  ;;  %v1536_v44 = vshrl.u32 %v11684_v25, 16 }
  0x91   : > { %1570 = vrot.lane.b32.xlu0 %v1435_v21, %s6810_s18  ;;  %v1484_v21 = vor.u32 %v1483_v55, %v1479_v24  ;;  %v11677_v24 = vld [vmem:[#allocation19_spill] sm:$0xff] }
  0x92   : > { %1576 = vrot.lane.b32.xlu1 %v1446_v32, %s6810_s18  ;;  %v1495_v55 = vsel %vm408_vm0, %v1494_v43, %v11677_v24 }
  0x93   : > { %v7540_v17 = vpop.permute.xlu1 %607 }
  0x94   : > { %v7543_v53 = vpop.permute.xlu0 %603 }
  0x95   : > { %1574 = vrot.lane.b32.xlu0 %v1445_v38, %s6810_s18  ;;  %v1021_v13 = vsel %vm1017_vm1, %v11710_v16, %v7543_v53 }
  0x96   : > { %1580 = vrot.lane.b32.xlu1 %v1456_v49, %s6810_s18  ;;  %v1501_v49 = vshll.u32 %v5892_v46, 16 }
  0x97   : > { %v7551_v27 = vpop.permute.xlu1 %611 }
  0x99   : > { %1578 = vrot.lane.b32.xlu0 %v1455_v6, %s6810_s18  ;;  %v1503_v6 = vrot.slane %v1501_v49, 1  ;;  %v11681_v49 = vld [vmem:[#allocation30_spill] sm:$0xff] }
  0x9a   : > { %1584 = vrot.lane.b32.xlu1 %v1466_v41, %s6810_s18  ;;  %v7559_v4 = vpop.permute.xlu0 %609  ;;  %v1485_v41 = vsel %vm408_vm0, %v1484_v21, %v11675_v50  ;;  %v1526_v5 = vshrl.u32 %v11681_v49, 16  ;;  %v11683_v50 = vld [vmem:[#allocation32_spill] sm:$0xff]  ;;  %v11691_v49 = vld [vmem:[#allocation38_spill] sm:$0xff] }
  0x9b   : > { %v7562_v32 = vpop.permute.xlu1 %615 }
  0x9d   : > { %1582 = vrot.lane.b32.xlu0 %v1465_v31, %s6810_s18  ;;  %v1504_v31 = vor.u32 %v1503_v6, %v1499_v42  ;;  %v1533_v42 = vrot.slane %v1531_v33, 1 }
  0x9e   : > { %1588 = vrot.lane.b32.xlu1 %v1476_v58, %s6810_s18  ;;  %v7570_v38 = vpop.permute.xlu0 %613  ;;  %v1509_v58 = vshrl.u32 %v5893_v36, 16  ;;  %v11682_v36 = vld [vmem:[#allocation26_spill] sm:$0xff] }
  0x9f   : > { %v1505_v60 = vsel %vm408_vm0, %v1504_v31, %v11679_v26 }
  0xa0   : > { %v7577_v51 = vpop.permute.xlu1 %619  ;;  %v1514_v9 = vor.u32 %v1513_v61, %v1509_v58  ;;  %v11687_v61 = vld [vmem:[#allocation37_spill] sm:$0xff] }
  0xa1   : > { %1586 = vrot.lane.b32.xlu0 %v1475_v15, %s6810_s18  ;;  %v1333_v15 = vld [vmem:[%s6849_s17 + $0xb4] sm:$0xe]  ;;  %v1546_v1 = vshrl.u32 %v11687_v61, 16  ;;  %v11705_v61 = vld [vmem:[#allocation67_spill] sm:$0xff] }
  0xa2   : > { %1592 = vrot.lane.b32.xlu1 %v1486_v0, %s6810_s18  ;;  %v11680_v0 = vld [vmem:[#allocation20_spill] sm:$0xff]  ;;  %v1515_v8 = vsel %vm408_vm0, %v1514_v9, %v11682_v36 }
  0xa3   : > { %v1516_v21 = vshrl.u32 %v11680_v0, 16 }
  0xa4   : > { %v7581_v57 = vpop.permute.xlu0 %617 }
  0xa5   : > { %1590 = vrot.lane.b32.xlu0 %v1485_v41, %s6810_s18  ;;  %v7587_v3 = vpop.permute.xlu1 %623  ;;  %v5897_v41 = vcombine.low %v1333_v15, %v11683_v50 }
  0xa6   : > { %1596 = vrot.lane.b32.xlu1 %v1496_v54, %s6810_s18  ;;  %v1529_v54 = vshrl.u32 %v5895_v10, 16 }
  0xa7   : > { %v1549_v10 = vshrl.u32 %v5897_v41, 16 }
  0xa8   : > { %v7591_v46 = vpop.permute.xlu0 %621  ;;  %v1534_v23 = vor.u32 %v1533_v42, %v1529_v54  ;;  %v11694_v54 = vld [vmem:[#allocation55_spill] sm:$0xff] }
  0xa9   : > { %1594 = vrot.lane.b32.xlu0 %v1495_v55, %s6810_s18  ;;  %v11686_v55 = vld [vmem:[#allocation34_spill] sm:$0xff] }
  0xaa   : > { %1600 = vrot.lane.b32.xlu1 %v1506_v63, %s6810_s18  ;;  %v1551_v63 = vshll.u32 %v5897_v41, 16  ;;  %v1535_v31 = vsel %vm408_vm0, %v1534_v23, %v11686_v55  ;;  %v11698_v41 = vld [vmem:[#allocation60_spill] sm:$0xff]  ;;  %v11701_v23 = vld [vmem:[#allocation63_spill] sm:$0xff] }
  0xab   : > { %v7598_v7 = vpop.permute.xlu1 %627 }
  0xac   : > { %v1553_v26 = vrot.slane %v1551_v63, 1 }
  0xad   : > { %1598 = vrot.lane.b32.xlu0 %v1505_v60, %s6810_s18 }
  0xae   : > { %1604 = vrot.lane.b32.xlu1 %v1516_v21, %s6810_s18  ;;  %v11689_v21 = vld [vmem:[#allocation35_spill] sm:$0xff] }
  0xaf   : > { %v7606_v43 = vpop.permute.xlu0 %625  ;;  %v1556_v9 = vshrl.u32 %v11689_v21, 16  ;;  %v11708_v21 = vld [vmem:[#allocation41_spill] sm:$0xff] }
  0xb0   : > { %v7608_v6 = vpop.permute.xlu1 %631 }
  0xb1   : > { %1602 = vrot.lane.b32.xlu0 %v1515_v8, %s6810_s18 }
  0xb2   : > { %1608 = vrot.lane.b32.xlu1 %v1526_v5, %s6810_s18 }
  0xb3   : > { %v7613_v58 = vpop.permute.xlu0 %629 }
  0xb4   : > { %v7615_v24 = vpop.permute.xlu1 %715 }
  0xb5   : > { %11685 = vst [vmem:[#allocation9_spill] sm:$0xff] %v7615_v24  ;;  %1606 = vrot.lane.b32.xlu0 %v7483_v52, %s6810_s18  ;;  %v1554_v52 = vor.u32 %v1553_v26, %v1549_v10  ;;  %v5866_v10 = vld [vmem:[%s6849_s17 + $0xc] sm:$0xe] }
  0xb6   : > { %1612 = vrot.lane.b32.xlu1 %v1536_v44, %s6810_s18 }
  0xb7   : > { %v7623_v60 = vpop.permute.xlu0 %713  ;;  %v1555_v5 = vsel %vm408_vm0, %v1554_v52, %v11691_v49  ;;  %v5867_v52 = vld [vmem:[%s6849_s17 + $0x18] sm:$0xe] }
  0xb8   : > { %11688 = vst [vmem:[#allocation14_spill] sm:$0xff] %v7623_v60  ;;  %v7625_v0 = vpop.permute.xlu1 %719  ;;  %v5899_v18 = vcombine.low %v5867_v52, %v11711_v47  ;;  %v5868_v47 = vld [vmem:[%s6849_s17 + $0x24] sm:$0xe] }
  0xb9   : > { %1610 = vrot.lane.b32.xlu0 %v1535_v31, %s6810_s18  ;;  %v11704_v31 = vld [vmem:[#allocation66_spill] sm:$0xff] }
  0xba   : > { %1616 = vrot.lane.b32.xlu1 %v1546_v1, %s6810_s18 }
  0xbb   : > { %v7630_v33 = vpop.permute.xlu0 %717 }
  0xbc   : > { %v7632_v15 = vpop.permute.xlu1 %723 }
  0xbd   : > { %11690 = vst [vmem:[#allocation22_spill] sm:$0xff] %v7632_v15  ;;  %1614 = vrot.lane.b32.xlu0 %v7498_v45, %s6810_s18  ;;  %v11697_v45 = vld [vmem:[#allocation57_spill] sm:$0xff] }
  0xbe   : > { %1620 = vrot.lane.b32.xlu1 %v1556_v9, %s6810_s18  ;;  %v5898_v9 = vcombine.low %v5866_v10, %v11708_v21  ;;  %v1019_v10 = vsel %vm1017_vm1, %v11712_v62, %v7532_v12  ;;  %v1054_v21 = vsel %vm1050_vm2, %v1021_v13, %v7615_v24  ;;  %v11713_v12 = vld [vmem:[#allocation80_spill] sm:$0xff]  ;;  %v1715_v13 = vshll.u32 %v5899_v18, 16 }
  0xbf   : > { %v7639_v36 = vpop.permute.xlu0 %721  ;;  %v1052_v16 = vsel %vm1050_vm2, %v1019_v10, %v7623_v60  ;;  %v11716_v60 = vld [vmem:[#allocation45_spill] sm:$0xff] }
  0xc0   : > { %11692 = vst [vmem:[#allocation15_spill] sm:$0xff] %v7639_v36  ;;  %v7641_v8 = vpop.permute.xlu1 %727  ;;  %v1705_v2 = vshll.u32 %v5898_v9, 16  ;;  %v1703_v10 = vshrl.u32 %v5898_v9, 16  ;;  %v11717_v9 = vld [vmem:[#allocation42_spill] sm:$0xff] }
  0xc1   : > { %11693 = vst [vmem:[#allocation11_spill] sm:$0xff] %v7641_v8  ;;  %1618 = vrot.lane.b32.xlu0 %v1555_v5, %s6810_s18 }
  0xc2   : > { %1624 = vrot.lane.b32.xlu1 %v11694_v54, %s6811_s19 }
  0xc3   : > { %v7646_v42 = vpop.permute.xlu0 %725 }
  0xc4   : > { %11695 = vst [vmem:[#allocation17_spill] sm:$0xff] %v7646_v42  ;;  %v7648_v50 = vpop.permute.xlu1 %731 }
  0xc5   : > { %11696 = vst [vmem:[#allocation13_spill] sm:$0xff] %v7648_v50  ;;  %1622 = vrot.lane.b32.xlu0 %v11697_v45, %s6811_s19 }
  0xc6   : > { %1628 = vrot.lane.b32.xlu1 %v11698_v41, %s6811_s19 }
  0xc7   : > { %v7654_v25 = vpop.permute.xlu0 %729 }
  0xc8   : > { %11699 = vst [vmem:[#allocation21_spill] sm:$0xff] %v7654_v25  ;;  %v7656_v44 = vpop.permute.xlu1 %735 }
  0xc9   : > { %11700 = vst [vmem:[#allocation24_spill] sm:$0xff] %v7656_v44  ;;  %1626 = vrot.lane.b32.xlu0 %v11701_v23, %s6811_s19 }
  0xca   : > { %1632 = vrot.lane.b32.xlu1 %v7274_v29, %s6811_s19 }
  0xcb   : > { %v7662_v63 = vpop.permute.xlu0 %733 }
  0xcc   : > { %11702 = vst [vmem:[#allocation19_spill] sm:$0xff] %v7662_v63  ;;  %v7664_v55 = vpop.permute.xlu1 %739 }
  0xcd   : > { %11703 = vst [vmem:[#allocation25_spill] sm:$0xff] %v7664_v55  ;;  %1630 = vrot.lane.b32.xlu0 %v11704_v31, %s6811_s19 }
  0xce   : > { %1636 = vrot.lane.b32.xlu1 %v11705_v61, %s6811_s19 }
  0xcf   : > { %v7670_v1 = vpop.permute.xlu0 %737 }
  0xd0   : > { %11706 = vst [vmem:[#allocation29_spill] sm:$0xff] %v7670_v1  ;;  %v7673_v26 = vpop.permute.xlu1 %743 }
  0xd1   : > { %11707 = vst [vmem:[#allocation20_spill] sm:$0xff] %v7673_v26  ;;  %1634 = vrot.lane.b32.xlu0 %v7313_v14, %s6811_s19 }
  0xd2   : > { %1640 = vrot.lane.b32.xlu1 %v7323_v28, %s6811_s19 }
  0xd3   : > { %v7681_v49 = vpop.permute.xlu0 %741 }
  0xd4   : > { %11709 = vst [vmem:[#allocation30_spill] sm:$0xff] %v7681_v49  ;;  %v988_v5 = vpop.permute.xlu1 %987 }
  0xd5   : > { %1638 = vrot.lane.b32.xlu0 %v7331_v56, %s6811_s19  ;;  %v1087_v53 = vsel %vm1083_vm3, %v1054_v21, %v988_v5  ;;  %v11715_v5 = vld [vmem:[#allocation86_spill] sm:$0xff]  ;;  %v1707_v21 = vrot.slane %v1705_v2, 1 }
  0xd6   : > { %1644 = vrot.lane.b32.xlu1 %v7334_v40, %s6811_s19  ;;  %v11714_v40 = vld [vmem:[#allocation2_spill] sm:$0xff] }
  0xd7   : > { %v986_v20 = vpop.permute.xlu0 %985  ;;  %v1023_v24 = vsel %vm1017_vm1, %v11714_v40, %v7529_v11  ;;  %v1713_v11 = vshrl.u32 %v5899_v18, 16  ;;  %v5870_v18 = vld [vmem:[%s6849_s17 + $0x3c] sm:$0xe] }
  0xd8   : > { %v1085_v52 = vsel %vm1083_vm3, %v1052_v16, %v986_v20  ;;  %v992_v34 = vpop.permute.xlu1 %991  ;;  %v5900_v20 = vcombine.low %v5868_v47, %v11716_v60  ;;  %v5869_v16 = vld [vmem:[%s6849_s17 + $0x30] sm:$0xe]  ;;  %v1056_v62 = vsel %vm1050_vm2, %v1023_v24, %v7630_v33  ;;  %v1708_v24 = vor.u32 %v1707_v21, %v1703_v10 }
  0xd9   : > { %1642 = vrot.lane.b32.xlu0 %v11713_v12, %s6811_s19  ;;  %6220 = vmatprep.mubr.msk.bf16.mxu0 %vm1124_vm4, %v1085_v52  ;;  %v5901_v2 = vcombine.low %v5869_v16, %v11717_v9  ;;  %v11720_v10 = vshrl.u32 %v11697_v45, 16 }
  0xda   : > { %6221 = vmatmul.mubr.msk.bf16.vlgmr.msra.gmra.mrb[0].mxu0 %vm1124_vm4, %v1087_v53  ;;  %1648 = vrot.lane.b32.xlu1 %v11715_v5, %s6811_s19  ;;  %v1717_v53 = vrot.slane %v1715_v13, 1  ;;  %v1725_v47 = vshll.u32 %v5900_v20, 16  ;;  %v11718_v5 = vld [vmem:[#allocation4_spill] sm:$0xff]  ;;  %v11719_v13 = vld [vmem:[#allocation7_spill] sm:$0xff]  ;;  %v1723_v21 = vshrl.u32 %v5900_v20, 16  ;;  %v11721_v20 = vld [vmem:[#allocation65_spill] sm:$0xff] }
  0xdb   : > { %v990_v52 = vpop.permute.xlu0 %989  ;;  %v1027_v16 = vsel %vm1017_vm1, %v11719_v13, %v7559_v4  ;;  %v1735_v4 = vshll.u32 %v5901_v2, 16  ;;  %v7749_v13 = vsel %vm408_vm0, %v1708_v24, %v11721_v20  ;;  %v11724_v24 = vshrl.u32 %v11694_v54, 16 }
  0xdc   : > { %v1089_v59 = vsel %vm1083_vm3, %v1056_v62, %v990_v52  ;;  %v996_v37 = vpop.permute.xlu1 %995  ;;  %v6717_v62 = vld [vmem:[%s11258_s1 + $0x8] sm:$0xff]   ;;  %v1025_v52 = vsel %vm1017_vm1, %v11718_v5, %v7540_v17  ;;  %v1060_v60 = vsel %vm1050_vm2, %v1027_v16, %v7639_v36  ;;  %v1718_v5 = vor.u32 %v1717_v53, %v1713_v11 }
  0xdd   : > { %1646 = vrot.lane.b32.xlu0 %v7393_v48, %s6811_s19  ;;  %6224 = vmatprep.mubr.msk.bf16.mxu0 %vm1124_vm4, %v1089_v59  ;;  %v1727_v16 = vrot.slane %v1725_v47, 1  ;;  %v11725_v47 = vld [vmem:[#allocation62_spill] sm:$0xff] }
  0xde   : > { %1652 = vrot.lane.b32.xlu1 %v7404_v35, %s6811_s19  ;;  %v1058_v35 = vsel %vm1050_vm2, %v1025_v52, %v7625_v0  ;;  %6252 = vmatprep.subr.bf16.mxu1 %v6717_v62 }
  0xdf   : > { %v994_v59 = vpop.permute.xlu0 %993  ;;  %v1091_v17 = vsel %vm1083_vm3, %v1058_v35, %v992_v34  ;;  %6253 = vmatpush3.bf16.msra.mxu1 %v6717_v62  ;;  %v11722_v34 = vld [vmem:[#allocation49_spill] sm:$0xff]  ;;  %v1737_v62 = vrot.slane %v1735_v4, 1  ;;  %v5872_v4 = vld [vmem:[%s6849_s17 + $0x54] sm:$0xe] }
  0xe0   : > { %v7734_v9 = vpop.permute.xlu1 %999  ;;  %v1093_v52 = vsel %vm1083_vm3, %v1060_v60, %v994_v59  ;;  %v5902_v35 = vcombine.low %v5870_v18, %v11722_v34  ;;  %v1733_v60 = vshrl.u32 %v5901_v2, 16  ;;  %v11723_v59 = vld [vmem:[#allocation46_spill] sm:$0xff]  ;;  %v7764_v18 = vsel %vm408_vm0, %v1718_v5, %v11725_v47 }
  0xe1   : > { %1650 = vrot.lane.b32.xlu0 %v7407_v22, %s6811_s19  ;;  %v5871_v22 = vld [vmem:[%s6849_s17 + $0x48] sm:$0xe]  ;;  %v11726_v34 = vld [vmem:[#allocation6_spill] sm:$0xff] }
  0xe2   : > { %6225 = vmatmul.mubr.msk.bf16.gmra.mrb[4].mxu0 %vm1124_vm4, %v1091_v17  ;;  %1864 = vrot.lane.b32.xlu1 %v11720_v10, %s6812_s22  ;;  %v5903_v10 = vcombine.low %v5871_v22, %v11723_v59  ;;  %v1745_v20 = vshll.u32 %v5902_v35, 16  ;;  %v1029_v36 = vsel %vm1017_vm1, %v11726_v34, %v7551_v27  ;;  %v11727_v22 = vld [vmem:[#allocation10_spill] sm:$0xff]  ;;  %v1738_v17 = vor.u32 %v1737_v62, %v1733_v60 }
  0xe3   : > { %6228 = vmatprep.mubr.msk.bf16.mxu0 %vm1124_vm4, %v1093_v52  ;;  %v998_v11 = vpop.permute.xlu0 %997  ;;  %v1728_v52 = vor.u32 %v1727_v16, %v1723_v21  ;;  %v1031_v59 = vsel %vm1017_vm1, %v11727_v22, %v7570_v38  ;;  %v1743_v16 = vshrl.u32 %v5902_v35, 16  ;;  %v11729_v35 = vld [vmem:[#allocation73_spill] sm:$0xff] }
  0xe4   : > { %v7754_v53 = vpop.permute.xlu1 %1003  ;;  %v1064_v47 = vsel %vm1050_vm2, %v1031_v59, %v7646_v42  ;;  %v1755_v38 = vshll.u32 %v5903_v10, 16  ;;  %v1747_v59 = vrot.slane %v1745_v20, 1  ;;  %v5873_v42 = vld [vmem:[%s6849_s17 + $0x60] sm:$0xe]  ;;  %v11731_v20 = vld [vmem:[#allocation71_spill] sm:$0xff] }
  0xe5   : > { %1862 = vrot.lane.b32.xlu0 %v7749_v13, %s6812_s22  ;;  %v1097_v22 = vsel %vm1083_vm3, %v1064_v47, %v998_v11  ;;  %v7791_v21 = vsel %vm408_vm0, %v1728_v52, %v11729_v35  ;;  %v1753_v11 = vshrl.u32 %v5903_v10, 16  ;;  %v11730_v52 = vshrl.u32 %v11698_v41, 16 }
  0xe6   : > { %1868 = vrot.lane.b32.xlu1 %v11724_v24, %s6812_s22  ;;  %v1062_v24 = vsel %vm1050_vm2, %v1029_v36, %v7632_v15  ;;  %v11728_v36 = vshrl.u32 %v11701_v23, 16  ;;  %v1757_v47 = vrot.slane %v1755_v38, 1  ;;  %v1748_v35 = vor.u32 %v1747_v59, %v1743_v16  ;;  %v11732_v15 = vld [vmem:[#allocation8_spill] sm:$0xff]  ;;  %v5874_v38 = vld [vmem:[%s6849_s17 + $0x6c] sm:$0xe] }
  0xe7   : > { %v1002_v2 = vpop.permute.xlu0 %1001  ;;  %v1095_v27 = vsel %vm1083_vm3, %v1062_v24, %v996_v37  ;;  %v6756_v37 = vld [vmem:[%s6849_s17 + $0x58] sm:$0xf]  ;;  %v1033_v34 = vsel %vm1017_vm1, %v11732_v15, %v7562_v32  ;;  %v11734_v16 = vshrl.u32 %v11704_v31, 16 }
  0xe8   : > { %v7776_v5 = vpop.permute.xlu1 %1007  ;;  %v5904_v24 = vcombine.low %v5872_v4, %v6756_v37  ;;  %v7806_v4 = vsel %vm408_vm0, %v1738_v17, %v11731_v20  ;;  %v1066_v17 = vsel %vm1050_vm2, %v1033_v34, %v7641_v8  ;;  %v11738_v8 = vld [vmem:[#allocation12_spill] sm:$0xff] }
  0xe9   : > { %1866 = vrot.lane.b32.xlu0 %v7764_v18, %s6812_s22  ;;  %v1099_v20 = vsel %vm1083_vm3, %v1066_v17, %v7734_v9  ;;  %v6758_v9 = vld [vmem:[%s6849_s17 + $0x70] sm:$0xf]  ;;  %v1037_v15 = vsel %vm1017_vm1, %v11738_v8, %v7577_v51 }
  0xea   : > { %6229 = vmatmul.mubr.msk.bf16.gmra.mrb[8].mxu0 %vm1124_vm4, %v1095_v27  ;;  %1872 = vrot.lane.b32.xlu1 %v11728_v36, %s6812_s22  ;;  %v6757_v27 = vld [vmem:[%s6849_s17 + $0x64] sm:$0xf]  ;;  %v1765_v37 = vshll.u32 %v5904_v24, 16  ;;  %v1763_v59 = vshrl.u32 %v5904_v24, 16  ;;  %v5906_v17 = vcombine.low %v5874_v38, %v6758_v9 }
  0xeb   : > { %6232 = vmatprep.mubr.msk.bf16.mxu0 %vm1124_vm4, %v1097_v22  ;;  %v1006_v60 = vpop.permute.xlu0 %1005  ;;  %v5905_v36 = vcombine.low %v5873_v42, %v6757_v27  ;;  %v11733_v42 = vld [vmem:[#allocation16_spill] sm:$0xff]  ;;  %v1758_v22 = vor.u32 %v1757_v47, %v1753_v11  ;;  %v11735_v24 = vld [vmem:[#allocation78_spill] sm:$0xff] }
  0xec   : > { %v7796_v62 = vpop.permute.xlu1 %1011  ;;  %v1035_v27 = vsel %vm1017_vm1, %v11733_v42, %v7581_v57  ;;  %v5875_v42 = vld [vmem:[%s6849_s17 + $0x78] sm:$0xe]  ;;  %v1785_v9 = vshll.u32 %v5906_v17, 16 }
  0xed   : > { %1870 = vrot.lane.b32.xlu0 %v7791_v21, %s6812_s22  ;;  %v1068_v32 = vsel %vm1050_vm2, %v1035_v27, %v7654_v25  ;;  %v1775_v57 = vshll.u32 %v5905_v36, 16  ;;  %v7836_v27 = vsel %vm408_vm0, %v1748_v35, %v11735_v24  ;;  %v1767_v25 = vrot.slane %v1765_v37, 1  ;;  %v11737_v37 = vld [vmem:[#allocation74_spill] sm:$0xff] }
  0xee   : > { %1876 = vrot.lane.b32.xlu1 %v11730_v52, %s6812_s22  ;;  %v1101_v34 = vsel %vm1083_vm3, %v1068_v32, %v1002_v2  ;;  %v1773_v47 = vshrl.u32 %v5905_v36, 16  ;;  %v6759_v32 = vld [vmem:[%s6849_s17 + $0x7c] sm:$0xf]  ;;  %v11736_v35 = vshrl.u32 %v7274_v29, 16  ;;  %v7853_v38 = vsel %vm408_vm0, %v1758_v22, %v11737_v37 }
  0xef   : > { %v7812_v10 = vpop.permute.xlu0 %1009  ;;  %v1768_v24 = vor.u32 %v1767_v25, %v1763_v59  ;;  %v1070_v22 = vsel %vm1050_vm2, %v1037_v15, %v7648_v50  ;;  %v1783_v59 = vshrl.u32 %v5906_v17, 16  ;;  %v11740_v25 = vshrl.u32 %v7313_v14, 16  ;;  %v11741_v17 = vld [vmem:[#allocation85_spill] sm:$0xff]  ;;  %v11746_v14 = vld [vmem:[#allocation18_spill] sm:$0xff] }
  0xf0   : > { %v7820_v52 = vpop.permute.xlu1 %1015  ;;  %v1103_v37 = vsel %vm1083_vm3, %v1070_v22, %v7754_v53  ;;  %v6760_v53 = vld [vmem:[%s6849_s17 + $0x88] sm:$0xf] }
  0xf1   : > { %1874 = vrot.lane.b32.xlu0 %v7806_v4, %s6812_s22 }
  0xf2   : > { %6233 = vmatmul.mubr.msk.bf16.gmra.mrb[12].mxu0 %vm1124_vm4, %v1099_v20  ;;  %1880 = vrot.lane.b32.xlu1 %v11734_v16, %s6812_s22  ;;  %v1777_v16 = vrot.slane %v1775_v57, 1  ;;  %v5907_v20 = vcombine.low %v5875_v42, %v6759_v32  ;;  %v5876_v57 = vld [vmem:[%s6849_s17 + $0x84] sm:$0xe]  ;;  %v11739_v42 = vld [vmem:[#allocation23_spill] sm:$0xff] }
  0xf3   : > { %6236 = vmatprep.mubr.msk.bf16.mxu0 %vm1124_vm4, %v1101_v34  ;;  %v7841_v11 = vpop.permute.xlu0 %1013  ;;  %v1039_v32 = vsel %vm1017_vm1, %v11739_v42, %v7591_v46  ;;  %v5908_v22 = vcombine.low %v5876_v57, %v6760_v53  ;;  %v5877_v42 = vld [vmem:[%s6849_s17 + $0x90] sm:$0xe] }
  0xf4   : > { %v7843_v2 = vpop.permute.xlu1 %1560  ;;  %v1072_v51 = vsel %vm1050_vm2, %v1039_v32, %v7662_v63  ;;  %v1778_v34 = vor.u32 %v1777_v16, %v1773_v47  ;;  %v1795_v46 = vshll.u32 %v5907_v20, 16  ;;  %v7883_v32 = vsel %vm408_vm0, %v1768_v24, %v11741_v17 }
  0xf5   : > { %1878 = vrot.lane.b32.xlu0 %v7836_v27, %s6812_s22  ;;  %v1105_v15 = vsel %vm1083_vm3, %v1072_v51, %v1006_v60  ;;  %11742 = vst [vmem:[#allocation26_spill] sm:$0xff] %v7883_v32  ;;  %v1787_v63 = vrot.slane %v1785_v9, 1  ;;  %v1793_v16 = vshrl.u32 %v5907_v20, 16  ;;  %v6761_v51 = vld [vmem:[%s6849_s17 + $0x94] sm:$0xf]  ;;  %v11743_v24 = vshrl.u32 %v11705_v61, 16 }
  0xf6   : > { %1884 = vrot.lane.b32.xlu1 %v11736_v35, %s6812_s22  ;;  %v11744_v9 = vld [vmem:[#allocation79_spill] sm:$0xff]  ;;  %v1805_v53 = vshll.u32 %v5908_v22, 16 }
  0xf7   : > { %v7859_v36 = vpop.permute.xlu0 %1558  ;;  %v7900_v57 = vsel %vm408_vm0, %v1778_v34, %v11744_v9  ;;  %v1788_v17 = vor.u32 %v1787_v63, %v1783_v59  ;;  %v1803_v59 = vshrl.u32 %v5908_v22, 16  ;;  %v11748_v22 = vshrl.u32 %v7331_v56, 16  ;;  %v11749_v63 = vld [vmem:[#allocation88_spill] sm:$0xff]  ;;  %v11754_v56 = vld [vmem:[#allocation27_spill] sm:$0xff] }
  0xf8   : > { %v7867_v35 = vpop.permute.xlu1 %1564  ;;  %11745 = vst [vmem:[#allocation32_spill] sm:$0xff] %v7900_v57 }
  0xf9   : > { %1882 = vrot.lane.b32.xlu0 %v7853_v38, %s6812_s22 }
  0xfa   : > { %6237 = vmatmul.mubr.msk.bf16.gmra.mrb[16].mxu0 %vm1124_vm4, %v1103_v37  ;;  %1888 = vrot.lane.b32.xlu1 %v11740_v25, %s6812_s22  ;;  %v1797_v25 = vrot.slane %v1795_v46, 1  ;;  %v5909_v37 = vcombine.low %v5877_v42, %v6761_v51  ;;  %v5878_v46 = vld [vmem:[%s6849_s17 + $0x9c] sm:$0xe]  ;;  %v11747_v42 = vld [vmem:[#allocation31_spill] sm:$0xff] }
  0xfb   : > { %6240 = vmatprep.mubr.msk.bf16.mxu0 %vm1124_vm4, %v1105_v15  ;;  %v7888_v47 = vpop.permute.xlu0 %1562  ;;  %v1043_v51 = vsel %vm1017_vm1, %v11747_v42, %v7606_v43  ;;  %v8161_v42 = vld [vmem:[%s6849_s17 + $0x38] ss:$0 sps:$4 sm:$0x11]  }
  0xfc   : > { %v7890_v60 = vpop.permute.xlu1 %1568  ;;  %v1798_v15 = vor.u32 %v1797_v25, %v1793_v16  ;;  %v1815_v43 = vshll.u32 %v5909_v37, 16  ;;  %v1813_v25 = vshrl.u32 %v5909_v37, 16 }
  0xfd   : > { %1886 = vrot.lane.b32.xlu0 %v7883_v32, %s6812_s22  ;;  %v1041_v32 = vsel %vm1017_vm1, %v11746_v14, %v7587_v3  ;;  %v1076_v3 = vsel %vm1050_vm2, %v1043_v51, %v7670_v1  ;;  %v7931_v51 = vsel %vm408_vm0, %v1788_v17, %v11749_v63  ;;  %v5942_v14 = vld [vmem:[%s6849_s17 + $0x4c] sm:$0xf] }
  0xfe   : > { %1892 = vrot.lane.b32.xlu1 %v11743_v24, %s6812_s22  ;;  %v1074_v34 = vsel %vm1050_vm2, %v1041_v32, %v7656_v44  ;;  %v1109_v32 = vsel %vm1083_vm3, %v1076_v3, %v7812_v10  ;;  %11750 = vst [vmem:[#allocation28_spill] sm:$0xff] %v7931_v51  ;;  %v1817_v3 = vrot.slane %v1815_v43, 1  ;;  %v5880_v43 = vld [vmem:[%s6849_s17 + $0xb4] sm:$0xe] }
  0xff   : > { %v7906_v20 = vpop.permute.xlu0 %1566  ;;  %v1107_v9 = vsel %vm1083_vm3, %v1074_v34, %v7776_v5  ;;  %v1807_v5 = vrot.slane %v1805_v53, 1  ;;  %v6762_v34 = vld [vmem:[%s6849_s17 + $0xa0] sm:$0xf]  ;;  %v11751_v53 = vshrl.u32 %v7323_v28, 16 }
 0x100   : > { %v7914_v24 = vpop.permute.xlu1 %1572  ;;  %v5910_v61 = vcombine.low %v5878_v46, %v6762_v34  ;;  %v11752_v46 = vld [vmem:[#allocation87_spill] sm:$0xff] }
 0x101   : > { %1890 = vrot.lane.b32.xlu0 %v7900_v57, %s6812_s22  ;;  %v5879_v57 = vld [vmem:[%s6849_s17 + $0xa8] sm:$0xe]  ;;  %v7948_v63 = vsel %vm408_vm0, %v1798_v15, %v11752_v46  ;;  %v7965_v46 = vld [vmem:[%s6849_s17 + $0x98] ss:$0 sps:$4 sm:$0x11]  }
 0x102   : > { %6241 = vmatmul.mubr.msk.bf16.gmra.mrb[20].mxu0 %vm1124_vm4, %v1107_v9  ;;  %1896 = vrot.lane.b32.xlu1 %v11748_v22, %s6812_s22  ;;  %v6763_v9 = vld [vmem:[%s6849_s17 + $0xac] sm:$0xf]  ;;  %11753 = vst [vmem:[#allocation34_spill] sm:$0xff] %v7948_v63  ;;  %v1808_v22 = vor.u32 %v1807_v5, %v1803_v59  ;;  %v1825_v34 = vshll.u32 %v5910_v61, 16  ;;  %11756 = vst [vmem:[#allocation37_spill] sm:$0xff] %v7965_v46  ;;  %v1823_v5 = vshrl.u32 %v5910_v61, 16 }
 0x103   : > { %6244 = vmatprep.mubr.msk.bf16.mxu0 %vm1124_vm4, %v1109_v32  ;;  %v7936_v16 = vpop.permute.xlu0 %1570  ;;  %v5911_v17 = vcombine.low %v5879_v57, %v6763_v9  ;;  %v11755_v57 = vld [vmem:[#allocation36_spill] sm:$0xff]  ;;  %v11757_v59 = vshrl.u32 %v11713_v12, 16  ;;  %v11761_v12 = vld [vmem:[#allocation33_spill] sm:$0xff] }
 0x104   : > { %v7938_v10 = vpop.permute.xlu1 %1576  ;;  %v1047_v9 = vsel %vm1017_vm1, %v11755_v57, %v7613_v58  ;;  %v1818_v58 = vor.u32 %v1817_v3, %v1813_v25  ;;  %v7982_v61 = vsel %vm408_vm0, %v1808_v22, %v7395_v30  ;;  %v5881_v3 = vld [vmem:[%s6849_s17 + $0xc0] sm:$0xe]  ;;  %v11759_v22 = vshrl.u32 %v7965_v46, 16 }
 0x105   : > { %1894 = vrot.lane.b32.xlu0 %v7931_v51, %s6812_s22  ;;  %v1045_v51 = vsel %vm1017_vm1, %v11754_v56, %v7598_v7  ;;  %v1080_v7 = vsel %vm1050_vm2, %v1047_v9, %v7681_v49  ;;  %v1835_v28 = vshll.u32 %v5911_v17, 16  ;;  %11758 = vst [vmem:[#allocation35_spill] sm:$0xff] %v7982_v61  ;;  %v6765_v9 = vld [vmem:[%s6849_s17 + $0xb8] sm:$0xf] }
 0x106   : > { %1900 = vrot.lane.b32.xlu1 %v11751_v53, %s6812_s22  ;;  %v1078_v15 = vsel %vm1050_vm2, %v1045_v51, %v7664_v55  ;;  %v1113_v51 = vsel %vm1083_vm3, %v1080_v7, %v7841_v11 }
 0x107   : > { %v7954_v37 = vpop.permute.xlu0 %1574  ;;  %v1111_v32 = vsel %vm1083_vm3, %v1078_v15, %v7796_v62  ;;  %v1827_v62 = vrot.slane %v1825_v34, 1  ;;  %v5912_v15 = vcombine.low %v5880_v43, %v6765_v9  ;;  %v1837_v30 = vrot.slane %v1835_v28, 1 }
 0x108   : > { %v7962_v53 = vpop.permute.xlu1 %1580  ;;  %v7999_v34 = vsel %vm408_vm0, %v1818_v58, %v7389_v39 }
 0x109   : > { %1898 = vrot.lane.b32.xlu0 %v7948_v63, %s6812_s22  ;;  %11760 = vst [vmem:[#allocation38_spill] sm:$0xff] %v7999_v34  ;;  %v1828_v43 = vor.u32 %v1827_v62, %v1823_v5  ;;  %v1845_v7 = vshll.u32 %v5912_v15, 16  ;;  %v8016_v5 = vld [vmem:[%s6849_s17 + $0xb0] ss:$0 sps:$4 sm:$0x11]  }
 0x10a   : > { %6245 = vmatmul.mubr.msk.bf16.gmra.mrb[24].mxu0 %vm1124_vm4, %v1111_v32  ;;  %1904 = vrot.lane.b32.xlu1 %v11757_v59, %s6812_s22  ;;  %v11414_v32 = vshrl.u32 %v7393_v48, 16  ;;  %v1833_v59 = vshrl.u32 %v5911_v17, 16  ;;  %11762 = vst [vmem:[#allocation55_spill] sm:$0xff] %v8016_v5 }
 0x10b   : > { %6248 = vmatprep.mubr.msk.bf16.mxu0 %vm1124_vm4, %v1113_v51  ;;  %v7986_v25 = vpop.permute.xlu0 %1578  ;;  %v6766_v51 = vld [vmem:[%s6849_s17 + $0xc4] sm:$0xf]  ;;  %v1847_v62 = vrot.slane %v1845_v7, 1 }
 0x10c   : > { %v7989_v11 = vpop.permute.xlu1 %1584  ;;  %v5913_v9 = vcombine.low %v5881_v3, %v6766_v51  ;;  %v1838_v58 = vor.u32 %v1837_v30, %v1833_v59  ;;  %v6032_v59 = vld [vmem:[%s6849_s17 + $0x18] sm:$0xe]  ;;  %v11764_v30 = vld [vmem:[#allocation94_spill] sm:$0xff] }
 0x10d   : > { %1902 = vrot.lane.b32.xlu0 %v7982_v61, %s6812_s22  ;;  %v1049_v61 = vsel %vm1017_vm1, %v11761_v12, %v7608_v6  ;;  %v11418_v6 = vshrl.u32 %v8016_v5, 16 }
 0x10e   : > { %1908 = vrot.lane.b32.xlu1 %v11759_v22, %s6812_s22  ;;  %v1082_v28 = vsel %vm1050_vm2, %v1049_v61, %v7673_v26  ;;  %v8025_v61 = vsel %vm408_vm0, %v1828_v43, %v7441_v19  ;;  %v1855_v3 = vshll.u32 %v5913_v9, 16  ;;  %v8043_v19 = vld [vmem:[%s6849_s17 + $0xbc] ss:$0 sps:$4 sm:$0x11]   ;;  %v1853_v7 = vshrl.u32 %v5913_v9, 16 }
 0x10f   : > { %v8005_v63 = vpop.permute.xlu0 %1582  ;;  %v1115_v39 = vsel %vm1083_vm3, %v1082_v28, %v7820_v52  ;;  %11763 = vst [vmem:[#allocation57_spill] sm:$0xff] %v8025_v61  ;;  %v1843_v52 = vshrl.u32 %v5912_v15, 16  ;;  %v5934_v28 = vld [vmem:[%s6849_s17 + $0x1c] sm:$0xf]  ;;  %11766 = vst [vmem:[#allocation63_spill] sm:$0xff] %v8043_v19  ;;  %v11421_v15 = vshrl.u32 %v8043_v19, 16 }
 0x110   : > { %v8009_v17 = vpop.permute.xlu1 %1588  ;;  %v8060_v9 = vld [vmem:[%s6849_s17 + $0xc8] ss:$0 sps:$4 sm:$0x11]  }
 0x111   : > { %1906 = vrot.lane.b32.xlu0 %v7999_v34, %s6812_s22  ;;  %v1848_v43 = vor.u32 %v1847_v62, %v1843_v52  ;;  %11769 = vst [vmem:[#allocation41_spill] sm:$0xff] %v8060_v9  ;;  %v11427_v52 = vshrl.u32 %v8060_v9, 16  ;;  %v6033_v34 = vld [vmem:[%s6849_s17 + $0x24] sm:$0xe] }
 0x112   : > { %6249 = vmatmul.mubr.msk.bf16.gmra.mrb[28].mxu0 %vm1124_vm4, %v1115_v39  ;;  %1912 = vrot.lane.b32.xlu1 %v11414_v32, %s6812_s22  ;;  %v8037_v39 = vsel %vm408_vm0, %v1838_v58, %v11764_v30  ;;  %v1857_v32 = vrot.slane %v1855_v3, 1  ;;  %v11767_v58 = vld [vmem:[#allocation99_spill] sm:$0xff] }
 0x113   : > { %v8027_v22 = vpop.permute.xlu0 %1586  ;;  %11765 = vst [vmem:[#allocation60_spill] sm:$0xff] %v8037_v39  ;;  %v8057_v30 = vsel %vm408_vm0, %v1848_v43, %v11767_v58  ;;  %v11771_v43 = vld [vmem:[#allocation97_spill] sm:$0xff] }
 0x114   : > { %v8029_v51 = vpop.permute.xlu1 %1592  ;;  %11768 = vst [vmem:[#allocation66_spill] sm:$0xff] %v8057_v30  ;;  %v1858_v62 = vor.u32 %v1857_v32, %v1853_v7  ;;  %v5935_v7 = vld [vmem:[%s6849_s17 + $0x24] sm:$0xf] }
 0x115   : > { %1910 = vrot.lane.b32.xlu0 %v8025_v61, %s6812_s22  ;;  %v6048_v61 = vcombine.low %v6032_v59, %v5934_v28  ;;  %v5933_v59 = vld [vmem:[%s6849_s17 + $0x18] sm:$0xf] }
 0x116   : > { %1916 = vrot.lane.b32.xlu1 %v11418_v6, %s6812_s22  ;;  %v8067_v6 = vld [vmem:[%s6849_s17 + $0x20] ss:$0 sps:$4 sm:$0x11]   ;;  %v8078_v58 = vsel %vm408_vm0, %v1858_v62, %v11771_v43  ;;  %v8080_v32 = vcombine.low %v5933_v59, %v5934_v28 }
 0x117   : > { %v8046_v48 = vpop.permute.xlu0 %1590  ;;  %v3406_v5 = vshll.u32 %v6048_v61, 16  ;;  %11772 = vst [vmem:[#allocation2_spill] sm:$0xff] %v8078_v58  ;;  %v2729_v26 = vshll.u32 %v8067_v6, 16  ;;  %v3404_v12 = vshrl.u32 %v6048_v61, 16 }
 0x118   : > { %v8048_v46 = vpop.permute.xlu1 %1596 }
 0x119   : > { %1914 = vrot.lane.b32.xlu0 %v8037_v39, %s6812_s22  ;;  %v2731_v43 = vrot.slane %v2729_v26, 1 }
 0x11a   : > { %1920 = vrot.lane.b32.xlu1 %v11421_v15, %s6812_s22  ;;  %v5936_v15 = vld [vmem:[%s6849_s17 + $0x28] sm:$0xf] }
 0x11b   : > { %v8063_v3 = vpop.permute.xlu0 %1594  ;;  %v5982_v28 = vcombine.low %v5935_v7, %v5936_v15  ;;  %v6049_v62 = vcombine.low %v6033_v34, %v5936_v15 }
 0x11c   : > { %v8069_v39 = vpop.permute.xlu1 %1600 }
 0x11d   : > { %11770 = vst [vmem:[#allocation39_spill] sm:$0xff] %v8069_v39  ;;  %1918 = vrot.lane.b32.xlu0 %v8057_v30, %s6812_s22  ;;  %v3408_v30 = vrot.slane %v3406_v5, 1  ;;  %v6710_v5 = vld [vmem:[%s6849_s17 + $0x2c] ss:$0 sps:$4 sm:$0x11]   ;;  %v3416_v61 = vshll.u32 %v6049_v62, 16 }
 0x11e   : > { %1924 = vrot.lane.b32.xlu1 %v11427_v52, %s6812_s22  ;;  %v2741_v26 = vshll.u32 %v6710_v5, 16 }
 0x11f   : > { %v8084_v19 = vpop.permute.xlu0 %1598  ;;  %v3409_v52 = vor.u32 %v3408_v30, %v3404_v12  ;;  %v3414_v12 = vshrl.u32 %v6049_v62, 16  ;;  %v3418_v34 = vrot.slane %v3416_v61, 1  ;;  %v11781_v30 = vshrl.u32 %v11697_v45, 16  ;;  %v6735_v62 = vld [vmem:[%s11258_s1 + $0x10] sm:$0xff]   ;;  %v8129_v45 = vld [vmem:[%s11258_s1 + $0x18] sm:$0xff]  }
 0x120   : > { %11773 = vst [vmem:[#allocation86_spill] sm:$0xff] %v8084_v19  ;;  %v8088_v49 = vpop.permute.xlu1 %1604  ;;  %v11784_v61 = vshrl.u32 %v11694_v54, 16  ;;  %6286 = vmatprep.subr.bf16.mxu0 %v6735_v62  ;;  %6320 = vmatprep.subr.bf16.mxu1 %v8129_v45  ;;  %v3411_v54 = vshrl.u32 %v8067_v6, 16 }
 0x121   : > { %11774 = vst [vmem:[#allocation45_spill] sm:$0xff] %v8088_v49  ;;  %1922 = vrot.lane.b32.xlu0 %v8078_v58, %s6812_s22  ;;  %v3410_v58 = vsel %vm408_vm0, %v3409_v52, %v2731_v43  ;;  %v2743_v52 = vrot.slane %v2741_v26, 1  ;;  %v3419_v7 = vor.u32 %v3418_v34, %v3414_v12  ;;  %v2724_v12 = vshll.u32 %v8080_v32, 16  ;;  %6287 = vmatpush3.bf16.msra.mxu0 %v6735_v62 }
 0x122   : > { %2641 = vrot.lane.b32.xlu1 %v8080_v32, %s6811_s19 }
 0x123   : > { %v8094_v59 = vpop.permute.xlu0 %1602  ;;  %v3420_v26 = vsel %vm408_vm0, %v3419_v7, %v2743_v52  ;;  %v11786_v7 = vld [vmem:[#allocation70_spill] sm:$0xff] }
 0x124   : > { %11775 = vst [vmem:[#allocation42_spill] sm:$0xff] %v8094_v59  ;;  %v8096_v9 = vpop.permute.xlu1 %1608  ;;  %v6036_v59 = vld [vmem:[%s6849_s17 + $0x48] sm:$0xe] }
 0x125   : > { %11776 = vst [vmem:[#allocation65_spill] sm:$0xff] %v8096_v9  ;;  %3259 = vrot.lane.b32.xlu0 %v7749_v13, %s6810_s18 }
 0x126   : > { %2643 = vrot.lane.b32.xlu1 %v5982_v28, %s6811_s19 }
 0x127   : > { %v8102_v57 = vpop.permute.xlu0 %1606 }
 0x128   : > { %11777 = vst [vmem:[#allocation49_spill] sm:$0xff] %v8102_v57  ;;  %v8105_v55 = vpop.permute.xlu1 %1612 }
 0x129   : > { %11778 = vst [vmem:[#allocation46_spill] sm:$0xff] %v8105_v55  ;;  %3263 = vrot.lane.b32.xlu0 %v7764_v18, %s6810_s18  ;;  %v2736_v18 = vshll.u32 %v5982_v28, 16  ;;  %v11787_v55 = vld [vmem:[#allocation69_spill] sm:$0xff] }
 0x12a   : > { %3563 = vrot.lane.b32.xlu1 %v3410_v58, %s6812_s22 }
 0x12b   : > { %v8110_v15 = vpop.permute.xlu0 %1610 }
 0x12c   : > { %11779 = vst [vmem:[#allocation62_spill] sm:$0xff] %v8110_v15  ;;  %v8112_v13 = vpop.permute.xlu1 %1616  ;;  %v6034_v15 = vld [vmem:[%s6849_s17 + $0x30] sm:$0xe] }
 0x12d   : > { %11780 = vst [vmem:[#allocation73_spill] sm:$0xff] %v8112_v13  ;;  %3261 = vrot.lane.b32.xlu0 %v11781_v30, %s6810_s18  ;;  %v2734_v30 = vshrl.u32 %v5982_v28, 16  ;;  %v5938_v13 = vld [vmem:[%s6849_s17 + $0x34] sm:$0xf]  ;;  %v2726_v28 = vrot.slane %v2724_v12, 1 }
 0x12e   : > { %3323 = vrot.lane.b32.xlu1 %v8067_v6, %s6811_s19  ;;  %v6050_v62 = vcombine.low %v6034_v15, %v5938_v13  ;;  %v5937_v12 = vld [vmem:[%s6849_s17 + $0x30] sm:$0xf] }
 0x12f   : > { %v8119_v56 = vpop.permute.xlu0 %1614 }
 0x130   : > { %11782 = vst [vmem:[#allocation71_spill] sm:$0xff] %v8119_v56  ;;  %v8121_v58 = vpop.permute.xlu1 %1620  ;;  %v3426_v15 = vshll.u32 %v6050_v62, 16 }
 0x131   : > { %11783 = vst [vmem:[#allocation78_spill] sm:$0xff] %v8121_v58  ;;  %3265 = vrot.lane.b32.xlu0 %v11784_v61, %s6810_s18  ;;  %v2738_v58 = vrot.slane %v2736_v18, 1  ;;  %v2722_v61 = vshrl.u32 %v8080_v32, 16 }
 0x132   : > { %3325 = vrot.lane.b32.xlu1 %v6710_v5, %s6811_s19  ;;  %v3428_v57 = vrot.slane %v3426_v15, 1 }
 0x133   : > { %v8137_v34 = vpop.permute.xlu0 %1618  ;;  %v2727_v6 = vor.u32 %v2726_v28, %v2722_v61  ;;  %v6035_v28 = vld [vmem:[%s6849_s17 + $0x3c] sm:$0xe] }
 0x134   : > { %11785 = vst [vmem:[#allocation74_spill] sm:$0xff] %v8137_v34  ;;  %v8140_v56 = vpop.permute.xlu1 %1624  ;;  %v2739_v34 = vor.u32 %v2738_v58, %v2734_v30  ;;  %v5983_v30 = vcombine.low %v5937_v12, %v5938_v13 }
 0x135   : > { %3567 = vrot.lane.b32.xlu0 %v3420_v26, %s6812_s22  ;;  %v3421_v26 = vshrl.u32 %v6710_v5, 16  ;;  %v2732_v5 = vsel %vm408_vm0, %v2727_v6, %v2731_v43 }
 0x136   : > { %2529 = vrot.lane.b32.xlu1 %v11786_v7, %s6810_s18  ;;  %v2744_v32 = vsel %vm408_vm0, %v2739_v34, %v2743_v52  ;;  %v2753_v52 = vshll.u32 %v8161_v42, 16  ;;  %v3424_v34 = vshrl.u32 %v6050_v62, 16  ;;  %v8186_v62 = vld [vmem:[%s6849_s17 + $0x44] ss:$0 sps:$4 sm:$0x11]   ;;  %v2748_v9 = vshll.u32 %v5983_v30, 16 }
 0x137   : > { %v8149_v18 = vpop.permute.xlu0 %1622  ;;  %v2746_v19 = vshrl.u32 %v5983_v30, 16 }
 0x138   : > { %v8151_v1 = vpop.permute.xlu1 %1628  ;;  %v2755_v13 = vrot.slane %v2753_v52, 1  ;;  %v3429_v6 = vor.u32 %v3428_v57, %v3424_v34  ;;  %v2765_v57 = vshll.u32 %v8186_v62, 16  ;;  %v2750_v50 = vrot.slane %v2748_v9, 1  ;;  %v6770_v9 = vld [vmem:[%s6849_s17 + $0x8] ss:$0 sps:$4 sm:$0x11]  }
 0x139   : > { %3565 = vrot.lane.b32.xlu0 %v3411_v54, %s6812_s22  ;;  %v5939_v54 = vld [vmem:[%s6849_s17 + $0x3c] sm:$0xf] }
 0x13a   : > { %2531 = vrot.lane.b32.xlu1 %v11787_v55, %s6810_s18  ;;  %v5940_v55 = vld [vmem:[%s6849_s17 + $0x40] sm:$0xf] }
 0x13b   : > { %v8156_v7 = vpop.permute.xlu0 %1626 }
 0x13c   : > { %v8163_v58 = vpop.permute.xlu1 %1632 }
 0x13d   : > { %3569 = vrot.lane.b32.xlu0 %v3421_v26, %s6812_s22  ;;  %v5984_v26 = vcombine.low %v5939_v54, %v5940_v55  ;;  %v3430_v54 = vsel %vm408_vm0, %v3429_v6, %v2755_v13  ;;  %v11791_v6 = vshrl.u32 %v11701_v23, 16  ;;  %v11794_v23 = vshrl.u32 %v11698_v41, 16 }
 0x13e   : > { %2915 = vrot.lane.b32.xlu1 %v2744_v32, %s6812_s22  ;;  %v6051_v32 = vcombine.low %v6035_v28, %v5940_v55  ;;  %v1929_v41 = vsel %vm1017_vm1, %v6770_v9, %v7843_v2 }
 0x13f   : > { %v8170_v61 = vpop.permute.xlu0 %1630  ;;  %v2760_v34 = vshll.u32 %v5984_v26, 16 }
 0x140   : > { %v8174_v44 = vpop.permute.xlu1 %1636  ;;  %v3436_v15 = vshll.u32 %v6051_v32, 16 }
 0x141   : > { %2913 = vrot.lane.b32.xlu0 %v2732_v5, %s6812_s22 }
 0x142   : > { %2645 = vrot.lane.b32.xlu1 %v5983_v30, %s6811_s19  ;;  %v3438_v28 = vrot.slane %v3436_v15, 1  ;;  %v2751_v30 = vor.u32 %v2750_v50, %v2746_v19  ;;  %v1992_v50 = vsel %vm1050_vm2, %v1929_v41, %v8149_v18  ;;  %v3431_v19 = vshrl.u32 %v8161_v42, 16 }
 0x143   : > { %v8178_v43 = vpop.permute.xlu0 %1634 }
 0x144   : > { %v8180_v12 = vpop.permute.xlu1 %1640 }
 0x145   : > { %3267 = vrot.lane.b32.xlu0 %v7791_v21, %s6810_s18  ;;  %v3434_v21 = vshrl.u32 %v6051_v32, 16  ;;  %v6052_v32 = vcombine.low %v6036_v59, %v5942_v14 }
 0x146   : > { %2647 = vrot.lane.b32.xlu1 %v5984_v26, %s6811_s19 }
 0x147   : > { %v8188_v5 = vpop.permute.xlu0 %1638  ;;  %v3444_v9 = vshrl.u32 %v6052_v32, 16 }
 0x148   : > { %v8191_v55 = vpop.permute.xlu1 %1644 }
 0x149   : > { %11788 = vst [vmem:[#allocation12_spill] sm:$0xff] %v8191_v55  ;;  %3271 = vrot.lane.b32.xlu0 %v7806_v4, %s6810_s18  ;;  %v2767_v4 = vrot.slane %v2765_v57, 1  ;;  %v2758_v55 = vshrl.u32 %v5984_v26, 16  ;;  %v3446_v57 = vshll.u32 %v6052_v32, 16 }
 0x14a   : > { %3571 = vrot.lane.b32.xlu1 %v3430_v54, %s6812_s22  ;;  %v3439_v54 = vor.u32 %v3438_v28, %v3434_v21  ;;  %v8222_v28 = vld [vmem:[%s6849_s17 + $0x58] sm:$0xf] }
 0x14b   : > { %v8197_v52 = vpop.permute.xlu0 %1642 }
 0x14c   : > { %11789 = vst [vmem:[#allocation85_spill] sm:$0xff] %v8197_v52  ;;  %v8201_v49 = vpop.permute.xlu1 %1648  ;;  %v2762_v52 = vrot.slane %v2760_v34, 1  ;;  %v3440_v59 = vsel %vm408_vm0, %v3439_v54, %v2767_v4  ;;  %v11796_v34 = vld [vmem:[#allocation3_spill] sm:$0xff] }
 0x14d   : > { %11790 = vst [vmem:[#allocation79_spill] sm:$0xff] %v8201_v49  ;;  %3269 = vrot.lane.b32.xlu0 %v11791_v6, %s6810_s18  ;;  %v6037_v6 = vld [vmem:[%s6849_s17 + $0x54] sm:$0xe] }
 0x14e   : > { %3327 = vrot.lane.b32.xlu1 %v8161_v42, %s6811_s19  ;;  %v2763_v26 = vor.u32 %v2762_v52, %v2758_v55  ;;  %v8232_v54 = vcombine.low %v6037_v6, %v8222_v28  ;;  %v8239_v55 = vld [vmem:[%s6849_s17 + $0x50] ss:$0 sps:$4 sm:$0x11]   ;;  %v11797_v52 = vld [vmem:[#allocation81_spill] sm:$0xff]  ;;  %v3448_v6 = vrot.slane %v3446_v57, 1  ;;  %v2756_v42 = vsel %vm408_vm0, %v2751_v30, %v2755_v13 }
 0x14f   : > { %v8208_v15 = vpop.permute.xlu0 %1646 }
 0x150   : > { %11792 = vst [vmem:[#allocation88_spill] sm:$0xff] %v8208_v15  ;;  %v8210_v49 = vpop.permute.xlu1 %1652  ;;  %v5941_v15 = vld [vmem:[%s6849_s17 + $0x48] sm:$0xf] }
 0x151   : > { %11793 = vst [vmem:[#allocation87_spill] sm:$0xff] %v8210_v49  ;;  %3273 = vrot.lane.b32.xlu0 %v11794_v23, %s6810_s18  ;;  %v1927_v23 = vsel %vm1017_vm1, %v11796_v34, %v7859_v36  ;;  %v3441_v36 = vshrl.u32 %v8186_v62, 16  ;;  %v8246_v34 = vld [vmem:[%s6849_s17 + $0x5c] ss:$0 sps:$4 sm:$0x11]   ;;  %v8252_v39 = vcombine.low %v5941_v15, %v5942_v14  ;;  %v2777_v15 = vshll.u32 %v8239_v55, 16 }
 0x152   : > { %3329 = vrot.lane.b32.xlu1 %v8186_v62, %s6811_s19  ;;  %v11799_v62 = vld [vmem:[#allocation5_spill] sm:$0xff]  ;;  %v2789_v30 = vshll.u32 %v8246_v34, 16 }
 0x153   : > { %v8219_v21 = vpop.permute.xlu0 %1650  ;;  %v1931_v32 = vsel %vm1017_vm1, %v11799_v62, %v7888_v47  ;;  %v3449_v47 = vor.u32 %v3448_v6, %v3444_v9  ;;  %v1935_v62 = vsel %vm1017_vm1, %v11714_v40, %v7906_v20  ;;  %v8288_v20 = vrot.slane %v2777_v15, 1 }
 0x154   : > { %11795 = vst [vmem:[#allocation94_spill] sm:$0xff] %v8219_v21  ;;  %v1865_v49 = vpop.permute.xlu1 %1864  ;;  %v11798_v21 = vld [vmem:[#allocation14_spill] sm:$0xff] }
 0x155   : > { %3575 = vrot.lane.b32.xlu0 %v3440_v59, %s6812_s22  ;;  %v2041_v2 = vsel %vm1083_vm3, %v1992_v50, %v1865_v49  ;;  %v1990_v18 = vsel %vm1050_vm2, %v1927_v23, %v11798_v21  ;;  %v2768_v59 = vsel %vm408_vm0, %v2763_v26, %v2767_v4  ;;  %v6771_v49 = vld [vmem:[%s6849_s17 + $0x14] ss:$0 sps:$4 sm:$0x11]   ;;  %v3456_v21 = vshll.u32 %v8232_v54, 16 }
 0x156   : > { %2533 = vrot.lane.b32.xlu1 %v11797_v52, %s6810_s18  ;;  %v1933_v50 = vsel %vm1017_vm1, %v6771_v49, %v7867_v35  ;;  %v2108_v13 = vshll.u32 %v2041_v2, 16  ;;  %v11800_v26 = vld [vmem:[#allocation76_spill] sm:$0xff]  ;;  %v3454_v23 = vshrl.u32 %v8232_v54, 16 }
 0x157   : > { %v1863_v41 = vpop.permute.xlu0 %1862  ;;  %v1995_v4 = vsel %vm1050_vm2, %v1933_v50, %v8140_v56 }
 0x158   : > { %v2039_v57 = vsel %vm1083_vm3, %v1990_v18, %v1863_v41  ;;  %v1869_v52 = vpop.permute.xlu1 %1868  ;;  %v6772_v18 = vld [vmem:[%s6849_s17 + $0x20] ss:$0 sps:$4 sm:$0x11]  }
 0x159   : > { %v2104_v14 = vshll.u32 %v2039_v57, 16  ;;  %3573 = vrot.lane.b32.xlu0 %v3431_v19, %s6812_s22  ;;  %v2045_v35 = vsel %vm1083_vm3, %v1995_v4, %v1869_v52  ;;  %v1937_v56 = vsel %vm1017_vm1, %v6772_v18, %v7890_v60  ;;  %v2102_v2 = vshrl.u32 %v2039_v57, 16  ;;  %v11801_v19 = vld [vmem:[#allocation9_spill] sm:$0xff] }
 0x15a   : > { %2535 = vrot.lane.b32.xlu1 %v11800_v26, %s6810_s18  ;;  %v1993_v49 = vsel %vm1050_vm2, %v1931_v32, %v11801_v19  ;;  %v1998_v9 = vsel %vm1050_vm2, %v1937_v56, %v8156_v7  ;;  %v3458_v52 = vrot.slane %v3456_v21, 1  ;;  %v2110_v4 = vrot.slane %v2108_v13, 1  ;;  %v6773_v32 = vld [vmem:[%s6849_s17 + $0x2c] ss:$0 sps:$4 sm:$0x11]  }
 0x15b   : > { %v2106_v41 = vrot.slane %v2104_v14, 1  ;;  %v1867_v50 = vpop.permute.xlu0 %1866  ;;  %v2118_v57 = vshll.u32 %v2045_v35, 16  ;;  %v1941_v26 = vsel %vm1017_vm1, %v6773_v32, %v7914_v24  ;;  %v8290_v7 = vrot.slane %v2789_v30, 1  ;;  %v5943_v56 = vld [vmem:[%s6849_s17 + $0x54] sm:$0xf] }
 0x15c   : > { %v2043_v54 = vsel %vm1083_vm3, %v1993_v49, %v1867_v50  ;;  %v1873_v6 = vpop.permute.xlu1 %1872  ;;  %v1996_v35 = vsel %vm1050_vm2, %v1935_v62, %v7630_v33  ;;  %v11802_v24 = vld [vmem:[#allocation4_spill] sm:$0xff]  ;;  %v6774_v62 = vld [vmem:[%s6849_s17 + $0x38] ss:$0 sps:$4 sm:$0x11]  }
 0x15d   : > { %v2107_v60 = vor.u32 %v2106_v41, %v2102_v2  ;;  %v2114_v14 = vshll.u32 %v2043_v54, 16  ;;  %3577 = vrot.lane.b32.xlu0 %v3441_v36, %s6812_s22  ;;  %v2049_v40 = vsel %vm1083_vm3, %v1998_v9, %v1873_v6  ;;  %v2112_v21 = vshrl.u32 %v2043_v54, 16 }
 0x15e   : > { %2919 = vrot.lane.b32.xlu1 %v2768_v59, %s6812_s22  ;;  %v1939_v2 = vsel %vm1017_vm1, %v11802_v24, %v7936_v16  ;;  %v2001_v59 = vsel %vm1050_vm2, %v1941_v26, %v8151_v1  ;;  %v3459_v41 = vor.u32 %v3458_v52, %v3454_v23  ;;  %v2120_v19 = vrot.slane %v2118_v57, 1 }
 0x15f   : > { %v2116_v13 = vrot.slane %v2114_v14, 1  ;;  %v1871_v18 = vpop.permute.xlu0 %1870  ;;  %v2111_v36 = vsel %vm408_vm0, %v2107_v60, %v2110_v4  ;;  %v2128_v33 = vshll.u32 %v2049_v40, 16  ;;  %v1945_v9 = vsel %vm1017_vm1, %v6774_v62, %v7938_v10  ;;  %v11803_v4 = vld [vmem:[#allocation7_spill] sm:$0xff]  ;;  %v6776_v62 = vld [vmem:[%s6849_s17 + $0x50] ss:$0 sps:$4 sm:$0x11]  }
 0x160   : > { %v2047_v15 = vsel %vm1083_vm3, %v1996_v35, %v1871_v18  ;;  %6254 = vmatprep.mubr.msk.bf16.mxu1 %vm1124_vm4, %v2111_v36  ;;  %v1877_v30 = vpop.permute.xlu1 %1876  ;;  %v8311_v1 = vcombine.low %v5943_v56, %v8222_v28  ;;  %v3450_v23 = vsel %vm408_vm0, %v3449_v47, %v8288_v20  ;;  %v1943_v60 = vsel %vm1017_vm1, %v11803_v4, %v7954_v37  ;;  %v6775_v37 = vld [vmem:[%s6849_s17 + $0x44] ss:$0 sps:$4 sm:$0x11]   ;;  %v11804_v56 = vld [vmem:[#allocation15_spill] sm:$0xff] }
 0x161   : > { %v2117_v49 = vor.u32 %v2116_v13, %v2112_v21  ;;  %v2124_v50 = vshll.u32 %v2047_v15, 16  ;;  %2917 = vrot.lane.b32.xlu0 %v2756_v42, %s6812_s22  ;;  %v2053_v16 = vsel %vm1083_vm3, %v2001_v59, %v1877_v30  ;;  %v2122_v54 = vshrl.u32 %v2047_v15, 16  ;;  %v11807_v4 = vld [vmem:[#allocation10_spill] sm:$0xff] }
 0x162   : > { %2649 = vrot.lane.b32.xlu1 %v8252_v39, %s6811_s19  ;;  %v1999_v42 = vsel %vm1050_vm2, %v1939_v2, %v7625_v0  ;;  %v2004_v28 = vsel %vm1050_vm2, %v1945_v9, %v8170_v61  ;;  %v8327_v14 = vsel %vm408_vm0, %v3459_v41, %v8290_v7  ;;  %v2130_v0 = vrot.slane %v2128_v33, 1 }
 0x163   : > { %v2126_v6 = vrot.slane %v2124_v50, 1  ;;  %v1875_v52 = vpop.permute.xlu0 %1874  ;;  %v2121_v10 = vsel %vm408_vm0, %v2117_v49, %v2120_v19  ;;  %v2138_v26 = vshll.u32 %v2053_v16, 16  ;;  %v1949_v61 = vsel %vm1017_vm1, %v6775_v37, %v7962_v53  ;;  %v11805_v53 = vld [vmem:[#allocation6_spill] sm:$0xff] }
 0x164   : > { %v2051_v57 = vsel %vm1083_vm3, %v1999_v42, %v1875_v52  ;;  %6255 = vmatmul.mubr.msk.bf16.vlgmr.msra.gmra.mrb[0].mxu1 %vm1124_vm4, %v2121_v10  ;;  %v1881_v47 = vpop.permute.xlu1 %1880  ;;  %v3451_v13 = vshrl.u32 %v8239_v55, 16  ;;  %v2784_v35 = vshll.u32 %v8311_v1, 16  ;;  %v1947_v2 = vsel %vm1017_vm1, %v11805_v53, %v7986_v25  ;;  %v11806_v42 = vld [vmem:[#allocation22_spill] sm:$0xff] }
 0x165   : > { %v2127_v32 = vor.u32 %v2126_v6, %v2122_v54  ;;  %v2134_v40 = vshll.u32 %v2051_v57, 16  ;;  %3275 = vrot.lane.b32.xlu0 %v7836_v27, %s6810_s18  ;;  %6321 = vmatpush3.bf16.msra.mxu1 %v8129_v45  ;;  %v2057_v21 = vsel %vm1083_vm3, %v2004_v28, %v1881_v47  ;;  %v2132_v18 = vshrl.u32 %v2051_v57, 16 }
 0x166   : > { %2651 = vrot.lane.b32.xlu1 %v8311_v1, %s6811_s19  ;;  %v2002_v27 = vsel %vm1050_vm2, %v1943_v60, %v11804_v56  ;;  %v2007_v59 = vsel %vm1050_vm2, %v1949_v61, %v8163_v58  ;;  %v2772_v41 = vshll.u32 %v8252_v39, 16  ;;  %v2140_v19 = vrot.slane %v2138_v26, 1 }
 0x167   : > { %v2136_v36 = vrot.slane %v2134_v40, 1  ;;  %v1879_v45 = vpop.permute.xlu0 %1878  ;;  %v2131_v24 = vsel %vm408_vm0, %v2127_v32, %v2130_v0  ;;  %v2148_v33 = vshll.u32 %v2057_v21, 16  ;;  %v1953_v25 = vsel %vm1017_vm1, %v6776_v62, %v7989_v11 }
 0x168   : > { %v2055_v15 = vsel %vm1083_vm3, %v2002_v27, %v1879_v45  ;;  %6258 = vmatprep.mubr.msk.bf16.mxu1 %vm1124_vm4, %v2131_v24  ;;  %v1885_v30 = vpop.permute.xlu1 %1884  ;;  %v3461_v9 = vshrl.u32 %v8246_v34, 16  ;;  %v2782_v16 = vshrl.u32 %v8311_v1, 16  ;;  %v2005_v52 = vsel %vm1050_vm2, %v1947_v2, %v11806_v42  ;;  %v8384_v27 = vld [vmem:[%s6849_s17 + $0x64] sm:$0xf]  ;;  %v11810_v45 = vld [vmem:[#allocation8_spill] sm:$0xff] }
 0x169   : > { %v2137_v49 = vor.u32 %v2136_v36, %v2132_v18  ;;  %v2144_v50 = vshll.u32 %v2055_v15, 16  ;;  %3279 = vrot.lane.b32.xlu0 %v7853_v38, %s6810_s18  ;;  %v2061_v58 = vsel %vm1083_vm3, %v2007_v59, %v1885_v30  ;;  %v2142_v54 = vshrl.u32 %v2055_v15, 16  ;;  %v11809_v18 = vld [vmem:[#allocation17_spill] sm:$0xff] }
 0x16a   : > { %3579 = vrot.lane.b32.xlu1 %v3450_v23, %s6812_s22  ;;  %v1951_v11 = vsel %vm1017_vm1, %v11807_v4, %v8005_v63  ;;  %v2010_v23 = vsel %vm1050_vm2, %v1953_v25, %v8178_v43  ;;  %v2786_v28 = vrot.slane %v2784_v35, 1  ;;  %v2150_v57 = vrot.slane %v2148_v33, 1  ;;  %v6777_v63 = vld [vmem:[%s6849_s17 + $0x5c] ss:$0 sps:$4 sm:$0x11]  }
 0x16b   : > { %v2146_v6 = vrot.slane %v2144_v50, 1  ;;  %v1883_v10 = vpop.permute.xlu0 %1882  ;;  %v2141_v38 = vsel %vm408_vm0, %v2137_v49, %v2140_v19  ;;  %v2158_v0 = vshll.u32 %v2061_v58, 16  ;;  %v11808_v26 = vshrl.u32 %v11704_v31, 16  ;;  %v6778_v33 = vld [vmem:[%s6849_s17 + $0x68] ss:$0 sps:$4 sm:$0x11]  }
 0x16c   : > { %v2059_v60 = vsel %vm1083_vm3, %v2005_v52, %v1883_v10  ;;  %6259 = vmatmul.mubr.msk.bf16.gmra.mrb[4].mxu1 %vm1124_vm4, %v2141_v38  ;;  %v1889_v1 = vpop.permute.xlu1 %1888  ;;  %v1957_v43 = vsel %vm1017_vm1, %v6777_v63, %v8009_v17  ;;  %v2770_v37 = vshrl.u32 %v8252_v39, 16  ;;  %v2774_v61 = vrot.slane %v2772_v41, 1  ;;  %v6038_v17 = vld [vmem:[%s6849_s17 + $0x60] sm:$0xe] }
 0x16d   : > { %v2147_v47 = vor.u32 %v2146_v6, %v2142_v54  ;;  %v2154_v32 = vshll.u32 %v2059_v60, 16  ;;  %3277 = vrot.lane.b32.xlu0 %v11808_v26, %s6810_s18  ;;  %v2065_v40 = vsel %vm1083_vm3, %v2010_v23, %v1889_v1  ;;  %v2152_v21 = vshrl.u32 %v2059_v60, 16  ;;  %v11815_v26 = vld [vmem:[#allocation21_spill] sm:$0xff] }
 0x16e   : > { %3331 = vrot.lane.b32.xlu1 %v8239_v55, %s6811_s19  ;;  %v2008_v36 = vsel %vm1050_vm2, %v1951_v11, %v11809_v18  ;;  %v1955_v24 = vsel %vm1017_vm1, %v11810_v45, %v8027_v22  ;;  %v2013_v39 = vsel %vm1050_vm2, %v1957_v43, %v8174_v44  ;;  %v2787_v59 = vor.u32 %v2786_v28, %v2782_v16  ;;  %v11812_v16 = vld [vmem:[#allocation11_spill] sm:$0xff]  ;;  %v11817_v45 = vld [vmem:[#allocation82_spill] sm:$0xff] }
 0x16f   : > { %v2156_v35 = vrot.slane %v2154_v32, 1  ;;  %v1887_v31 = vpop.permute.xlu0 %1886  ;;  %v2151_v56 = vsel %vm408_vm0, %v2147_v47, %v2150_v57  ;;  %v2160_v15 = vrot.slane %v2158_v0, 1  ;;  %v2168_v41 = vshll.u32 %v2065_v40, 16  ;;  %v11814_v57 = vld [vmem:[#allocation83_spill] sm:$0xff] }
 0x170   : > { %v2063_v53 = vsel %vm1083_vm3, %v2008_v36, %v1887_v31  ;;  %6262 = vmatprep.mubr.msk.bf16.mxu1 %vm1124_vm4, %v2151_v56  ;;  %v1893_v2 = vpop.permute.xlu1 %1892  ;;  %v11811_v49 = vshrl.u32 %v7274_v29, 16  ;;  %v1961_v22 = vsel %vm1017_vm1, %v6778_v33, %v8029_v51  ;;  %v2775_v50 = vor.u32 %v2774_v61, %v2770_v37  ;;  %v11813_v51 = vld [vmem:[#allocation16_spill] sm:$0xff]  ;;  %v5945_v56 = vld [vmem:[%s6849_s17 + $0x60] sm:$0xf] }
 0x171   : > { %v2157_v30 = vor.u32 %v2156_v35, %v2152_v21  ;;  %v2164_v19 = vshll.u32 %v2063_v53, 16  ;;  %v2069_v44 = vsel %vm1083_vm3, %v2013_v39, %v1893_v2  ;;  %v8404_v62 = vcombine.low %v6038_v17, %v8384_v27 }
 0x172   : > { %3281 = vrot.lane.b32.xlu0 %v11811_v49, %s6810_s18  ;;  %3333 = vrot.lane.b32.xlu1 %v8246_v34, %s6811_s19  ;;  %v2162_v25 = vshrl.u32 %v2063_v53, 16  ;;  %v2011_v29 = vsel %vm1050_vm2, %v1955_v24, %v11812_v16  ;;  %v1959_v42 = vsel %vm1017_vm1, %v11813_v51, %v8046_v48  ;;  %v2016_v52 = vsel %vm1050_vm2, %v1961_v22, %v8188_v5  ;;  %v6779_v48 = vld [vmem:[%s6849_s17 + $0x74] ss:$0 sps:$4 sm:$0x11]   ;;  %v11821_v49 = vld [vmem:[#allocation85_spill] sm:$0xff] }
 0x173   : > { %v2166_v58 = vrot.slane %v2164_v19, 1  ;;  %v1891_v54 = vpop.permute.xlu0 %1890  ;;  %v2161_v6 = vsel %vm408_vm0, %v2157_v30, %v2160_v15  ;;  %v2792_v4 = vsel %vm408_vm0, %v2787_v59, %v8290_v7  ;;  %v2170_v11 = vrot.slane %v2168_v41, 1  ;;  %v8431_v7 = vld [vmem:[%s6849_s17 + $0x68] ss:$0 sps:$4 sm:$0x11]   ;;  %v11818_v59 = vld [vmem:[#allocation13_spill] sm:$0xff] }
 0x174   : > { %v2067_v10 = vsel %vm1083_vm3, %v2011_v29, %v1891_v54  ;;  %6263 = vmatmul.mubr.msk.bf16.gmra.mrb[8].mxu1 %vm1124_vm4, %v2161_v6  ;;  %v1897_v38 = vpop.permute.xlu1 %1896  ;;  %v2178_v60 = vshll.u32 %v2069_v44, 16  ;;  %v1965_v28 = vsel %vm1017_vm1, %v6779_v48, %v8048_v46  ;;  %v8428_v47 = vsel %vm408_vm0, %v2775_v50, %v8288_v20  ;;  %v11819_v30 = vld [vmem:[#allocation86_spill] sm:$0xff]  ;;  %v11820_v41 = vld [vmem:[#allocation23_spill] sm:$0xff]  ;;  %v11822_v6 = vld [vmem:[#allocation45_spill] sm:$0xff] }
 0x175   : > { %v2167_v23 = vor.u32 %v2166_v58, %v2162_v25  ;;  %v2174_v1 = vshll.u32 %v2067_v10, 16  ;;  %v2073_v5 = vsel %vm1083_vm3, %v2016_v52, %v1897_v38  ;;  %v3466_v0 = vshll.u32 %v8404_v62, 16  ;;  %v6039_v29 = vld [vmem:[%s6849_s17 + $0x6c] sm:$0xe]  ;;  %v11824_v48 = vld [vmem:[#allocation42_spill] sm:$0xff] }
 0x176   : > { %3583 = vrot.lane.b32.xlu0 %v8327_v14, %s6812_s22  ;;  %2537 = vrot.lane.b32.xlu1 %v11814_v57, %s6810_s18  ;;  %v2172_v32 = vshrl.u32 %v2067_v10, 16  ;;  %v2014_v46 = vsel %vm1050_vm2, %v1959_v42, %v11815_v26  ;;  %v1963_v40 = vsel %vm1017_vm1, %v11738_v8, %v8063_v3  ;;  %v2019_v20 = vsel %vm1050_vm2, %v1965_v28, %v8180_v12  ;;  %v6780_v8 = vld [vmem:[%s6849_s17 + $0x80] ss:$0 sps:$4 sm:$0x11]   ;;  %v11816_v3 = vld [vmem:[#allocation39_spill] sm:$0xff]  ;;  %v11826_v57 = vld [vmem:[#allocation12_spill] sm:$0xff] }
 0x177   : > { %v2176_v14 = vrot.slane %v2174_v1, 1  ;;  %v1895_v63 = vpop.permute.xlu0 %1894  ;;  %v2171_v43 = vsel %vm408_vm0, %v2167_v23, %v2170_v11  ;;  %v3464_v21 = vshrl.u32 %v8404_v62, 16  ;;  %v2180_v35 = vrot.slane %v2178_v60, 1  ;;  %v6781_v54 = vld [vmem:[%s6849_s17 + $0x8c] ss:$0 sps:$4 sm:$0x11]  }
 0x178   : > { %v2071_v37 = vsel %vm1083_vm3, %v2014_v46, %v1895_v63  ;;  %6266 = vmatprep.mubr.msk.bf16.mxu1 %vm1124_vm4, %v2171_v43  ;;  %v1901_v61 = vpop.permute.xlu1 %1900  ;;  %v2188_v36 = vshll.u32 %v2073_v5, 16  ;;  %v1969_v12 = vsel %vm1017_vm1, %v6780_v8, %v11816_v3  ;;  %v2801_v24 = vshll.u32 %v8431_v7, 16  ;;  %v11823_v11 = vld [vmem:[#allocation19_spill] sm:$0xff]  ;;  %v5948_v1 = vld [vmem:[%s6849_s17 + $0x70] sm:$0xf]  ;;  %v11825_v28 = vld [vmem:[#allocation18_spill] sm:$0xff] }
 0x179   : > { %v2177_v18 = vor.u32 %v2176_v14, %v2172_v32  ;;  %v2184_v31 = vshll.u32 %v2071_v37, 16  ;;  %v2077_v17 = vsel %vm1083_vm3, %v2019_v20, %v1901_v61  ;;  %v3468_v39 = vrot.slane %v3466_v0, 1  ;;  %v5947_v60 = vld [vmem:[%s6849_s17 + $0x6c] sm:$0xf]  ;;  %v11827_v20 = vld [vmem:[#allocation65_spill] sm:$0xff] }
 0x17a   : > { %3581 = vrot.lane.b32.xlu0 %v3451_v13, %s6812_s22  ;;  %2539 = vrot.lane.b32.xlu1 %v11817_v45, %s6810_s18  ;;  %v2182_v53 = vshrl.u32 %v2071_v37, 16  ;;  %v2017_v55 = vsel %vm1050_vm2, %v1963_v40, %v11818_v59  ;;  %v1967_v19 = vsel %vm1017_vm1, %v11820_v41, %v11819_v30  ;;  %v2022_v33 = vsel %vm1050_vm2, %v1969_v12, %v11821_v49  ;;  %v6782_v40 = vld [vmem:[%s6849_s17 + $0x98] ss:$0 sps:$4 sm:$0x11]   ;;  %v11832_v41 = vld [vmem:[#allocation26_spill] sm:$0xff] }
 0x17b   : > { %v2186_v2 = vrot.slane %v2184_v31, 1  ;;  %v1899_v13 = vpop.permute.xlu0 %1898  ;;  %v2181_v15 = vsel %vm408_vm0, %v2177_v18, %v2180_v35  ;;  %v8467_v50 = vcombine.low %v5945_v56, %v8384_v27  ;;  %v2190_v62 = vrot.slane %v2188_v36, 1  ;;  %v8507_v18 = vld [vmem:[%s6849_s17 + $0x74] ss:$0 sps:$4 sm:$0x11]   ;;  %v11829_v12 = vld [vmem:[#allocation49_spill] sm:$0xff] }
 0x17c   : > { %v2075_v22 = vsel %vm1083_vm3, %v2017_v55, %v1899_v13  ;;  %6267 = vmatmul.mubr.msk.bf16.gmra.mrb[12].mxu1 %vm1124_vm4, %v2181_v15  ;;  %v1905_v44 = vpop.permute.xlu1 %1904  ;;  %v2198_v58 = vshll.u32 %v2077_v17, 16  ;;  %v1973_v51 = vsel %vm1017_vm1, %v6781_v54, %v11822_v6  ;;  %v8478_v27 = vrot.slane %v2801_v24, 1  ;;  %v11830_v17 = vld [vmem:[#allocation31_spill] sm:$0xff]  ;;  %v11831_v24 = vld [vmem:[#allocation88_spill] sm:$0xff]  ;;  %v11833_v49 = vld [vmem:[#allocation46_spill] sm:$0xff] }
 0x17d   : > { %v2187_v25 = vor.u32 %v2186_v2, %v2182_v53  ;;  %v2194_v16 = vshll.u32 %v2075_v22, 16  ;;  %v2081_v42 = vsel %vm1083_vm3, %v2022_v33, %v1905_v44  ;;  %v3469_v52 = vor.u32 %v3468_v39, %v3464_v21 }
 0x17e   : > { %3585 = vrot.lane.b32.xlu0 %v3461_v9, %s6812_s22  ;;  %2923 = vrot.lane.b32.xlu1 %v2792_v4, %s6812_s22  ;;  %v2192_v10 = vshrl.u32 %v2075_v22, 16  ;;  %v2020_v23 = vsel %vm1050_vm2, %v1967_v19, %v11823_v11  ;;  %v1971_v5 = vsel %vm1017_vm1, %v11825_v28, %v11824_v48  ;;  %v2025_v4 = vsel %vm1050_vm2, %v1973_v51, %v11826_v57  ;;  %v6783_v19 = vld [vmem:[%s6849_s17 + $0xa4] ss:$0 sps:$4 sm:$0x11]   ;;  %v11838_v28 = vld [vmem:[#allocation32_spill] sm:$0xff]  ;;  %v11839_v57 = vld [vmem:[#allocation73_spill] sm:$0xff] }
 0x17f   : > { %v2196_v38 = vrot.slane %v2194_v16, 1  ;;  %v1903_v34 = vpop.permute.xlu0 %1902  ;;  %v2191_v9 = vsel %vm408_vm0, %v2187_v25, %v2190_v62  ;;  %v8492_v14 = vcombine.low %v6039_v29, %v5948_v1  ;;  %v2200_v26 = vrot.slane %v2198_v58, 1  ;;  %v11834_v16 = vld [vmem:[#allocation29_spill] sm:$0xff]  ;;  %v11835_v51 = vld [vmem:[#allocation62_spill] sm:$0xff] }
 0x180   : > { %v2079_v0 = vsel %vm1083_vm3, %v2020_v23, %v1903_v34  ;;  %6270 = vmatprep.mubr.msk.bf16.mxu1 %vm1124_vm4, %v2191_v9  ;;  %v1909_v32 = vpop.permute.xlu1 %1908  ;;  %v2208_v63 = vshll.u32 %v2081_v42, 16  ;;  %v1977_v37 = vsel %vm1017_vm1, %v6782_v40, %v11827_v20  ;;  %v8502_v21 = vcombine.low %v5947_v60, %v5948_v1  ;;  %v11836_v42 = vld [vmem:[#allocation27_spill] sm:$0xff] }
 0x181   : > { %v2197_v46 = vor.u32 %v2196_v38, %v2192_v10  ;;  %v2204_v43 = vshll.u32 %v2079_v0, 16  ;;  %v2085_v61 = vsel %vm1083_vm3, %v2025_v4, %v1909_v32  ;;  %v3470_v35 = vsel %vm408_vm0, %v3469_v52, %v8478_v27  ;;  %v11837_v10 = vld [vmem:[#allocation79_spill] sm:$0xff] }
 0x182   : > { %2921 = vrot.lane.b32.xlu0 %v8428_v47, %s6812_s22  ;;  %2653 = vrot.lane.b32.xlu1 %v8467_v50, %s6811_s19  ;;  %v2202_v36 = vshrl.u32 %v2079_v0, 16  ;;  %v11828_v47 = vld [vmem:[#allocation24_spill] sm:$0xff]  ;;  %v1975_v45 = vsel %vm1017_vm1, %v11830_v17, %v11829_v12  ;;  %v2028_v39 = vsel %vm1050_vm2, %v1977_v37, %v11831_v24  ;;  %v3476_v59 = vshll.u32 %v8492_v14, 16  ;;  %v11841_v20 = vld [vmem:[#allocation71_spill] sm:$0xff] }
 0x183   : > { %v2206_v31 = vrot.slane %v2204_v43, 1  ;;  %v2023_v56 = vsel %vm1050_vm2, %v1971_v5, %v11828_v47  ;;  %v1907_v8 = vpop.permute.xlu0 %1906  ;;  %v2201_v3 = vsel %vm408_vm0, %v2197_v46, %v2200_v26  ;;  %v2210_v55 = vrot.slane %v2208_v63, 1  ;;  %v6784_v5 = vld [vmem:[%s6849_s17 + $0xb0] ss:$0 sps:$4 sm:$0x11]   ;;  %v11840_v46 = vld [vmem:[#allocation25_spill] sm:$0xff] }
 0x184   : > { %v2083_v53 = vsel %vm1083_vm3, %v2023_v56, %v1907_v8  ;;  %6271 = vmatmul.mubr.msk.bf16.gmra.mrb[16].mxu1 %vm1124_vm4, %v2201_v3  ;;  %v1913_v2 = vpop.permute.xlu1 %1912  ;;  %v2218_v15 = vshll.u32 %v2085_v61, 16  ;;  %v1981_v33 = vsel %vm1017_vm1, %v6783_v19, %v11833_v49  ;;  %v2813_v44 = vshll.u32 %v8507_v18, 16  ;;  %v11842_v37 = vld [vmem:[#allocation36_spill] sm:$0xff] }
 0x185   : > { %v2207_v13 = vor.u32 %v2206_v31, %v2202_v36  ;;  %v2214_v30 = vshll.u32 %v2083_v53, 16  ;;  %v2089_v22 = vsel %vm1083_vm3, %v2028_v39, %v1913_v2  ;;  %v3474_v62 = vshrl.u32 %v8492_v14, 16  ;;  %v11843_v36 = vld [vmem:[#allocation94_spill] sm:$0xff]  ;;  %v6785_v39 = vld [vmem:[%s6849_s17 + $0xbc] ss:$0 sps:$4 sm:$0x11]  }
 0x186   : > { %3283 = vrot.lane.b32.xlu0 %v11832_v41, %s6810_s18  ;;  %2655 = vrot.lane.b32.xlu1 %v8502_v21, %s6811_s19  ;;  %v2212_v25 = vshrl.u32 %v2083_v53, 16  ;;  %v2026_v29 = vsel %vm1050_vm2, %v1975_v45, %v11834_v16  ;;  %v1979_v52 = vsel %vm1017_vm1, %v11836_v42, %v11835_v51  ;;  %v2031_v38 = vsel %vm1050_vm2, %v1981_v33, %v11837_v10  ;;  %v11844_v45 = vld [vmem:[#allocation72_spill] sm:$0xff]  ;;  %v11846_v53 = vld [vmem:[#allocation78_spill] sm:$0xff] }
 0x187   : > { %v2216_v58 = vrot.slane %v2214_v30, 1  ;;  %v1911_v54 = vpop.permute.xlu0 %1910  ;;  %v2211_v6 = vsel %vm408_vm0, %v2207_v13, %v2210_v55  ;;  %v3478_v34 = vrot.slane %v3476_v59, 1  ;;  %v2220_v9 = vrot.slane %v2218_v15, 1  ;;  %v11847_v30 = vld [vmem:[#allocation30_spill] sm:$0xff] }
 0x188   : > { %v2087_v11 = vsel %vm1083_vm3, %v2026_v29, %v1911_v54  ;;  %6274 = vmatprep.mubr.msk.bf16.mxu1 %vm1124_vm4, %v2211_v6  ;;  %v1917_v23 = vpop.permute.xlu1 %1916  ;;  %v2228_v1 = vshll.u32 %v2089_v22, 16  ;;  %v1985_v4 = vsel %vm1017_vm1, %v6784_v5, %v11839_v57  ;;  %v8547_v32 = vrot.slane %v2813_v44, 1  ;;  %v11848_v33 = vld [vmem:[#allocation74_spill] sm:$0xff]  ;;  %v11849_v22 = vld [vmem:[#allocation33_spill] sm:$0xff] }
 0x189   : > { %v2217_v60 = vor.u32 %v2216_v58, %v2212_v25  ;;  %v2224_v48 = vshll.u32 %v2087_v11, 16  ;;  %v2093_v0 = vsel %vm1083_vm3, %v2031_v38, %v1917_v23  ;;  %v2222_v14 = vshrl.u32 %v2087_v11, 16 }
 0x18a   : > { %3287 = vrot.lane.b32.xlu0 %v11838_v28, %s6810_s18  ;;  %3587 = vrot.lane.b32.xlu1 %v3470_v35, %s6812_s22  ;;  %v2029_v63 = vsel %vm1050_vm2, %v1979_v52, %v11840_v46  ;;  %v1983_v61 = vsel %vm1017_vm1, %v11842_v37, %v11841_v20  ;;  %v2034_v31 = vsel %vm1050_vm2, %v1985_v4, %v11843_v36  ;;  %v2230_v8 = vrot.slane %v2228_v1, 1  ;;  %v11851_v52 = vld [vmem:[#allocation67_spill] sm:$0xff]  ;;  %v11853_v1 = vld [vmem:[#allocation20_spill] sm:$0xff] }
 0x18b   : > { %v2226_v26 = vrot.slane %v2224_v48, 1  ;;  %v1915_v43 = vpop.permute.xlu0 %1914  ;;  %v2221_v40 = vsel %vm408_vm0, %v2217_v60, %v2220_v9  ;;  %v3479_v56 = vor.u32 %v3478_v34, %v3474_v62  ;;  %v2238_v12 = vshll.u32 %v2093_v0, 16  ;;  %v11850_v62 = vld [vmem:[#allocation87_spill] sm:$0xff] }
 0x18c   : > { %v2091_v35 = vsel %vm1083_vm3, %v2029_v63, %v1915_v43  ;;  %6275 = vmatmul.mubr.msk.bf16.gmra.mrb[20].mxu1 %vm1124_vm4, %v2221_v40  ;;  %v1921_v47 = vpop.permute.xlu1 %1920  ;;  %v11845_v24 = vshrl.u32 %v11844_v45, 16  ;;  %v1989_v2 = vsel %vm1017_vm1, %v6785_v39, %v11846_v53  ;;  %v2808_v55 = vshll.u32 %v8502_v21, 16  ;;  %v11854_v40 = vld [vmem:[#allocation90_spill] sm:$0xff]  ;;  %v5949_v45 = vld [vmem:[%s6849_s17 + $0x78] sm:$0xf] }
 0x18d   : > { %v2227_v3 = vor.u32 %v2226_v26, %v2222_v14  ;;  %v2234_v17 = vshll.u32 %v2091_v35, 16  ;;  %v2097_v59 = vsel %vm1083_vm3, %v2034_v31, %v1921_v47  ;;  %v2232_v13 = vshrl.u32 %v2091_v35, 16  ;;  %v6040_v14 = vld [vmem:[%s6849_s17 + $0x78] sm:$0xe] }
 0x18e   : > { %3285 = vrot.lane.b32.xlu0 %v11845_v24, %s6810_s18  ;;  %3335 = vrot.lane.b32.xlu1 %v8431_v7, %s6811_s19  ;;  %v2032_v41 = vsel %vm1050_vm2, %v1983_v61, %v11847_v30  ;;  %v1987_v44 = vsel %vm1017_vm1, %v11849_v22, %v11848_v33  ;;  %v2037_v25 = vsel %vm1050_vm2, %v1989_v2, %v11850_v62  ;;  %v2240_v54 = vrot.slane %v2238_v12, 1  ;;  %v11855_v12 = vld [vmem:[#allocation84_spill] sm:$0xff]  ;;  %v6041_v2 = vld [vmem:[%s6849_s17 + $0x84] sm:$0xe] }
 0x18f   : > { %v2236_v15 = vrot.slane %v2234_v17, 1  ;;  %v1919_v19 = vpop.permute.xlu0 %1918  ;;  %v2231_v49 = vsel %vm408_vm0, %v2227_v3, %v2230_v8  ;;  %v3480_v29 = vsel %vm408_vm0, %v3479_v56, %v8547_v32  ;;  %v2248_v51 = vshll.u32 %v2097_v59, 16  ;;  %v8617_v59 = vld [vmem:[%s6849_s17 + $0x80] ss:$0 sps:$4 sm:$0x11]  }
 0x190   : > { %v2095_v58 = vsel %vm1083_vm3, %v2032_v41, %v1919_v19  ;;  %6278 = vmatprep.mubr.msk.bf16.mxu1 %vm1124_vm4, %v2231_v49  ;;  %v1925_v16 = vpop.permute.xlu1 %1924  ;;  %v11852_v10 = vshrl.u32 %v11851_v52, 16  ;;  %v2806_v11 = vshrl.u32 %v8502_v21, 16  ;;  %v2810_v23 = vrot.slane %v2808_v55, 1  ;;  %v5950_v21 = vld [vmem:[%s6849_s17 + $0x7c] sm:$0xf]  ;;  %v11857_v52 = vld [vmem:[#allocation40_spill] sm:$0xff] }
 0x191   : > { %v2237_v6 = vor.u32 %v2236_v15, %v2232_v13  ;;  %v2244_v42 = vshll.u32 %v2095_v58, 16  ;;  %v2101_v38 = vsel %vm1083_vm3, %v2037_v25, %v1925_v16  ;;  %v2796_v34 = vshll.u32 %v8467_v50, 16  ;;  %v5951_v33 = vld [vmem:[%s6849_s17 + $0x84] sm:$0xf] }
 0x192   : > { %3289 = vrot.lane.b32.xlu0 %v11852_v10, %s6810_s18  ;;  %3337 = vrot.lane.b32.xlu1 %v8507_v18, %s6811_s19  ;;  %v2242_v9 = vshrl.u32 %v2095_v58, 16  ;;  %v2035_v48 = vsel %vm1050_vm2, %v1987_v44, %v11853_v1  ;;  %v3471_v0 = vshrl.u32 %v8431_v7, 16  ;;  %v2250_v26 = vrot.slane %v2248_v51, 1  ;;  %v8639_v16 = vld [vmem:[%s6849_s17 + $0x8c] ss:$0 sps:$4 sm:$0x11]  }
 0x193   : > { %v2246_v60 = vrot.slane %v2244_v42, 1  ;;  %v1923_v28 = vpop.permute.xlu0 %1922  ;;  %v2241_v5 = vsel %vm408_vm0, %v2237_v6, %v2240_v54  ;;  %v2258_v63 = vshll.u32 %v2101_v38, 16  ;;  %v2811_v20 = vor.u32 %v2810_v23, %v2806_v11  ;;  %v11858_v11 = vld [vmem:[#allocation28_spill] sm:$0xff] }
 0x194   : > { %v2099_v57 = vsel %vm1083_vm3, %v2035_v48, %v1923_v28  ;;  %6279 = vmatmul.mubr.msk.bf16.gmra.mrb[24].mxu1 %vm1124_vm4, %v2241_v5  ;;  %v8594_v4 = vpop.permute.xlu1 %2641  ;;  %v2794_v37 = vshrl.u32 %v8467_v50, 16  ;;  %v2798_v61 = vrot.slane %v2796_v34, 1  ;;  %v6056_v47 = vcombine.low %v6040_v14, %v5950_v21  ;;  %v6786_v14 = vld [vmem:[%s6849_s17 + $0x14] ss:$0 sps:$4 sm:$0x11]  }
 0x195   : > { %v2247_v46 = vor.u32 %v2246_v60, %v2242_v9  ;;  %v2254_v43 = vshll.u32 %v2099_v57, 16  ;;  %v2252_v36 = vshrl.u32 %v2099_v57, 16  ;;  %v2260_v8 = vrot.slane %v2258_v63, 1 }
 0x196   : > { %3591 = vrot.lane.b32.xlu0 %v3480_v29, %s6812_s22  ;;  %2541 = vrot.lane.b32.xlu1 %v11854_v40, %s6810_s18  ;;  %v3481_v50 = vshrl.u32 %v8507_v18, 16  ;;  %v2799_v17 = vor.u32 %v2798_v61, %v2794_v37  ;;  %v2816_v53 = vsel %vm408_vm0, %v2811_v20, %v8547_v32  ;;  %v3486_v55 = vshll.u32 %v6056_v47, 16  ;;  %v5952_v18 = vld [vmem:[%s6849_s17 + $0x88] sm:$0xf] }
 0x197   : > { %v2256_v31 = vrot.slane %v2254_v43, 1  ;;  %v3260_v7 = vpop.permute.xlu0 %3259  ;;  %v2251_v35 = vsel %vm408_vm0, %v2247_v46, %v2250_v26  ;;  %v8625_v30 = vcombine.low %v5949_v45, %v5950_v21  ;;  %v6057_v41 = vcombine.low %v6041_v2, %v5952_v18  ;;  %v11856_v32 = vld [vmem:[#allocation43_spill] sm:$0xff] }
 0x198   : > { %6282 = vmatprep.mubr.msk.bf16.mxu1 %vm1124_vm4, %v2251_v35  ;;  %v8605_v56 = vpop.permute.xlu1 %2643  ;;  %v2804_v15 = vsel %vm408_vm0, %v2799_v17, %v8478_v27  ;;  %v3628_v19 = vsel %vm1017_vm1, %v11856_v32, %v3260_v7  ;;  %v2825_v22 = vshll.u32 %v8617_v59, 16  ;;  %v3484_v44 = vshrl.u32 %v6056_v47, 16 }
 0x199   : > { %v2257_v3 = vor.u32 %v2256_v31, %v2252_v36  ;;  %v3488_v62 = vrot.slane %v3486_v55, 1  ;;  %v3691_v58 = vsel %vm1050_vm2, %v3628_v19, %v8594_v4  ;;  %v8636_v27 = vcombine.low %v5951_v33, %v5952_v18  ;;  %v6787_v31 = vld [vmem:[%s6849_s17 + $0x20] ss:$0 sps:$4 sm:$0x11]  }
 0x19a   : > { %3589 = vrot.lane.b32.xlu0 %v3471_v0, %s6812_s22  ;;  %2543 = vrot.lane.b32.xlu1 %v11855_v12, %s6810_s18  ;;  %v3496_v29 = vshll.u32 %v6057_v41, 16  ;;  %v8642_v51 = vrot.slane %v2825_v22, 1  ;;  %v2837_v34 = vshll.u32 %v8639_v16, 16  ;;  %v3494_v9 = vshrl.u32 %v6057_v41, 16  ;;  %v11859_v0 = vld [vmem:[#allocation34_spill] sm:$0xff] }
 0x19b   : > { %v3264_v24 = vpop.permute.xlu0 %3263  ;;  %v2261_v39 = vsel %vm408_vm0, %v2257_v3, %v2260_v8  ;;  %v3489_v42 = vor.u32 %v3488_v62, %v3484_v44  ;;  %v11861_v8 = vld [vmem:[#allocation77_spill] sm:$0xff]  ;;  %v2832_v33 = vshll.u32 %v8636_v27, 16  ;;  %v11865_v62 = vld [vmem:[#allocation75_spill] sm:$0xff] }
 0x19c   : > { %6283 = vmatmul.mubr.msk.bf16.gmra.mrb[28].mxu1 %vm1124_vm4, %v2261_v39  ;;  %v3564_v13 = vpop.permute.xlu1 %3563  ;;  %v3632_v10 = vsel %vm1017_vm1, %v11857_v52, %v3264_v24  ;;  %v3498_v60 = vrot.slane %v3496_v29, 1  ;;  %v8661_v46 = vrot.slane %v2837_v34, 1  ;;  %v11862_v3 = vshrl.u32 %v11861_v8, 16  ;;  %v6043_v8 = vld [vmem:[%s6849_s17 + $0x9c] sm:$0xe] }
 0x19d   : > { %v3740_v54 = vsel %vm1083_vm3, %v3691_v58, %v3564_v13  ;;  %v3694_v1 = vsel %vm1050_vm2, %v3632_v10, %v8605_v56  ;;  %v3490_v28 = vsel %vm408_vm0, %v3489_v42, %v8642_v51 }
 0x19e   : > { %3593 = vrot.lane.b32.xlu0 %v3481_v50, %s6812_s22  ;;  %2927 = vrot.lane.b32.xlu1 %v2816_v53, %s6812_s22  ;;  %v3805_v23 = vshll.u32 %v3740_v54, 16  ;;  %v3499_v63 = vor.u32 %v3498_v60, %v3494_v9  ;;  %v3803_v37 = vshrl.u32 %v3740_v54, 16  ;;  %v2834_v9 = vrot.slane %v2832_v33, 1 }
 0x19f   : > { %v3262_v49 = vpop.permute.xlu0 %3261 }
 0x1a0   : > { %v3324_v25 = vpop.permute.xlu1 %3323  ;;  %v3807_v21 = vrot.slane %v3805_v23, 1  ;;  %v3630_v26 = vsel %vm1017_vm1, %v6786_v14, %v3262_v49  ;;  %v3500_v45 = vsel %vm408_vm0, %v3499_v63, %v8661_v46  ;;  %v3491_v49 = vshrl.u32 %v8617_v59, 16 }
 0x1a1   : > { %v3693_v43 = vsel %vm1050_vm2, %v3630_v26, %v3324_v25  ;;  %v11866_v25 = vshrl.u32 %v11865_v62, 16 }
 0x1a2   : > { %2925 = vrot.lane.b32.xlu0 %v2804_v15, %s6812_s22  ;;  %2657 = vrot.lane.b32.xlu1 %v8625_v30, %s6811_s19  ;;  %v3808_v50 = vor.u32 %v3807_v21, %v3803_v37 }
 0x1a3   : > { %v3266_v6 = vpop.permute.xlu0 %3265 }
 0x1a4   : > { %v3326_v38 = vpop.permute.xlu1 %3325  ;;  %v3634_v7 = vsel %vm1017_vm1, %v6787_v31, %v3266_v6  ;;  %v2820_v6 = vshll.u32 %v8625_v30, 16  ;;  %v3501_v31 = vshrl.u32 %v8639_v16, 16 }
 0x1a5   : > { %v3696_v12 = vsel %vm1050_vm2, %v3634_v7, %v3326_v38 }
 0x1a6   : > { %3291 = vrot.lane.b32.xlu0 %v11858_v11, %s6810_s18  ;;  %2659 = vrot.lane.b32.xlu1 %v8636_v27, %s6811_s19  ;;  %v2822_v21 = vrot.slane %v2820_v6, 1  ;;  %v5955_v6 = vld [vmem:[%s6849_s17 + $0x9c] sm:$0xf] }
 0x1a7   : > { %v3568_v48 = vpop.permute.xlu0 %3567 }
 0x1a8   : > { %v3744_v5 = vsel %vm1083_vm3, %v3694_v1, %v3568_v48  ;;  %v2530_v57 = vpop.permute.xlu1 %2529 }
 0x1a9   : > { %v3815_v40 = vshll.u32 %v3744_v5, 16  ;;  %v2946_v39 = vsel %vm1017_vm1, %v11856_v32, %v2530_v57  ;;  %v3813_v18 = vshrl.u32 %v3744_v5, 16  ;;  %v6042_v5 = vld [vmem:[%s6849_s17 + $0x90] sm:$0xe] }
 0x1aa   : > { %3295 = vrot.lane.b32.xlu0 %v11859_v0, %s6810_s18  ;;  %3595 = vrot.lane.b32.xlu1 %v3490_v28, %s6812_s22  ;;  %v2978_v54 = vsel %vm1050_vm2, %v2946_v39, %v8594_v4  ;;  %v2830_v4 = vshrl.u32 %v8636_v27, 16  ;;  %v5954_v28 = vld [vmem:[%s6849_s17 + $0x94] sm:$0xf]  ;;  %v2818_v27 = vshrl.u32 %v8625_v30, 16 }
 0x1ab   : > { %v3566_v20 = vpop.permute.xlu0 %3565  ;;  %v3817_v24 = vrot.slane %v3815_v40, 1  ;;  %v6058_v30 = vcombine.low %v6042_v5, %v5954_v28 }
 0x1ac   : > { %v3742_v61 = vsel %vm1083_vm3, %v3693_v43, %v3566_v20  ;;  %v2532_v36 = vpop.permute.xlu1 %2531  ;;  %v11868_v43 = vld [vmem:[#allocation92_spill] sm:$0xff] }
 0x1ad   : > { %v3809_v35 = vshll.u32 %v3742_v61, 16  ;;  %v8667_v47 = vpop.f32.mrb[0].mxu0  ;;  %v2948_v2 = vsel %vm1017_vm1, %v11857_v52, %v2532_v36  ;;  %v3818_v42 = vor.u32 %v3817_v24, %v3813_v18  ;;  %v2835_v61 = vor.u32 %v2834_v9, %v2830_v4 }
 0x1ae   : > { %11860 = vst [vmem:[#allocation99_spill] sm:$0xff] %v8667_v47  ;;  %3293 = vrot.lane.b32.xlu0 %v11862_v3, %s6810_s18  ;;  %v8673_v17 = vpop.f32.mrb[1].mxu0  ;;  %3339 = vrot.lane.b32.xlu1 %v8617_v59, %s6811_s19  ;;  %v2980_v59 = vsel %vm1050_vm2, %v2948_v2, %v8605_v56  ;;  %v4184_v52 = vsel %vm1050_vm2, %v8667_v47, 0.0  ;;  %v5956_v2 = vld [vmem:[%s6849_s17 + $0xa0] sm:$0xf] }
 0x1af   : > { %v3811_v53 = vrot.slane %v3809_v35, 1  ;;  %v8683_v55 = vpop.f32.mrb[2].mxu0  ;;  %v3570_v13 = vpop.permute.xlu0 %3569  ;;  %v4181_v32 = vsel %vm1050_vm2, %v8673_v17, 0.0  ;;  %v2823_v35 = vor.u32 %v2822_v21, %v2818_v27 }
 0x1b0   : > { %11863 = vst [vmem:[#allocation97_spill] sm:$0xff] %v8683_v55  ;;  %v3746_v15 = vsel %vm1083_vm3, %v3696_v12, %v3570_v13  ;;  %v8686_v41 = vpop.f32.mrb[3].mxu0  ;;  %v2916_v19 = vpop.permute.xlu1 %2915  ;;  %v4186_v60 = vsel %vm1050_vm2, %v8683_v55, 0.0  ;;  %v11870_v12 = vld [vmem:[#allocation91_spill] sm:$0xff] }
 0x1b1   : > { %11864 = vst [vmem:[#allocation70_spill] sm:$0xff] %v8686_v41  ;;  %v3819_v22 = vshll.u32 %v3746_v15, 16  ;;  %v4182_v44 = vsel %vm1050_vm2, %v8686_v41, 0.0  ;;  %v3812_v58 = vsel %vm408_vm0, %v3808_v50, %v3811_v53  ;;  %v3012_v38 = vsel %vm1083_vm3, %v2980_v59, %v2916_v19  ;;  %v8751_v13 = vld [vmem:[%s6849_s17 + $0x98] ss:$0 sps:$4 sm:$0x11]  }
 0x1b2   : > { %3297 = vrot.lane.b32.xlu0 %v11866_v25, %s6810_s18  ;;  %v4183_v29 = vadd.f32 %v4182_v44, %v4181_v32  ;;  %6322 = vmatprep.mubr.msk.bf16.mxu1 %vm1124_vm4, %v3812_v58  ;;  %v2840_v53 = vsel %vm408_vm0, %v2835_v61, %v8661_v46  ;;  %v6059_v19 = vcombine.low %v6043_v8, %v5956_v2  ;;  %v11872_v46 = vld [vmem:[#allocation47_spill] sm:$0xff] }
 0x1b3   : > { %3341 = vrot.lane.b32.xlu1 %v8639_v16, %s6811_s19  ;;  %v3821_v10 = vrot.slane %v3819_v22, 1  ;;  %v2914_v11 = vpop.permute.xlu0 %2913  ;;  %v3506_v16 = vshll.u32 %v6058_v30, 16  ;;  %v2828_v32 = vsel %vm408_vm0, %v2823_v35, %v8642_v51  ;;  %v2849_v51 = vshll.u32 %v8751_v13, 16 }
 0x1b4   : > { %v4185_v23 = vadd.f32 %v4184_v52, %v4183_v29  ;;  %v3010_v56 = vsel %vm1083_vm3, %v2978_v54, %v2914_v11  ;;  %v8710_v34 = vpop.permute.xlu1 %2645  ;;  %v3516_v11 = vshll.u32 %v6059_v19, 16 }
 0x1b5   : > { %v3822_v1 = vsel %vm408_vm0, %v3818_v42, %v3821_v10  ;;  %v8716_v48 = vpop.f32.mrb[4].mxu0  ;;  %6288 = vmatprep.mubr.msk.bf16.mxu0 %vm1124_vm4, %v3010_v56  ;;  %v3504_v42 = vshrl.u32 %v6058_v30, 16  ;;  %v3508_v52 = vrot.slane %v3506_v16, 1  ;;  %v8792_v21 = vrot.slane %v2849_v51, 1 }
 0x1b6   : > { %3599 = vrot.lane.b32.xlu0 %v3500_v45, %s6812_s22  ;;  %v8722_v57 = vpop.f32.mrb[5].mxu0  ;;  %v4187_v0 = vadd.f32 %v4186_v60, %v4185_v23  ;;  %6289 = vmatmul.mubr.msk.bf16.vlgmr.msra.gmra.mrb[32].mxu0 %vm1124_vm4, %v3012_v38  ;;  %v4192_v3 = vsel %vm1050_vm2, %v8716_v48, 0.0  ;;  %v5953_v45 = vld [vmem:[%s6849_s17 + $0x90] sm:$0xf]  ;;  %v3514_v30 = vshrl.u32 %v6059_v19, 16 }
 0x1b7   : > { %11867 = vst [vmem:[#allocation69_spill] sm:$0xff] %v8722_v57  ;;  %6323 = vmatmul.mubr.msk.bf16.vlgmr.msra.gmra.mrb[32].mxu1 %vm1124_vm4, %v3822_v1  ;;  %v4188_v14 = vsel %vm1050_vm2, %v8722_v57, 0.0  ;;  %v8729_v26 = vpop.f32.mrb[6].mxu0  ;;  %v3268_v63 = vpop.permute.xlu0 %3267  ;;  %2545 = vrot.lane.b32.xlu1 %v11868_v43, %s6810_s18  ;;  %v8769_v58 = vcombine.low %v5953_v45, %v5954_v28  ;;  %v8779_v38 = vld [vmem:[%s6849_s17 + $0xa4] ss:$0 sps:$4 sm:$0x11]   ;;  %v8788_v1 = vcombine.low %v5955_v6, %v5956_v2 }
 0x1b8   : > { %v4189_v40 = vadd.f32 %v4188_v14, %v4187_v0  ;;  %v8733_v20 = vpop.f32.mrb[7].mxu0  ;;  %v8735_v37 = vpop.permute.xlu1 %2647  ;;  %v4194_v18 = vsel %vm1050_vm2, %v8729_v26, 0.0  ;;  %v3636_v22 = vsel %vm1017_vm1, %v11872_v46, %v3268_v63  ;;  %v11873_v28 = vld [vmem:[#allocation44_spill] sm:$0xff]  ;;  %v3509_v14 = vor.u32 %v3508_v52, %v3504_v42 }
 0x1b9   : > { %11869 = vst [vmem:[#allocation3_spill] sm:$0xff] %v8733_v20  ;;  %v4190_v36 = vsel %vm1050_vm2, %v8733_v20, 0.0  ;;  %v3697_v23 = vsel %vm1050_vm2, %v3636_v22, %v8710_v34  ;;  %v2861_v61 = vshll.u32 %v8779_v38, 16  ;;  %v6788_v22 = vld [vmem:[%s6849_s17 + $0x2c] ss:$0 sps:$4 sm:$0x11]  }
 0x1ba   : > { %3597 = vrot.lane.b32.xlu0 %v3491_v49, %s6812_s22  ;;  %v4191_v7 = vadd.f32 %v4190_v36, %v4189_v40  ;;  %v11875_v40 = vld [vmem:[#allocation35_spill] sm:$0xff]  ;;  %v3518_v36 = vrot.slane %v3516_v11, 1  ;;  %v3510_v2 = vsel %vm408_vm0, %v3509_v14, %v8792_v21  ;;  %v11879_v14 = vld [vmem:[#allocation80_spill] sm:$0xff] }
 0x1bb   : > { %v3272_v50 = vpop.permute.xlu0 %3271  ;;  %2547 = vrot.lane.b32.xlu1 %v11870_v12, %s6810_s18  ;;  %v8820_v19 = vrot.slane %v2861_v61, 1 }
 0x1bc   : > { %v4193_v24 = vadd.f32 %v4192_v3, %v4191_v7  ;;  %v3572_v39 = vpop.permute.xlu1 %3571  ;;  %v3640_v5 = vsel %vm1017_vm1, %v11873_v28, %v3272_v50 }
 0x1bd   : > { %v8755_v15 = vpop.f32.mrb[8].mxu0  ;;  %v3748_v9 = vsel %vm1083_vm3, %v3697_v23, %v3572_v39  ;;  %v3700_v50 = vsel %vm1050_vm2, %v3640_v5, %v8735_v37 }
 0x1be   : > { %11871 = vst [vmem:[#allocation81_spill] sm:$0xff] %v8755_v15  ;;  %3601 = vrot.lane.b32.xlu0 %v3501_v31, %s6812_s22  ;;  %v8758_v49 = vpop.f32.mrb[9].mxu0  ;;  %v4195_v33 = vadd.f32 %v4194_v18, %v4193_v24  ;;  %v4200_v4 = vsel %vm1050_vm2, %v8755_v15, 0.0  ;;  %v3825_v31 = vshll.u32 %v3748_v9, 16  ;;  %v11878_v18 = vld [vmem:[#allocation38_spill] sm:$0xff] }
 0x1bf   : > { %v4196_v44 = vsel %vm1050_vm2, %v8758_v49, 0.0  ;;  %v8766_v62 = vpop.f32.mrb[10].mxu0  ;;  %v3270_v25 = vpop.permute.xlu0 %3269  ;;  %2931 = vrot.lane.b32.xlu1 %v2840_v53, %s6812_s22 }
 0x1c0   : > { %v4197_v29 = vadd.f32 %v4196_v44, %v4195_v33  ;;  %v8771_v59 = vpop.f32.mrb[11].mxu0  ;;  %v3328_v54 = vpop.permute.xlu1 %3327  ;;  %v4202_v63 = vsel %vm1050_vm2, %v8766_v62, 0.0  ;;  %v3519_v33 = vor.u32 %v3518_v36, %v3514_v30  ;;  %v3638_v44 = vsel %vm1017_vm1, %v6788_v22, %v3270_v25  ;;  %v11883_v22 = vld [vmem:[#allocation37_spill] sm:$0xff] }
 0x1c1   : > { %v4198_v10 = vsel %vm1050_vm2, %v8771_v59, 0.0  ;;  %v3699_v6 = vsel %vm1050_vm2, %v3638_v44, %v3328_v54  ;;  %v11884_v44 = vshrl.u32 %v11883_v22, 16 }
 0x1c2   : > { %2929 = vrot.lane.b32.xlu0 %v2828_v32, %s6812_s22  ;;  %v4199_v56 = vadd.f32 %v4198_v10, %v4197_v29  ;;  %v3827_v32 = vrot.slane %v3825_v31, 1  ;;  %v3823_v10 = vshrl.u32 %v3748_v9, 16  ;;  %v3520_v9 = vsel %vm408_vm0, %v3519_v33, %v8820_v19 }
 0x1c3   : > { %v3274_v60 = vpop.permute.xlu0 %3273  ;;  %2661 = vrot.lane.b32.xlu1 %v8769_v58, %s6811_s19 }
 0x1c4   : > { %v4201_v0 = vadd.f32 %v4200_v4, %v4199_v56  ;;  %v3330_v27 = vpop.permute.xlu1 %3329  ;;  %v6789_v4 = vld [vmem:[%s6849_s17 + $0x38] ss:$0 sps:$4 sm:$0x11]  }
 0x1c5   : > { %v8796_v43 = vpop.f32.mrb[12].mxu0  ;;  %v3642_v5 = vsel %vm1017_vm1, %v6789_v4, %v3274_v60 }
 0x1c6   : > { %11874 = vst [vmem:[#allocation14_spill] sm:$0xff] %v8796_v43  ;;  %3299 = vrot.lane.b32.xlu0 %v11875_v40, %s6810_s18  ;;  %v8801_v7 = vpop.f32.mrb[13].mxu0  ;;  %v4203_v35 = vadd.f32 %v4202_v63, %v4201_v0  ;;  %v4208_v51 = vsel %vm1050_vm2, %v8796_v43, 0.0  ;;  %v11880_v63 = vshrl.u32 %v11879_v14, 16  ;;  %v3828_v40 = vor.u32 %v3827_v32, %v3823_v10 }
 0x1c7   : > { %v4204_v8 = vsel %vm1050_vm2, %v8801_v7, 0.0  ;;  %v8805_v3 = vpop.f32.mrb[14].mxu0  ;;  %v3576_v12 = vpop.permute.xlu0 %3575  ;;  %2663 = vrot.lane.b32.xlu1 %v8788_v1, %s6811_s19  ;;  %v3702_v61 = vsel %vm1050_vm2, %v3642_v5, %v3330_v27 }
 0x1c8   : > { %11876 = vst [vmem:[#allocation5_spill] sm:$0xff] %v8805_v3  ;;  %v4205_v45 = vadd.f32 %v4204_v8, %v4203_v35  ;;  %v3752_v24 = vsel %vm1083_vm3, %v3700_v50, %v3576_v12  ;;  %v8812_v39 = vpop.f32.mrb[15].mxu0  ;;  %v2534_v53 = vpop.permute.xlu1 %2533  ;;  %v4210_v25 = vsel %vm1050_vm2, %v8805_v3, 0.0 }
 0x1c9   : > { %11877 = vst [vmem:[#allocation76_spill] sm:$0xff] %v8812_v39  ;;  %v4206_v16 = vsel %vm1050_vm2, %v8812_v39, 0.0  ;;  %v3835_v42 = vshll.u32 %v3752_v24, 16  ;;  %v2950_v30 = vsel %vm1017_vm1, %v11872_v46, %v2534_v53  ;;  %v3833_v33 = vshrl.u32 %v3752_v24, 16 }
 0x1ca   : > { %3303 = vrot.lane.b32.xlu0 %v11878_v18, %s6810_s18  ;;  %v4207_v29 = vadd.f32 %v4206_v16, %v4205_v45  ;;  %v3511_v16 = vshrl.u32 %v8751_v13, 16  ;;  %v2856_v18 = vshll.u32 %v8788_v1, 16  ;;  %v2844_v24 = vshll.u32 %v8769_v58, 16 }
 0x1cb   : > { %v3574_v52 = vpop.permute.xlu0 %3573  ;;  %3603 = vrot.lane.b32.xlu1 %v3510_v2, %s6812_s22  ;;  %v3837_v31 = vrot.slane %v3835_v42, 1 }
 0x1cc   : > { %v4209_v11 = vadd.f32 %v4208_v51, %v4207_v29  ;;  %v3750_v23 = vsel %vm1083_vm3, %v3699_v6, %v3574_v52  ;;  %v2536_v56 = vpop.permute.xlu1 %2535  ;;  %v2858_v5 = vrot.slane %v2856_v18, 1  ;;  %v3521_v18 = vshrl.u32 %v8779_v38, 16 }
 0x1cd   : > { %v3829_v0 = vshll.u32 %v3750_v23, 16  ;;  %v8833_v54 = vpop.f32.mrb[16].mxu0  ;;  %v2952_v50 = vsel %vm1017_vm1, %v11873_v28, %v2536_v56  ;;  %v3838_v42 = vor.u32 %v3837_v31, %v3833_v33 }
 0x1ce   : > { %3301 = vrot.lane.b32.xlu0 %v11880_v63, %s6810_s18  ;;  %v8843_v60 = vpop.f32.mrb[17].mxu0  ;;  %v4211_v36 = vadd.f32 %v4210_v25, %v4209_v11  ;;  %v2984_v51 = vsel %vm1050_vm2, %v2952_v50, %v8735_v37  ;;  %v4216_v52 = vsel %vm1050_vm2, %v8833_v54, 0.0  ;;  %v5958_v63 = vld [vmem:[%s6849_s17 + $0xac] sm:$0xf] }
 0x1cf   : > { %11881 = vst [vmem:[#allocation9_spill] sm:$0xff] %v8843_v60  ;;  %v3831_v35 = vrot.slane %v3829_v0, 1  ;;  %v4212_v8 = vsel %vm1050_vm2, %v8843_v60, 0.0  ;;  %v8849_v12 = vpop.f32.mrb[18].mxu0  ;;  %v3578_v45 = vpop.permute.xlu0 %3577  ;;  %3343 = vrot.lane.b32.xlu1 %v8751_v13, %s6811_s19  ;;  %v2982_v13 = vsel %vm1050_vm2, %v2950_v30, %v8710_v34  ;;  %v2854_v34 = vshrl.u32 %v8788_v1, 16 }
 0x1d0   : > { %v4213_v27 = vadd.f32 %v4212_v8, %v4211_v36  ;;  %v3754_v46 = vsel %vm1083_vm3, %v3702_v61, %v3578_v45  ;;  %v8854_v53 = vpop.f32.mrb[19].mxu0  ;;  %v2920_v2 = vpop.permute.xlu1 %2919  ;;  %v4218_v25 = vsel %vm1050_vm2, %v8849_v12, 0.0  ;;  %v2842_v1 = vshrl.u32 %v8769_v58, 16  ;;  %v11886_v8 = vld [vmem:[#allocation95_spill] sm:$0xff] }
 0x1d1   : > { %11882 = vst [vmem:[#allocation4_spill] sm:$0xff] %v8854_v53  ;;  %v3839_v32 = vshll.u32 %v3754_v46, 16  ;;  %v4214_v28 = vsel %vm1050_vm2, %v8854_v53, 0.0  ;;  %v3832_v29 = vsel %vm408_vm0, %v3828_v40, %v3831_v35  ;;  %v3016_v11 = vsel %vm1083_vm3, %v2984_v51, %v2920_v2  ;;  %v6044_v40 = vld [vmem:[%s6849_s17 + $0xa8] sm:$0xe] }
 0x1d2   : > { %3305 = vrot.lane.b32.xlu0 %v11884_v44, %s6810_s18  ;;  %v4215_v6 = vadd.f32 %v4214_v28, %v4213_v27  ;;  %6326 = vmatprep.mubr.msk.bf16.mxu1 %vm1124_vm4, %v3832_v29  ;;  %v2846_v36 = vrot.slane %v2844_v24, 1  ;;  %v2859_v46 = vor.u32 %v2858_v5, %v2854_v34  ;;  %v6060_v2 = vcombine.low %v6044_v40, %v5958_v63  ;;  %v11887_v44 = vld [vmem:[#allocation93_spill] sm:$0xff] }
 0x1d3   : > { %v3841_v10 = vrot.slane %v3839_v32, 1  ;;  %v2918_v23 = vpop.permute.xlu0 %2917  ;;  %3345 = vrot.lane.b32.xlu1 %v8779_v38, %s6811_s19 }
 0x1d4   : > { %v4217_v56 = vadd.f32 %v4216_v52, %v4215_v6  ;;  %v3014_v37 = vsel %vm1083_vm3, %v2982_v13, %v2918_v23  ;;  %v8876_v4 = vpop.permute.xlu1 %2649  ;;  %v2847_v32 = vor.u32 %v2846_v36, %v2842_v1  ;;  %v2864_v51 = vsel %vm408_vm0, %v2859_v46, %v8820_v19  ;;  %v5957_v13 = vld [vmem:[%s6849_s17 + $0xa8] sm:$0xf] }
 0x1d5   : > { %v8881_v0 = vpop.f32.mrb[20].mxu0  ;;  %6292 = vmatprep.mubr.msk.bf16.mxu0 %vm1124_vm4, %v3014_v37  ;;  %v3842_v14 = vsel %vm408_vm0, %v3838_v42, %v3841_v10  ;;  %v3526_v38 = vshll.u32 %v6060_v2, 16  ;;  %v8933_v5 = vcombine.low %v5957_v13, %v5958_v63 }
 0x1d6   : > { %11885 = vst [vmem:[#allocation7_spill] sm:$0xff] %v8881_v0  ;;  %3607 = vrot.lane.b32.xlu0 %v3520_v9, %s6812_s22  ;;  %v8888_v61 = vpop.f32.mrb[21].mxu0  ;;  %v4219_v30 = vadd.f32 %v4218_v25, %v4217_v56  ;;  %6293 = vmatmul.mubr.msk.bf16.gmra.mrb[36].mxu0 %vm1124_vm4, %v3016_v11  ;;  %v4224_v28 = vsel %vm1050_vm2, %v8881_v0, 0.0  ;;  %v2852_v19 = vsel %vm408_vm0, %v2847_v32, %v8792_v21  ;;  %v11890_v11 = vld [vmem:[#allocation50_spill] sm:$0xff]  ;;  %v5959_v25 = vld [vmem:[%s6849_s17 + $0xb4] sm:$0xf] }
 0x1d7   : > { %6327 = vmatmul.mubr.msk.bf16.gmra.mrb[36].mxu1 %vm1124_vm4, %v3842_v14  ;;  %v4220_v31 = vsel %vm1050_vm2, %v8888_v61, 0.0  ;;  %v8895_v9 = vpop.f32.mrb[22].mxu0  ;;  %v3276_v35 = vpop.permute.xlu0 %3275  ;;  %2549 = vrot.lane.b32.xlu1 %v11886_v8, %s6810_s18  ;;  %v6045_v14 = vld [vmem:[%s6849_s17 + $0xb4] sm:$0xe]  ;;  %v5960_v21 = vld [vmem:[%s6849_s17 + $0xb8] sm:$0xf] }
 0x1d8   : > { %v4221_v50 = vadd.f32 %v4220_v31, %v4219_v30  ;;  %v8899_v45 = vpop.f32.mrb[23].mxu0  ;;  %v8901_v27 = vpop.permute.xlu1 %2651  ;;  %v4226_v24 = vsel %vm1050_vm2, %v8895_v9, 0.0  ;;  %v3644_v23 = vsel %vm1017_vm1, %v11890_v11, %v3276_v35  ;;  %v3524_v31 = vshrl.u32 %v6060_v2, 16  ;;  %v11893_v32 = vld [vmem:[#allocation48_spill] sm:$0xff] }
 0x1d9   : > { %v4222_v58 = vsel %vm1050_vm2, %v8899_v45, 0.0  ;;  %v3528_v35 = vrot.slane %v3526_v38, 1  ;;  %v3703_v63 = vsel %vm1050_vm2, %v3644_v23, %v8876_v4  ;;  %v6061_v46 = vcombine.low %v6045_v14, %v5960_v21 }
 0x1da   : > { %3605 = vrot.lane.b32.xlu0 %v3511_v16, %s6812_s22  ;;  %v4223_v33 = vadd.f32 %v4222_v58, %v4221_v50  ;;  %v8915_v16 = vld [vmem:[%s6849_s17 + $0xb0] ss:$0 sps:$4 sm:$0x11]   ;;  %v8951_v2 = vcombine.low %v5959_v25, %v5960_v21 }
 0x1db   : > { %v3280_v22 = vpop.permute.xlu0 %3279  ;;  %2551 = vrot.lane.b32.xlu1 %v11887_v44, %s6810_s18  ;;  %v2873_v36 = vshll.u32 %v8915_v16, 16  ;;  %v3529_v13 = vor.u32 %v3528_v35, %v3524_v31 }
 0x1dc   : > { %v4225_v29 = vadd.f32 %v4224_v28, %v4223_v33  ;;  %v3580_v6 = vpop.permute.xlu1 %3579  ;;  %v3648_v28 = vsel %vm1017_vm1, %v11893_v32, %v3280_v22  ;;  %v3536_v22 = vshll.u32 %v6061_v46, 16 }
 0x1dd   : > { %v8919_v42 = vpop.f32.mrb[24].mxu0 }
 0x1de   : > { %11888 = vst [vmem:[#allocation15_spill] sm:$0xff] %v8919_v42  ;;  %3609 = vrot.lane.b32.xlu0 %v3521_v18, %s6812_s22  ;;  %v8922_v52 = vpop.f32.mrb[25].mxu0  ;;  %v4227_v10 = vadd.f32 %v4226_v24, %v4225_v29  ;;  %v4232_v58 = vsel %vm1050_vm2, %v8919_v42, 0.0  ;;  %v3756_v18 = vsel %vm1083_vm3, %v3703_v63, %v3580_v6  ;;  %v11895_v6 = vld [vmem:[#allocation57_spill] sm:$0xff] }
 0x1df   : > { %11889 = vst [vmem:[#allocation6_spill] sm:$0xff] %v8922_v52  ;;  %v4228_v56 = vsel %vm1050_vm2, %v8922_v52, 0.0  ;;  %v8930_v37 = vpop.f32.mrb[26].mxu0  ;;  %v3278_v34 = vpop.permute.xlu0 %3277  ;;  %2935 = vrot.lane.b32.xlu1 %v2864_v51, %s6812_s22  ;;  %v8955_v51 = vrot.slane %v2873_v36, 1 }
 0x1e0   : > { %11891 = vst [vmem:[#allocation22_spill] sm:$0xff] %v8930_v37  ;;  %v4229_v40 = vadd.f32 %v4228_v56, %v4227_v10  ;;  %v8937_v30 = vpop.f32.mrb[27].mxu0  ;;  %v3332_v1 = vpop.permute.xlu1 %3331  ;;  %v4234_v38 = vsel %vm1050_vm2, %v8930_v37, 0.0  ;;  %v8964_v10 = vld [vmem:[%s6849_s17 + $0xbc] ss:$0 sps:$4 sm:$0x11]  }
 0x1e1   : > { %11892 = vst [vmem:[#allocation10_spill] sm:$0xff] %v8937_v30  ;;  %v4230_v8 = vsel %vm1050_vm2, %v8937_v30, 0.0  ;;  %v3530_v63 = vsel %vm408_vm0, %v3529_v13, %v8955_v51 }
 0x1e2   : > { %2933 = vrot.lane.b32.xlu0 %v2852_v19, %s6812_s22  ;;  %v4231_v50 = vadd.f32 %v4230_v8, %v4229_v40  ;;  %v3845_v19 = vshll.u32 %v3756_v18, 16  ;;  %v3706_v40 = vsel %vm1050_vm2, %v3648_v28, %v8901_v27  ;;  %v2885_v28 = vshll.u32 %v8964_v10, 16 }
 0x1e3   : > { %2665 = vrot.lane.b32.xlu1 %v8933_v5, %s6811_s19 }
 0x1e4   : > { %v3282_v33 = vpop.permute.xlu0 %3281  ;;  %v4233_v44 = vadd.f32 %v4232_v58, %v4231_v50  ;;  %v3334_v29 = vpop.permute.xlu1 %3333  ;;  %v11898_v58 = vld [vmem:[#allocation60_spill] sm:$0xff] }
 0x1e5   : > { %v8959_v24 = vpop.f32.mrb[28].mxu0 }
 0x1e6   : > { %11894 = vst [vmem:[#allocation17_spill] sm:$0xff] %v8959_v24  ;;  %3307 = vrot.lane.b32.xlu0 %v11895_v6, %s6810_s18  ;;  %v8966_v23 = vpop.f32.mrb[29].mxu0  ;;  %v4235_v56 = vadd.f32 %v4234_v38, %v4233_v44  ;;  %v3534_v44 = vshrl.u32 %v6061_v46, 16  ;;  %v3847_v38 = vrot.slane %v3845_v19, 1  ;;  %v4240_v13 = vsel %vm1050_vm2, %v8959_v24, 0.0 }
 0x1e7   : > { %11896 = vst [vmem:[#allocation8_spill] sm:$0xff] %v8966_v23  ;;  %v4236_v25 = vsel %vm1050_vm2, %v8966_v23, 0.0  ;;  %v8970_v14 = vpop.f32.mrb[30].mxu0  ;;  %2667 = vrot.lane.b32.xlu1 %v8951_v2, %s6811_s19  ;;  %v6790_v6 = vld [vmem:[%s6849_s17 + $0x44] ss:$0 sps:$4 sm:$0x11]  }
 0x1e8   : > { %v3584_v21 = vpop.permute.xlu0 %3583  ;;  %v4237_v36 = vadd.f32 %v4236_v25, %v4235_v56  ;;  %v8977_v35 = vpop.f32.mrb[31].mxu0  ;;  %v3646_v56 = vsel %vm1017_vm1, %v6790_v6, %v3278_v34  ;;  %v4242_v34 = vsel %vm1050_vm2, %v8970_v14, 0.0 }
 0x1e9   : > { %v3760_v31 = vsel %vm1083_vm3, %v3706_v40, %v3584_v21  ;;  %11897 = vst [vmem:[#allocation11_spill] sm:$0xff] %v8977_v35  ;;  %v2538_v8 = vpop.permute.xlu1 %2537  ;;  %v4238_v50 = vsel %vm1050_vm2, %v8977_v35, 0.0  ;;  %v3538_v40 = vrot.slane %v3536_v22, 1  ;;  %v3705_v21 = vsel %vm1050_vm2, %v3646_v56, %v3332_v1  ;;  %v11899_v22 = vld [vmem:[#allocation89_spill] sm:$0xff] }
 0x1ea   : > { %3311 = vrot.lane.b32.xlu0 %v11898_v58, %s6810_s18  ;;  %v4239_v25 = vadd.f32 %v4238_v50, %v4237_v36  ;;  %v3855_v23 = vshll.u32 %v3760_v31, 16  ;;  %v3843_v58 = vshrl.u32 %v3756_v18, 16  ;;  %v11900_v50 = vshrl.u32 %v11899_v22, 16  ;;  %v6791_v56 = vld [vmem:[%s6849_s17 + $0x50] ss:$0 sps:$4 sm:$0x11]  }
 0x1eb   : > { %3611 = vrot.lane.b32.xlu1 %v3530_v63, %s6812_s22  ;;  %v2887_v1 = vrot.slane %v2885_v28, 1  ;;  %v3650_v24 = vsel %vm1017_vm1, %v6791_v56, %v3282_v33  ;;  %v3539_v18 = vor.u32 %v3538_v40, %v3534_v44  ;;  %v2954_v28 = vsel %vm1017_vm1, %v11890_v11, %v2538_v8 }
 0x1ec   : > { %v3582_v35 = vpop.permute.xlu0 %3581  ;;  %v4241_v52 = vadd.f32 %v4240_v13, %v4239_v25  ;;  %v3848_v6 = vor.u32 %v3847_v38, %v3843_v58  ;;  %v3708_v63 = vsel %vm1050_vm2, %v3650_v24, %v3334_v29  ;;  %v3853_v44 = vshrl.u32 %v3760_v31, 16  ;;  %v11901_v29 = vld [vmem:[#allocation55_spill] sm:$0xff] }
 0x1ed   : > { %v3758_v46 = vsel %vm1083_vm3, %v3705_v21, %v3582_v35  ;;  %v2540_v19 = vpop.permute.xlu1 %2539  ;;  %v3857_v35 = vrot.slane %v3855_v23, 1  ;;  %v11902_v24 = vshrl.u32 %v11901_v29, 16  ;;  %v3540_v11 = vsel %vm408_vm0, %v3539_v18, %v2887_v1  ;;  %v6046_v18 = vld [vmem:[%s6849_s17 + $0xc0] sm:$0xe] }
 0x1ee   : > { %v3849_v36 = vshll.u32 %v3758_v46, 16  ;;  %3309 = vrot.lane.b32.xlu0 %v11900_v50, %s6810_s18  ;;  %v9000_v30 = vadd.f32 %v4242_v34, %v4241_v52  ;;  %v2956_v21 = vsel %vm1017_vm1, %v11893_v32, %v2540_v19  ;;  %v2880_v52 = vshll.u32 %v8951_v2, 16  ;;  %v9049_v29 = vld [vmem:[%s6849_s17 + $0xc8] ss:$0 sps:$4 sm:$0x11]  }
 0x1ef   : > { %3347 = vrot.lane.b32.xlu1 %v8915_v16, %s6811_s19  ;;  %v2988_v23 = vsel %vm1050_vm2, %v2956_v21, %v8901_v27  ;;  %v2868_v8 = vshll.u32 %v8933_v5, 16  ;;  %v3858_v58 = vor.u32 %v3857_v35, %v3853_v44  ;;  %v2986_v19 = vsel %vm1050_vm2, %v2954_v28, %v8876_v4  ;;  %v5962_v4 = vld [vmem:[%s6849_s17 + $0xc4] sm:$0xf] }
 0x1f0   : > { %v3851_v25 = vrot.slane %v3849_v36, 1  ;;  %v3586_v13 = vpop.permute.xlu0 %3585  ;;  %v2878_v22 = vshrl.u32 %v8951_v2, 16  ;;  %v2882_v50 = vrot.slane %v2880_v52, 1  ;;  %v3531_v56 = vshrl.u32 %v8915_v16, 16  ;;  %v11904_v52 = vld [vmem:[#allocation96_spill] sm:$0xff] }
 0x1f1   : > { %v3762_v38 = vsel %vm1083_vm3, %v3708_v63, %v3586_v13  ;;  %v2924_v33 = vpop.permute.xlu1 %2923  ;;  %v2866_v63 = vshrl.u32 %v8933_v5, 16  ;;  %v2870_v2 = vrot.slane %v2868_v8, 1  ;;  %v6062_v28 = vcombine.low %v6046_v18, %v5962_v4 }
 0x1f2   : > { %v3859_v40 = vshll.u32 %v3762_v38, 16  ;;  %3313 = vrot.lane.b32.xlu0 %v11902_v24, %s6810_s18  ;;  %v3852_v32 = vsel %vm408_vm0, %v3848_v6, %v3851_v25  ;;  %v3020_v46 = vsel %vm1083_vm3, %v2988_v23, %v2924_v33  ;;  %v11903_v25 = vld [vmem:[#allocation98_spill] sm:$0xff]  ;;  %v2883_v13 = vor.u32 %v2882_v50, %v2878_v22 }
 0x1f3   : > { %6330 = vmatprep.mubr.msk.bf16.mxu1 %vm1124_vm4, %v3852_v32  ;;  %3349 = vrot.lane.b32.xlu1 %v8964_v10, %s6811_s19  ;;  %v3541_v16 = vshrl.u32 %v8964_v10, 16  ;;  %v2871_v38 = vor.u32 %v2870_v2, %v2866_v63  ;;  %v3546_v24 = vshll.u32 %v6062_v28, 16  ;;  %v11905_v10 = vld [vmem:[#allocation52_spill] sm:$0xff] }
 0x1f4   : > { %v3861_v31 = vrot.slane %v3859_v40, 1  ;;  %v2922_v34 = vpop.permute.xlu0 %2921  ;;  %v2888_v44 = vsel %vm408_vm0, %v2883_v13, %v2887_v1  ;;  %v5961_v40 = vld [vmem:[%s6849_s17 + $0xc0] sm:$0xf]  ;;  %v9078_v13 = vld [vmem:[%s6849_s17 + $0xd4] ss:$0 sps:$4 sm:$0x11]  }
 0x1f5   : > { %v3018_v36 = vsel %vm1083_vm3, %v2986_v19, %v2922_v34  ;;  %v9026_v27 = vpop.permute.xlu1 %2653  ;;  %v2876_v32 = vsel %vm408_vm0, %v2871_v38, %v8955_v51  ;;  %v9057_v8 = vcombine.low %v5961_v40, %v5962_v4  ;;  %v2897_v19 = vshll.u32 %v9049_v29, 16  ;;  %v11906_v4 = vld [vmem:[#allocation51_spill] sm:$0xff]  ;;  %v11908_v40 = vld [vmem:[#allocation2_spill] sm:$0xff] }
 0x1f6   : > { %3615 = vrot.lane.b32.xlu0 %v3540_v11, %s6812_s22  ;;  %6296 = vmatprep.mubr.msk.bf16.mxu0 %vm1124_vm4, %v3018_v36  ;;  %v3862_v6 = vsel %vm408_vm0, %v3858_v58, %v3861_v31  ;;  %v5963_v58 = vld [vmem:[%s6849_s17 + $0xcc] sm:$0xf]  ;;  %v3544_v34 = vshrl.u32 %v6062_v28, 16  ;;  %v3548_v36 = vrot.slane %v3546_v24, 1  ;;  %v2909_v24 = vshll.u32 %v9078_v13, 16 }
 0x1f7   : > { %6297 = vmatmul.mubr.msk.bf16.gmra.mrb[40].mxu0 %vm1124_vm4, %v3020_v46  ;;  %6331 = vmatmul.mubr.msk.bf16.gmra.mrb[40].mxu1 %vm1124_vm4, %v3862_v6  ;;  %v6047_v31 = vld [vmem:[%s6849_s17 + $0xcc] sm:$0xe]  ;;  %v5964_v46 = vld [vmem:[%s6849_s17 + $0xd0] sm:$0xf]  ;;  %v9073_v2 = vrot.slane %v2897_v19, 1 }
 0x1f8   : > { %v3284_v35 = vpop.permute.xlu0 %3283  ;;  %2553 = vrot.lane.b32.xlu1 %v11903_v25, %s6810_s18  ;;  %v6063_v22 = vcombine.low %v6047_v31, %v5964_v46  ;;  %v11907_v25 = vld [vmem:[#allocation66_spill] sm:$0xff] }
 0x1f9   : > { %v9040_v21 = vpop.permute.xlu1 %2655  ;;  %v3652_v23 = vsel %vm1017_vm1, %v11905_v10, %v3284_v35  ;;  %v3549_v35 = vor.u32 %v3548_v36, %v3544_v34 }
 0x1fa   : > { %3613 = vrot.lane.b32.xlu0 %v3531_v56, %s6812_s22  ;;  %v3709_v51 = vsel %vm1050_vm2, %v3652_v23, %v9026_v27  ;;  %v9069_v56 = vcombine.low %v5963_v58, %v5964_v46  ;;  %v6792_v23 = vld [vmem:[%s6849_s17 + $0x5c] ss:$0 sps:$4 sm:$0x11]   ;;  %v3554_v31 = vshrl.u32 %v6063_v22, 16 }
 0x1fc   : > { %v3288_v33 = vpop.permute.xlu0 %3287  ;;  %2555 = vrot.lane.b32.xlu1 %v11904_v52, %s6810_s18 }
 0x1fd   : > { %v3588_v5 = vpop.permute.xlu1 %3587  ;;  %v3656_v18 = vsel %vm1017_vm1, %v11906_v4, %v3288_v33 }
 0x1fe   : > { %3617 = vrot.lane.b32.xlu0 %v3541_v16, %s6812_s22  ;;  %v3764_v50 = vsel %vm1083_vm3, %v3709_v51, %v3588_v5  ;;  %v3556_v16 = vshll.u32 %v6063_v22, 16  ;;  %v3712_v38 = vsel %vm1050_vm2, %v3656_v18, %v9040_v21  ;;  %v2911_v22 = vrot.slane %v2909_v24, 1 }
 0x1ff   : > { %v3865_v28 = vshll.u32 %v3764_v50, 16  ;;  %v3863_v51 = vshrl.u32 %v3764_v50, 16 }
 0x200   : > { %v3286_v11 = vpop.permute.xlu0 %3285  ;;  %2939 = vrot.lane.b32.xlu1 %v2888_v44, %s6812_s22  ;;  %v3550_v44 = vsel %vm408_vm0, %v3549_v35, %v9073_v2  ;;  %v3558_v46 = vrot.slane %v3556_v16, 1 }
 0x201   : > { %v3336_v1 = vpop.permute.xlu1 %3335  ;;  %v3654_v58 = vsel %vm1017_vm1, %v6792_v23, %v3286_v11 }
 0x202   : > { %2937 = vrot.lane.b32.xlu0 %v2876_v32, %s6812_s22  ;;  %v3867_v32 = vrot.slane %v3865_v28, 1  ;;  %v3711_v19 = vsel %vm1050_vm2, %v3654_v58, %v3336_v1  ;;  %v3559_v16 = vor.u32 %v3558_v46, %v3554_v31 }
 0x204   : > { %v3290_v6 = vpop.permute.xlu0 %3289  ;;  %2669 = vrot.lane.b32.xlu1 %v9057_v8, %s6811_s19  ;;  %v3868_v28 = vor.u32 %v3867_v32, %v3863_v51 }
 0x205   : > { %v3338_v63 = vpop.permute.xlu1 %3337 }
 0x206   : > { %3315 = vrot.lane.b32.xlu0 %v11907_v25, %s6810_s18 }
 0x208   : > { %v3592_v52 = vpop.permute.xlu0 %3591  ;;  %2671 = vrot.lane.b32.xlu1 %v9069_v56, %s6811_s19 }
 0x209   : > { %v3768_v33 = vsel %vm1083_vm3, %v3712_v38, %v3592_v52  ;;  %v2542_v5 = vpop.permute.xlu1 %2541  ;;  %v11909_v38 = vld [vmem:[#allocation63_spill] sm:$0xff] }
 0x20a   : > { %3319 = vrot.lane.b32.xlu0 %v11908_v40, %s6810_s18  ;;  %v3875_v34 = vshll.u32 %v3768_v33, 16  ;;  %v11910_v52 = vshrl.u32 %v11909_v38, 16  ;;  %v6793_v40 = vld [vmem:[%s6849_s17 + $0x68] ss:$0 sps:$4 sm:$0x11]   ;;  %v3873_v24 = vshrl.u32 %v3768_v33, 16 }
 0x20b   : > { %v3658_v11 = vsel %vm1017_vm1, %v6793_v40, %v3290_v6  ;;  %v2904_v6 = vshll.u32 %v9069_v56, 16 }
 0x20c   : > { %v3590_v36 = vpop.permute.xlu0 %3589  ;;  %3619 = vrot.lane.b32.xlu1 %v3550_v44, %s6812_s22  ;;  %v3714_v1 = vsel %vm1050_vm2, %v3658_v11, %v3338_v63  ;;  %v3877_v23 = vrot.slane %v3875_v34, 1  ;;  %v11911_v63 = vld [vmem:[#allocation41_spill] sm:$0xff]  ;;  %v3551_v11 = vshrl.u32 %v9049_v29, 16 }
 0x20d   : > { %v3766_v18 = vsel %vm1083_vm3, %v3711_v19, %v3590_v36  ;;  %v2544_v35 = vpop.permute.xlu1 %2543  ;;  %v2958_v19 = vsel %vm1017_vm1, %v11905_v10, %v2542_v5  ;;  %v11912_v46 = vshrl.u32 %v11911_v63, 16  ;;  %v3560_v10 = vsel %vm408_vm0, %v3559_v16, %v2911_v22 }
 0x20e   : > { %v3869_v25 = vshll.u32 %v3766_v18, 16  ;;  %3317 = vrot.lane.b32.xlu0 %v11910_v52, %s6810_s18  ;;  %v2960_v50 = vsel %vm1017_vm1, %v11906_v4, %v2544_v35  ;;  %v2892_v5 = vshll.u32 %v9057_v8, 16  ;;  %v3878_v51 = vor.u32 %v3877_v23, %v3873_v24  ;;  %v11913_v23 = vld [vmem:[#allocation101_spill] sm:$0xff] }
 0x20f   : > { %v2992_v34 = vsel %vm1050_vm2, %v2960_v50, %v9040_v21  ;;  %v2990_v35 = vsel %vm1050_vm2, %v2958_v19, %v9026_v27  ;;  %v2902_v21 = vshrl.u32 %v9069_v56, 16  ;;  %v2890_v27 = vshrl.u32 %v9057_v8, 16 }
 0x210   : > { %v3871_v58 = vrot.slane %v3869_v25, 1  ;;  %v3594_v44 = vpop.permute.xlu0 %3593  ;;  %3351 = vrot.lane.b32.xlu1 %v9049_v29, %s6811_s19  ;;  %v2894_v16 = vrot.slane %v2892_v5, 1  ;;  %v3561_v50 = vshrl.u32 %v9078_v13, 16  ;;  %v11914_v29 = vld [vmem:[#allocation100_spill] sm:$0xff] }
 0x211   : > { %v3770_v32 = vsel %vm1083_vm3, %v3714_v1, %v3594_v44  ;;  %v2928_v36 = vpop.permute.xlu1 %2927 }
 0x212   : > { %v3879_v31 = vshll.u32 %v3770_v32, 16  ;;  %3321 = vrot.lane.b32.xlu0 %v11912_v46, %s6810_s18  ;;  %v3872_v4 = vsel %vm408_vm0, %v3868_v28, %v3871_v58  ;;  %v3024_v33 = vsel %vm1083_vm3, %v2992_v34, %v2928_v36  ;;  %v2906_v28 = vrot.slane %v2904_v6, 1  ;;  %v11915_v6 = vld [vmem:[#allocation54_spill] sm:$0xff] }
 0x213   : > { %6334 = vmatprep.mubr.msk.bf16.mxu1 %vm1124_vm4, %v3872_v4  ;;  %v2895_v44 = vor.u32 %v2894_v16, %v2890_v27  ;;  %v11916_v4 = vld [vmem:[#allocation53_spill] sm:$0xff] }
 0x214   : > { %v3881_v18 = vrot.slane %v3879_v31, 1  ;;  %v2926_v25 = vpop.permute.xlu0 %2925  ;;  %3353 = vrot.lane.b32.xlu1 %v9078_v13, %s6811_s19  ;;  %v2907_v58 = vor.u32 %v2906_v28, %v2902_v21 }
 0x215   : > { %v3022_v38 = vsel %vm1083_vm3, %v2990_v35, %v2926_v25  ;;  %v9124_v52 = vpop.permute.xlu1 %2657  ;;  %v2900_v8 = vsel %vm408_vm0, %v2895_v44, %v9073_v2  ;;  %v6794_v25 = vld [vmem:[%s6849_s17 + $0x74] ss:$0 sps:$4 sm:$0x11]  }
 0x216   : > { %3623 = vrot.lane.b32.xlu0 %v3560_v10, %s6812_s22  ;;  %6300 = vmatprep.mubr.msk.bf16.mxu0 %vm1124_vm4, %v3022_v38  ;;  %v3882_v40 = vsel %vm408_vm0, %v3878_v51, %v3881_v18  ;;  %v2912_v36 = vsel %vm408_vm0, %v2907_v58, %v2911_v22  ;;  %v6795_v58 = vld [vmem:[%s6849_s17 + $0x80] ss:$0 sps:$4 sm:$0x11]  }
 0x217   : > { %6301 = vmatmul.mubr.msk.bf16.gmra.mrb[44].mxu0 %vm1124_vm4, %v3024_v33  ;;  %6335 = vmatmul.mubr.msk.bf16.gmra.mrb[44].mxu1 %vm1124_vm4, %v3882_v40 }
 0x218   : > { %v3292_v1 = vpop.permute.xlu0 %3291  ;;  %2557 = vrot.lane.b32.xlu1 %v11913_v23, %s6810_s18 }
 0x219   : > { %v2660_v56 = vpop.permute.xlu1 %2659  ;;  %v3660_v24 = vsel %vm1017_vm1, %v11915_v6, %v3292_v1 }
 0x21a   : > { %3621 = vrot.lane.b32.xlu0 %v3551_v11, %s6812_s22  ;;  %v3715_v63 = vsel %vm1050_vm2, %v3660_v24, %v9124_v52 }
 0x21c   : > { %v3296_v19 = vpop.permute.xlu0 %3295  ;;  %2559 = vrot.lane.b32.xlu1 %v11914_v29, %s6810_s18 }
 0x21d   : > { %v3596_v32 = vpop.permute.xlu1 %3595  ;;  %v3664_v34 = vsel %vm1017_vm1, %v11916_v4, %v3296_v19 }
 0x21e   : > { %3625 = vrot.lane.b32.xlu0 %v3561_v50, %s6812_s22  ;;  %v3772_v22 = vsel %vm1083_vm3, %v3715_v63, %v3596_v32  ;;  %v3718_v5 = vsel %vm1050_vm2, %v3664_v34, %v2660_v56 }
 0x21f   : > { %v3885_v10 = vshll.u32 %v3772_v22, 16  ;;  %v3883_v11 = vshrl.u32 %v3772_v22, 16 }
 0x220   : > { %v3294_v31 = vpop.permute.xlu0 %3293  ;;  %2943 = vrot.lane.b32.xlu1 %v2912_v36, %s6812_s22 }
 0x221   : > { %v3340_v13 = vpop.permute.xlu1 %3339  ;;  %v3887_v35 = vrot.slane %v3885_v10, 1  ;;  %v3662_v38 = vsel %vm1017_vm1, %v6794_v25, %v3294_v31 }
 0x222   : > { %2941 = vrot.lane.b32.xlu0 %v2900_v8, %s6812_s22  ;;  %v3717_v21 = vsel %vm1050_vm2, %v3662_v38, %v3340_v13 }
 0x223   : > { %v3888_v23 = vor.u32 %v3887_v35, %v3883_v11 }
 0x224   : > { %v3298_v46 = vpop.permute.xlu0 %3297 }
 0x225   : > { %v3342_v2 = vpop.permute.xlu1 %3341  ;;  %v3666_v50 = vsel %vm1017_vm1, %v6795_v58, %v3298_v46  ;;  %v11921_v58 = vld [vmem:[#allocation58_spill] sm:$0xff] }
 0x226   : > { %v3720_v44 = vsel %vm1050_vm2, %v3666_v50, %v3342_v2 }
 0x228   : > { %v3600_v51 = vpop.permute.xlu0 %3599 }
 0x229   : > { %v3776_v18 = vsel %vm1083_vm3, %v3718_v5, %v3600_v51  ;;  %v2546_v33 = vpop.permute.xlu1 %2545 }
 0x22a   : > { %v3895_v28 = vshll.u32 %v3776_v18, 16  ;;  %v2962_v8 = vsel %vm1017_vm1, %v11915_v6, %v2546_v33  ;;  %v3893_v31 = vshrl.u32 %v3776_v18, 16 }
 0x22c   : > { %v3598_v40 = vpop.permute.xlu0 %3597  ;;  %v3897_v19 = vrot.slane %v3895_v28, 1 }
 0x22d   : > { %v3774_v27 = vsel %vm1083_vm3, %v3717_v21, %v3598_v40  ;;  %v2548_v1 = vpop.permute.xlu1 %2547 }
 0x22e   : > { %v3889_v16 = vshll.u32 %v3774_v27, 16  ;;  %v2964_v32 = vsel %vm1017_vm1, %v11916_v4, %v2548_v1  ;;  %v3898_v34 = vor.u32 %v3897_v19, %v3893_v31  ;;  %v2994_v4 = vsel %vm1050_vm2, %v2962_v8, %v9124_v52 }
 0x22f   : > { %v2996_v46 = vsel %vm1050_vm2, %v2964_v32, %v2660_v56 }
 0x230   : > { %v3891_v29 = vrot.slane %v3889_v16, 1  ;;  %v3602_v36 = vpop.permute.xlu0 %3601 }
 0x231   : > { %v3778_v24 = vsel %vm1083_vm3, %v3720_v44, %v3602_v36  ;;  %v2932_v22 = vpop.permute.xlu1 %2931 }
 0x232   : > { %v3899_v13 = vshll.u32 %v3778_v24, 16  ;;  %v3892_v63 = vsel %vm408_vm0, %v3888_v23, %v3891_v29  ;;  %v3028_v10 = vsel %vm1083_vm3, %v2996_v46, %v2932_v22 }
 0x233   : > { %6338 = vmatprep.mubr.msk.bf16.mxu1 %vm1124_vm4, %v3892_v63 }
 0x234   : > { %v3901_v2 = vrot.slane %v3899_v13, 1  ;;  %v2930_v5 = vpop.permute.xlu0 %2929 }
 0x235   : > { %v3026_v6 = vsel %vm1083_vm3, %v2994_v4, %v2930_v5  ;;  %v9176_v18 = vpop.permute.xlu1 %2661 }
 0x236   : > { %6304 = vmatprep.mubr.msk.bf16.mxu0 %vm1124_vm4, %v3026_v6  ;;  %v3902_v51 = vsel %vm408_vm0, %v3898_v34, %v3901_v2  ;;  %v11926_v6 = vld [vmem:[#allocation56_spill] sm:$0xff] }
 0x237   : > { %6305 = vmatmul.mubr.msk.bf16.gmra.mrb[48].mxu0 %vm1124_vm4, %v3028_v10  ;;  %6339 = vmatmul.mubr.msk.bf16.gmra.mrb[48].mxu1 %vm1124_vm4, %v3902_v51  ;;  %v9180_v56 = vpop.f32.mrb[0].mxu1 }
 0x238   : > { %11917 = vst [vmem:[#allocation16_spill] sm:$0xff] %v9180_v56  ;;  %v3300_v33 = vpop.permute.xlu0 %3299  ;;  %v9182_v35 = vpop.f32.mrb[1].mxu1  ;;  %v4253_v1 = vsel %vm1050_vm2, %v9180_v56, 0.0 }
 0x239   : > { %11918 = vst [vmem:[#allocation83_spill] sm:$0xff] %v9182_v35  ;;  %v9184_v25 = vpop.f32.mrb[2].mxu1  ;;  %v9186_v52 = vpop.permute.xlu1 %2663  ;;  %v4250_v28 = vsel %vm1050_vm2, %v9182_v35, 0.0  ;;  %v3668_v50 = vsel %vm1017_vm1, %v11921_v58, %v3300_v33 }
 0x23a   : > { %11919 = vst [vmem:[#allocation21_spill] sm:$0xff] %v9184_v25  ;;  %v6373_v38 = vpack.i.bf16 %v9184_v25, %v9180_v56  ;;  %v9190_v21 = vpop.f32.mrb[3].mxu1  ;;  %v4255_v19 = vsel %vm1050_vm2, %v9184_v25, 0.0  ;;  %v3721_v24 = vsel %vm1050_vm2, %v3668_v50, %v9176_v18 }
 0x23b   : > { %11920 = vst [vmem:[#allocation39_spill] sm:$0xff] %v9190_v21  ;;  %v6368_v40 = vpack.i.bf16 %v9190_v21, %v9182_v35  ;;  %v4251_v11 = vsel %vm1050_vm2, %v9190_v21, 0.0 }
 0x23c   : > { %v3304_v27 = vpop.permute.xlu0 %3303  ;;  %v4252_v16 = vadd.f32 %v4251_v11, %v4250_v28  ;;  %6374 = vrot.lane.b32.xlu1 %v6373_v38, %s6811_s19 }
 0x23d   : > { %6369 = vrot.lane.b32.xlu0 %v6368_v40, %s6811_s19  ;;  %v3604_v23 = vpop.permute.xlu1 %3603  ;;  %v3672_v51 = vsel %vm1017_vm1, %v11926_v6, %v3304_v27 }
 0x23e   : > { %v4254_v44 = vadd.f32 %v4253_v1, %v4252_v16  ;;  %v3780_v22 = vsel %vm1083_vm3, %v3721_v24, %v3604_v23  ;;  %v3724_v27 = vsel %vm1050_vm2, %v3672_v51, %v9186_v52 }
 0x23f   : > { %v9206_v29 = vpop.f32.mrb[4].mxu1  ;;  %v3905_v38 = vshll.u32 %v3780_v22, 16 }
 0x240   : > { %11922 = vst [vmem:[#allocation82_spill] sm:$0xff] %v9206_v29  ;;  %v3302_v32 = vpop.permute.xlu0 %3301  ;;  %v9208_v36 = vpop.f32.mrb[5].mxu1  ;;  %v4256_v8 = vadd.f32 %v4255_v19, %v4254_v44  ;;  %v4261_v28 = vsel %vm1050_vm2, %v9206_v29, 0.0 }
 0x241   : > { %11923 = vst [vmem:[#allocation13_spill] sm:$0xff] %v9208_v36  ;;  %v4257_v31 = vsel %vm1050_vm2, %v9208_v36, 0.0  ;;  %v9214_v13 = vpop.f32.mrb[6].mxu1  ;;  %v3344_v63 = vpop.permute.xlu1 %3343 }
 0x242   : > { %11924 = vst [vmem:[#allocation86_spill] sm:$0xff] %v9214_v13  ;;  %v4258_v46 = vadd.f32 %v4257_v31, %v4256_v8  ;;  %v6383_v34 = vpack.i.bf16 %v9214_v13, %v9206_v29  ;;  %v9219_v2 = vpop.f32.mrb[7].mxu1  ;;  %v4263_v16 = vsel %vm1050_vm2, %v9214_v13, 0.0  ;;  %v3907_v8 = vrot.slane %v3905_v38, 1 }
 0x243   : > { %11925 = vst [vmem:[#allocation23_spill] sm:$0xff] %v9219_v2  ;;  %v6378_v10 = vpack.i.bf16 %v9219_v2, %v9208_v36  ;;  %v4259_v4 = vsel %vm1050_vm2, %v9219_v2, 0.0 }
 0x244   : > { %v3306_v5 = vpop.permute.xlu0 %3305  ;;  %v4260_v33 = vadd.f32 %v4259_v4, %v4258_v46  ;;  %6384 = vrot.lane.b32.xlu1 %v6383_v34, %s6811_s19  ;;  %v6796_v34 = vld [vmem:[%s6849_s17 + $0x8c] ss:$0 sps:$4 sm:$0x11]  }
 0x245   : > { %6379 = vrot.lane.b32.xlu0 %v6378_v10, %s6811_s19  ;;  %v3346_v40 = vpop.permute.xlu1 %3345  ;;  %v3670_v10 = vsel %vm1017_vm1, %v6796_v34, %v3302_v32 }
 0x246   : > { %v4262_v11 = vadd.f32 %v4261_v28, %v4260_v33  ;;  %v3723_v38 = vsel %vm1050_vm2, %v3670_v10, %v3344_v63 }
 0x247   : > { %v9233_v1 = vpop.f32.mrb[8].mxu1 }
 0x248   : > { %11927 = vst [vmem:[#allocation85_spill] sm:$0xff] %v9233_v1  ;;  %v3608_v23 = vpop.permute.xlu0 %3607  ;;  %v9238_v44 = vpop.f32.mrb[9].mxu1  ;;  %v4264_v19 = vadd.f32 %v4263_v16, %v4262_v11 }
 0x249   : > { %v3784_v50 = vsel %vm1083_vm3, %v3724_v27, %v3608_v23  ;;  %11928 = vst [vmem:[#allocation45_spill] sm:$0xff] %v9238_v44  ;;  %v4265_v24 = vsel %vm1050_vm2, %v9238_v44, 0.0  ;;  %v9242_v31 = vpop.f32.mrb[10].mxu1  ;;  %v2550_v46 = vpop.permute.xlu1 %2549  ;;  %v3903_v27 = vshrl.u32 %v3780_v22, 16 }
 0x24a   : > { %11929 = vst [vmem:[#allocation19_spill] sm:$0xff] %v9242_v31  ;;  %v3915_v4 = vshll.u32 %v3784_v50, 16  ;;  %v4266_v33 = vadd.f32 %v4265_v24, %v4264_v19  ;;  %v6393_v51 = vpack.i.bf16 %v9242_v31, %v9233_v1  ;;  %v9248_v28 = vpop.f32.mrb[11].mxu1  ;;  %v4269_v24 = vsel %vm1050_vm2, %v9233_v1, 0.0 }
 0x24b   : > { %11930 = vst [vmem:[#allocation42_spill] sm:$0xff] %v9248_v28  ;;  %v6388_v11 = vpack.i.bf16 %v9248_v28, %v9238_v44  ;;  %v4267_v16 = vsel %vm1050_vm2, %v9248_v28, 0.0  ;;  %v3908_v19 = vor.u32 %v3907_v8, %v3903_v27  ;;  %v6797_v22 = vld [vmem:[%s6849_s17 + $0x98] ss:$0 sps:$4 sm:$0x11]   ;;  %v4271_v8 = vsel %vm1050_vm2, %v9242_v31, 0.0 }
 0x24c   : > { %v3606_v23 = vpop.permute.xlu0 %3605  ;;  %v4268_v13 = vadd.f32 %v4267_v16, %v4266_v33  ;;  %6394 = vrot.lane.b32.xlu1 %v6393_v51, %s6811_s19  ;;  %v3674_v10 = vsel %vm1017_vm1, %v6797_v22, %v3306_v5  ;;  %v3917_v44 = vrot.slane %v3915_v4, 1  ;;  %v2966_v33 = vsel %vm1017_vm1, %v11921_v58, %v2550_v46 }
 0x24d   : > { %v3782_v32 = vsel %vm1083_vm3, %v3723_v38, %v3606_v23  ;;  %6389 = vrot.lane.b32.xlu0 %v6388_v11, %s6811_s19  ;;  %v2552_v63 = vpop.permute.xlu1 %2551  ;;  %v3726_v38 = vsel %vm1050_vm2, %v3674_v10, %v3346_v40  ;;  %v3913_v23 = vshrl.u32 %v3784_v50, 16 }
 0x24e   : > { %v3909_v34 = vshll.u32 %v3782_v32, 16  ;;  %v4270_v29 = vadd.f32 %v4269_v24, %v4268_v13  ;;  %v2968_v27 = vsel %vm1017_vm1, %v11926_v6, %v2552_v63  ;;  %v2998_v6 = vsel %vm1050_vm2, %v2966_v33, %v9176_v18 }
 0x24f   : > { %v9269_v16 = vpop.f32.mrb[12].mxu1 }
 0x250   : > { %v3911_v51 = vrot.slane %v3909_v34, 1  ;;  %11931 = vst [vmem:[#allocation18_spill] sm:$0xff] %v9269_v16  ;;  %v3610_v11 = vpop.permute.xlu0 %3609  ;;  %v9272_v4 = vpop.f32.mrb[13].mxu1  ;;  %v4272_v13 = vadd.f32 %v4271_v8, %v4270_v29  ;;  %v3918_v34 = vor.u32 %v3917_v44, %v3913_v23  ;;  %v3000_v29 = vsel %vm1050_vm2, %v2968_v27, %v9186_v52 }
 0x251   : > { %v3786_v5 = vsel %vm1083_vm3, %v3726_v38, %v3610_v11  ;;  %11932 = vst [vmem:[#allocation12_spill] sm:$0xff] %v9272_v4  ;;  %v4273_v58 = vsel %vm1050_vm2, %v9272_v4, 0.0  ;;  %v9276_v40 = vpop.f32.mrb[14].mxu1  ;;  %v2936_v24 = vpop.permute.xlu1 %2935 }
 0x252   : > { %v3919_v32 = vshll.u32 %v3786_v5, 16  ;;  %11933 = vst [vmem:[#allocation65_spill] sm:$0xff] %v9276_v40  ;;  %v3912_v46 = vsel %vm408_vm0, %v3908_v19, %v3911_v51  ;;  %v4274_v63 = vadd.f32 %v4273_v58, %v4272_v13  ;;  %v6403_v50 = vpack.i.bf16 %v9276_v40, %v9269_v16  ;;  %v9283_v22 = vpop.f32.mrb[15].mxu1 }
 0x253   : > { %11934 = vst [vmem:[#allocation24_spill] sm:$0xff] %v9283_v22  ;;  %6342 = vmatprep.mubr.msk.bf16.mxu1 %vm1124_vm4, %v3912_v46  ;;  %v6398_v19 = vpack.i.bf16 %v9283_v22, %v9272_v4  ;;  %v4275_v38 = vsel %vm1050_vm2, %v9283_v22, 0.0  ;;  %v3032_v18 = vsel %vm1083_vm3, %v3000_v29, %v2936_v24  ;;  %v4277_v51 = vsel %vm1050_vm2, %v9269_v16, 0.0 }
 0x254   : > { %v3921_v10 = vrot.slane %v3919_v32, 1  ;;  %v2934_v44 = vpop.permute.xlu0 %2933  ;;  %v4276_v33 = vadd.f32 %v4275_v38, %v4274_v63  ;;  %6404 = vrot.lane.b32.xlu1 %v6403_v50, %s6811_s19  ;;  %v4279_v23 = vsel %vm1050_vm2, %v9276_v40, 0.0 }
 0x255   : > { %v3030_v8 = vsel %vm1083_vm3, %v2998_v6, %v2934_v44  ;;  %6399 = vrot.lane.b32.xlu0 %v6398_v19, %s6811_s19  ;;  %v9300_v27 = vpop.permute.xlu1 %2665 }
 0x256   : > { %6308 = vmatprep.mubr.msk.bf16.mxu0 %vm1124_vm4, %v3030_v8  ;;  %v3922_v52 = vsel %vm408_vm0, %v3918_v34, %v3921_v10  ;;  %v4278_v11 = vadd.f32 %v4277_v51, %v4276_v33  ;;  %v11939_v33 = vld [vmem:[#allocation61_spill] sm:$0xff] }
 0x257   : > { %6309 = vmatmul.mubr.msk.bf16.gmra.mrb[52].mxu0 %vm1124_vm4, %v3032_v18  ;;  %6343 = vmatmul.mubr.msk.bf16.gmra.mrb[52].mxu1 %vm1124_vm4, %v3922_v52  ;;  %v9306_v5 = vpop.f32.mrb[16].mxu1 }
 0x258   : > { %11935 = vst [vmem:[#allocation49_spill] sm:$0xff] %v9306_v5  ;;  %v3308_v13 = vpop.permute.xlu0 %3307  ;;  %v9308_v32 = vpop.f32.mrb[17].mxu1  ;;  %v4280_v58 = vadd.f32 %v4279_v23, %v4278_v11  ;;  %v4285_v18 = vsel %vm1050_vm2, %v9306_v5, 0.0 }
 0x259   : > { %11936 = vst [vmem:[#allocation31_spill] sm:$0xff] %v9308_v32  ;;  %v4281_v46 = vsel %vm1050_vm2, %v9308_v32, 0.0  ;;  %v9312_v24 = vpop.f32.mrb[18].mxu1  ;;  %v9314_v6 = vpop.permute.xlu1 %2667  ;;  %v3676_v8 = vsel %vm1017_vm1, %v11939_v33, %v3308_v13 }
 0x25a   : > { %11937 = vst [vmem:[#allocation88_spill] sm:$0xff] %v9312_v24  ;;  %v4282_v34 = vadd.f32 %v4281_v46, %v4280_v58  ;;  %v6413_v63 = vpack.i.bf16 %v9312_v24, %v9306_v5  ;;  %v9318_v50 = vpop.f32.mrb[19].mxu1  ;;  %v4287_v52 = vsel %vm1050_vm2, %v9312_v24, 0.0  ;;  %v11944_v5 = vld [vmem:[#allocation59_spill] sm:$0xff] }
 0x25b   : > { %11938 = vst [vmem:[#allocation26_spill] sm:$0xff] %v9318_v50  ;;  %v6408_v29 = vpack.i.bf16 %v9318_v50, %v9308_v32  ;;  %v4283_v10 = vsel %vm1050_vm2, %v9318_v50, 0.0 }
 0x25c   : > { %v3312_v19 = vpop.permute.xlu0 %3311  ;;  %v4284_v38 = vadd.f32 %v4283_v10, %v4282_v34  ;;  %6414 = vrot.lane.b32.xlu1 %v6413_v63, %s6811_s19  ;;  %v3727_v34 = vsel %vm1050_vm2, %v3676_v8, %v9300_v27 }
 0x25d   : > { %6409 = vrot.lane.b32.xlu0 %v6408_v29, %s6811_s19  ;;  %v3612_v44 = vpop.permute.xlu1 %3611  ;;  %v3680_v50 = vsel %vm1017_vm1, %v11944_v5, %v3312_v19 }
 0x25e   : > { %v4286_v51 = vadd.f32 %v4285_v18, %v4284_v38  ;;  %v3788_v13 = vsel %vm1083_vm3, %v3727_v34, %v3612_v44  ;;  %v3730_v19 = vsel %vm1050_vm2, %v3680_v50, %v9314_v6 }
 0x25f   : > { %v9332_v11 = vpop.f32.mrb[20].mxu1  ;;  %v3925_v44 = vshll.u32 %v3788_v13, 16 }
 0x260   : > { %11940 = vst [vmem:[#allocation46_spill] sm:$0xff] %v9332_v11  ;;  %v3310_v23 = vpop.permute.xlu0 %3309  ;;  %v9334_v58 = vpop.f32.mrb[21].mxu1  ;;  %v4288_v46 = vadd.f32 %v4287_v52, %v4286_v51 }
 0x261   : > { %11941 = vst [vmem:[#allocation29_spill] sm:$0xff] %v9334_v58  ;;  %v4289_v63 = vsel %vm1050_vm2, %v9334_v58, 0.0  ;;  %v9340_v29 = vpop.f32.mrb[22].mxu1  ;;  %v3348_v10 = vpop.permute.xlu1 %3347  ;;  %v3927_v16 = vrot.slane %v3925_v44, 1 }
 0x262   : > { %11942 = vst [vmem:[#allocation62_spill] sm:$0xff] %v9340_v29  ;;  %v4290_v38 = vadd.f32 %v4289_v63, %v4288_v46  ;;  %v6423_v18 = vpack.i.bf16 %v9340_v29, %v9332_v11  ;;  %v9345_v24 = vpop.f32.mrb[23].mxu1  ;;  %v4293_v46 = vsel %vm1050_vm2, %v9332_v11, 0.0 }
 0x263   : > { %11943 = vst [vmem:[#allocation27_spill] sm:$0xff] %v9345_v24  ;;  %v6418_v51 = vpack.i.bf16 %v9345_v24, %v9334_v58  ;;  %v4291_v8 = vsel %vm1050_vm2, %v9345_v24, 0.0  ;;  %v4295_v58 = vsel %vm1050_vm2, %v9340_v29, 0.0 }
 0x264   : > { %v3314_v52 = vpop.permute.xlu0 %3313  ;;  %v4292_v32 = vadd.f32 %v4291_v8, %v4290_v38  ;;  %6424 = vrot.lane.b32.xlu1 %v6423_v18, %s6811_s19 }
 0x265   : > { %6419 = vrot.lane.b32.xlu0 %v6418_v51, %s6811_s19  ;;  %v3350_v34 = vpop.permute.xlu1 %3349 }
 0x266   : > { %v4294_v63 = vadd.f32 %v4293_v46, %v4292_v32  ;;  %v6798_v46 = vld [vmem:[%s6849_s17 + $0xa4] ss:$0 sps:$4 sm:$0x11]  }
 0x267   : > { %v9359_v24 = vpop.f32.mrb[24].mxu1  ;;  %v3678_v29 = vsel %vm1017_vm1, %v6798_v46, %v3310_v23 }
 0x268   : > { %11945 = vst [vmem:[#allocation79_spill] sm:$0xff] %v9359_v24  ;;  %v3616_v38 = vpop.permute.xlu0 %3615  ;;  %v9364_v8 = vpop.f32.mrb[25].mxu1  ;;  %v4296_v40 = vadd.f32 %v4295_v58, %v4294_v63  ;;  %v3729_v58 = vsel %vm1050_vm2, %v3678_v29, %v3348_v10  ;;  %v6799_v10 = vld [vmem:[%s6849_s17 + $0xb0] ss:$0 sps:$4 sm:$0x11]  }
 0x269   : > { %v3792_v18 = vsel %vm1083_vm3, %v3730_v19, %v3616_v38  ;;  %11946 = vst [vmem:[#allocation32_spill] sm:$0xff] %v9364_v8  ;;  %v4297_v51 = vsel %vm1050_vm2, %v9364_v8, 0.0  ;;  %v9368_v11 = vpop.f32.mrb[26].mxu1  ;;  %v3923_v38 = vshrl.u32 %v3788_v13, 16  ;;  %v3682_v13 = vsel %vm1017_vm1, %v6799_v10, %v3314_v52 }
 0x26a   : > { %11947 = vst [vmem:[#allocation73_spill] sm:$0xff] %v9368_v11  ;;  %v2554_v32 = vpop.permute.xlu1 %2553  ;;  %v3935_v22 = vshll.u32 %v3792_v18, 16  ;;  %v4298_v4 = vadd.f32 %v4297_v51, %v4296_v40  ;;  %v6433_v50 = vpack.i.bf16 %v9368_v11, %v9359_v24  ;;  %v9374_v19 = vpop.f32.mrb[27].mxu1  ;;  %v4301_v51 = vsel %vm1050_vm2, %v9359_v24, 0.0 }
 0x26b   : > { %11948 = vst [vmem:[#allocation25_spill] sm:$0xff] %v9374_v19  ;;  %v6428_v44 = vpack.i.bf16 %v9374_v19, %v9364_v8  ;;  %v4299_v63 = vsel %vm1050_vm2, %v9374_v19, 0.0  ;;  %v3928_v40 = vor.u32 %v3927_v16, %v3923_v38  ;;  %v4303_v16 = vsel %vm1050_vm2, %v9368_v11, 0.0 }
 0x26c   : > { %v3614_v31 = vpop.permute.xlu0 %3613  ;;  %v4300_v1 = vadd.f32 %v4299_v63, %v4298_v4  ;;  %6434 = vrot.lane.b32.xlu1 %v6433_v50, %s6811_s19  ;;  %v3937_v8 = vrot.slane %v3935_v22, 1  ;;  %v2970_v4 = vsel %vm1017_vm1, %v11939_v33, %v2554_v32  ;;  %v4244_v63 = vrot.slane %v9000_v30, 4 }
 0x26d   : > { %v3790_v23 = vsel %vm1083_vm3, %v3729_v58, %v3614_v31  ;;  %6429 = vrot.lane.b32.xlu0 %v6428_v44, %s6811_s19  ;;  %v3732_v31 = vsel %vm1050_vm2, %v3682_v13, %v3350_v34  ;;  %v3933_v52 = vshrl.u32 %v3792_v18, 16 }
 0x26e   : > { %v3929_v46 = vshll.u32 %v3790_v23, 16  ;;  %v2556_v29 = vpop.permute.xlu1 %2555  ;;  %v4302_v28 = vadd.f32 %v4301_v51, %v4300_v1 }
 0x26f   : > { %v2972_v38 = vsel %vm1017_vm1, %v11944_v5, %v2556_v29  ;;  %v9395_v58 = vpop.f32.mrb[28].mxu1  ;;  %v3938_v29 = vor.u32 %v3937_v8, %v3933_v52 }
 0x270   : > { %v3931_v50 = vrot.slane %v3929_v46, 1  ;;  %11949 = vst [vmem:[#allocation71_spill] sm:$0xff] %v9395_v58  ;;  %v3618_v44 = vpop.permute.xlu0 %3617  ;;  %v9399_v22 = vpop.f32.mrb[29].mxu1  ;;  %v4304_v33 = vadd.f32 %v4303_v16, %v4302_v28  ;;  %v3002_v46 = vsel %vm1050_vm2, %v2970_v4, %v9300_v27  ;;  %v3004_v28 = vsel %vm1050_vm2, %v2972_v38, %v9314_v6 }
 0x271   : > { %v3794_v1 = vsel %vm1083_vm3, %v3732_v31, %v3618_v44  ;;  %11950 = vst [vmem:[#allocation36_spill] sm:$0xff] %v9399_v22  ;;  %v4305_v34 = vsel %vm1050_vm2, %v9399_v22, 0.0  ;;  %v9403_v23 = vpop.f32.mrb[30].mxu1  ;;  %v4245_v4 = vadd.f32 %v4244_v63, %v9000_v30  ;;  %v4309_v6 = vsel %vm1050_vm2, %v9395_v58, 0.0 }
 0x272   : > { %v3939_v32 = vshll.u32 %v3794_v1, 16  ;;  %11951 = vst [vmem:[#allocation94_spill] sm:$0xff] %v9403_v23  ;;  %v3932_v51 = vsel %vm408_vm0, %v3928_v40, %v3931_v50  ;;  %v2940_v5 = vpop.permute.xlu1 %2939  ;;  %v4306_v10 = vadd.f32 %v4305_v34, %v4304_v33  ;;  %v6443_v18 = vpack.i.bf16 %v9403_v23, %v9395_v58  ;;  %v9410_v13 = vpop.f32.mrb[31].mxu1 }
 0x273   : > { %11952 = vst [vmem:[#allocation72_spill] sm:$0xff] %v9410_v13  ;;  %6346 = vmatprep.mubr.msk.bf16.mxu1 %vm1124_vm4, %v3932_v51  ;;  %v6438_v40 = vpack.i.bf16 %v9410_v13, %v9399_v22  ;;  %v4307_v16 = vsel %vm1050_vm2, %v9410_v13, 0.0  ;;  %v3036_v27 = vsel %vm1083_vm3, %v3004_v28, %v2940_v5  ;;  %v4311_v30 = vsel %vm1050_vm2, %v9403_v23, 0.0 }
 0x274   : > { %v3941_v31 = vrot.slane %v3939_v32, 1  ;;  %v2938_v8 = vpop.permute.xlu0 %2937  ;;  %v4308_v50 = vadd.f32 %v4307_v16, %v4306_v10  ;;  %6444 = vrot.lane.b32.xlu1 %v6443_v18, %s6811_s19  ;;  %v4246_v33 = vrot.slane %v4245_v4, 2 }
 0x275   : > { %v3034_v44 = vsel %vm1083_vm3, %v3002_v46, %v2938_v8  ;;  %6439 = vrot.lane.b32.xlu0 %v6438_v40, %s6811_s19 }
 0x276   : > { %6312 = vmatprep.mubr.msk.bf16.mxu0 %vm1124_vm4, %v3034_v44  ;;  %v3942_v38 = vsel %vm408_vm0, %v3938_v29, %v3941_v31  ;;  %v9428_v52 = vpop.permute.xlu1 %2669  ;;  %v4310_v1 = vadd.f32 %v4309_v6, %v4308_v50  ;;  %v4247_v46 = vadd.f32 %v4246_v33, %v4245_v4  ;;  %v11953_v29 = vld [vmem:[#allocation68_spill] sm:$0xff] }
 0x277   : > { %6313 = vmatmul.mubr.msk.bf16.gmra.mrb[56].mxu0 %vm1124_vm4, %v3036_v27  ;;  %6347 = vmatmul.mubr.msk.bf16.gmra.mrb[56].mxu1 %vm1124_vm4, %v3942_v38 }
 0x278   : > { %v3316_v63 = vpop.permute.xlu0 %3315  ;;  %v4312_v32 = vadd.f32 %v4311_v30, %v4310_v1  ;;  %v4248_v16 = vrot.slane %v4247_v46, 1  ;;  %v11954_v30 = vld [vmem:[#allocation64_spill] sm:$0xff] }
 0x279   : > { %v3684_v18 = vsel %vm1017_vm1, %v11953_v29, %v3316_v63 }
 0x27a   : > { %v9434_v34 = vpop.permute.xlu1 %2671  ;;  %v4313_v51 = vrot.slane %v4312_v32, 4  ;;  %v3733_v8 = vsel %vm1050_vm2, %v3684_v18, %v9428_v52  ;;  %v4249_v1 = vadd.f32 %v4248_v16, %v4247_v46 }
 0x27c   : > { %v3320_v5 = vpop.permute.xlu0 %3319  ;;  %v4314_v10 = vadd.f32 %v4313_v51, %v4312_v32 }
 0x27d   : > { %v3688_v63 = vsel %vm1017_vm1, %v11954_v30, %v3320_v5  ;;  %v6800_v5 = vld [vmem:[%s6849_s17 + $0xbc] ss:$0 sps:$4 sm:$0x11]  }
 0x27e   : > { %v3620_v28 = vpop.permute.xlu1 %3619  ;;  %v4315_v31 = vrot.slane %v4314_v10, 2 }
 0x27f   : > { %v3796_v50 = vsel %vm1083_vm3, %v3733_v8, %v3620_v28 }
 0x280   : > { %v3318_v40 = vpop.permute.xlu0 %3317  ;;  %v4316_v27 = vadd.f32 %v4315_v31, %v4314_v10  ;;  %v3945_v33 = vshll.u32 %v3796_v50, 16  ;;  %v3736_v10 = vsel %vm1050_vm2, %v3688_v63, %v9434_v34  ;;  %v3943_v46 = vshrl.u32 %v3796_v50, 16 }
 0x282   : > { %v3352_v44 = vpop.permute.xlu1 %3351  ;;  %v4317_v6 = vrot.slane %v4316_v27, 1  ;;  %v3947_v31 = vrot.slane %v3945_v33, 1 }
 0x284   : > { %v3322_v38 = vpop.permute.xlu0 %3321  ;;  %v4318_v4 = vadd.f32 %v4317_v6, %v4316_v27  ;;  %v3686_v6 = vsel %vm1017_vm1, %v6800_v5, %v3318_v40 }
 0x286   : > { %v3354_v32 = vpop.permute.xlu1 %3353  ;;  %v9443_v51 = vadd.f32 %v4318_v4, %v4249_v1  ;;  %v6801_v1 = vld [vmem:[%s6849_s17 + $0xc8] ss:$0 sps:$4 sm:$0x11]  }
 0x287   : > { %v3690_v4 = vsel %vm1017_vm1, %v6801_v1, %v3322_v38 }
 0x288   : > { %v3624_v18 = vpop.permute.xlu0 %3623  ;;  %v3738_v13 = vsel %vm1050_vm2, %v3690_v4, %v3354_v32 }
 0x289   : > { %v3800_v28 = vsel %vm1083_vm3, %v3736_v10, %v3624_v18  ;;  %v9448_v8 = vpop.f32.mrb[32].mxu0  ;;  %v3948_v10 = vor.u32 %v3947_v31, %v3943_v46  ;;  %v3735_v18 = vsel %vm1050_vm2, %v3686_v6, %v3352_v44 }
 0x28a   : > { %11955 = vst [vmem:[#allocation78_spill] sm:$0xff] %v9448_v8  ;;  %v9450_v23 = vpop.f32.mrb[32].mxu1  ;;  %v9452_v16 = vpop.f32.mrb[33].mxu0  ;;  %v3955_v63 = vshll.u32 %v3800_v28, 16  ;;  %v3953_v24 = vshrl.u32 %v3800_v28, 16  ;;  %v4323_v38 = vsel %vm1050_vm2, %v9448_v8, 0.0 }
 0x28b   : > { %11956 = vst [vmem:[#allocation30_spill] sm:$0xff] %v9450_v23  ;;  %11957 = vst [vmem:[#allocation74_spill] sm:$0xff] %v9452_v16  ;;  %v9454_v27 = vpop.f32.mrb[33].mxu1  ;;  %v2558_v58 = vpop.permute.xlu1 %2557  ;;  %v4320_v40 = vsel %vm1050_vm2, %v9452_v16, 0.0 }
 0x28c   : > { %11958 = vst [vmem:[#allocation33_spill] sm:$0xff] %v9454_v27  ;;  %v9460_v33 = vpop.f32.mrb[34].mxu0  ;;  %v9466_v22 = vpop.f32.mrb[34].mxu1  ;;  %v3957_v1 = vrot.slane %v3955_v63, 1  ;;  %v4393_v63 = vsel %vm1050_vm2, %v9450_v23, 0.0 }
 0x28d   : > { %11959 = vst [vmem:[#allocation87_spill] sm:$0xff] %v9460_v33  ;;  %v6453_v50 = vpack.i.bf16 %v9460_v33, %v9448_v8  ;;  %11960 = vst [vmem:[#allocation67_spill] sm:$0xff] %v9466_v22  ;;  %v3622_v11 = vpop.permute.xlu0 %3621  ;;  %v9473_v31 = vpop.f32.mrb[35].mxu0  ;;  %v4325_v8 = vsel %vm1050_vm2, %v9460_v33, 0.0 }
 0x28e   : > { %v3798_v5 = vsel %vm1083_vm3, %v3735_v18, %v3622_v11  ;;  %11961 = vst [vmem:[#allocation20_spill] sm:$0xff] %v9473_v31  ;;  %v9475_v44 = vpop.f32.mrb[35].mxu1  ;;  %v6448_v46 = vpack.i.bf16 %v9473_v31, %v9452_v16  ;;  %v4321_v6 = vsel %vm1050_vm2, %v9473_v31, 0.0  ;;  %v4390_v11 = vsel %vm1050_vm2, %v9454_v27, 0.0 }
 0x28f   : > { %11962 = vst [vmem:[#allocation90_spill] sm:$0xff] %v9475_v44  ;;  %v3949_v32 = vshll.u32 %v3798_v5, 16  ;;  %6454 = vrot.lane.b32.xlu1 %v6453_v50, %s6813_s29  ;;  %v4322_v4 = vadd.f32 %v4321_v6, %v4320_v40  ;;  %v4391_v18 = vsel %vm1050_vm2, %v9475_v44, 0.0  ;;  %v2560_v5 = vpop.permute.xlu1 %2559  ;;  %v2974_v40 = vsel %vm1017_vm1, %v11953_v29, %v2558_v58 }
 0x290   : > { %v4392_v31 = vadd.f32 %v4391_v18, %v4390_v11  ;;  %v2976_v28 = vsel %vm1017_vm1, %v11954_v30, %v2560_v5  ;;  %6449 = vrot.lane.b32.xlu0 %v6448_v46, %s6813_s29  ;;  %v3958_v30 = vor.u32 %v3957_v1, %v3953_v24  ;;  %v4395_v46 = vsel %vm1050_vm2, %v9466_v22, 0.0 }
 0x291   : > { %v3951_v16 = vrot.slane %v3949_v32, 1  ;;  %v3626_v50 = vpop.permute.xlu0 %3625  ;;  %v4324_v6 = vadd.f32 %v4323_v38, %v4322_v4  ;;  %v3008_v5 = vsel %vm1050_vm2, %v2976_v28, %v9434_v34 }
 0x292   : > { %v3802_v19 = vsel %vm1083_vm3, %v3738_v13, %v3626_v50  ;;  %v4394_v32 = vadd.f32 %v4393_v63, %v4392_v31  ;;  %v3006_v31 = vsel %vm1050_vm2, %v2974_v40, %v9428_v52 }
 0x293   : > { %v3959_v11 = vshll.u32 %v3802_v19, 16  ;;  %v3952_v18 = vsel %vm408_vm0, %v3948_v10, %v3951_v16  ;;  %v2944_v58 = vpop.permute.xlu1 %2943  ;;  %v4326_v29 = vadd.f32 %v4325_v8, %v4324_v6 }
 0x294   : > { %6350 = vmatprep.mubr.msk.bf16.mxu1 %vm1124_vm4, %v3952_v18  ;;  %v3040_v13 = vsel %vm1083_vm3, %v3008_v5, %v2944_v58  ;;  %v4396_v4 = vadd.f32 %v4395_v46, %v4394_v32 }
 0x295   : > { %v3961_v38 = vrot.slane %v3959_v11, 1  ;;  %v2942_v19 = vpop.permute.xlu0 %2941 }
 0x296   : > { %v3038_v24 = vsel %vm1083_vm3, %v3006_v31, %v2942_v19 }
 0x297   : > { %6316 = vmatprep.mubr.msk.bf16.mxu0 %vm1124_vm4, %v3038_v24  ;;  %v3962_v16 = vsel %vm408_vm0, %v3958_v30, %v3961_v38 }
 0x298   : > { %6317 = vmatmul.mubr.msk.bf16.gmra.mrb[60].mxu0 %vm1124_vm4, %v3040_v13  ;;  %6351 = vmatmul.mubr.msk.bf16.gmra.mrb[60].mxu1 %vm1124_vm4, %v3962_v16 }
 0x2a9   : > { %v9514_v34 = vpop.f32.mrb[36].mxu0 }
 0x2aa   : > { %11963 = vst [vmem:[#allocation84_spill] sm:$0xff] %v9514_v34  ;;  %v9516_v8 = vpop.f32.mrb[36].mxu1  ;;  %v9518_v10 = vpop.f32.mrb[37].mxu0  ;;  %v4331_v31 = vsel %vm1050_vm2, %v9514_v34, 0.0 }
 0x2ab   : > { %11964 = vst [vmem:[#allocation43_spill] sm:$0xff] %v9516_v8  ;;  %11965 = vst [vmem:[#allocation40_spill] sm:$0xff] %v9518_v10  ;;  %v9520_v28 = vpop.f32.mrb[37].mxu1  ;;  %v4327_v52 = vsel %vm1050_vm2, %v9518_v10, 0.0  ;;  %v9526_v50 = vpop.f32.mrb[38].mxu0 }
 0x2ac   : > { %11966 = vst [vmem:[#allocation28_spill] sm:$0xff] %v9520_v28  ;;  %v4397_v1 = vsel %vm1050_vm2, %v9520_v28, 0.0  ;;  %11967 = vst [vmem:[#allocation34_spill] sm:$0xff] %v9526_v50  ;;  %v9528_v63 = vpop.f32.mrb[38].mxu1  ;;  %v4328_v40 = vadd.f32 %v4327_v52, %v4326_v29  ;;  %v6463_v32 = vpack.i.bf16 %v9526_v50, %v9514_v34  ;;  %v9532_v11 = vpop.f32.mrb[39].mxu0  ;;  %v4401_v52 = vsel %vm1050_vm2, %v9516_v8, 0.0 }
 0x2ad   : > { %11968 = vst [vmem:[#allocation77_spill] sm:$0xff] %v9528_v63  ;;  %v4398_v6 = vadd.f32 %v4397_v1, %v4396_v4  ;;  %11969 = vst [vmem:[#allocation75_spill] sm:$0xff] %v9532_v11  ;;  %v9534_v18 = vpop.f32.mrb[39].mxu1  ;;  %v6458_v46 = vpack.i.bf16 %v9532_v11, %v9518_v10  ;;  %v4329_v5 = vsel %vm1050_vm2, %v9532_v11, 0.0 }
 0x2ae   : > { %11970 = vst [vmem:[#allocation92_spill] sm:$0xff] %v9534_v18  ;;  %v4330_v58 = vadd.f32 %v4329_v5, %v4328_v40  ;;  %v4399_v38 = vsel %vm1050_vm2, %v9534_v18, 0.0  ;;  %v6375_v13 = vpop.permute.xlu1 %6374  ;;  %6464 = vrot.lane.b32.xlu1 %v6463_v32, %s6813_s29  ;;  %v4333_v5 = vsel %vm1050_vm2, %v9526_v50, 0.0 }
 0x2af   : > { %v4400_v19 = vadd.f32 %v4399_v38, %v4398_v6  ;;  %v6377_v4 = vunpack.i.h.bf16 %v6375_v13  ;;  %v6376_v24 = vunpack.i.l.bf16 %v6375_v13  ;;  %6459 = vrot.lane.b32.xlu0 %v6458_v46, %s6813_s29  ;;  %v9550_v16 = vpop.permute.xlu0 %6369  ;;  %v4403_v46 = vsel %vm1050_vm2, %v9528_v63, 0.0 }
 0x2b0   : > { %v4332_v1 = vadd.f32 %v4331_v31, %v4330_v58  ;;  %v6372_v40 = vunpack.i.h.bf16 %v9550_v16 }
 0x2b1   : > { %v4402_v32 = vadd.f32 %v4401_v52, %v4400_v19  ;;  %v9559_v29 = vsel %vm1050_vm2, %v8683_v55, %v6377_v4  ;;  %v9563_v6 = vsel %vm1050_vm2, %v8667_v47, %v6376_v24 }
 0x2b2   : > { %v9569_v58 = vsel %vm1050_vm2, %v8686_v41, %v6372_v40  ;;  %v4334_v38 = vadd.f32 %v4333_v5, %v4332_v1 }
 0x2b3   : > { %v4404_v13 = vadd.f32 %v4403_v46, %v4402_v32 }
 0x2b6   : > { %v9571_v52 = vpop.permute.xlu1 %6384 }
 0x2b7   : > { %v6380_v31 = vpop.permute.xlu0 %6379 }
 0x2b8   : > { %v6382_v30 = vunpack.i.h.bf16 %v6380_v31  ;;  %v6381_v19 = vunpack.i.l.bf16 %v6380_v31 }
 0x2ba   : > { %v9575_v4 = vsel %vm1050_vm2, %v8733_v20, %v6382_v30  ;;  %v9579_v24 = vsel %vm1050_vm2, %v8722_v57, %v6381_v19 }
 0x2bb   : > { %11971 = vst [vmem:[#allocation91_spill] sm:$0xff] %v9575_v4 }
 0x2be   : > { %v9581_v50 = vpop.permute.xlu1 %6394 }
 0x2bf   : > { %v6396_v40 = vunpack.i.l.bf16 %v9581_v50  ;;  %v9588_v5 = vpop.permute.xlu0 %6389 }
 0x2c1   : > { %v9586_v1 = vsel %vm1050_vm2, %v8755_v15, %v6396_v40 }
 0x2c2   : > { %11972 = vst [vmem:[#allocation47_spill] sm:$0xff] %v9586_v1 }
 0x2c6   : > { %v6405_v32 = vpop.permute.xlu1 %6404 }
 0x2c7   : > { %v6407_v46 = vunpack.i.h.bf16 %v6405_v32  ;;  %v6406_v31 = vunpack.i.l.bf16 %v6405_v32  ;;  %v9590_v34 = vpop.permute.xlu0 %6399 }
 0x2c8   : > { %v6402_v30 = vunpack.i.h.bf16 %v9590_v34 }
 0x2c9   : > { %v9595_v19 = vsel %vm1050_vm2, %v8805_v3, %v6407_v46  ;;  %v9599_v11 = vsel %vm1050_vm2, %v8796_v43, %v6406_v31 }
 0x2ca   : > { %11973 = vst [vmem:[#allocation44_spill] sm:$0xff] %v9595_v19  ;;  %11974 = vst [vmem:[#allocation35_spill] sm:$0xff] %v9599_v11  ;;  %v9601_v10 = vpop.f32.mrb[40].mxu0  ;;  %v9603_v40 = vpop.f32.mrb[40].mxu1  ;;  %v9607_v33 = vsel %vm1050_vm2, %v8812_v39, %v6402_v30 }
 0x2cb   : > { %11975 = vst [vmem:[#allocation38_spill] sm:$0xff] %v9601_v10  ;;  %11976 = vst [vmem:[#allocation80_spill] sm:$0xff] %v9603_v40  ;;  %v9609_v32 = vpop.f32.mrb[41].mxu0  ;;  %v9611_v2 = vpop.f32.mrb[41].mxu1 }
 0x2cc   : > { %11977 = vst [vmem:[#allocation37_spill] sm:$0xff] %v9607_v33  ;;  %11978 = vst [vmem:[#allocation95_spill] sm:$0xff] %v9609_v32  ;;  %v4335_v46 = vsel %vm1050_vm2, %v9609_v32, 0.0  ;;  %v4405_v36 = vsel %vm1050_vm2, %v9611_v2, 0.0  ;;  %v9617_v31 = vpop.f32.mrb[42].mxu0  ;;  %v9619_v25 = vpop.f32.mrb[42].mxu1 }
 0x2cd   : > { %11979 = vst [vmem:[#allocation93_spill] sm:$0xff] %v9611_v2  ;;  %11980 = vst [vmem:[#allocation50_spill] sm:$0xff] %v9617_v31  ;;  %v4336_v56 = vadd.f32 %v4335_v46, %v4334_v38  ;;  %v4406_v21 = vadd.f32 %v4405_v36, %v4404_v13  ;;  %v6473_v30 = vpack.i.bf16 %v9617_v31, %v9601_v10  ;;  %v9623_v35 = vpop.f32.mrb[43].mxu0  ;;  %v9625_v33 = vpop.f32.mrb[43].mxu1  ;;  %v4339_v13 = vsel %vm1050_vm2, %v9601_v10, 0.0 }
 0x2ce   : > { %11981 = vst [vmem:[#allocation48_spill] sm:$0xff] %v9619_v25  ;;  %11982 = vst [vmem:[#allocation57_spill] sm:$0xff] %v9623_v35  ;;  %v6468_v19 = vpack.i.bf16 %v9623_v35, %v9609_v32  ;;  %v4337_v1 = vsel %vm1050_vm2, %v9623_v35, 0.0  ;;  %v4407_v38 = vsel %vm1050_vm2, %v9625_v33, 0.0  ;;  %v4409_v32 = vsel %vm1050_vm2, %v9603_v40, 0.0  ;;  %v9647_v39 = vpop.permute.xlu1 %6414 }
 0x2cf   : > { %11983 = vst [vmem:[#allocation60_spill] sm:$0xff] %v9625_v33  ;;  %v4338_v3 = vadd.f32 %v4337_v1, %v4336_v56  ;;  %6474 = vrot.lane.b32.xlu1 %v6473_v30, %s6813_s29  ;;  %v4408_v46 = vadd.f32 %v4407_v38, %v4406_v21  ;;  %v6410_v11 = vpop.permute.xlu0 %6409  ;;  %v4341_v36 = vsel %vm1050_vm2, %v9617_v31, 0.0  ;;  %v4411_v30 = vsel %vm1050_vm2, %v9619_v25, 0.0 }
 0x2d0   : > { %6469 = vrot.lane.b32.xlu0 %v6468_v19, %s6813_s29  ;;  %v6412_v56 = vunpack.i.h.bf16 %v6410_v11  ;;  %v6411_v1 = vunpack.i.l.bf16 %v6410_v11 }
 0x2d1   : > { %v4340_v35 = vadd.f32 %v4339_v13, %v4338_v3  ;;  %v4410_v43 = vadd.f32 %v4409_v32, %v4408_v46 }
 0x2d2   : > { %v9651_v21 = vsel %vm1050_vm2, %v8854_v53, %v6412_v56  ;;  %v9655_v19 = vsel %vm1050_vm2, %v8843_v60, %v6411_v1 }
 0x2d3   : > { %11984 = vst [vmem:[#allocation89_spill] sm:$0xff] %v9651_v21  ;;  %11985 = vst [vmem:[#allocation55_spill] sm:$0xff] %v9655_v19  ;;  %v4342_v3 = vadd.f32 %v4341_v36, %v4340_v35  ;;  %v4412_v38 = vadd.f32 %v4411_v30, %v4410_v43 }
 0x2d6   : > { %v9657_v11 = vpop.permute.xlu1 %6424 }
 0x2d7   : > { %v6426_v13 = vunpack.i.l.bf16 %v9657_v11 }
 0x2d9   : > { %v9662_v32 = vsel %vm1050_vm2, %v8881_v0, %v6426_v13 }
 0x2da   : > { %11986 = vst [vmem:[#allocation98_spill] sm:$0xff] %v9662_v32 }
 0x2de   : > { %v6435_v46 = vpop.permute.xlu1 %6434 }
 0x2df   : > { %v6437_v31 = vunpack.i.h.bf16 %v6435_v46  ;;  %v6436_v10 = vunpack.i.l.bf16 %v6435_v46 }
 0x2e1   : > { %v9666_v56 = vsel %vm1050_vm2, %v8930_v37, %v6437_v31  ;;  %v9670_v1 = vsel %vm1050_vm2, %v8919_v42, %v6436_v10 }
 0x2e2   : > { %11987 = vst [vmem:[#allocation96_spill] sm:$0xff] %v9666_v56  ;;  %11988 = vst [vmem:[#allocation52_spill] sm:$0xff] %v9670_v1 }
 0x2ea   : > { %v9672_v43 = vpop.f32.mrb[44].mxu0  ;;  %v9674_v35 = vpop.f32.mrb[44].mxu1 }
 0x2eb   : > { %11989 = vst [vmem:[#allocation51_spill] sm:$0xff] %v9672_v43  ;;  %11990 = vst [vmem:[#allocation66_spill] sm:$0xff] %v9674_v35  ;;  %v9676_v36 = vpop.f32.mrb[45].mxu0  ;;  %v9678_v30 = vpop.f32.mrb[45].mxu1  ;;  %v4417_v37 = vsel %vm1050_vm2, %v9674_v35, 0.0 }
 0x2ec   : > { %11991 = vst [vmem:[#allocation2_spill] sm:$0xff] %v9676_v36  ;;  %11992 = vst [vmem:[#allocation63_spill] sm:$0xff] %v9678_v30  ;;  %v4343_v13 = vsel %vm1050_vm2, %v9676_v36, 0.0  ;;  %v4413_v46 = vsel %vm1050_vm2, %v9678_v30, 0.0  ;;  %v9684_v31 = vpop.f32.mrb[46].mxu0  ;;  %v9686_v56 = vpop.f32.mrb[46].mxu1 }
 0x2ed   : > { %11993 = vst [vmem:[#allocation41_spill] sm:$0xff] %v9684_v31  ;;  %11994 = vst [vmem:[#allocation101_spill] sm:$0xff] %v9686_v56  ;;  %v4344_v10 = vadd.f32 %v4343_v13, %v4342_v3  ;;  %v4414_v1 = vadd.f32 %v4413_v46, %v4412_v38  ;;  %v6483_v32 = vpack.i.bf16 %v9684_v31, %v9672_v43  ;;  %v9690_v21 = vpop.f32.mrb[47].mxu0  ;;  %v9692_v19 = vpop.f32.mrb[47].mxu1  ;;  %v4347_v13 = vsel %vm1050_vm2, %v9672_v43, 0.0 }
 0x2ee   : > { %11995 = vst [vmem:[#allocation100_spill] sm:$0xff] %v9690_v21  ;;  %11996 = vst [vmem:[#allocation54_spill] sm:$0xff] %v9692_v19  ;;  %v6478_v42 = vpack.i.bf16 %v9690_v21, %v9676_v36  ;;  %v4345_v0 = vsel %vm1050_vm2, %v9690_v21, 0.0  ;;  %v4415_v38 = vsel %vm1050_vm2, %v9692_v19, 0.0  ;;  %v4419_v3 = vsel %vm1050_vm2, %v9686_v56, 0.0 }
 0x2ef   : > { %v4346_v53 = vadd.f32 %v4345_v0, %v4344_v10  ;;  %6484 = vrot.lane.b32.xlu1 %v6483_v32, %s6813_s29  ;;  %v4416_v46 = vadd.f32 %v4415_v38, %v4414_v1  ;;  %v4349_v0 = vsel %vm1050_vm2, %v9684_v31, 0.0 }
 0x2f0   : > { %6479 = vrot.lane.b32.xlu0 %v6478_v42, %s6813_s29 }
 0x2f1   : > { %v4348_v36 = vadd.f32 %v4347_v13, %v4346_v53  ;;  %v4418_v10 = vadd.f32 %v4417_v37, %v4416_v46 }
 0x2f3   : > { %v4350_v21 = vadd.f32 %v4349_v0, %v4348_v36  ;;  %v4420_v60 = vadd.f32 %v4419_v3, %v4418_v10 }
 0x30a   : > { %v9714_v32 = vpop.f32.mrb[48].mxu0  ;;  %v9716_v15 = vpop.f32.mrb[48].mxu1 }
 0x30b   : > { %11997 = vst [vmem:[#allocation53_spill] sm:$0xff] %v9714_v32  ;;  %11998 = vst [vmem:[#allocation58_spill] sm:$0xff] %v9716_v15  ;;  %v9718_v1 = vpop.f32.mrb[49].mxu0  ;;  %v9720_v42 = vpop.f32.mrb[49].mxu1  ;;  %v4425_v31 = vsel %vm1050_vm2, %v9716_v15, 0.0 }
 0x30c   : > { %11999 = vst [vmem:[#allocation56_spill] sm:$0xff] %v9718_v1  ;;  %12000 = vst [vmem:[#allocation61_spill] sm:$0xff] %v9720_v42  ;;  %v4351_v53 = vsel %vm1050_vm2, %v9718_v1, 0.0  ;;  %v4421_v38 = vsel %vm1050_vm2, %v9720_v42, 0.0  ;;  %v9726_v37 = vpop.f32.mrb[50].mxu0  ;;  %v9728_v13 = vpop.f32.mrb[50].mxu1 }
 0x30d   : > { %12001 = vst [vmem:[#allocation59_spill] sm:$0xff] %v9726_v37  ;;  %12002 = vst [vmem:[#allocation68_spill] sm:$0xff] %v9728_v13  ;;  %v4352_v36 = vadd.f32 %v4351_v53, %v4350_v21  ;;  %v4422_v3 = vadd.f32 %v4421_v38, %v4420_v60  ;;  %v6493_v46 = vpack.i.bf16 %v9726_v37, %v9714_v32  ;;  %v9732_v0 = vpop.f32.mrb[51].mxu0  ;;  %v9734_v10 = vpop.f32.mrb[51].mxu1  ;;  %v4355_v53 = vsel %vm1050_vm2, %v9714_v32, 0.0 }
 0x30e   : > { %12003 = vst [vmem:[#allocation64_spill] sm:$0xff] %v9732_v0  ;;  %12004 = vst [vmem:[#allocation102_spill] sm:$0xff] %v9734_v10  ;;  %v6488_v43 = vpack.i.bf16 %v9732_v0, %v9718_v1  ;;  %v4353_v20 = vsel %vm1050_vm2, %v9732_v0, 0.0  ;;  %v4423_v21 = vsel %vm1050_vm2, %v9734_v10, 0.0  ;;  %v4427_v60 = vsel %vm1050_vm2, %v9728_v13, 0.0 }
 0x30f   : > { %v4354_v57 = vadd.f32 %v4353_v20, %v4352_v36  ;;  %6494 = vrot.lane.b32.xlu1 %v6493_v46, %s6813_s29  ;;  %v4424_v38 = vadd.f32 %v4423_v21, %v4422_v3  ;;  %v4357_v20 = vsel %vm1050_vm2, %v9726_v37, 0.0 }
 0x310   : > { %6489 = vrot.lane.b32.xlu0 %v6488_v43, %s6813_s29 }
 0x311   : > { %v4356_v1 = vadd.f32 %v4355_v53, %v4354_v57  ;;  %v4426_v36 = vadd.f32 %v4425_v31, %v4424_v38 }
 0x313   : > { %v4358_v0 = vadd.f32 %v4357_v20, %v4356_v1  ;;  %v4428_v55 = vadd.f32 %v4427_v60, %v4426_v36 }
 0x32a   : > { %v9756_v46 = vpop.f32.mrb[52].mxu0  ;;  %v9758_v47 = vpop.f32.mrb[52].mxu1 }
 0x32b   : > { %12005 = vst [vmem:[#allocation103_spill] sm:$0xff] %v9756_v46  ;;  %12006 = vst [vmem:[#allocation104_spill] sm:$0xff] %v9758_v47  ;;  %v9760_v3 = vpop.f32.mrb[53].mxu0  ;;  %v9762_v43 = vpop.f32.mrb[53].mxu1  ;;  %v4433_v37 = vsel %vm1050_vm2, %v9758_v47, 0.0 }
 0x32c   : > { %12007 = vst [vmem:[#allocation105_spill] sm:$0xff] %v9760_v3  ;;  %12008 = vst [vmem:[#allocation106_spill] sm:$0xff] %v9762_v43  ;;  %v4359_v57 = vsel %vm1050_vm2, %v9760_v3, 0.0  ;;  %v4429_v21 = vsel %vm1050_vm2, %v9762_v43, 0.0  ;;  %v9768_v31 = vpop.f32.mrb[54].mxu0  ;;  %v9770_v53 = vpop.f32.mrb[54].mxu1 }
 0x32d   : > { %12009 = vst [vmem:[#allocation107_spill] sm:$0xff] %v9768_v31  ;;  %12010 = vst [vmem:[#allocation108_spill] sm:$0xff] %v9770_v53  ;;  %v4360_v1 = vadd.f32 %v4359_v57, %v4358_v0  ;;  %v4430_v60 = vadd.f32 %v4429_v21, %v4428_v55  ;;  %v6503_v38 = vpack.i.bf16 %v9768_v31, %v9756_v46  ;;  %v9774_v20 = vpop.f32.mrb[55].mxu0  ;;  %v9776_v36 = vpop.f32.mrb[55].mxu1  ;;  %v4363_v57 = vsel %vm1050_vm2, %v9756_v46, 0.0 }
 0x32e   : > { %12011 = vst [vmem:[#allocation109_spill] sm:$0xff] %v9774_v20  ;;  %12012 = vst [vmem:[#allocation110_spill] sm:$0xff] %v9776_v36  ;;  %v6498_v32 = vpack.i.bf16 %v9774_v20, %v9760_v3  ;;  %v4361_v41 = vsel %vm1050_vm2, %v9774_v20, 0.0  ;;  %v4431_v0 = vsel %vm1050_vm2, %v9776_v36, 0.0  ;;  %v4435_v55 = vsel %vm1050_vm2, %v9770_v53, 0.0 }
 0x32f   : > { %v4362_v42 = vadd.f32 %v4361_v41, %v4360_v1  ;;  %6504 = vrot.lane.b32.xlu1 %v6503_v38, %s6813_s29  ;;  %v4432_v21 = vadd.f32 %v4431_v0, %v4430_v60  ;;  %v4365_v41 = vsel %vm1050_vm2, %v9768_v31, 0.0 }
 0x330   : > { %6499 = vrot.lane.b32.xlu0 %v6498_v32, %s6813_s29 }
 0x331   : > { %v4364_v3 = vadd.f32 %v4363_v57, %v4362_v42  ;;  %v4434_v1 = vadd.f32 %v4433_v37, %v4432_v21 }
 0x333   : > { %v4366_v20 = vadd.f32 %v4365_v41, %v4364_v3  ;;  %v4436_v43 = vadd.f32 %v4435_v55, %v4434_v1 }
 0x34a   : > { %v9798_v38 = vpop.f32.mrb[56].mxu0  ;;  %v9800_v36 = vpop.f32.mrb[56].mxu1 }
 0x34b   : > { %12013 = vst [vmem:[#allocation111_spill] sm:$0xff] %v9798_v38  ;;  %12014 = vst [vmem:[#allocation112_spill] sm:$0xff] %v9800_v36  ;;  %v9802_v60 = vpop.f32.mrb[57].mxu0  ;;  %v9804_v32 = vpop.f32.mrb[57].mxu1  ;;  %v4441_v31 = vsel %vm1050_vm2, %v9800_v36, 0.0  ;;  %v6371_v36 = vunpack.i.l.bf16 %v9550_v16 }
 0x34c   : > { %12015 = vst [vmem:[#allocation113_spill] sm:$0xff] %v9802_v60  ;;  %12016 = vst [vmem:[#allocation114_spill] sm:$0xff] %v9804_v32  ;;  %v4367_v42 = vsel %vm1050_vm2, %v9802_v60, 0.0  ;;  %v4437_v0 = vsel %vm1050_vm2, %v9804_v32, 0.0  ;;  %v9810_v37 = vpop.f32.mrb[58].mxu0  ;;  %v9812_v57 = vpop.f32.mrb[58].mxu1 }
 0x34d   : > { %12017 = vst [vmem:[#allocation115_spill] sm:$0xff] %v9810_v37  ;;  %12018 = vst [vmem:[#allocation116_spill] sm:$0xff] %v9812_v57  ;;  %v4368_v3 = vadd.f32 %v4367_v42, %v4366_v20  ;;  %v4438_v55 = vadd.f32 %v4437_v0, %v4436_v43  ;;  %v6513_v21 = vpack.i.bf16 %v9810_v37, %v9798_v38  ;;  %v9816_v41 = vpop.f32.mrb[59].mxu0  ;;  %v9818_v1 = vpop.f32.mrb[59].mxu1  ;;  %v4371_v42 = vsel %vm1050_vm2, %v9798_v38, 0.0 }
 0x34e   : > { %12019 = vst [vmem:[#allocation117_spill] sm:$0xff] %v9816_v41  ;;  %12020 = vst [vmem:[#allocation118_spill] sm:$0xff] %v9818_v1  ;;  %v6508_v46 = vpack.i.bf16 %v9816_v41, %v9802_v60  ;;  %v4369_v47 = vsel %vm1050_vm2, %v9816_v41, 0.0  ;;  %v4439_v20 = vsel %vm1050_vm2, %v9818_v1, 0.0  ;;  %v4443_v43 = vsel %vm1050_vm2, %v9812_v57, 0.0 }
 0x34f   : > { %v4370_v53 = vadd.f32 %v4369_v47, %v4368_v3  ;;  %6514 = vrot.lane.b32.xlu1 %v6513_v21, %s6813_s29  ;;  %v4440_v0 = vadd.f32 %v4439_v20, %v4438_v55  ;;  %v4373_v47 = vsel %vm1050_vm2, %v9810_v37, 0.0  ;;  %v9840_v21 = vpop.permute.xlu0 %6419  ;;  %v6386_v57 = vunpack.i.l.bf16 %v9571_v52 }
 0x350   : > { %6509 = vrot.lane.b32.xlu0 %v6508_v46, %s6813_s29 }
 0x351   : > { %v4372_v60 = vadd.f32 %v4371_v42, %v4370_v53  ;;  %v4442_v3 = vadd.f32 %v4441_v31, %v4440_v0 }
 0x353   : > { %v4374_v41 = vadd.f32 %v4373_v47, %v4372_v60  ;;  %v4444_v32 = vadd.f32 %v4443_v43, %v4442_v3  ;;  %v9842_v1 = vpop.permute.xlu0 %6429 }
 0x36b   : > { %v9844_v55 = vpop.f32.mrb[60].mxu0  ;;  %v9846_v46 = vpop.f32.mrb[60].mxu1 }
 0x36c   : > { %12021 = vst [vmem:[#allocation119_spill] sm:$0xff] %v9844_v55  ;;  %12022 = vst [vmem:[#allocation120_spill] sm:$0xff] %v9846_v46  ;;  %v9848_v20 = vpop.f32.mrb[61].mxu0  ;;  %v9850_v53 = vpop.f32.mrb[61].mxu1  ;;  %v4449_v4 = vsel %vm1050_vm2, %v9846_v46, 0.0 }
 0x36d   : > { %12023 = vst [vmem:[#allocation121_spill] sm:$0xff] %v9848_v20  ;;  %12024 = vst [vmem:[#allocation122_spill] sm:$0xff] %v9850_v53  ;;  %v4375_v31 = vsel %vm1050_vm2, %v9848_v20, 0.0  ;;  %v4445_v42 = vsel %vm1050_vm2, %v9850_v53, 0.0  ;;  %v9856_v60 = vpop.f32.mrb[62].mxu0  ;;  %v9858_v43 = vpop.f32.mrb[62].mxu1 }
 0x36e   : > { %12025 = vst [vmem:[#allocation123_spill] sm:$0xff] %v9856_v60  ;;  %12026 = vst [vmem:[#allocation124_spill] sm:$0xff] %v9858_v43  ;;  %v4376_v0 = vadd.f32 %v4375_v31, %v4374_v41  ;;  %v4446_v47 = vadd.f32 %v4445_v42, %v4444_v32  ;;  %v6523_v3 = vpack.i.bf16 %v9856_v60, %v9844_v55  ;;  %v9862_v37 = vpop.f32.mrb[63].mxu0  ;;  %v9864_v38 = vpop.f32.mrb[63].mxu1  ;;  %v6387_v32 = vunpack.i.h.bf16 %v9571_v52 }
 0x36f   : > { %12027 = vst [vmem:[#allocation125_spill] sm:$0xff] %v9862_v37  ;;  %12028 = vst [vmem:[#allocation126_spill] sm:$0xff] %v9864_v38  ;;  %v6518_v10 = vpack.i.bf16 %v9862_v37, %v9848_v20  ;;  %v4377_v15 = vsel %vm1050_vm2, %v9862_v37, 0.0  ;;  %v9874_v41 = vpop.permute.xlu1 %6444  ;;  %v9876_v31 = vpop.permute.xlu0 %6439  ;;  %v4447_v16 = vsel %vm1050_vm2, %v9864_v38, 0.0  ;;  %v4379_v37 = vsel %vm1050_vm2, %v9844_v55, 0.0 }
 0x370   : > { %v4378_v42 = vadd.f32 %v4377_v15, %v4376_v0  ;;  %6524 = vrot.lane.b32.xlu1 %v6523_v3, %s6813_s29  ;;  %v4448_v20 = vadd.f32 %v4447_v16, %v4446_v47  ;;  %v9891_v0 = vsel %vm1050_vm2, %v8673_v17, %v6371_v36  ;;  %v4381_v13 = vsel %vm1050_vm2, %v9856_v60, 0.0 }
 0x371   : > { %6519 = vrot.lane.b32.xlu0 %v6518_v10, %s6813_s29  ;;  %v9897_v52 = vsel %vm1050_vm2, %v8729_v26, %v6387_v32  ;;  %v6397_v47 = vunpack.i.h.bf16 %v9581_v50  ;;  %v12029_v36 = vpack.i.bf16 %v9466_v22, %v9450_v23  ;;  %v6392_v50 = vunpack.i.h.bf16 %v9588_v5 }
 0x372   : > { %v4380_v15 = vadd.f32 %v4379_v37, %v4378_v42  ;;  %v4450_v3 = vadd.f32 %v4449_v4, %v4448_v20  ;;  %v4451_v37 = vsel %vm1050_vm2, %v9858_v43, 0.0  ;;  %v9912_v4 = vsel %vm1050_vm2, %v8716_v48, %v6386_v57 }
 0x373   : > { %v9900_v16 = vpop.permute.xlu1 %6454  ;;  %v9902_v10 = vpop.permute.xlu0 %6449  ;;  %v6391_v20 = vunpack.i.l.bf16 %v9588_v5  ;;  %v12030_v60 = vpack.i.bf16 %v9475_v44, %v9454_v27  ;;  %v6427_v57 = vunpack.i.h.bf16 %v9657_v11  ;;  %v6422_v23 = vunpack.i.h.bf16 %v9840_v21 }
 0x374   : > { %v4382_v42 = vadd.f32 %v4381_v13, %v4380_v15  ;;  %6534 = vrot.lane.b32.xlu1 %v12029_v36, %s6814_s30  ;;  %v4452_v32 = vadd.f32 %v4451_v37, %v4450_v3  ;;  %v6401_v13 = vunpack.i.l.bf16 %v9590_v34  ;;  %v6417_v15 = vunpack.i.h.bf16 %v9647_v39 }
 0x375   : > { %6529 = vrot.lane.b32.xlu0 %v12030_v60, %s6814_s30  ;;  %v6416_v36 = vunpack.i.l.bf16 %v9647_v39  ;;  %v6421_v55 = vunpack.i.l.bf16 %v9840_v21  ;;  %v9928_v3 = vsel %vm1050_vm2, %v8766_v62, %v6397_v47  ;;  %v6432_v60 = vunpack.i.h.bf16 %v9842_v1 }
 0x376   : > { %v4383_v22 = vrot.slane %v4382_v42, 4  ;;  %v4453_v5 = vrot.slane %v4452_v32, 4  ;;  %v6431_v34 = vunpack.i.l.bf16 %v9842_v1  ;;  %v12031_v39 = vpack.i.bf16 %v9528_v63, %v9516_v8 }
 0x377   : > { %v6465_v37 = vpop.permute.xlu1 %6464  ;;  %v6460_v44 = vpop.permute.xlu0 %6459  ;;  %v9938_v11 = vsel %vm1050_vm2, %v8771_v59, %v6392_v50  ;;  %v9942_v21 = vsel %vm1050_vm2, %v8758_v49, %v6391_v20  ;;  %v6447_v47 = vunpack.i.h.bf16 %v9874_v41  ;;  %v9951_v1 = vsel %vm1050_vm2, %v8801_v7, %v6401_v13 }
 0x378   : > { %v4384_v27 = vadd.f32 %v4383_v22, %v4382_v42  ;;  %6544 = vrot.lane.b32.xlu1 %v12031_v39, %s6814_s30  ;;  %v4454_v53 = vadd.f32 %v4453_v5, %v4452_v32  ;;  %v12032_v22 = vpack.i.bf16 %v9534_v18, %v9520_v28  ;;  %v9955_v42 = vsel %vm1050_vm2, %v8849_v12, %v6417_v15  ;;  %v12036_v15 = vld [vmem:[#allocation10_spill] sm:$0xff]  ;;  %v12048_v18 = vld [vmem:[#allocation8_spill] sm:$0xff] }
 0x379   : > { %v9959_v50 = vsel %vm1050_vm2, %v8833_v54, %v6416_v36  ;;  %v9963_v32 = vsel %vm1050_vm2, %v8895_v9, %v6427_v57  ;;  %v9967_v5 = vsel %vm1050_vm2, %v8899_v45, %v6422_v23  ;;  %v9971_v13 = vsel %vm1050_vm2, %v8888_v61, %v6421_v55  ;;  %v12038_v36 = vld [vmem:[#allocation6_spill] sm:$0xff] }
 0x37a   : > { %6539 = vrot.lane.b32.xlu0 %v12032_v22, %s6814_s30  ;;  %v4385_v20 = vrot.slane %v4384_v27, 2  ;;  %12033 = vst [vmem:[#allocation127_spill] sm:$0xff] %v9963_v32  ;;  %12034 = vst [vmem:[#allocation128_spill] sm:$0xff] %v9967_v5  ;;  %v4455_v39 = vrot.slane %v4454_v53, 2  ;;  %v9975_v22 = vsel %vm1050_vm2, %v12036_v15, %v6432_v60  ;;  %v9979_v63 = vsel %vm1050_vm2, %v12038_v36, %v6431_v34 }
 0x37b   : > { %12035 = vst [vmem:[#allocation129_spill] sm:$0xff] %v9971_v13  ;;  %12037 = vst [vmem:[#allocation10_spill] sm:$0xff] %v9975_v22  ;;  %v6446_v57 = vunpack.i.l.bf16 %v9874_v41  ;;  %v9982_v32 = vpop.permute.xlu1 %6474  ;;  %v9984_v8 = vpop.permute.xlu0 %6469  ;;  %v12040_v55 = vpack.i.bf16 %v9619_v25, %v9603_v40  ;;  %v9992_v60 = vsel %vm1050_vm2, %v8970_v14, %v6447_v47  ;;  %v6442_v22 = vunpack.i.h.bf16 %v9876_v31 }
 0x37c   : > { %12039 = vst [vmem:[#allocation6_spill] sm:$0xff] %v9979_v63  ;;  %v4386_v23 = vadd.f32 %v4385_v20, %v4384_v27  ;;  %12041 = vst [vmem:[#allocation130_spill] sm:$0xff] %v9992_v60  ;;  %v6441_v34 = vunpack.i.l.bf16 %v9876_v31  ;;  %v4456_v63 = vadd.f32 %v4455_v39, %v4454_v53  ;;  %v12042_v41 = vpack.i.bf16 %v9625_v33, %v9611_v2  ;;  %v12043_v31 = vld [vmem:[#allocation17_spill] sm:$0xff] }
 0x37d   : > { %6554 = vrot.lane.b32.xlu1 %v12040_v55, %s6814_s30  ;;  %v6457_v27 = vunpack.i.h.bf16 %v9900_v16  ;;  %v6456_v20 = vunpack.i.l.bf16 %v9900_v16  ;;  %v6452_v55 = vunpack.i.h.bf16 %v9902_v10  ;;  %v6451_v47 = vunpack.i.l.bf16 %v9902_v10  ;;  %v12046_v10 = vld [vmem:[#allocation11_spill] sm:$0xff] }
 0x37e   : > { %6549 = vrot.lane.b32.xlu0 %v12042_v41, %s6814_s30  ;;  %v4387_v5 = vrot.slane %v4386_v23, 1  ;;  %v6467_v60 = vunpack.i.h.bf16 %v6465_v37  ;;  %v6466_v13 = vunpack.i.l.bf16 %v6465_v37  ;;  %v4457_v25 = vrot.slane %v4456_v63, 1 }
 0x37f   : > { %v10006_v53 = vsel %vm1050_vm2, %v12043_v31, %v6446_v57  ;;  %v6462_v39 = vunpack.i.h.bf16 %v6460_v44  ;;  %v6461_v40 = vunpack.i.l.bf16 %v6460_v44  ;;  %v10008_v33 = vpop.permute.xlu1 %6484  ;;  %v10010_v41 = vpop.permute.xlu0 %6479  ;;  %v12045_v16 = vpack.i.bf16 %v9686_v56, %v9674_v35 }
 0x380   : > { %12044 = vst [vmem:[#allocation17_spill] sm:$0xff] %v10006_v53  ;;  %v4388_v2 = vadd.f32 %v4387_v5, %v4386_v23  ;;  %v10019_v37 = vsel %vm1050_vm2, %v12046_v10, %v6442_v22  ;;  %v10023_v57 = vsel %vm1050_vm2, %v12048_v18, %v6441_v34  ;;  %v6477_v44 = vunpack.i.h.bf16 %v9982_v32  ;;  %v12079_v53 = vld [vmem:[#allocation76_spill] sm:$0xff] }
 0x381   : > { %6564 = vrot.lane.b32.xlu1 %v12045_v16, %s6814_s30  ;;  %12047 = vst [vmem:[#allocation11_spill] sm:$0xff] %v10019_v37  ;;  %12049 = vst [vmem:[#allocation8_spill] sm:$0xff] %v10023_v57  ;;  %v12050_v5 = vpack.i.bf16 %v9692_v19, %v9678_v30  ;;  %v10032_v23 = vsel %vm1124_vm4, %v9559_v29, %v6457_v27  ;;  %v10036_v22 = vsel %vm1124_vm4, %v9563_v6, %v6456_v20  ;;  %v12064_v27 = vld [vmem:[#allocation102_spill] sm:$0xff]  ;;  %v12065_v20 = vld [vmem:[#allocation61_spill] sm:$0xff] }
 0x382   : > { %12051 = vst [vmem:[#allocation131_spill] sm:$0xff] %v10032_v23  ;;  %12052 = vst [vmem:[#allocation132_spill] sm:$0xff] %v10036_v22  ;;  %v4389_v16 = vadd.f32 %v4388_v2, %v9443_v51  ;;  %v4458_v34 = vadd.f32 %v4457_v25, %v4456_v63  ;;  %v10041_v57 = vsel %vm1124_vm4, %v9891_v0, %v6451_v47  ;;  %v12058_v2 = vld [vmem:[#allocation91_spill] sm:$0xff]  ;;  %v6476_v63 = vunpack.i.l.bf16 %v9982_v32  ;;  %v12078_v23 = vld [vmem:[#allocation81_spill] sm:$0xff] }
 0x383   : > { %6559 = vrot.lane.b32.xlu0 %v12050_v5, %s6814_s30  ;;  %12053 = vst [vmem:[#allocation133_spill] sm:$0xff] %v10041_v57  ;;  %v10045_v37 = vsel %vm1124_vm4, %v9569_v58, %v6452_v55  ;;  %v10049_v5 = vsel %vm1124_vm4, %v9897_v52, %v6467_v60  ;;  %v10053_v29 = vsel %vm1124_vm4, %v9912_v4, %v6466_v13  ;;  %v10069_v58 = vpop.permute.xlu1 %6494  ;;  %v10071_v0 = vpop.permute.xlu0 %6489  ;;  %v12060_v52 = vld [vmem:[#allocation68_spill] sm:$0xff]  ;;  %v12061_v4 = vld [vmem:[#allocation58_spill] sm:$0xff]  ;;  %v6471_v60 = vunpack.i.l.bf16 %v9984_v8 }
 0x384   : > { %12054 = vst [vmem:[#allocation134_spill] sm:$0xff] %v10045_v37  ;;  %12055 = vst [vmem:[#allocation135_spill] sm:$0xff] %v10049_v5  ;;  %v10062_v25 = vsel %vm1124_vm4, %v9579_v24, %v6461_v40  ;;  %v10066_v51 = vsel %vm1124_vm4, %v12058_v2, %v6462_v39  ;;  %v4459_v6 = vadd.f32 %v4458_v34, %v4389_v16  ;;  %v6472_v40 = vunpack.i.h.bf16 %v9984_v8  ;;  %v12073_v5 = vld [vmem:[#allocation69_spill] sm:$0xff]  ;;  %v12074_v37 = vld [vmem:[#allocation3_spill] sm:$0xff] }
 0x385   : > { %12056 = vst [vmem:[#allocation136_spill] sm:$0xff] %v10053_v29  ;;  %12057 = vst [vmem:[#allocation137_spill] sm:$0xff] %v10062_v25  ;;  %v12062_v13 = vpack.i.bf16 %v12060_v52, %v12061_v4  ;;  %v10079_v24 = vsel %vm1124_vm4, %v9928_v3, %v6477_v44  ;;  %v6487_v32 = vunpack.i.h.bf16 %v10008_v33  ;;  %v12066_v55 = vpack.i.bf16 %v12064_v27, %v12065_v20  ;;  %v12069_v25 = vld [vmem:[#allocation97_spill] sm:$0xff]  ;;  %v12071_v29 = vld [vmem:[#allocation104_spill] sm:$0xff] }
 0x386   : > { %12059 = vst [vmem:[#allocation91_spill] sm:$0xff] %v10066_v51  ;;  %12063 = vst [vmem:[#allocation138_spill] sm:$0xff] %v10079_v24  ;;  %v6486_v47 = vunpack.i.l.bf16 %v10008_v33  ;;  %v6482_v39 = vunpack.i.h.bf16 %v10010_v41  ;;  %v6481_v16 = vunpack.i.l.bf16 %v10010_v41  ;;  %v10091_v34 = vmul.f32 0.0009765625, %v4459_v6  ;;  %v12067_v33 = vld [vmem:[#allocation70_spill] sm:$0xff]  ;;  %v12068_v41 = vld [vmem:[#allocation99_spill] sm:$0xff] }
 0x387   : > { %6574 = vrot.lane.b32.xlu1 %v12062_v13, %s6814_s30  ;;  %6569 = vrot.lane.b32.xlu0 %v12066_v55, %s6814_s30  ;;  %4998 = vst.msk [vmem:[%s10058_s7] sm:$0x1] %vm4997_vm5, %v4459_v6  ;;  %v6497_v3 = vunpack.i.h.bf16 %v10069_v58  ;;  %v6496_v8 = vunpack.i.l.bf16 %v10069_v58  ;;  %v6492_v44 = vunpack.i.h.bf16 %v10071_v0  ;;  %v6491_v2 = vunpack.i.l.bf16 %v10071_v0  ;;  %v12070_v51 = vld [vmem:[#allocation108_spill] sm:$0xff]  ;;  %v12075_v57 = vld [vmem:[#allocation110_spill] sm:$0xff] }
 0x388   : > { %v4461_v13 = vsub.f32 %v8673_v17, %v10091_v34  ;;  %v4462_v55 = vsub.f32 %v12067_v33, %v10091_v34  ;;  %v4463_v24 = vsub.f32 %v12068_v41, %v10091_v34  ;;  %v4464_v6 = vsub.f32 %v12069_v25, %v10091_v34  ;;  %v12076_v25 = vld [vmem:[#allocation106_spill] sm:$0xff]  ;;  %v12085_v4 = vld [vmem:[#allocation112_spill] sm:$0xff] }
 0x389   : > { %v12072_v58 = vpack.i.bf16 %v12070_v51, %v12071_v29  ;;  %v4465_v0 = vsub.f32 %v12073_v5, %v10091_v34  ;;  %v4466_v17 = vsub.f32 %v12074_v37, %v10091_v34  ;;  %v4467_v33 = vsub.f32 %v8716_v48, %v10091_v34  ;;  %v12088_v20 = vld [vmem:[#allocation118_spill] sm:$0xff] }
 0x38a   : > { %v4468_v41 = vsub.f32 %v8729_v26, %v10091_v34  ;;  %v12077_v22 = vpack.i.bf16 %v12075_v57, %v12076_v25  ;;  %v4470_v5 = vsub.f32 %v8771_v59, %v10091_v34  ;;  %v4471_v37 = vsub.f32 %v12078_v23, %v10091_v34  ;;  %v12082_v59 = vld [vmem:[#allocation9_spill] sm:$0xff]  ;;  %v12083_v23 = vld [vmem:[#allocation4_spill] sm:$0xff] }
 0x38b   : > { %6584 = vrot.lane.b32.xlu1 %v12072_v58, %s6814_s30  ;;  %v4469_v58 = vsub.f32 %v8758_v49, %v10091_v34  ;;  %v4472_v48 = vsub.f32 %v8766_v62, %v10091_v34  ;;  %v4473_v26 = vsub.f32 %v8801_v7, %v10091_v34  ;;  %v4474_v51 = vsub.f32 %v12079_v53, %v10091_v34  ;;  %v12081_v49 = vld [vmem:[#allocation5_spill] sm:$0xff]  ;;  %v12084_v53 = vld [vmem:[#allocation116_spill] sm:$0xff] }
 0x38c   : > { %6579 = vrot.lane.b32.xlu0 %v12077_v22, %s6814_s30  ;;  %v12080_v22 = vld [vmem:[#allocation14_spill] sm:$0xff]  ;;  %v4476_v57 = vsub.f32 %v12081_v49, %v10091_v34  ;;  %v4477_v25 = vsub.f32 %v12082_v59, %v10091_v34  ;;  %v4478_v52 = vsub.f32 %v12083_v23, %v10091_v34  ;;  %v4479_v62 = vsub.f32 %v8833_v54, %v10091_v34  ;;  %v12087_v59 = vld [vmem:[#allocation7_spill] sm:$0xff] }
 0x38d   : > { %v4475_v29 = vsub.f32 %v12080_v22, %v10091_v34  ;;  %v4480_v7 = vsub.f32 %v8849_v12, %v10091_v34  ;;  %v12086_v27 = vpack.i.bf16 %v12084_v53, %v12085_v4  ;;  %v4481_v22 = vsub.f32 %v8888_v61, %v10091_v34  ;;  %v12089_v12 = vld [vmem:[#allocation114_spill] sm:$0xff]  ;;  %v12091_v53 = vld [vmem:[#allocation15_spill] sm:$0xff] }
 0x38e   : > { %v4482_v49 = vsub.f32 %v8899_v45, %v10091_v34  ;;  %v4483_v23 = vsub.f32 %v12087_v59, %v10091_v34  ;;  %v4484_v54 = vsub.f32 %v8895_v9, %v10091_v34  ;;  %v12090_v56 = vpack.i.bf16 %v12088_v20, %v12089_v12  ;;  %v12092_v4 = vld [vmem:[#allocation22_spill] sm:$0xff]  ;;  %v12093_v20 = vld [vmem:[#allocation47_spill] sm:$0xff] }
 0x38f   : > { %6594 = vrot.lane.b32.xlu1 %v12086_v27, %s6814_s30  ;;  %v4485_v27 = vsub.f32 %v12038_v36, %v10091_v34  ;;  %v4486_v61 = vsub.f32 %v12036_v15, %v10091_v34  ;;  %v4487_v45 = vsub.f32 %v12091_v53, %v10091_v34  ;;  %v4488_v59 = vsub.f32 %v12092_v4, %v10091_v34  ;;  %v12097_v4 = vld [vmem:[#allocation44_spill] sm:$0xff] }
 0x390   : > { %6589 = vrot.lane.b32.xlu0 %v12090_v56, %s6814_s30  ;;  %v4489_v9 = vsub.f32 %v12048_v18, %v10091_v34  ;;  %v4490_v35 = vsub.f32 %v12046_v10, %v10091_v34  ;;  %v4491_v56 = vsub.f32 %v12043_v31, %v10091_v34  ;;  %v4492_v36 = vsub.f32 %v8970_v14, %v10091_v34  ;;  %v12100_v31 = vld [vmem:[#allocation35_spill] sm:$0xff] }
 0x391   : > { %v10181_v15 = vsel %vm1124_vm4, %v12093_v20, %v6476_v63  ;;  %v10185_v53 = vsel %vm1124_vm4, %v9942_v21, %v6471_v60  ;;  %v10189_v18 = vsel %vm1124_vm4, %v9938_v11, %v6472_v40  ;;  %v10193_v10 = vsel %vm1124_vm4, %v12097_v4, %v6487_v32  ;;  %v12103_v60 = vld [vmem:[#allocation37_spill] sm:$0xff]  ;;  %v12106_v32 = vld [vmem:[#allocation122_spill] sm:$0xff] }
 0x392   : > { %12094 = vst [vmem:[#allocation70_spill] sm:$0xff] %v10181_v15  ;;  %12095 = vst [vmem:[#allocation99_spill] sm:$0xff] %v10185_v53  ;;  %v12099_v14 = vpack.i.bf16 %v9858_v43, %v9846_v46  ;;  %v10201_v63 = vsel %vm1124_vm4, %v12100_v31, %v6486_v47  ;;  %v10205_v21 = vsel %vm1124_vm4, %v9951_v1, %v6481_v16  ;;  %v12109_v1 = vld [vmem:[#allocation55_spill] sm:$0xff] }
 0x393   : > { %12096 = vst [vmem:[#allocation97_spill] sm:$0xff] %v10189_v18  ;;  %12098 = vst [vmem:[#allocation69_spill] sm:$0xff] %v10193_v10  ;;  %v10209_v11 = vsel %vm1124_vm4, %v12103_v60, %v6482_v39  ;;  %v10213_v40 = vsel %vm1124_vm4, %v9955_v42, %v6497_v3  ;;  %v12107_v20 = vpack.i.bf16 %v9864_v38, %v12106_v32  ;;  %v12111_v39 = vld [vmem:[#allocation89_spill] sm:$0xff] }
 0x394   : > { %6604 = vrot.lane.b32.xlu1 %v12099_v14, %s6814_s30  ;;  %12101 = vst [vmem:[#allocation3_spill] sm:$0xff] %v10201_v63  ;;  %12102 = vst [vmem:[#allocation81_spill] sm:$0xff] %v10205_v21  ;;  %v4493_v4 = vmul.f32 %v4461_v13, %v4461_v13  ;;  %v10221_v47 = vsel %vm1124_vm4, %v9959_v50, %v6496_v8  ;;  %v10225_v16 = vsel %vm1124_vm4, %v12109_v1, %v6491_v2 }
 0x395   : > { %12104 = vst [vmem:[#allocation76_spill] sm:$0xff] %v10209_v11  ;;  %12105 = vst [vmem:[#allocation14_spill] sm:$0xff] %v10213_v40  ;;  %6599 = vrot.lane.b32.xlu0 %v12107_v20, %s6814_s30  ;;  %v10229_v14 = vsel %vm1124_vm4, %v12111_v39, %v6492_v44  ;;  %v4494_v42 = vmul.f32 %v4462_v55, %v4462_v55  ;;  %v4495_v3 = vmul.f32 %v4463_v24, %v4463_v24 }
 0x396   : > { %12108 = vst [vmem:[#allocation5_spill] sm:$0xff] %v10221_v47  ;;  %12110 = vst [vmem:[#allocation9_spill] sm:$0xff] %v10225_v16  ;;  %v4496_v31 = vmul.f32 %v4464_v6, %v4464_v6  ;;  %v4497_v60 = vmul.f32 %v4465_v0, %v4465_v0  ;;  %v4498_v40 = vmul.f32 %v4466_v17, %v4466_v17  ;;  %v4525_v6 = vsel %vm1050_vm2, %v4493_v4, 0.0 }
 0x397   : > { %12112 = vst [vmem:[#allocation4_spill] sm:$0xff] %v10229_v14  ;;  %v4499_v11 = vmul.f32 %v4467_v33, %v4467_v33  ;;  %v4500_v20 = vmul.f32 %v4468_v41, %v4468_v41  ;;  %v4501_v13 = vmul.f32 %v4469_v58, %v4469_v58  ;;  %v4502_v21 = vmul.f32 %v4470_v5, %v4470_v5 }
 0x398   : > { %v4503_v63 = vmul.f32 %v4471_v37, %v4471_v37  ;;  %v4504_v50 = vmul.f32 %v4472_v48, %v4472_v48  ;;  %v4505_v8 = vmul.f32 %v4473_v26, %v4473_v26  ;;  %v4506_v47 = vmul.f32 %v4474_v51, %v4474_v51 }
 0x399   : > { %v4507_v10 = vmul.f32 %v4475_v29, %v4475_v29  ;;  %v4508_v2 = vmul.f32 %v4476_v57, %v4476_v57  ;;  %v4509_v1 = vmul.f32 %v4477_v25, %v4477_v25  ;;  %v4510_v16 = vmul.f32 %v4478_v52, %v4478_v52 }
 0x39a   : > { %v4511_v18 = vmul.f32 %v4479_v62, %v4479_v62  ;;  %v4512_v44 = vmul.f32 %v4480_v7, %v4480_v7  ;;  %v4513_v39 = vmul.f32 %v4481_v22, %v4481_v22  ;;  %v10231_v55 = vmul.f32 %v4482_v49, %v4482_v49 }
 0x39b   : > { %v10233_v24 = vmul.f32 %v4483_v23, %v4483_v23  ;;  %v4526_v0 = vsel %vm1050_vm2, %v4494_v42, 0.0  ;;  %v10237_v17 = vmul.f32 %v4484_v54, %v4484_v54  ;;  %v10239_v33 = vmul.f32 %v4485_v27, %v4485_v27 }
 0x39c   : > { %v10241_v51 = vmul.f32 %v4486_v61, %v4486_v61  ;;  %v4527_v57 = vadd.f32 %v4526_v0, %v4525_v6  ;;  %v10243_v29 = vmul.f32 %v4487_v45, %v4487_v45  ;;  %v10245_v52 = vmul.f32 %v4488_v59, %v4488_v59  ;;  %v12120_v6 = vld [vmem:[#allocation86_spill] sm:$0xff] }
 0x39d   : > { %v10247_v41 = vmul.f32 %v4489_v9, %v4489_v9  ;;  %v4528_v25 = vsel %vm1050_vm2, %v4495_v3, 0.0  ;;  %v10250_v58 = vmul.f32 %v4490_v35, %v4490_v35  ;;  %v10252_v5 = vmul.f32 %v4491_v56, %v4491_v56  ;;  %v12114_v3 = vld [vmem:[#allocation39_spill] sm:$0xff] }
 0x39e   : > { %v10254_v37 = vmul.f32 %v4492_v36, %v4492_v36  ;;  %v4529_v48 = vadd.f32 %v4528_v25, %v4527_v57  ;;  %v4530_v26 = vsel %vm1050_vm2, %v4496_v31, 0.0  ;;  %v4532_v62 = vsel %vm1050_vm2, %v4497_v60, 0.0  ;;  %v12115_v60 = vld [vmem:[#allocation16_spill] sm:$0xff]  ;;  %v12121_v57 = vld [vmem:[#allocation45_spill] sm:$0xff] }
 0x39f   : > { %v4534_v7 = vsel %vm1050_vm2, %v4498_v40, 0.0  ;;  %v4536_v22 = vsel %vm1050_vm2, %v4499_v11, 0.0  ;;  %v4538_v23 = vsel %vm1050_vm2, %v4500_v20, 0.0  ;;  %v4540_v54 = vsel %vm1050_vm2, %v4501_v13, 0.0  ;;  %v12116_v20 = vld [vmem:[#allocation21_spill] sm:$0xff] }
 0x3a0   : > { %v4531_v49 = vadd.f32 %v4530_v26, %v4529_v48  ;;  %v4542_v35 = vsel %vm1050_vm2, %v4502_v21, 0.0  ;;  %v4544_v27 = vsel %vm1050_vm2, %v4503_v63, 0.0  ;;  %v4546_v61 = vsel %vm1050_vm2, %v4504_v50, 0.0  ;;  %v12117_v13 = vld [vmem:[#allocation13_spill] sm:$0xff]  ;;  %v12122_v48 = vld [vmem:[#allocation42_spill] sm:$0xff] }
 0x3a1   : > { %v10266_v45 = vsel %vm1050_vm2, %v4505_v8, 0.0  ;;  %v10269_v59 = vsel %vm1050_vm2, %v4506_v47, 0.0  ;;  %v10272_v56 = vsel %vm1050_vm2, %v4507_v10, 0.0  ;;  %v10275_v36 = vsel %vm1050_vm2, %v4508_v2, 0.0  ;;  %v12113_v47 = vld [vmem:[#allocation83_spill] sm:$0xff] }
 0x3a2   : > { %v4533_v9 = vadd.f32 %v4532_v62, %v4531_v49  ;;  %v10278_v11 = vsel %vm1050_vm2, %v4509_v1, 0.0  ;;  %v10281_v63 = vsel %vm1050_vm2, %v4510_v16, 0.0  ;;  %v10284_v21 = vsel %vm1050_vm2, %v4511_v18, 0.0  ;;  %v12118_v8 = vld [vmem:[#allocation23_spill] sm:$0xff]  ;;  %v12119_v1 = vld [vmem:[#allocation82_spill] sm:$0xff]  ;;  %v12123_v62 = vld [vmem:[#allocation85_spill] sm:$0xff] }
 0x3a3   : > { %v10287_v40 = vsel %vm1050_vm2, %v4512_v44, 0.0  ;;  %v10290_v4 = vsel %vm1050_vm2, %v4513_v39, 0.0  ;;  %v4595_v42 = vsub.f32 %v12113_v47, %v10091_v34  ;;  %v4596_v31 = vsub.f32 %v12114_v3, %v10091_v34  ;;  %v12124_v49 = vld [vmem:[#allocation19_spill] sm:$0xff]  ;;  %v12125_v47 = vld [vmem:[#allocation12_spill] sm:$0xff] }
 0x3a4   : > { %v4535_v10 = vadd.f32 %v4534_v7, %v4533_v9  ;;  %v4597_v16 = vsub.f32 %v12115_v60, %v10091_v34  ;;  %v4598_v18 = vsub.f32 %v12116_v20, %v10091_v34  ;;  %v4599_v50 = vsub.f32 %v12117_v13, %v10091_v34  ;;  %v12127_v20 = vld [vmem:[#allocation18_spill] sm:$0xff] }
 0x3a5   : > { %v4600_v2 = vsub.f32 %v12118_v8, %v10091_v34  ;;  %v4601_v44 = vsub.f32 %v12119_v1, %v10091_v34  ;;  %v4602_v0 = vsub.f32 %v12120_v6, %v10091_v34  ;;  %v4603_v25 = vsub.f32 %v12121_v57, %v10091_v34  ;;  %v12128_v8 = vld [vmem:[#allocation65_spill] sm:$0xff]  ;;  %v12129_v6 = vld [vmem:[#allocation31_spill] sm:$0xff] }
 0x3a6   : > { %v4537_v39 = vadd.f32 %v4536_v22, %v4535_v10  ;;  %v4604_v26 = vsub.f32 %v12122_v48, %v10091_v34  ;;  %v4605_v7 = vsub.f32 %v12123_v62, %v10091_v34  ;;  %v4606_v9 = vsub.f32 %v12124_v49, %v10091_v34  ;;  %v12126_v22 = vld [vmem:[#allocation24_spill] sm:$0xff]  ;;  %v12130_v48 = vld [vmem:[#allocation26_spill] sm:$0xff]  ;;  %v12131_v49 = vld [vmem:[#allocation49_spill] sm:$0xff] }
 0x3a7   : > { %v4607_v3 = vsub.f32 %v12125_v47, %v10091_v34  ;;  %v4608_v10 = vsub.f32 %v12126_v22, %v10091_v34  ;;  %v4609_v13 = vsub.f32 %v12127_v20, %v10091_v34  ;;  %v4610_v1 = vsub.f32 %v12128_v8, %v10091_v34  ;;  %v12132_v47 = vld [vmem:[#allocation88_spill] sm:$0xff]  ;;  %v12134_v20 = vld [vmem:[#allocation27_spill] sm:$0xff]  ;;  %v12135_v8 = vld [vmem:[#allocation46_spill] sm:$0xff] }
 0x3a8   : > { %v4539_v60 = vadd.f32 %v4538_v23, %v4537_v39  ;;  %v4611_v57 = vsub.f32 %v12129_v6, %v10091_v34  ;;  %v4612_v62 = vsub.f32 %v12130_v48, %v10091_v34  ;;  %v4613_v14 = vsub.f32 %v12131_v49, %v10091_v34  ;;  %v12133_v23 = vld [vmem:[#allocation29_spill] sm:$0xff]  ;;  %v12136_v6 = vld [vmem:[#allocation62_spill] sm:$0xff]  ;;  %v12137_v48 = vld [vmem:[#allocation32_spill] sm:$0xff] }
 0x3a9   : > { %v4614_v53 = vsub.f32 %v12132_v47, %v10091_v34  ;;  %v4615_v39 = vsub.f32 %v12133_v23, %v10091_v34  ;;  %v4616_v15 = vsub.f32 %v12134_v20, %v10091_v34  ;;  %v4617_v43 = vsub.f32 %v12135_v8, %v10091_v34  ;;  %v12138_v49 = vld [vmem:[#allocation25_spill] sm:$0xff]  ;;  %v12139_v47 = vld [vmem:[#allocation79_spill] sm:$0xff]  ;;  %v12141_v20 = vld [vmem:[#allocation36_spill] sm:$0xff] }
 0x3aa   : > { %v4541_v22 = vadd.f32 %v4540_v54, %v4539_v60  ;;  %v4618_v46 = vsub.f32 %v12136_v6, %v10091_v34  ;;  %v4619_v38 = vsub.f32 %v12137_v48, %v10091_v34  ;;  %v4620_v32 = vsub.f32 %v12138_v49, %v10091_v34  ;;  %v12140_v54 = vld [vmem:[#allocation73_spill] sm:$0xff]  ;;  %v12142_v8 = vld [vmem:[#allocation72_spill] sm:$0xff]  ;;  %v12143_v6 = vld [vmem:[#allocation71_spill] sm:$0xff] }
 0x3ab   : > { %v4621_v12 = vsub.f32 %v12139_v47, %v10091_v34  ;;  %v4622_v60 = vsub.f32 %v12140_v54, %v10091_v34  ;;  %v4623_v19 = vsub.f32 %v12141_v20, %v10091_v34  ;;  %v4624_v30 = vsub.f32 %v12142_v8, %v10091_v34 }
 0x3ac   : > { %v4543_v23 = vadd.f32 %v4542_v35, %v4541_v22  ;;  %v4625_v28 = vsub.f32 %v12143_v6, %v10091_v34  ;;  %v10356_v48 = vsel %vm1050_vm2, %v10231_v55, 0.0  ;;  %v10360_v49 = vsel %vm1050_vm2, %v10233_v24, 0.0  ;;  %v12144_v22 = vld [vmem:[#allocation94_spill] sm:$0xff] }
 0x3ad   : > { %v10364_v35 = vsel %vm1050_vm2, %v10237_v17, 0.0  ;;  %v4626_v47 = vsub.f32 %v12144_v22, %v10091_v34  ;;  %v10370_v20 = vsel %vm1050_vm2, %v10239_v33, 0.0  ;;  %v10374_v55 = vsel %vm1050_vm2, %v10241_v51, 0.0 }
 0x3ae   : > { %v4545_v54 = vadd.f32 %v4544_v27, %v4543_v23  ;;  %12145 = vst [vmem:[#allocation7_spill] sm:$0xff] %v10370_v20  ;;  %12146 = vst [vmem:[#allocation15_spill] sm:$0xff] %v10374_v55  ;;  %v10378_v24 = vsel %vm1050_vm2, %v10243_v29, 0.0  ;;  %v10382_v17 = vsel %vm1050_vm2, %v10245_v52, 0.0  ;;  %v10386_v8 = vsel %vm1050_vm2, %v10247_v41, 0.0 }
 0x3af   : > { %12147 = vst [vmem:[#allocation22_spill] sm:$0xff] %v10378_v24  ;;  %12148 = vst [vmem:[#allocation47_spill] sm:$0xff] %v10382_v17  ;;  %v10390_v33 = vsel %vm1050_vm2, %v10250_v58, 0.0  ;;  %v10394_v51 = vsel %vm1050_vm2, %v10252_v5, 0.0  ;;  %v10398_v29 = vsel %vm1050_vm2, %v10254_v37, 0.0  ;;  %v4627_v23 = vmul.f32 %v4595_v42, %v4595_v42 }
 0x3b0   : > { %12149 = vst [vmem:[#allocation44_spill] sm:$0xff] %v10386_v8  ;;  %12150 = vst [vmem:[#allocation35_spill] sm:$0xff] %v10390_v33  ;;  %v4547_v27 = vadd.f32 %v4546_v61, %v4545_v54  ;;  %v4628_v52 = vmul.f32 %v4596_v31, %v4596_v31  ;;  %v4629_v6 = vmul.f32 %v4597_v16, %v4597_v16 }
 0x3b1   : > { %12151 = vst [vmem:[#allocation37_spill] sm:$0xff] %v10394_v51  ;;  %12152 = vst [vmem:[#allocation55_spill] sm:$0xff] %v10398_v29  ;;  %v4630_v22 = vmul.f32 %v4598_v18, %v4598_v18  ;;  %v4631_v17 = vmul.f32 %v4599_v50, %v4599_v50  ;;  %v4632_v41 = vmul.f32 %v4600_v2, %v4600_v2 }
 0x3b2   : > { %v4549_v8 = vadd.f32 %v10266_v45, %v4547_v27  ;;  %v4633_v24 = vmul.f32 %v4601_v44, %v4601_v44  ;;  %v4634_v58 = vmul.f32 %v4602_v0, %v4602_v0  ;;  %v4635_v33 = vmul.f32 %v4603_v25, %v4603_v25 }
 0x3b3   : > { %v4636_v55 = vmul.f32 %v4604_v26, %v4604_v26  ;;  %v4637_v20 = vmul.f32 %v4605_v7, %v4605_v7  ;;  %v4638_v5 = vmul.f32 %v4606_v9, %v4606_v9  ;;  %v4639_v51 = vmul.f32 %v4607_v3, %v4607_v3 }
 0x3b4   : > { %v4551_v61 = vadd.f32 %v10269_v59, %v4549_v8  ;;  %v4640_v54 = vmul.f32 %v4608_v10, %v4608_v10  ;;  %v4641_v37 = vmul.f32 %v4609_v13, %v4609_v13  ;;  %v4642_v29 = vmul.f32 %v4610_v1, %v4610_v1 }
 0x3b5   : > { %v4643_v42 = vmul.f32 %v4611_v57, %v4611_v57  ;;  %v4644_v31 = vmul.f32 %v4612_v62, %v4612_v62  ;;  %v4645_v16 = vmul.f32 %v4613_v14, %v4613_v14  ;;  %v4646_v18 = vmul.f32 %v4614_v53, %v4614_v53 }
 0x3b6   : > { %v4553_v50 = vadd.f32 %v10272_v56, %v4551_v61  ;;  %v4647_v2 = vmul.f32 %v4615_v39, %v4615_v39  ;;  %v4659_v45 = vsel %vm1050_vm2, %v4627_v23, 0.0  ;;  %v4660_v44 = vsel %vm1050_vm2, %v4628_v52, 0.0  ;;  %v12156_v61 = vld [vmem:[#allocation87_spill] sm:$0xff] }
 0x3b7   : > { %v10405_v0 = vmul.f32 %v4616_v15, %v4616_v15  ;;  %v10407_v25 = vmul.f32 %v4617_v43, %v4617_v43  ;;  %v10409_v26 = vmul.f32 %v4618_v46, %v4618_v46  ;;  %v4661_v59 = vadd.f32 %v4660_v44, %v4659_v45  ;;  %v12160_v45 = vld [vmem:[#allocation34_spill] sm:$0xff] }
 0x3b8   : > { %v4555_v7 = vadd.f32 %v10275_v36, %v4553_v50  ;;  %v10412_v9 = vmul.f32 %v4619_v38, %v4619_v38  ;;  %v10414_v14 = vmul.f32 %v4620_v32, %v4620_v32  ;;  %v4662_v53 = vsel %vm1050_vm2, %v4629_v6, 0.0  ;;  %v12159_v50 = vld [vmem:[#allocation84_spill] sm:$0xff] }
 0x3b9   : > { %v10417_v56 = vmul.f32 %v4621_v12, %v4621_v12  ;;  %v10419_v3 = vmul.f32 %v4622_v60, %v4622_v60  ;;  %v10421_v10 = vmul.f32 %v4623_v19, %v4623_v19  ;;  %v4663_v15 = vadd.f32 %v4662_v53, %v4661_v59  ;;  %v12161_v59 = vld [vmem:[#allocation95_spill] sm:$0xff]  ;;  %v12162_v53 = vld [vmem:[#allocation57_spill] sm:$0xff] }
 0x3ba   : > { %v4557_v43 = vadd.f32 %v10278_v11, %v4555_v7  ;;  %v10424_v46 = vmul.f32 %v4624_v30, %v4624_v30  ;;  %v10426_v13 = vmul.f32 %v4625_v28, %v4625_v28  ;;  %v4664_v38 = vsel %vm1050_vm2, %v4630_v22, 0.0  ;;  %v12154_v22 = vld [vmem:[#allocation20_spill] sm:$0xff] }
 0x3bb   : > { %v10429_v36 = vmul.f32 %v4626_v47, %v4626_v47  ;;  %v4665_v32 = vadd.f32 %v4664_v38, %v4663_v15  ;;  %v4666_v1 = vsel %vm1050_vm2, %v4631_v17, 0.0  ;;  %v4668_v12 = vsel %vm1050_vm2, %v4632_v41, 0.0 }
 0x3bc   : > { %v4559_v57 = vadd.f32 %v10281_v63, %v4557_v43  ;;  %v4670_v19 = vsel %vm1050_vm2, %v4633_v24, 0.0  ;;  %v4672_v62 = vsel %vm1050_vm2, %v4634_v58, 0.0  ;;  %v4674_v30 = vsel %vm1050_vm2, %v4635_v33, 0.0  ;;  %v12155_v58 = vld [vmem:[#allocation78_spill] sm:$0xff] }
 0x3bd   : > { %v4667_v11 = vadd.f32 %v4666_v1, %v4665_v32  ;;  %v4676_v28 = vsel %vm1050_vm2, %v4636_v55, 0.0  ;;  %v4678_v39 = vsel %vm1050_vm2, %v4637_v20, 0.0  ;;  %v4680_v60 = vsel %vm1050_vm2, %v4638_v5, 0.0  ;;  %v12163_v43 = vld [vmem:[#allocation38_spill] sm:$0xff] }
 0x3be   : > { %v4561_v47 = vadd.f32 %v10284_v21, %v4559_v57  ;;  %v4682_v17 = vsel %vm1050_vm2, %v4639_v51, 0.0  ;;  %v10443_v8 = vsel %vm1050_vm2, %v4640_v54, 0.0  ;;  %v10446_v63 = vsel %vm1050_vm2, %v4641_v37, 0.0  ;;  %v12157_v37 = vld [vmem:[#allocation40_spill] sm:$0xff]  ;;  %v12164_v32 = vld [vmem:[#allocation50_spill] sm:$0xff] }
 0x3bf   : > { %v4669_v24 = vadd.f32 %v4668_v12, %v4667_v11  ;;  %v10449_v33 = vsel %vm1050_vm2, %v4642_v29, 0.0  ;;  %v10452_v55 = vsel %vm1050_vm2, %v4643_v42, 0.0  ;;  %v10455_v20 = vsel %vm1050_vm2, %v4644_v31, 0.0  ;;  %v12153_v29 = vld [vmem:[#allocation74_spill] sm:$0xff]  ;;  %v12158_v31 = vld [vmem:[#allocation75_spill] sm:$0xff] }
 0x3c0   : > { %v4563_v21 = vadd.f32 %v10287_v40, %v4561_v47  ;;  %v10459_v51 = vsel %vm1050_vm2, %v4645_v16, 0.0  ;;  %v10462_v27 = vsel %vm1050_vm2, %v4646_v18, 0.0  ;;  %v10465_v23 = vsel %vm1050_vm2, %v4647_v2, 0.0  ;;  %v12165_v57 = vld [vmem:[#allocation2_spill] sm:$0xff]  ;;  %v12167_v47 = vld [vmem:[#allocation51_spill] sm:$0xff] }
 0x3c1   : > { %v4671_v52 = vadd.f32 %v4670_v19, %v4669_v24  ;;  %v4729_v6 = vsub.f32 %v12153_v29, %v10091_v34  ;;  %v4730_v41 = vsub.f32 %v12154_v22, %v10091_v34  ;;  %v4731_v5 = vsub.f32 %v12155_v58, %v10091_v34  ;;  %v12169_v29 = vld [vmem:[#allocation56_spill] sm:$0xff] }
 0x3c2   : > { %v4565_v40 = vadd.f32 %v10290_v4, %v4563_v21  ;;  %v4732_v54 = vsub.f32 %v12156_v61, %v10091_v34  ;;  %v4733_v42 = vsub.f32 %v12157_v37, %v10091_v34  ;;  %v4734_v16 = vsub.f32 %v12158_v31, %v10091_v34  ;;  %v12168_v21 = vld [vmem:[#allocation41_spill] sm:$0xff]  ;;  %v12170_v58 = vld [vmem:[#allocation64_spill] sm:$0xff]  ;;  %v12172_v31 = vld [vmem:[#allocation59_spill] sm:$0xff] }
 0x3c3   : > { %v4673_v18 = vadd.f32 %v4672_v62, %v4671_v52  ;;  %v4735_v2 = vsub.f32 %v12159_v50, %v10091_v34  ;;  %v4736_v44 = vsub.f32 %v12160_v45, %v10091_v34  ;;  %v4737_v7 = vsub.f32 %v12161_v59, %v10091_v34  ;;  %v12166_v62 = vld [vmem:[#allocation100_spill] sm:$0xff]  ;;  %v12171_v61 = vld [vmem:[#allocation53_spill] sm:$0xff] }
 0x3c4   : > { %v4567_v4 = vadd.f32 %v10356_v48, %v4565_v40  ;;  %v4738_v15 = vsub.f32 %v12162_v53, %v10091_v34  ;;  %v4739_v38 = vsub.f32 %v12163_v43, %v10091_v34  ;;  %v4740_v1 = vsub.f32 %v12164_v32, %v10091_v34  ;;  %v12173_v50 = vld [vmem:[#allocation105_spill] sm:$0xff]  ;;  %v12175_v53 = vld [vmem:[#allocation103_spill] sm:$0xff] }
 0x3c5   : > { %v4675_v12 = vadd.f32 %v4674_v30, %v4673_v18  ;;  %v4741_v19 = vsub.f32 %v12165_v57, %v10091_v34  ;;  %v4742_v11 = vsub.f32 %v12166_v62, %v10091_v34  ;;  %v4743_v24 = vsub.f32 %v12167_v47, %v10091_v34  ;;  %v12174_v59 = vld [vmem:[#allocation109_spill] sm:$0xff]  ;;  %v12176_v32 = vld [vmem:[#allocation107_spill] sm:$0xff] }
 0x3c6   : > { %v4569_v48 = vadd.f32 %v10360_v49, %v4567_v4  ;;  %v4744_v52 = vsub.f32 %v12168_v21, %v10091_v34  ;;  %v4745_v22 = vsub.f32 %v12169_v29, %v10091_v34  ;;  %v4746_v30 = vsub.f32 %v12170_v58, %v10091_v34  ;;  %v12177_v57 = vld [vmem:[#allocation113_spill] sm:$0xff]  ;;  %v12179_v29 = vld [vmem:[#allocation111_spill] sm:$0xff] }
 0x3c7   : > { %v4677_v40 = vadd.f32 %v4676_v28, %v4675_v12  ;;  %v4747_v37 = vsub.f32 %v12171_v61, %v10091_v34  ;;  %v4748_v18 = vsub.f32 %v12172_v31, %v10091_v34  ;;  %v4749_v45 = vsub.f32 %v12173_v50, %v10091_v34  ;;  %v12178_v47 = vld [vmem:[#allocation117_spill] sm:$0xff]  ;;  %v12181_v61 = vld [vmem:[#allocation115_spill] sm:$0xff] }
 0x3c8   : > { %v4571_v49 = vadd.f32 %v10364_v35, %v4569_v48  ;;  %v4750_v4 = vsub.f32 %v12174_v59, %v10091_v34  ;;  %v4751_v43 = vsub.f32 %v12175_v53, %v10091_v34  ;;  %v4752_v28 = vsub.f32 %v12176_v32, %v10091_v34  ;;  %v12180_v48 = vld [vmem:[#allocation7_spill] sm:$0xff]  ;;  %v12182_v50 = vld [vmem:[#allocation121_spill] sm:$0xff] }
 0x3c9   : > { %v4679_v12 = vadd.f32 %v4678_v39, %v4677_v40  ;;  %v4753_v62 = vsub.f32 %v12177_v57, %v10091_v34  ;;  %v10523_v21 = vsub.f32 %v12178_v47, %v10091_v34  ;;  %v10527_v35 = vsub.f32 %v12179_v29, %v10091_v34  ;;  %v12183_v40 = vld [vmem:[#allocation125_spill] sm:$0xff]  ;;  %v12184_v57 = vld [vmem:[#allocation119_spill] sm:$0xff] }
 0x3ca   : > { %v4573_v58 = vadd.f32 %v12180_v48, %v4571_v49  ;;  %v10532_v31 = vsub.f32 %v12181_v61, %v10091_v34  ;;  %v10536_v39 = vsub.f32 %v12182_v50, %v10091_v34  ;;  %v10540_v59 = vsub.f32 %v12183_v40, %v10091_v34  ;;  %v12185_v47 = vld [vmem:[#allocation123_spill] sm:$0xff] }
 0x3cb   : > { %v4681_v53 = vadd.f32 %v4680_v60, %v4679_v12  ;;  %v10544_v32 = vsel %vm1050_vm2, %v10405_v0, 0.0  ;;  %v10548_v49 = vsub.f32 %v12184_v57, %v10091_v34  ;;  %v10552_v29 = vsub.f32 %v12185_v47, %v10091_v34  ;;  %v12186_v48 = vld [vmem:[#allocation15_spill] sm:$0xff]  ;;  %v12191_v57 = vld [vmem:[#allocation22_spill] sm:$0xff] }
 0x3cc   : > { %v4575_v61 = vadd.f32 %v12186_v48, %v4573_v58  ;;  %v10557_v50 = vsel %vm1050_vm2, %v10407_v25, 0.0  ;;  %v10561_v60 = vsel %vm1050_vm2, %v10409_v26, 0.0  ;;  %v10565_v0 = vsel %vm1050_vm2, %v10412_v9, 0.0  ;;  %v12196_v48 = vld [vmem:[#allocation47_spill] sm:$0xff] }
 0x3cd   : > { %12187 = vst [vmem:[#allocation89_spill] sm:$0xff] %v10565_v0  ;;  %v4683_v12 = vadd.f32 %v4682_v17, %v4681_v53  ;;  %v10569_v40 = vsel %vm1050_vm2, %v10414_v14, 0.0  ;;  %v10573_v58 = vsel %vm1050_vm2, %v10417_v56, 0.0  ;;  %v10577_v25 = vsel %vm1050_vm2, %v10419_v3, 0.0  ;;  %v12198_v0 = vld [vmem:[#allocation35_spill] sm:$0xff] }
 0x3ce   : > { %12188 = vst [vmem:[#allocation83_spill] sm:$0xff] %v10569_v40  ;;  %12189 = vst [vmem:[#allocation39_spill] sm:$0xff] %v10573_v58  ;;  %v4577_v26 = vadd.f32 %v12191_v57, %v4575_v61  ;;  %v10582_v47 = vsel %vm1050_vm2, %v10421_v10, 0.0  ;;  %v10586_v9 = vsel %vm1050_vm2, %v10424_v46, 0.0  ;;  %v10590_v14 = vsel %vm1050_vm2, %v10426_v13, 0.0  ;;  %v12197_v13 = vld [vmem:[#allocation44_spill] sm:$0xff] }
 0x3cf   : > { %12190 = vst [vmem:[#allocation16_spill] sm:$0xff] %v10577_v25  ;;  %12192 = vst [vmem:[#allocation21_spill] sm:$0xff] %v10582_v47  ;;  %v4685_v56 = vadd.f32 %v10443_v8, %v4683_v12  ;;  %v10595_v3 = vsel %vm1050_vm2, %v10429_v36, 0.0  ;;  %v4761_v17 = vmul.f32 %v4729_v6, %v4729_v6  ;;  %v4762_v53 = vmul.f32 %v4730_v41, %v4730_v41 }
 0x3d0   : > { %12193 = vst [vmem:[#allocation13_spill] sm:$0xff] %v10586_v9  ;;  %12194 = vst [vmem:[#allocation23_spill] sm:$0xff] %v10590_v14  ;;  %v4579_v61 = vadd.f32 %v12196_v48, %v4577_v26  ;;  %v4763_v10 = vmul.f32 %v4731_v5, %v4731_v5  ;;  %v4764_v57 = vmul.f32 %v4732_v54, %v4732_v54 }
 0x3d1   : > { %12195 = vst [vmem:[#allocation82_spill] sm:$0xff] %v10595_v3  ;;  %v4765_v47 = vmul.f32 %v4733_v42, %v4733_v42  ;;  %v4687_v46 = vadd.f32 %v10446_v63, %v4685_v56  ;;  %v4766_v9 = vmul.f32 %v4734_v16, %v4734_v16  ;;  %v4767_v25 = vmul.f32 %v4735_v2, %v4735_v2  ;;  %v12199_v56 = vld [vmem:[#allocation37_spill] sm:$0xff] }
 0x3d2   : > { %v4768_v58 = vmul.f32 %v4736_v44, %v4736_v44  ;;  %v4581_v14 = vadd.f32 %v12197_v13, %v4579_v61  ;;  %v4769_v40 = vmul.f32 %v4737_v7, %v4737_v7  ;;  %v4770_v8 = vmul.f32 %v4738_v15, %v4738_v15 }
 0x3d3   : > { %v4771_v12 = vmul.f32 %v4739_v38, %v4739_v38  ;;  %v4689_v36 = vadd.f32 %v10449_v33, %v4687_v46  ;;  %v4772_v3 = vmul.f32 %v4740_v1, %v4740_v1  ;;  %v4773_v6 = vmul.f32 %v4741_v19, %v4741_v19 }
 0x3d4   : > { %v4774_v41 = vmul.f32 %v4742_v11, %v4742_v11  ;;  %v4583_v26 = vadd.f32 %v12198_v0, %v4581_v14  ;;  %v4775_v5 = vmul.f32 %v4743_v24, %v4743_v24  ;;  %v4776_v54 = vmul.f32 %v4744_v52, %v4744_v52  ;;  %v12200_v24 = vld [vmem:[#allocation55_spill] sm:$0xff] }
 0x3d5   : > { %v4777_v42 = vmul.f32 %v4745_v22, %v4745_v22  ;;  %v4691_v63 = vadd.f32 %v10452_v55, %v4689_v36  ;;  %v4778_v16 = vmul.f32 %v4746_v30, %v4746_v30  ;;  %v4779_v2 = vmul.f32 %v4747_v37, %v4747_v37 }
 0x3d6   : > { %v4780_v44 = vmul.f32 %v4748_v18, %v4748_v18  ;;  %v4585_v48 = vadd.f32 %v12199_v56, %v4583_v26  ;;  %v4781_v7 = vmul.f32 %v4749_v45, %v4749_v45  ;;  %v4793_v15 = vsel %vm1050_vm2, %v4761_v17, 0.0 }
 0x3d7   : > { %v4794_v33 = vsel %vm1050_vm2, %v4762_v53, 0.0  ;;  %v4693_v38 = vadd.f32 %v10455_v20, %v4691_v63  ;;  %v4782_v1 = vmul.f32 %v4750_v4, %v4750_v4  ;;  %v10607_v19 = vmul.f32 %v4751_v43, %v4751_v43  ;;  %v12202_v63 = vld [vmem:[#allocation90_spill] sm:$0xff] }
 0x3d8   : > { %v4795_v11 = vadd.f32 %v4794_v33, %v4793_v15  ;;  %v4587_v52 = vadd.f32 %v12200_v24, %v4585_v48  ;;  %v10610_v22 = vmul.f32 %v4752_v28, %v4752_v28  ;;  %v10612_v55 = vmul.f32 %v4753_v62, %v4753_v62  ;;  %v12204_v48 = vld [vmem:[#allocation67_spill] sm:$0xff]  ;;  %v12205_v15 = vld [vmem:[#allocation28_spill] sm:$0xff] }
 0x3d9   : > { %v4796_v30 = vsel %vm1050_vm2, %v4763_v10, 0.0  ;;  %v4695_v37 = vadd.f32 %v10459_v51, %v4693_v38  ;;  %v10618_v18 = vmul.f32 %v10523_v21, %v10523_v21  ;;  %v10622_v20 = vmul.f32 %v10527_v35, %v10527_v35 }
 0x3da   : > { %v4797_v45 = vadd.f32 %v4796_v30, %v4795_v11  ;;  %v4588_v4 = vrot.slane %v4587_v52, 4  ;;  %v10626_v43 = vmul.f32 %v10532_v31, %v10532_v31  ;;  %v10630_v28 = vmul.f32 %v10536_v39, %v10536_v39  ;;  %v12207_v11 = vld [vmem:[#allocation92_spill] sm:$0xff] }
 0x3db   : > { %v4798_v51 = vsel %vm1050_vm2, %v4764_v57, 0.0  ;;  %v4697_v62 = vadd.f32 %v10462_v27, %v4695_v37  ;;  %v10636_v21 = vmul.f32 %v10540_v59, %v10540_v59  ;;  %v10640_v35 = vmul.f32 %v10548_v49, %v10548_v49  ;;  %v12209_v37 = vld [vmem:[#allocation77_spill] sm:$0xff] }
 0x3dc   : > { %v4799_v0 = vadd.f32 %v4798_v51, %v4797_v45  ;;  %v4589_v14 = vadd.f32 %v4588_v4, %v4587_v52  ;;  %v10644_v31 = vmul.f32 %v10552_v29, %v10552_v29  ;;  %v4800_v39 = vsel %vm1050_vm2, %v4765_v47, 0.0  ;;  %v12208_v52 = vld [vmem:[#allocation43_spill] sm:$0xff]  ;;  %v12210_v4 = vld [vmem:[#allocation93_spill] sm:$0xff] }
 0x3dd   : > { %v4802_v17 = vsel %vm1050_vm2, %v4766_v9, 0.0  ;;  %v4699_v27 = vadd.f32 %v10465_v23, %v4697_v62  ;;  %v4804_v59 = vsel %vm1050_vm2, %v4767_v25, 0.0  ;;  %v4806_v61 = vsel %vm1050_vm2, %v4768_v58, 0.0  ;;  %v12211_v62 = vld [vmem:[#allocation60_spill] sm:$0xff] }
 0x3de   : > { %v4801_v53 = vadd.f32 %v4800_v39, %v4799_v0  ;;  %v4590_v10 = vrot.slane %v4589_v14, 2  ;;  %v4808_v49 = vsel %vm1050_vm2, %v4769_v40, 0.0  ;;  %v4810_v57 = vsel %vm1050_vm2, %v4770_v8, 0.0 }
 0x3df   : > { %v4812_v46 = vsel %vm1050_vm2, %v4771_v12, 0.0  ;;  %v4701_v29 = vadd.f32 %v10544_v32, %v4699_v27  ;;  %v4814_v47 = vsel %vm1050_vm2, %v4772_v3, 0.0  ;;  %v4816_v9 = vsel %vm1050_vm2, %v4773_v6, 0.0 }
 0x3e0   : > { %v4803_v13 = vadd.f32 %v4802_v17, %v4801_v53  ;;  %v10657_v23 = vadd.f32 %v4590_v10, %v4589_v14  ;;  %v4818_v25 = vsel %vm1050_vm2, %v4774_v41, 0.0  ;;  %v10661_v58 = vsel %vm1050_vm2, %v4775_v5, 0.0  ;;  %v12212_v14 = vld [vmem:[#allocation80_spill] sm:$0xff]  ;;  %v12213_v17 = vld [vmem:[#allocation83_spill] sm:$0xff] }
 0x3e1   : > { %v10664_v40 = vsel %vm1050_vm2, %v4776_v54, 0.0  ;;  %v4703_v8 = vadd.f32 %v10557_v50, %v4701_v29  ;;  %v10668_v32 = vsel %vm1050_vm2, %v4777_v42, 0.0  ;;  %v10671_v3 = vsel %vm1050_vm2, %v4778_v16, 0.0  ;;  %v12201_v54 = vld [vmem:[#allocation33_spill] sm:$0xff]  ;;  %v12215_v10 = vld [vmem:[#allocation63_spill] sm:$0xff]  ;;  %v12216_v29 = vld [vmem:[#allocation54_spill] sm:$0xff] }
 0x3e2   : > { %v4805_v12 = vadd.f32 %v4804_v59, %v4803_v13  ;;  %v10674_v36 = vsel %vm1050_vm2, %v4779_v2, 0.0  ;;  %v10677_v6 = vsel %vm1050_vm2, %v4780_v44, 0.0  ;;  %v10680_v41 = vsel %vm1050_vm2, %v4781_v7, 0.0  ;;  %v12203_v44 = vld [vmem:[#allocation30_spill] sm:$0xff]  ;;  %v12214_v59 = vld [vmem:[#allocation48_spill] sm:$0xff] }
 0x3e3   : > { %v10683_v26 = vsel %vm1050_vm2, %v4782_v1, 0.0  ;;  %v4705_v50 = vadd.f32 %v10561_v60, %v4703_v8  ;;  %v4863_v42 = vsub.f32 %v12201_v54, %v10091_v34  ;;  %v4864_v16 = vsub.f32 %v12202_v63, %v10091_v34  ;;  %v12206_v60 = vld [vmem:[#allocation89_spill] sm:$0xff]  ;;  %v12217_v8 = vld [vmem:[#allocation66_spill] sm:$0xff]  ;;  %v12220_v63 = vld [vmem:[#allocation39_spill] sm:$0xff] }
 0x3e4   : > { %v4807_v5 = vadd.f32 %v4806_v61, %v4805_v12  ;;  %v4592_v2 = vrot.slane %v10657_v23, 1  ;;  %v4865_v56 = vsub.f32 %v12203_v44, %v10091_v34  ;;  %v4866_v7 = vsub.f32 %v12204_v48, %v10091_v34 }
 0x3e5   : > { %v10697_v33 = vsub.f32 %v12205_v15, %v10091_v34  ;;  %v4707_v38 = vadd.f32 %v12206_v60, %v4705_v50  ;;  %v4868_v24 = vsub.f32 %v12207_v11, %v10091_v34  ;;  %v4869_v30 = vsub.f32 %v12208_v52, %v10091_v34  ;;  %v12218_v50 = vld [vmem:[#allocation101_spill] sm:$0xff]  ;;  %v12221_v15 = vld [vmem:[#allocation102_spill] sm:$0xff]  ;;  %v12223_v11 = vld [vmem:[#allocation68_spill] sm:$0xff] }
 0x3e6   : > { %v4809_v1 = vadd.f32 %v4808_v49, %v4807_v5  ;;  %v4870_v45 = vsub.f32 %v12209_v37, %v10091_v34  ;;  %v4871_v51 = vsub.f32 %v12210_v4, %v10091_v34  ;;  %v4872_v0 = vsub.f32 %v12211_v62, %v10091_v34  ;;  %v12224_v37 = vld [vmem:[#allocation106_spill] sm:$0xff] }
 0x3e7   : > { %v10712_v39 = vsub.f32 %v12212_v14, %v10091_v34  ;;  %v4709_v27 = vadd.f32 %v12213_v17, %v4707_v38  ;;  %v10717_v61 = vsub.f32 %v12214_v59, %v10091_v34  ;;  %v10721_v49 = vsub.f32 %v12215_v10, %v10091_v34  ;;  %v12222_v38 = vld [vmem:[#allocation58_spill] sm:$0xff]  ;;  %v12228_v10 = vld [vmem:[#allocation108_spill] sm:$0xff] }
 0x3e8   : > { %v4811_v53 = vadd.f32 %v4810_v57, %v4809_v1  ;;  %v10725_v13 = vsub.f32 %v12216_v29, %v10091_v34  ;;  %v10729_v12 = vsub.f32 %v12217_v8, %v10091_v34  ;;  %v10733_v5 = vsub.f32 %v12218_v50, %v10091_v34  ;;  %v12219_v57 = vld [vmem:[#allocation61_spill] sm:$0xff]  ;;  %v12225_v62 = vld [vmem:[#allocation110_spill] sm:$0xff] }
 0x3e9   : > { %v10737_v54 = vsub.f32 %v12219_v57, %v10091_v34  ;;  %v4711_v44 = vadd.f32 %v12220_v63, %v4709_v27  ;;  %v10742_v60 = vsub.f32 %v12221_v15, %v10091_v34  ;;  %v10746_v1 = vsub.f32 %v12222_v38, %v10091_v34  ;;  %v12227_v27 = vld [vmem:[#allocation16_spill] sm:$0xff]  ;;  %v12229_v8 = vld [vmem:[#allocation114_spill] sm:$0xff]  ;;  %v10773_v57 = vpop.permute.xlu1 %6504 }
 0x3ea   : > { %v4813_v48 = vadd.f32 %v4812_v46, %v4811_v53  ;;  %v10750_v52 = vsub.f32 %v12223_v11, %v10091_v34  ;;  %v10754_v4 = vsub.f32 %v12224_v37, %v10091_v34  ;;  %v10758_v14 = vsub.f32 %v12225_v62, %v10091_v34  ;;  %v12226_v46 = vld [vmem:[#allocation104_spill] sm:$0xff]  ;;  %12230 = vst [vmem:[#allocation86_spill] sm:$0xff] %v10773_v57  ;;  %v12231_v63 = vld [vmem:[#allocation118_spill] sm:$0xff]  ;;  %v10791_v62 = vpop.permute.xlu0 %6499 }
 0x3eb   : > { %v10762_v17 = vsub.f32 %v12226_v46, %v10091_v34  ;;  %v4713_v53 = vadd.f32 %v12227_v27, %v4711_v44  ;;  %v10767_v29 = vsub.f32 %v12228_v10, %v10091_v34  ;;  %v10771_v50 = vsub.f32 %v12229_v8, %v10091_v34  ;;  %v12232_v38 = vld [vmem:[#allocation112_spill] sm:$0xff]  ;;  %v12236_v46 = vld [vmem:[#allocation21_spill] sm:$0xff]  ;;  %v12237_v8 = vld [vmem:[#allocation126_spill] sm:$0xff] }
 0x3ec   : > { %v4815_v59 = vadd.f32 %v4814_v47, %v4813_v48  ;;  %v10777_v15 = vsub.f32 %v12231_v63, %v10091_v34  ;;  %v10781_v11 = vsub.f32 %v12232_v38, %v10091_v34  ;;  %v12233_v47 = vld [vmem:[#allocation116_spill] sm:$0xff]  ;;  %v12234_v48 = vld [vmem:[#allocation122_spill] sm:$0xff]  ;;  %v10796_v63 = vsub.f32 %v12237_v8, %v10091_v34 }
 0x3ed   : > { %v10785_v44 = vsub.f32 %v12233_v47, %v10091_v34  ;;  %v10789_v37 = vsub.f32 %v12234_v48, %v10091_v34  ;;  %v4715_v27 = vadd.f32 %v12236_v46, %v4713_v53  ;;  %v12239_v38 = vld [vmem:[#allocation120_spill] sm:$0xff]  ;;  %v10804_v47 = vsel %vm1050_vm2, %v10607_v19, 0.0  ;;  %v12243_v46 = vld [vmem:[#allocation13_spill] sm:$0xff] }
 0x3ee   : > { %v4817_v10 = vadd.f32 %v4816_v9, %v4815_v59  ;;  %12238 = vst [vmem:[#allocation42_spill] sm:$0xff] %v10796_v63  ;;  %v10800_v57 = vsub.f32 %v12239_v38, %v10091_v34  ;;  %v10808_v48 = vsel %vm1050_vm2, %v10610_v22, 0.0  ;;  %v10812_v53 = vsel %vm1050_vm2, %v10612_v55, 0.0  ;;  %v12241_v9 = vld [vmem:[#allocation124_spill] sm:$0xff]  ;;  %v10827_v22 = vpop.permute.xlu1 %6514 }
 0x3ef   : > { %12235 = vst [vmem:[#allocation45_spill] sm:$0xff] %v10789_v37  ;;  %v10816_v59 = vsub.f32 %v12241_v9, %v10091_v34  ;;  %v4717_v8 = vadd.f32 %v12243_v46, %v4715_v27  ;;  %v10825_v19 = vsel %vm1050_vm2, %v10622_v20, 0.0  ;;  %v10831_v55 = vsel %vm1050_vm2, %v10626_v43, 0.0  ;;  %v10845_v20 = vpop.permute.xlu0 %6509  ;;  %v12247_v37 = vld [vmem:[#allocation82_spill] sm:$0xff] }
 0x3f0   : > { %12240 = vst [vmem:[#allocation85_spill] sm:$0xff] %v10800_v57  ;;  %v4819_v38 = vadd.f32 %v4818_v25, %v4817_v10  ;;  %v10821_v57 = vsel %vm1050_vm2, %v10618_v18, 0.0  ;;  %v10835_v34 = vsel %vm1050_vm2, %v10630_v28, 0.0  ;;  %v10839_v25 = vsel %vm1050_vm2, %v10636_v21, 0.0  ;;  %v12246_v10 = vld [vmem:[#allocation23_spill] sm:$0xff] }
 0x3f1   : > { %12242 = vst [vmem:[#allocation19_spill] sm:$0xff] %v10816_v59  ;;  %12244 = vst [vmem:[#allocation12_spill] sm:$0xff] %v10839_v25  ;;  %v10843_v18 = vsel %vm1050_vm2, %v10640_v35, 0.0  ;;  %v10848_v27 = vadd.f32 %v4592_v2, %v10657_v23  ;;  %v4719_v43 = vadd.f32 %v12246_v10, %v4717_v8  ;;  %v10854_v28 = vsel %vm1050_vm2, %v10644_v31, 0.0 }
 0x3f2   : > { %12245 = vst [vmem:[#allocation24_spill] sm:$0xff] %v10843_v18  ;;  %v4821_v9 = vadd.f32 %v10661_v58, %v4819_v38  ;;  %v4895_v46 = vmul.f32 %v4863_v42, %v4863_v42  ;;  %v4896_v21 = vmul.f32 %v4864_v16, %v4864_v16  ;;  %v4897_v59 = vmul.f32 %v4865_v56, %v4865_v56  ;;  %v10860_v25 = vpop.permute.xlu1 %6524 }
 0x3f3   : > { %v4898_v63 = vmul.f32 %v4866_v7, %v4866_v7  ;;  %v4721_v35 = vadd.f32 %v12247_v37, %v4719_v43  ;;  %v4899_v23 = vmul.f32 %v10697_v33, %v10697_v33  ;;  %v4900_v2 = vmul.f32 %v4868_v24, %v4868_v24  ;;  %v10862_v31 = vpop.permute.xlu0 %6519 }
 0x3f4   : > { %v4823_v18 = vadd.f32 %v10664_v40, %v4821_v9  ;;  %v4901_v8 = vmul.f32 %v4869_v30, %v4869_v30  ;;  %v4902_v58 = vmul.f32 %v4870_v45, %v4870_v45  ;;  %v4903_v38 = vmul.f32 %v4871_v51, %v4871_v51 }
 0x3f5   : > { %v4904_v10 = vmul.f32 %v4872_v0, %v4872_v0  ;;  %v4722_v42 = vrot.slane %v4721_v35, 4  ;;  %v4905_v56 = vmul.f32 %v10712_v39, %v10712_v39  ;;  %v4906_v40 = vmul.f32 %v10717_v61, %v10717_v61 }
 0x3f6   : > { %v4825_v16 = vadd.f32 %v10668_v32, %v4823_v18  ;;  %v4907_v7 = vmul.f32 %v10721_v49, %v10721_v49  ;;  %v4908_v33 = vmul.f32 %v10725_v13, %v10725_v13  ;;  %v4909_v24 = vmul.f32 %v10729_v12, %v10729_v12 }
 0x3f7   : > { %v4910_v30 = vmul.f32 %v10733_v5, %v10733_v5  ;;  %v4723_v45 = vadd.f32 %v4722_v42, %v4721_v35  ;;  %v4911_v51 = vmul.f32 %v10737_v54, %v10737_v54  ;;  %v4912_v0 = vmul.f32 %v10742_v60, %v10742_v60  ;;  %v10893_v60 = vpop.permute.xlu1 %6534  ;;  %v10901_v18 = vpop.permute.xlu0 %6529 }
 0x3f8   : > { %v4827_v32 = vadd.f32 %v10671_v3, %v4825_v16  ;;  %v4913_v39 = vmul.f32 %v10746_v1, %v10746_v1  ;;  %v4914_v61 = vmul.f32 %v10750_v52, %v10750_v52  ;;  %v4915_v49 = vmul.f32 %v10754_v4, %v10754_v4 }
 0x3f9   : > { %v4927_v13 = vsel %vm1050_vm2, %v4895_v46, 0.0  ;;  %v4724_v12 = vrot.slane %v4723_v45, 2  ;;  %v4916_v5 = vmul.f32 %v10758_v14, %v10758_v14  ;;  %v4928_v54 = vsel %vm1050_vm2, %v4896_v21, 0.0 }
 0x3fa   : > { %v4829_v3 = vadd.f32 %v10674_v36, %v4827_v32  ;;  %v4917_v1 = vmul.f32 %v10762_v17, %v10762_v17  ;;  %v4918_v52 = vmul.f32 %v10767_v29, %v10767_v29  ;;  %v4919_v4 = vmul.f32 %v10771_v50, %v10771_v50 }
 0x3fb   : > { %v4929_v37 = vadd.f32 %v4928_v54, %v4927_v13  ;;  %v4725_v36 = vadd.f32 %v4724_v12, %v4723_v45  ;;  %v4920_v14 = vmul.f32 %v10777_v15, %v10777_v15  ;;  %v4930_v9 = vsel %vm1050_vm2, %v4897_v59, 0.0  ;;  %v10925_v13 = vpop.permute.xlu1 %6544 }
 0x3fc   : > { %v4831_v43 = vadd.f32 %v10677_v6, %v4829_v3  ;;  %v10909_v17 = vmul.f32 %v10781_v11, %v10781_v11  ;;  %v10913_v29 = vmul.f32 %v10785_v44, %v10785_v44  ;;  %v4932_v46 = vsel %vm1050_vm2, %v4898_v63, 0.0 }
 0x3fd   : > { %v4931_v50 = vadd.f32 %v4930_v9, %v4929_v37  ;;  %v4726_v21 = vrot.slane %v4725_v36, 1  ;;  %v4934_v6 = vsel %vm1050_vm2, %v4899_v23, 0.0  ;;  %v4936_v15 = vsel %vm1050_vm2, %v4900_v2, 0.0 }
 0x3fe   : > { %v4833_v35 = vadd.f32 %v10680_v41, %v4831_v43  ;;  %v4938_v59 = vsel %vm1050_vm2, %v4901_v8, 0.0  ;;  %v4940_v11 = vsel %vm1050_vm2, %v4902_v58, 0.0  ;;  %v4942_v16 = vsel %vm1050_vm2, %v4903_v38, 0.0  ;;  %v10934_v58 = vpop.permute.xlu0 %6539 }
 0x3ff   : > { %v4933_v42 = vadd.f32 %v4932_v46, %v4931_v50  ;;  %v4727_v45 = vadd.f32 %v4726_v21, %v4725_v36  ;;  %v4944_v32 = vsel %vm1050_vm2, %v4904_v10, 0.0  ;;  %v4946_v63 = vsel %vm1050_vm2, %v4905_v56, 0.0  ;;  %v12249_v50 = vld [vmem:[#allocation127_spill] sm:$0xff]  ;;  %v12250_v21 = vld [vmem:[#allocation98_spill] sm:$0xff] }
 0x400   : > { %v4835_v44 = vadd.f32 %v10683_v26, %v4833_v35  ;;  %v4948_v23 = vsel %vm1050_vm2, %v4906_v40, 0.0  ;;  %v10929_v2 = vsel %vm1050_vm2, %v4907_v7, 0.0  ;;  %v10932_v8 = vsel %vm1050_vm2, %v4908_v33, 0.0 }
 0x401   : > { %v4935_v41 = vadd.f32 %v4934_v6, %v4933_v42  ;;  %v10937_v38 = vadd.f32 %v4727_v45, %v10848_v27  ;;  %v10941_v10 = vsel %vm1050_vm2, %v4909_v24, 0.0  ;;  %v10944_v56 = vsel %vm1050_vm2, %v4910_v30, 0.0  ;;  %v12251_v6 = vld [vmem:[#allocation129_spill] sm:$0xff] }
 0x402   : > { %v4837_v26 = vadd.f32 %v10804_v47, %v4835_v44  ;;  %v10947_v7 = vsel %vm1050_vm2, %v4911_v51, 0.0  ;;  %v10950_v33 = vsel %vm1050_vm2, %v4912_v0, 0.0  ;;  %v10953_v12 = vsel %vm1050_vm2, %v4913_v39, 0.0  ;;  %v10983_v9 = vpop.permute.xlu0 %6549 }
 0x403   : > { %v4937_v40 = vadd.f32 %v4936_v15, %v4935_v41  ;;  %v10957_v47 = vsel %vm1050_vm2, %v4914_v61, 0.0  ;;  %v10960_v24 = vsel %vm1050_vm2, %v4915_v49, 0.0  ;;  %v10963_v30 = vsel %vm1050_vm2, %v4916_v5, 0.0  ;;  %v12248_v61 = vld [vmem:[#allocation86_spill] sm:$0xff]  ;;  %v10978_v5 = vpop.permute.xlu1 %6554  ;;  %v12254_v41 = vld [vmem:[#allocation52_spill] sm:$0xff] }
 0x404   : > { %v4839_v27 = vadd.f32 %v10808_v48, %v4837_v26  ;;  %v10966_v51 = vsel %vm1050_vm2, %v4917_v1, 0.0  ;;  %v10969_v0 = vsel %vm1050_vm2, %v4918_v52, 0.0  ;;  %v10972_v39 = vsel %vm1050_vm2, %v4919_v4, 0.0 }
 0x405   : > { %v4939_v3 = vadd.f32 %v4938_v59, %v4937_v40  ;;  %v6507_v54 = vunpack.i.h.bf16 %v12248_v61  ;;  %v6506_v49 = vunpack.i.l.bf16 %v12248_v61  ;;  %v6502_v37 = vunpack.i.h.bf16 %v10791_v62  ;;  %v12256_v61 = vld [vmem:[#allocation10_spill] sm:$0xff] }
 0x406   : > { %v4841_v48 = vadd.f32 %v10812_v53, %v4839_v27  ;;  %v6501_v1 = vunpack.i.l.bf16 %v10791_v62  ;;  %v6517_v43 = vunpack.i.h.bf16 %v10827_v22  ;;  %v6516_v52 = vunpack.i.l.bf16 %v10827_v22  ;;  %v12252_v22 = vld [vmem:[#allocation128_spill] sm:$0xff] }
 0x407   : > { %v4941_v36 = vadd.f32 %v4940_v11, %v4939_v3  ;;  %v10987_v53 = vsel %vm1050_vm2, %v4920_v14, 0.0  ;;  %v10991_v46 = vsel %vm1124_vm4, %v12249_v50, %v6507_v54  ;;  %v10995_v35 = vsel %vm1124_vm4, %v12250_v21, %v6506_v49  ;;  %v11029_v54 = vpop.permute.xlu1 %6564 }
 0x408   : > { %v4843_v4 = vadd.f32 %v10821_v57, %v4841_v48  ;;  %v10999_v15 = vsel %vm1124_vm4, %v12251_v6, %v6501_v1  ;;  %v11003_v42 = vsel %vm1124_vm4, %v12252_v22, %v6502_v37  ;;  %v12253_v57 = vld [vmem:[#allocation96_spill] sm:$0xff]  ;;  %v6512_v11 = vunpack.i.h.bf16 %v10845_v20  ;;  %v12255_v48 = vld [vmem:[#allocation6_spill] sm:$0xff]  ;;  %v12259_v1 = vld [vmem:[#allocation11_spill] sm:$0xff] }
 0x409   : > { %v4943_v62 = vadd.f32 %v4942_v16, %v4941_v36  ;;  %v11007_v14 = vsel %vm1124_vm4, %v12253_v57, %v6517_v43  ;;  %v6511_v45 = vunpack.i.l.bf16 %v10845_v20  ;;  %v6527_v16 = vunpack.i.h.bf16 %v10860_v25  ;;  %v12257_v37 = vld [vmem:[#allocation130_spill] sm:$0xff]  ;;  %v12258_v36 = vld [vmem:[#allocation17_spill] sm:$0xff]  ;;  %v12260_v22 = vld [vmem:[#allocation12_spill] sm:$0xff] }
 0x40a   : > { %v4845_v59 = vadd.f32 %v10825_v19, %v4843_v4  ;;  %v11015_v26 = vsel %vm1124_vm4, %v12254_v41, %v6516_v52  ;;  %v6526_v40 = vunpack.i.l.bf16 %v10860_v25  ;;  %v6522_v27 = vunpack.i.h.bf16 %v10862_v31  ;;  %v11044_v52 = vpop.permute.xlu0 %6559 }
 0x40b   : > { %v4945_v44 = vadd.f32 %v4944_v32, %v4943_v62  ;;  %v11022_v19 = vsel %vm1124_vm4, %v12255_v48, %v6511_v45  ;;  %v11026_v20 = vsel %vm1124_vm4, %v12256_v61, %v6512_v11  ;;  %v6521_v32 = vunpack.i.l.bf16 %v10862_v31  ;;  %v12265_v48 = vld [vmem:[#allocation134_spill] sm:$0xff] }
 0x40c   : > { %v4847_v3 = vadd.f32 %v10831_v55, %v4845_v59  ;;  %v11033_v25 = vsel %vm1124_vm4, %v12257_v37, %v6527_v16  ;;  %v11037_v55 = vsel %vm1124_vm4, %v12258_v36, %v6526_v40  ;;  %v11041_v43 = vsel %vm1124_vm4, %v12259_v1, %v6522_v27  ;;  %v12261_v59 = vld [vmem:[#allocation131_spill] sm:$0xff]  ;;  %v12264_v40 = vld [vmem:[#allocation24_spill] sm:$0xff]  ;;  %v12284_v31 = vld [vmem:[#allocation42_spill] sm:$0xff] }
 0x40d   : > { %v4947_v49 = vadd.f32 %v4946_v63, %v4945_v44  ;;  %v6537_v63 = vunpack.i.h.bf16 %v10893_v60  ;;  %v6536_v21 = vunpack.i.l.bf16 %v10893_v60  ;;  %v6532_v62 = vunpack.i.h.bf16 %v10901_v18  ;;  %v12263_v44 = vld [vmem:[#allocation133_spill] sm:$0xff]  ;;  %v12266_v36 = vld [vmem:[#allocation135_spill] sm:$0xff] }
 0x40e   : > { %v4849_v4 = vadd.f32 %v10835_v34, %v4847_v3  ;;  %v6531_v6 = vunpack.i.l.bf16 %v10901_v18  ;;  %v6547_v11 = vunpack.i.h.bf16 %v10925_v13  ;;  %v12262_v18 = vld [vmem:[#allocation132_spill] sm:$0xff] }
 0x40f   : > { %v4949_v50 = vadd.f32 %v4948_v23, %v4947_v49  ;;  %v5452_v34 = vsel %vm5448_vm6, %v12261_v59, %v6537_v63  ;;  %v6546_v23 = vunpack.i.l.bf16 %v10925_v13  ;;  %v5451_v16 = vsel %vm5448_vm6, %v12262_v18, %v6536_v21  ;;  %v11069_v13 = vpop.permute.xlu1 %6574 }
 0x410   : > { %v4851_v57 = vadd.f32 %v12260_v22, %v4849_v4  ;;  %v6121_v45 = vpack.c.bf16 %v5452_v34, %v5452_v34  ;;  %v5449_v41 = vsel %vm5448_vm6, %v12263_v44, %v6531_v6  ;;  %v6120_v3 = vpack.c.bf16 %v5451_v16, %v5451_v16  ;;  %v12267_v4 = vld [vmem:[#allocation136_spill] sm:$0xff]  ;;  %v12270_v16 = vld [vmem:[#allocation138_spill] sm:$0xff] }
 0x411   : > { %v4951_v60 = vadd.f32 %v10929_v2, %v4949_v50  ;;  %v5450_v61 = vsel %vm5448_vm6, %v12265_v48, %v6532_v62  ;;  %v6118_v49 = vpack.c.bf16 %v5449_v41, %v5449_v41  ;;  %v5456_v1 = vsel %vm5448_vm6, %v12266_v36, %v6547_v11  ;;  %v11078_v50 = vpop.permute.xlu0 %6569 }
 0x412   : > { %v4853_v27 = vadd.f32 %v12264_v40, %v4851_v57  ;;  %5613 = vst.msk [vmem:[%s11055_s11 + $0xc] sm:$0xf] %vm5609_vm7, %v6121_v45  ;;  %v6119_v37 = vpack.c.bf16 %v5450_v61, %v5450_v61  ;;  %v5455_v63 = vsel %vm5448_vm6, %v12267_v4, %v6546_v23  ;;  %5612 = vst.msk [vmem:[%s11055_s11 + $0x8] sm:$0xf] %vm5609_vm7, %v6120_v3  ;;  %v6542_v6 = vunpack.i.h.bf16 %v10934_v58  ;;  %v12271_v3 = vld [vmem:[#allocation70_spill] sm:$0xff] }
 0x413   : > { %v4953_v2 = vadd.f32 %v10932_v8, %v4951_v60  ;;  %5610 = vst.msk [vmem:[%s11055_s11] sm:$0xf] %vm5609_vm7, %v6118_v49  ;;  %v6125_v8 = vpack.c.bf16 %v5456_v1, %v5456_v1  ;;  %v6124_v62 = vpack.c.bf16 %v5455_v63, %v5455_v63  ;;  %v6541_v57 = vunpack.i.l.bf16 %v10934_v58  ;;  %v12269_v58 = vld [vmem:[#allocation137_spill] sm:$0xff]  ;;  %v11107_v61 = vpop.permute.xlu1 %6584  ;;  %v12272_v49 = vld [vmem:[#allocation99_spill] sm:$0xff] }
 0x414   : > { %v4855_v21 = vadd.f32 %v10854_v28, %v4853_v27  ;;  %5611 = vst.msk [vmem:[%s11055_s11 + $0x4] sm:$0xf] %vm5609_vm7, %v6119_v37  ;;  %v6557_v59 = vunpack.i.h.bf16 %v10978_v5  ;;  %v6556_v34 = vunpack.i.l.bf16 %v10978_v5  ;;  %v12268_v28 = vld [vmem:[#allocation91_spill] sm:$0xff]  ;;  %v6552_v60 = vunpack.i.h.bf16 %v10983_v9  ;;  %v12273_v37 = vld [vmem:[#allocation97_spill] sm:$0xff] }
 0x415   : > { %v4955_v22 = vadd.f32 %v10941_v10, %v4953_v2  ;;  %5617 = vst.msk [vmem:[%s11055_s11 + $0x1c] sm:$0xf] %vm5609_vm7, %v6125_v8  ;;  %5616 = vst.msk [vmem:[%s11055_s11 + $0x18] sm:$0xf] %vm5609_vm7, %v6124_v62  ;;  %v5454_v23 = vsel %vm5448_vm6, %v12268_v28, %v6542_v6  ;;  %v6551_v10 = vunpack.i.l.bf16 %v10983_v9  ;;  %v5453_v18 = vsel %vm5448_vm6, %v12269_v58, %v6541_v57  ;;  %v11116_v1 = vpop.permute.xlu0 %6579 }
 0x416   : > { %v4856_v11 = vrot.slane %v4855_v21, 4  ;;  %v6123_v5 = vpack.c.bf16 %v5454_v23, %v5454_v23  ;;  %v5460_v44 = vsel %vm5448_vm6, %v12270_v16, %v6557_v59  ;;  %v6122_v40 = vpack.c.bf16 %v5453_v18, %v5453_v18  ;;  %v12274_v59 = vld [vmem:[#allocation69_spill] sm:$0xff]  ;;  %v12275_v23 = vld [vmem:[#allocation3_spill] sm:$0xff]  ;;  %v12277_v18 = vld [vmem:[#allocation76_spill] sm:$0xff] }
 0x417   : > { %v4957_v45 = vadd.f32 %v10944_v56, %v4955_v22  ;;  %v6129_v27 = vpack.c.bf16 %v5460_v44, %v5460_v44  ;;  %v5459_v48 = vsel %vm5448_vm6, %v12271_v3, %v6556_v34  ;;  %v5457_v2 = vsel %vm5448_vm6, %v12272_v49, %v6551_v10  ;;  %v6595_v44 = vpop.permute.xlu1 %6594 }
 0x418   : > { %v4857_v41 = vadd.f32 %v4856_v11, %v4855_v21  ;;  %5615 = vst.msk [vmem:[%s11055_s11 + $0x14] sm:$0xf] %vm5609_vm7, %v6123_v5  ;;  %v6128_v9 = vpack.c.bf16 %v5459_v48, %v5459_v48  ;;  %v5458_v36 = vsel %vm5448_vm6, %v12273_v37, %v6552_v60  ;;  %5614 = vst.msk [vmem:[%s11055_s11 + $0x10] sm:$0xf] %vm5609_vm7, %v6122_v40  ;;  %v6567_v21 = vunpack.i.h.bf16 %v11029_v54  ;;  %v12276_v60 = vld [vmem:[#allocation81_spill] sm:$0xff] }
 0x419   : > { %v4959_v56 = vadd.f32 %v10947_v7, %v4957_v45  ;;  %5621 = vst.msk [vmem:[%s11055_s11 + $0x2c] sm:$0xf] %vm5609_vm7, %v6129_v27  ;;  %v6126_v63 = vpack.c.bf16 %v5457_v2, %v5457_v2  ;;  %v6127_v7 = vpack.c.bf16 %v5458_v36, %v5458_v36  ;;  %v6566_v62 = vunpack.i.l.bf16 %v11029_v54  ;;  %v12279_v27 = vld [vmem:[#allocation5_spill] sm:$0xff]  ;;  %v6590_v48 = vpop.permute.xlu0 %6589 }
 0x41a   : > { %v4858_v4 = vrot.slane %v4857_v41, 2  ;;  %5620 = vst.msk [vmem:[%s11055_s11 + $0x28] sm:$0xf] %vm5609_vm7, %v6128_v9  ;;  %v6562_v6 = vunpack.i.h.bf16 %v11044_v52  ;;  %v6561_v22 = vunpack.i.l.bf16 %v11044_v52  ;;  %v5464_v34 = vsel %vm5448_vm6, %v12274_v59, %v6567_v21 }
 0x41b   : > { %v4961_v8 = vadd.f32 %v10950_v33, %v4959_v56  ;;  %5618 = vst.msk [vmem:[%s11055_s11 + $0x20] sm:$0xf] %vm5609_vm7, %v6126_v63  ;;  %5619 = vst.msk [vmem:[%s11055_s11 + $0x24] sm:$0xf] %vm5609_vm7, %v6127_v7  ;;  %v6577_v11 = vunpack.i.h.bf16 %v11069_v13  ;;  %v6576_v33 = vunpack.i.l.bf16 %v11069_v13  ;;  %v6133_v54 = vpack.c.bf16 %v5464_v34, %v5464_v34  ;;  %v12280_v7 = vld [vmem:[#allocation4_spill] sm:$0xff]  ;;  %v6605_v34 = vpop.permute.xlu1 %6604 }
 0x41c   : > { %v4859_v57 = vadd.f32 %v4858_v4, %v4857_v41  ;;  %v5463_v52 = vsel %vm5448_vm6, %v12275_v23, %v6566_v62  ;;  %v5461_v10 = vsel %vm5448_vm6, %v12276_v60, %v6561_v22  ;;  %v5462_v5 = vsel %vm5448_vm6, %v12277_v18, %v6562_v6  ;;  %v12278_v41 = vld [vmem:[#allocation14_spill] sm:$0xff]  ;;  %v12281_v62 = vld [vmem:[#allocation9_spill] sm:$0xff] }
 0x41d   : > { %v4963_v28 = vadd.f32 %v10953_v12, %v4961_v8  ;;  %v6132_v58 = vpack.c.bf16 %v5463_v52, %v5463_v52  ;;  %v6130_v16 = vpack.c.bf16 %v5461_v10, %v5461_v10  ;;  %5625 = vst.msk [vmem:[%s11055_s11 + $0x3c] sm:$0xf] %vm5609_vm7, %v6133_v54  ;;  %v6131_v12 = vpack.c.bf16 %v5462_v5, %v5462_v5 }
 0x41e   : > { %v4860_v45 = vrot.slane %v4859_v57, 1  ;;  %v5468_v40 = vsel %vm5448_vm6, %v12278_v41, %v6577_v11  ;;  %v5467_v3 = vsel %vm5448_vm6, %v12279_v27, %v6576_v33  ;;  %v6571_v37 = vunpack.i.l.bf16 %v11078_v50 }
 0x41f   : > { %v4965_v13 = vadd.f32 %v10957_v47, %v4963_v28  ;;  %5624 = vst.msk [vmem:[%s11055_s11 + $0x38] sm:$0xf] %vm5609_vm7, %v6132_v58  ;;  %5622 = vst.msk [vmem:[%s11055_s11 + $0x30] sm:$0xf] %vm5609_vm7, %v6130_v16  ;;  %v6137_v9 = vpack.c.bf16 %v5468_v40, %v5468_v40  ;;  %v6136_v49 = vpack.c.bf16 %v5467_v3, %v5467_v3  ;;  %v6572_v47 = vunpack.i.h.bf16 %v11078_v50  ;;  %v6600_v28 = vpop.permute.xlu0 %6599  ;;  %v12283_v3 = vld [vmem:[#allocation8_spill] sm:$0xff] }
 0x420   : > { %v4861_v56 = vadd.f32 %v4860_v45, %v4859_v57  ;;  %5623 = vst.msk [vmem:[%s11055_s11 + $0x34] sm:$0xf] %vm5609_vm7, %v6131_v12  ;;  %v6587_v36 = vunpack.i.h.bf16 %v11107_v61  ;;  %v6586_v4 = vunpack.i.l.bf16 %v11107_v61  ;;  %v6581_v8 = vunpack.i.l.bf16 %v11116_v1 }
 0x421   : > { %v4967_v2 = vadd.f32 %v10960_v24, %v4965_v13  ;;  %5629 = vst.msk [vmem:[%s11055_s11 + $0x4c] sm:$0xf] %vm5609_vm7, %v6137_v9  ;;  %5628 = vst.msk [vmem:[%s11055_s11 + $0x48] sm:$0xf] %vm5609_vm7, %v6136_v49  ;;  %v5466_v21 = vsel %vm5448_vm6, %v12280_v7, %v6572_v47  ;;  %v6582_v24 = vunpack.i.h.bf16 %v11116_v1  ;;  %v6597_v54 = vunpack.i.h.bf16 %v6595_v44 }
 0x422   : > { %v11163_v63 = vadd.f32 %v4861_v56, %v10937_v38  ;;  %v5465_v38 = vsel %vm5448_vm6, %v12281_v62, %v6571_v37  ;;  %v6135_v61 = vpack.c.bf16 %v5466_v21, %v5466_v21  ;;  %v5472_v6 = vsel %vm5448_vm6, %v10991_v46, %v6587_v36 }
 0x423   : > { %v4969_v50 = vadd.f32 %v10963_v30, %v4967_v2  ;;  %v6134_v22 = vpack.c.bf16 %v5465_v38, %v5465_v38  ;;  %v6141_v57 = vpack.c.bf16 %v5472_v6, %v5472_v6  ;;  %v5471_v59 = vsel %vm5448_vm6, %v10995_v35, %v6586_v4  ;;  %v12285_v2 = vld [vmem:[#allocation85_spill] sm:$0xff]  ;;  %v12286_v4 = vld [vmem:[#allocation19_spill] sm:$0xff] }
 0x424   : > { %v5469_v1 = vsel %vm5448_vm6, %v10999_v15, %v6581_v8  ;;  %5627 = vst.msk [vmem:[%s11055_s11 + $0x44] sm:$0xf] %vm5609_vm7, %v6135_v61  ;;  %v6140_v11 = vpack.c.bf16 %v5471_v59, %v5471_v59  ;;  %v5470_v46 = vsel %vm5448_vm6, %v11003_v42, %v6582_v24  ;;  %v6596_v15 = vunpack.i.l.bf16 %v6595_v44 }
 0x425   : > { %v4971_v30 = vadd.f32 %v10966_v51, %v4969_v50  ;;  %v6138_v33 = vpack.c.bf16 %v5469_v1, %v5469_v1  ;;  %5626 = vst.msk [vmem:[%s11055_s11 + $0x40] sm:$0xf] %vm5609_vm7, %v6134_v22  ;;  %5633 = vst.msk [vmem:[%s11055_s11 + $0x5c] sm:$0xf] %vm5609_vm7, %v6141_v57  ;;  %v6139_v35 = vpack.c.bf16 %v5470_v46, %v5470_v46  ;;  %v6592_v23 = vunpack.i.h.bf16 %v6590_v48 }
 0x426   : > { %5632 = vst.msk [vmem:[%s11055_s11 + $0x58] sm:$0xf] %vm5609_vm7, %v6140_v11  ;;  %v6591_v51 = vunpack.i.l.bf16 %v6590_v48  ;;  %v6607_v60 = vunpack.i.h.bf16 %v6605_v34  ;;  %v6606_v42 = vunpack.i.l.bf16 %v6605_v34  ;;  %v5476_v10 = vsel %vm5448_vm6, %v11007_v14, %v6597_v54 }
 0x427   : > { %v4973_v52 = vadd.f32 %v10969_v0, %v4971_v30  ;;  %5630 = vst.msk [vmem:[%s11055_s11 + $0x50] sm:$0xf] %vm5609_vm7, %v6138_v33  ;;  %5631 = vst.msk [vmem:[%s11055_s11 + $0x54] sm:$0xf] %vm5609_vm7, %v6139_v35  ;;  %v5475_v45 = vsel %vm5448_vm6, %v11015_v26, %v6596_v15  ;;  %v5474_v0 = vsel %vm5448_vm6, %v11026_v20, %v6592_v23  ;;  %v6602_v58 = vunpack.i.h.bf16 %v6600_v28 }
 0x428   : > { %v6145_v5 = vpack.c.bf16 %v5476_v10, %v5476_v10  ;;  %v6144_v16 = vpack.c.bf16 %v5475_v45, %v5475_v45  ;;  %v5473_v44 = vsel %vm5448_vm6, %v11022_v19, %v6591_v51  ;;  %v6143_v12 = vpack.c.bf16 %v5474_v0, %v5474_v0  ;;  %v12282_v19 = vld [vmem:[#allocation45_spill] sm:$0xff] }
 0x429   : > { %v4975_v18 = vadd.f32 %v10972_v39, %v4973_v52  ;;  %v6142_v13 = vpack.c.bf16 %v5473_v44, %v5473_v44  ;;  %v5479_v14 = vsel %vm5448_vm6, %v11037_v55, %v6606_v42  ;;  %v5480_v26 = vsel %vm5448_vm6, %v11033_v25, %v6607_v60 }
 0x42a   : > { %5637 = vst.msk [vmem:[%s11055_s11 + $0x6c] sm:$0xf] %vm5609_vm7, %v6145_v5  ;;  %5636 = vst.msk [vmem:[%s11055_s11 + $0x68] sm:$0xf] %vm5609_vm7, %v6144_v16  ;;  %v6148_v39 = vpack.c.bf16 %v5479_v14, %v5479_v14  ;;  %v6149_v41 = vpack.c.bf16 %v5480_v26, %v5480_v26  ;;  %v6601_v40 = vunpack.i.l.bf16 %v6600_v28  ;;  %v4923_v27 = vmul.f32 %v12282_v19, %v12282_v19 }
 0x42b   : > { %v4977_v20 = vadd.f32 %v10987_v53, %v4975_v18  ;;  %v4978_v55 = vsel %vm1050_vm2, %v10909_v17, 0.0  ;;  %v5444_v25 = vsel %vm1124_vm4, %v12283_v3, %v6521_v32  ;;  %5634 = vst.msk [vmem:[%s11055_s11 + $0x60] sm:$0xf] %vm5609_vm7, %v6142_v13  ;;  %5635 = vst.msk [vmem:[%s11055_s11 + $0x64] sm:$0xf] %vm5609_vm7, %v6143_v12  ;;  %v5478_v53 = vsel %vm5448_vm6, %v11041_v43, %v6602_v58 }
 0x42c   : > { %5640 = vst.msk [vmem:[%s11055_s11 + $0x78] sm:$0xf] %vm5609_vm7, %v6148_v39  ;;  %5641 = vst.msk [vmem:[%s11055_s11 + $0x7c] sm:$0xf] %vm5609_vm7, %v6149_v41  ;;  %v5477_v17 = vsel %vm5448_vm6, %v5444_v25, %v6601_v40  ;;  %v6147_v56 = vpack.c.bf16 %v5478_v53, %v5478_v53  ;;  %v4924_v9 = vmul.f32 %v12284_v31, %v12284_v31  ;;  %v4980_v32 = vsel %vm1050_vm2, %v10913_v29, 0.0 }
 0x42d   : > { %v4979_v48 = vadd.f32 %v4978_v55, %v4977_v20  ;;  %v6146_v49 = vpack.c.bf16 %v5477_v17, %v5477_v17  ;;  %v4925_v43 = vmul.f32 %v12285_v2, %v12285_v2  ;;  %v4982_v37 = vsel %vm1050_vm2, %v4923_v27, 0.0 }
 0x42e   : > { %5639 = vst.msk [vmem:[%s11055_s11 + $0x74] sm:$0xf] %vm5609_vm7, %v6147_v56  ;;  %v4926_v7 = vmul.f32 %v12286_v4, %v12286_v4  ;;  %v4984_v21 = vsel %vm1050_vm2, %v4924_v9, 0.0 }
 0x42f   : > { %v4981_v47 = vadd.f32 %v4980_v32, %v4979_v48  ;;  %5638 = vst.msk [vmem:[%s11055_s11 + $0x70] sm:$0xf] %vm5609_vm7, %v6146_v49  ;;  %v4986_v29 = vsel %vm1050_vm2, %v4925_v43, 0.0 }
 0x430   : > { %v4988_v50 = vsel %vm1050_vm2, %v4926_v7, 0.0 }
 0x431   : > { %v4983_v36 = vadd.f32 %v4982_v37, %v4981_v47 }
 0x433   : > { %v4985_v24 = vadd.f32 %v4984_v21, %v4983_v36 }
 0x435   : > { %v4987_v8 = vadd.f32 %v4986_v29, %v4985_v24 }
 0x437   : > { %v4989_v62 = vadd.f32 %v4988_v50, %v4987_v8 }
 0x439   : > { %v4990_v38 = vrot.slane %v4989_v62, 4 }
 0x43b   : > { %v4991_v61 = vadd.f32 %v4990_v38, %v4989_v62 }
 0x43d   : > { %v4992_v6 = vrot.slane %v4991_v61, 2 }
 0x43f   : > { %v4993_v22 = vadd.f32 %v4992_v6, %v4991_v61 }
 0x441   : > { %v4994_v57 = vrot.slane %v4993_v22, 1 }
 0x443   : > { %v4995_v59 = vadd.f32 %v4994_v57, %v4993_v22 }
 0x445   : > { %v4996_v1 = vadd.f32 %v4995_v59, %v11163_v63 }
 0x447   : > { %4999 = vst.msk [vmem:[%s10058_s7 + $0x1] sm:$0x1] %vm4997_vm5, %v4996_v1 }
 0x448 PF: > { %s14_s12 = sadd.s32 1, %s6808_s12  }
 0x449   : > { %p11_p4 = scmp.ge.s32.totalorder %s14_s12, 4  }
 0x44b   :  { %13 = sbr.rel (!%p11_p4) target bundleno = 1 (0x1), region = 75 }

</bundles_post_ra>
